<compile_context>
chip_gen: v7x
topology: tpu7x:2x2x1
jax: 0.10.0
libtpu: 0.0.40
codegen_flags: <defaults>
</compile_context>

<pallas_src>
import math

import jax
import jax.numpy as jnp
from jax.experimental import pallas as pl
from jax.experimental.pallas import tpu as pltpu


# ----------------------------- small helpers --------------------------------------
def _cdiv(a, b):
    return -(-a // b)


def _round_up(x, m):
    return _cdiv(x, m) * m


# ----------------------------- upsample (glue) ------------------------------------
def _interp_matrix(s_in, s_out, dtype=jnp.float32):
    """1-D linear interpolation matrix with PyTorch align_corners=True semantics."""
    if s_out == 1:
        return jnp.zeros((1, s_in), jnp.float32).at[0, 0].set(1.0).astype(dtype)
    i = jnp.arange(s_out, dtype=jnp.float32)
    src = i * (s_in - 1) / (s_out - 1)
    lo = jnp.clip(jnp.floor(src).astype(jnp.int32), 0, s_in - 1)
    hi = jnp.clip(lo + 1, 0, s_in - 1)
    w_hi = src - lo.astype(jnp.float32)
    w_lo = 1.0 - w_hi
    rows = jnp.arange(s_out)
    a = jnp.zeros((s_out, s_in), jnp.float32)
    a = a.at[rows, lo].add(w_lo)
    a = a.at[rows, hi].add(w_hi)
    return a.astype(dtype)


def trilinear_upsample_align_corners(x, scale):
    """x: (N, C, D, H, W) -> (N, C, floor(D*s), floor(H*s), floor(W*s))."""
    # TODO(synk): upsample kept as plain-JAX separable interp matmuls (it is linear);
    # fusing it into the conv kernel would remove one ~8x-sized HBM write+read.
    _, _, d, h, w = x.shape
    do = int(math.floor(d * scale))
    ho = int(math.floor(h * scale))
    wo = int(math.floor(w * scale))
    ad = _interp_matrix(d, do, x.dtype)
    ah = _interp_matrix(h, ho, x.dtype)
    aw = _interp_matrix(w, wo, x.dtype)
    x = jnp.einsum('pd,ncdhw->ncphw', ad, x)
    x = jnp.einsum('qh,ncdhw->ncdqw', ah, x)
    x = jnp.einsum('rw,ncdhw->ncdhr', aw, x)
    return x


# ----------------------------- conv3d as Pallas direct conv -----------------------
def conv3d_pallas(x, weight, bias, stride, padding, *, compute_dtype=jnp.bfloat16):
    """x: (N, C_in, D, H, W); weight: (C_out, C_in, KD, KH, KW); bias: (C_out,)."""
    n, cin, d, h, w = x.shape
    cout, _, kd, kh, kw = weight.shape
    out_dtype = x.dtype

    # Cast first (halves the HBM traffic of the pad/transpose glue below), then zero-pad
    # the spatial dims once and flatten to (C_in, N*Dp*Hp*Wp) so the last axis is
    # lane-dense.  The padded spatial extents become the flat strides, so a conv tap
    # (zd, zh, zw) is a pure flat shift; junk columns (h>=Ho or w>=Wo) are cropped later.
    xp = jnp.pad(x.astype(compute_dtype),
                 ((0, 0), (0, 0),
                  (padding, padding), (padding, padding), (padding, padding)))
    dp, hp, wp = d + 2 * padding, h + 2 * padding, w + 2 * padding
    L = n * dp * hp * wp
    x_flat = jnp.transpose(xp, (1, 0, 2, 3, 4)).reshape(cin, L)

    # Tap shifts + tiny permuted weight (C_out x C_in per tap); big tensor untouched.
    shifts = [zd * hp * wp + zh * wp + zw
              for zd in range(kd) for zh in range(kh) for zw in range(kw)]
    taps = len(shifts)
    halo = shifts[-1]
    halo_pad = _round_up(max(halo, 1), 128)
    w_taps = jnp.transpose(weight, (2, 3, 4, 0, 1)).reshape(taps, cout, cin)
    w_taps = w_taps.astype(compute_dtype)
    b2 = bias.reshape(cout, 1).astype(jnp.float32)

    cbytes = jnp.dtype(compute_dtype).itemsize
    obytes = jnp.dtype(out_dtype).itemsize

    # ---- tile_m from a per-generation VMEM budget; keep >= 4 grid steps ------------
    try:
        vmem_cap = int(pltpu.get_tpu_info().vmem_capacity_bytes)
    except Exception:  # pragma: no cover - conservative fallback (v7x-sized)
        vmem_cap = 64 * 1024 * 1024
    budget = int(0.4 * vmem_cap)
    # per column: x double-buffer, auto-pipelined output double-buffer, f32 accumulator
    per_col = 2 * cin * cbytes + 2 * cout * obytes + cout * 4
    fixed = 2 * cin * halo_pad * cbytes + taps * cout * cin * cbytes + cout * 4
    tm = (budget - fixed) // max(per_col, 1)
    tm = max(512, min(int(tm), 8192))
    tm = (tm // 128) * 128
    tm = min(tm, _round_up(L, 128))
    while tm > 512 and _cdiv(L, tm) < 4:
        tm = max(128, ((tm // 2) // 128) * 128)

    raw_tiles = _cdiv(L, tm)
    n_outer = 2 if raw_tiles >= 4 else 1      # 2 chunks -> both v7x TensorCores busy
    n_inner = _cdiv(raw_tiles, n_outer)
    n_tiles = n_outer * n_inner
    win = tm + halo_pad
    total_cols = n_tiles * tm + halo_pad
    x_flat = jnp.pad(x_flat, ((0, 0), (0, total_cols - L)))   # small tail pad only

    def kernel(x_hbm, w_ref, b_ref, o_ref, xbuf, sem):
        o_idx = pl.program_id(0)
        i_idx = pl.program_id(1)
        tile = o_idx * n_inner + i_idx
        slot = i_idx & 1

        def start_fetch(t, s):
            col0 = pl.multiple_of(t * tm, 128)
            pltpu.make_async_copy(x_hbm.at[:, pl.ds(col0, win)],
                                  xbuf.at[s], sem.at[s]).start()

        # Prime the double-buffer at the start of each core's chunk (inner index 0),
        # which is megacore-safe since only the outer axis is "parallel".
        @pl.when(i_idx == 0)
        def _():
            start_fetch(tile, slot)

        # Wait for the current window.
        pltpu.make_async_copy(x_hbm.at[:, pl.ds(0, win)],
                              xbuf.at[slot], sem.at[slot]).wait()

        # Prefetch the next window into the other slot; overlaps with compute below.
        @pl.when(i_idx + 1 < n_inner)
        def _():
            start_fetch(tile + 1, 1 - slot)

        # Direct conv: taps are shifted in-VMEM slices (no im2col), f32 accumulation.
        acc = jnp.zeros((cout, tm), jnp.float32)
        for t in range(taps):
            xw = xbuf[slot, :, pl.ds(shifts[t], tm)]          # (C_in, tm), static shift
            acc = acc + jnp.dot(w_ref[t], xw, preferred_element_type=jnp.float32)
        o_ref[...] = (acc + b_ref[...]).astype(o_ref.dtype)

    out_flat = pl.pallas_call(
        kernel,
        out_shape=jax.ShapeDtypeStruct((cout, n_tiles * tm), out_dtype),
        grid=(n_outer, n_inner),
        in_specs=[
            pl.BlockSpec(memory_space=pl.ANY),                        # activation in HBM
            pl.BlockSpec((taps, cout, cin), lambda o, i: (0, 0, 0)),  # weights, resident
            pl.BlockSpec((cout, 1), lambda o, i: (0, 0)),             # bias, resident
        ],
        out_specs=pl.BlockSpec((cout, tm), lambda o, i: (0, o * n_inner + i)),
        scratch_shapes=[pltpu.VMEM((2, cin, win), compute_dtype),
                        pltpu.SemaphoreType.DMA((2,))],
        compiler_params=pltpu.CompilerParams(
            dimension_semantics=("parallel", "arbitrary"),
            vmem_limit_bytes=int(0.8 * vmem_cap)),
    )(x_flat, w_taps, b2)

    # Crop the padded-width flat layout back to the valid conv output.
    of = out_flat[:, :L].reshape(cout, n, dp, hp, wp)
    do1, ho1, wo1 = dp - kd + 1, hp - kh + 1, wp - kw + 1
    of = of[:, :, :do1, :ho1, :wo1]
    if stride != 1:
        # TODO(synk): stride>1 handled by computing the stride-1 conv and subsampling
        # (stride^3 extra MXU work); this module is normally used with stride=1.
        of = of[:, :, ::stride, ::stride, ::stride]
    return jnp.transpose(of, (1, 0, 2, 3, 4))        # -> (N, C_out, Do, Ho, Wo)


# ----------------------------- module wrapper --------------------------------------
class UpsampleConv3d:
    def __init__(self, in_channels, out_channels, kernel_size, stride, padding,
                 bias=True, upsample=None, *, key, compute_dtype=jnp.bfloat16):
        k1, k2 = jax.random.split(key)
        fan_in = in_channels * kernel_size ** 3
        bound = 1.0 / math.sqrt(fan_in)
        self.weight = jax.random.uniform(
            k1, (out_channels, in_channels, kernel_size, kernel_size, kernel_size),
            jnp.float32, -bound, bound)
        if bias:
            self.bias = jax.random.uniform(k2, (out_channels,), jnp.float32,
                                           -bound, bound)
        else:
            self.bias = jnp.zeros((out_channels,), jnp.float32)
        self.upsample = upsample
        self.stride = stride
        self.padding = padding
        self.compute_dtype = compute_dtype

    def __call__(self, x):
        x_in = x
        if self.upsample:
            x_in = trilinear_upsample_align_corners(x_in, self.upsample)
        return conv3d_pallas(x_in, self.weight, self.bias, self.stride, self.padding,
                             compute_dtype=self.compute_dtype)


if __name__ == "__main__":
    key = jax.random.PRNGKey(0)
    kx, kp = jax.random.split(key)

    # small shapes: N=2, C_in=4, D=H=W=8, C_out=8, k=3, stride=1, pad=1, upsample=2
    x = jax.random.normal(kx, (2, 4, 8, 8, 8), jnp.float32)
    mod = UpsampleConv3d(in_channels=4, out_channels=8, kernel_size=3, stride=1,
                         padding=1, bias=True, upsample=2, key=kp)

    out = jax.jit(mod.__call__)(x)
    out = jax.block_until_ready(out)
    assert out.shape == (2, 8, 16, 16, 16), out.shape
    assert out.dtype == jnp.float32

    # Correctness check against an XLA reference conv on the same upsampled input
    # (bf16 operands / f32 accumulation in the kernel => loose-but-meaningful tolerance).
    x_up = trilinear_upsample_align_corners(x, 2)
    ref = jax.lax.conv_general_dilated(
        x_up, mod.weight, window_strides=(1, 1, 1),
        padding=[(1, 1), (1, 1), (1, 1)],
        dimension_numbers=("NCDHW", "OIDHW", "NCDHW"),
        precision=jax.lax.Precision.HIGHEST)
    ref = ref + mod.bias.reshape(1, -1, 1, 1, 1)
    err = float(jnp.max(jnp.abs(out - ref)))
    assert err < 5e-2, f"max abs error too large: {err}"

    print("KERNEL_OK")
</pallas_src>

<mosaic_0001>
module attributes {stable_mosaic.version = 11 : i64} {
  func.func private @main(%arg0: i32) attributes {dimension_semantics = [#tpu.dimension_semantics<core_parallel>], iteration_bounds = array<i64: 2>, tpu.core_type = #tpu.core_type<sc_scalar_subcore>, window_params = []} {
    return
  }
}

module attributes {stable_mosaic.version = 11 : i64} {
  func.func private @main(%arg0: i32) attributes {dimension_semantics = [#tpu.dimension_semantics<core_parallel>], iteration_bounds = array<i64: 2>, tpu.core_type = #tpu.core_type<sc_scalar_subcore>, window_params = []} {
    return
  }
}

module attributes {stable_mosaic.version = 11 : i64} {
  func.func @kernel(%arg0: i32, %arg1: i32, %arg2: memref<4x13056xbf16, #tpu.memory_space<any>>, %arg3: memref<27x8x4xbf16, #tpu.memory_space<vmem>>, %arg4: memref<8x1xf32, #tpu.memory_space<vmem>>, %arg5: memref<8x2048xf32, #tpu.memory_space<vmem>>, %arg6: memref<2x4x2816xbf16, #tpu.memory_space<vmem>>, %arg7: memref<2x!tpu.dma_semaphore, #tpu.memory_space<semaphore_mem>>) attributes {dimension_semantics = [#tpu.dimension_semantics<parallel>, #tpu.dimension_semantics<arbitrary>], iteration_bounds = array<i64: 2, 3>, scalar_prefetch = 0 : i64, scratch_operands = 2 : i64, tpu.core_type = #tpu.core_type<tc>, window_params = [{}, {pipeline_mode = #tpu.pipeline_mode<synchronous>, transform_indices = @transform_1, window_bounds = array<i64: 27, 8, 4>}, {pipeline_mode = #tpu.pipeline_mode<synchronous>, transform_indices = @transform_2, window_bounds = array<i64: 8, 1>}, {transform_indices = @transform_3, window_bounds = array<i64: 8, 2048>}]} {
    %c3_i32 = arith.constant 3 : i32
    %0 = arith.muli %arg0, %c3_i32 : i32
    %1 = arith.addi %0, %arg1 : i32
    %c1_i32 = arith.constant 1 : i32
    %2 = arith.andi %arg1, %c1_i32 : i32
    %c0_i32 = arith.constant 0 : i32
    %3 = arith.cmpi eq, %arg1, %c0_i32 : i32
    %4 = arith.extui %3 : i1 to i32
    %c0_i32_0 = arith.constant 0 : i32
    %5 = arith.cmpi ne, %4, %c0_i32_0 : i32
    scf.if %5 {
      %c2048_i32 = arith.constant 2048 : i32
      %209 = arith.muli %1, %c2048_i32 : i32
      %210 = tpu.assume_multiple %209, 128 : i32
      %c0_i32_126 = arith.constant 0 : i32
      %211 = tpu.memref_slice %arg2[%c0_i32_126, %210] : memref<4x13056xbf16, #tpu.memory_space<any>> -> memref<4x2816xbf16, #tpu.memory_space<any>>
      %c0_i32_127 = arith.constant 0 : i32
      %c0_i32_128 = arith.constant 0 : i32
      %212 = tpu.memref_slice %arg6[%2, %c0_i32_127, %c0_i32_128] : memref<2x4x2816xbf16, #tpu.memory_space<vmem>> -> memref<1x4x2816xbf16, #tpu.memory_space<vmem>>
      %213 = tpu.memref_squeeze %212 : memref<1x4x2816xbf16, #tpu.memory_space<vmem>> -> memref<4x2816xbf16, #tpu.memory_space<vmem>>
      %214 = tpu.memref_slice %arg7[%2] : memref<2x!tpu.dma_semaphore, #tpu.memory_space<semaphore_mem>> -> memref<1x!tpu.dma_semaphore, #tpu.memory_space<semaphore_mem>>
      %215 = tpu.memref_squeeze %214 : memref<1x!tpu.dma_semaphore, #tpu.memory_space<semaphore_mem>> -> memref<!tpu.dma_semaphore, #tpu.memory_space<semaphore_mem>>
      tpu.enqueue_dma source(%211 : memref<4x2816xbf16, #tpu.memory_space<any>>) target(%213 : memref<4x2816xbf16, #tpu.memory_space<vmem>>) target_semaphore(%215 : memref<!tpu.dma_semaphore, #tpu.memory_space<semaphore_mem>>)
    } else {
    }
    %c0_i32_1 = arith.constant 0 : i32
    %c0_i32_2 = arith.constant 0 : i32
    %6 = tpu.memref_slice %arg2[%c0_i32_1, %c0_i32_2] : memref<4x13056xbf16, #tpu.memory_space<any>> -> memref<4x2816xbf16, #tpu.memory_space<any>>
    %c0_i32_3 = arith.constant 0 : i32
    %c0_i32_4 = arith.constant 0 : i32
    %7 = tpu.memref_slice %arg6[%2, %c0_i32_3, %c0_i32_4] : memref<2x4x2816xbf16, #tpu.memory_space<vmem>> -> memref<1x4x2816xbf16, #tpu.memory_space<vmem>>
    %8 = tpu.memref_squeeze %7 : memref<1x4x2816xbf16, #tpu.memory_space<vmem>> -> memref<4x2816xbf16, #tpu.memory_space<vmem>>
    %9 = tpu.memref_slice %arg7[%2] : memref<2x!tpu.dma_semaphore, #tpu.memory_space<semaphore_mem>> -> memref<1x!tpu.dma_semaphore, #tpu.memory_space<semaphore_mem>>
    %10 = tpu.memref_squeeze %9 : memref<1x!tpu.dma_semaphore, #tpu.memory_space<semaphore_mem>> -> memref<!tpu.dma_semaphore, #tpu.memory_space<semaphore_mem>>
    tpu.wait_dma2 semaphore(%10 : memref<!tpu.dma_semaphore, #tpu.memory_space<semaphore_mem>>) src(%6 : memref<4x2816xbf16, #tpu.memory_space<any>>) dst(%8 : memref<4x2816xbf16, #tpu.memory_space<vmem>>)
    %c1_i32_5 = arith.constant 1 : i32
    %11 = arith.addi %arg1, %c1_i32_5 : i32
    %c3_i32_6 = arith.constant 3 : i32
    %12 = arith.cmpi slt, %11, %c3_i32_6 : i32
    %13 = arith.extui %12 : i1 to i32
    %c0_i32_7 = arith.constant 0 : i32
    %14 = arith.cmpi ne, %13, %c0_i32_7 : i32
    scf.if %14 {
      %c1_i32_126 = arith.constant 1 : i32
      %209 = arith.addi %1, %c1_i32_126 : i32
      %c1_i32_127 = arith.constant 1 : i32
      %210 = arith.subi %c1_i32_127, %2 : i32
      %c2048_i32 = arith.constant 2048 : i32
      %211 = arith.muli %209, %c2048_i32 : i32
      %212 = tpu.assume_multiple %211, 128 : i32
      %c0_i32_128 = arith.constant 0 : i32
      %213 = tpu.memref_slice %arg2[%c0_i32_128, %212] : memref<4x13056xbf16, #tpu.memory_space<any>> -> memref<4x2816xbf16, #tpu.memory_space<any>>
      %c0_i32_129 = arith.constant 0 : i32
      %c0_i32_130 = arith.constant 0 : i32
      %214 = tpu.memref_slice %arg6[%210, %c0_i32_129, %c0_i32_130] : memref<2x4x2816xbf16, #tpu.memory_space<vmem>> -> memref<1x4x2816xbf16, #tpu.memory_space<vmem>>
      %215 = tpu.memref_squeeze %214 : memref<1x4x2816xbf16, #tpu.memory_space<vmem>> -> memref<4x2816xbf16, #tpu.memory_space<vmem>>
      %216 = tpu.memref_slice %arg7[%210] : memref<2x!tpu.dma_semaphore, #tpu.memory_space<semaphore_mem>> -> memref<1x!tpu.dma_semaphore, #tpu.memory_space<semaphore_mem>>
      %217 = tpu.memref_squeeze %216 : memref<1x!tpu.dma_semaphore, #tpu.memory_space<semaphore_mem>> -> memref<!tpu.dma_semaphore, #tpu.memory_space<semaphore_mem>>
      tpu.enqueue_dma source(%213 : memref<4x2816xbf16, #tpu.memory_space<any>>) target(%215 : memref<4x2816xbf16, #tpu.memory_space<vmem>>) target_semaphore(%217 : memref<!tpu.dma_semaphore, #tpu.memory_space<semaphore_mem>>)
    } else {
    }
    %cst = arith.constant 0.000000e+00 : f32
    %15 = vector.broadcast %cst : f32 to vector<8x2048xf32>
    %16 = arith.index_cast %2 : i32 to index
    %c0 = arith.constant 0 : index
    %c0_8 = arith.constant 0 : index
    %17 = vector.load %arg6[%16, %c0, %c0_8] : memref<2x4x2816xbf16, #tpu.memory_space<vmem>>, vector<1x4x2048xbf16>
    %18 = vector.shape_cast %17 : vector<1x4x2048xbf16> to vector<4x2048xbf16>
    %c0_9 = arith.constant 0 : index
    %c0_10 = arith.constant 0 : index
    %c0_11 = arith.constant 0 : index
    %19 = vector.load %arg3[%c0_9, %c0_10, %c0_11] : memref<27x8x4xbf16, #tpu.memory_space<vmem>>, vector<1x8x4xbf16>
    %20 = vector.shape_cast %19 : vector<1x8x4xbf16> to vector<8x4xbf16>
    %cst_12 = arith.constant dense<0.000000e+00> : vector<8x2048xf32>
    %21 = tpu.matmul %20, %18, %cst_12 {dimension_numbers = #tpu.dot_dimension_numbers<[1], [0], [0], [1], [0, 0, 1, 1], [], []>} : vector<8x4xbf16>, vector<4x2048xbf16>, vector<8x2048xf32> -> vector<8x2048xf32>
    %22 = arith.addf %15, %21 : vector<8x2048xf32>
    %23 = arith.index_cast %2 : i32 to index
    %c0_13 = arith.constant 0 : index
    %c1 = arith.constant 1 : index
    %24 = vector.load %arg6[%23, %c0_13, %c1] : memref<2x4x2816xbf16, #tpu.memory_space<vmem>>, vector<1x4x2048xbf16>
    %25 = vector.shape_cast %24 : vector<1x4x2048xbf16> to vector<4x2048xbf16>
    %c1_14 = arith.constant 1 : index
    %c0_15 = arith.constant 0 : index
    %c0_16 = arith.constant 0 : index
    %26 = vector.load %arg3[%c1_14, %c0_15, %c0_16] : memref<27x8x4xbf16, #tpu.memory_space<vmem>>, vector<1x8x4xbf16>
    %27 = vector.shape_cast %26 : vector<1x8x4xbf16> to vector<8x4xbf16>
    %cst_17 = arith.constant dense<0.000000e+00> : vector<8x2048xf32>
    %28 = tpu.matmul %27, %25, %cst_17 {dimension_numbers = #tpu.dot_dimension_numbers<[1], [0], [0], [1], [0, 0, 1, 1], [], []>} : vector<8x4xbf16>, vector<4x2048xbf16>, vector<8x2048xf32> -> vector<8x2048xf32>
    %29 = arith.addf %22, %28 : vector<8x2048xf32>
    %30 = arith.index_cast %2 : i32 to index
    %c0_18 = arith.constant 0 : index
    %c2 = arith.constant 2 : index
    %31 = vector.load %arg6[%30, %c0_18, %c2] : memref<2x4x2816xbf16, #tpu.memory_space<vmem>>, vector<1x4x2048xbf16>
    %32 = vector.shape_cast %31 : vector<1x4x2048xbf16> to vector<4x2048xbf16>
    %c2_19 = arith.constant 2 : index
    %c0_20 = arith.constant 0 : index
    %c0_21 = arith.constant 0 : index
    %33 = vector.load %arg3[%c2_19, %c0_20, %c0_21] : memref<27x8x4xbf16, #tpu.memory_space<vmem>>, vector<1x8x4xbf16>
    %34 = vector.shape_cast %33 : vector<1x8x4xbf16> to vector<8x4xbf16>
    %cst_22 = arith.constant dense<0.000000e+00> : vector<8x2048xf32>
    %35 = tpu.matmul %34, %32, %cst_22 {dimension_numbers = #tpu.dot_dimension_numbers<[1], [0], [0], [1], [0, 0, 1, 1], [], []>} : vector<8x4xbf16>, vector<4x2048xbf16>, vector<8x2048xf32> -> vector<8x2048xf32>
    %36 = arith.addf %29, %35 : vector<8x2048xf32>
    %37 = arith.index_cast %2 : i32 to index
    %c0_23 = arith.constant 0 : index
    %c18 = arith.constant 18 : index
    %38 = vector.load %arg6[%37, %c0_23, %c18] : memref<2x4x2816xbf16, #tpu.memory_space<vmem>>, vector<1x4x2048xbf16>
    %39 = vector.shape_cast %38 : vector<1x4x2048xbf16> to vector<4x2048xbf16>
    %c3 = arith.constant 3 : index
    %c0_24 = arith.constant 0 : index
    %c0_25 = arith.constant 0 : index
    %40 = vector.load %arg3[%c3, %c0_24, %c0_25] : memref<27x8x4xbf16, #tpu.memory_space<vmem>>, vector<1x8x4xbf16>
    %41 = vector.shape_cast %40 : vector<1x8x4xbf16> to vector<8x4xbf16>
    %cst_26 = arith.constant dense<0.000000e+00> : vector<8x2048xf32>
    %42 = tpu.matmul %41, %39, %cst_26 {dimension_numbers = #tpu.dot_dimension_numbers<[1], [0], [0], [1], [0, 0, 1, 1], [], []>} : vector<8x4xbf16>, vector<4x2048xbf16>, vector<8x2048xf32> -> vector<8x2048xf32>
    %43 = arith.addf %36, %42 : vector<8x2048xf32>
    %44 = arith.index_cast %2 : i32 to index
    %c0_27 = arith.constant 0 : index
    %c19 = arith.constant 19 : index
    %45 = vector.load %arg6[%44, %c0_27, %c19] : memref<2x4x2816xbf16, #tpu.memory_space<vmem>>, vector<1x4x2048xbf16>
    %46 = vector.shape_cast %45 : vector<1x4x2048xbf16> to vector<4x2048xbf16>
    %c4 = arith.constant 4 : index
    %c0_28 = arith.constant 0 : index
    %c0_29 = arith.constant 0 : index
    %47 = vector.load %arg3[%c4, %c0_28, %c0_29] : memref<27x8x4xbf16, #tpu.memory_space<vmem>>, vector<1x8x4xbf16>
    %48 = vector.shape_cast %47 : vector<1x8x4xbf16> to vector<8x4xbf16>
    %cst_30 = arith.constant dense<0.000000e+00> : vector<8x2048xf32>
    %49 = tpu.matmul %48, %46, %cst_30 {dimension_numbers = #tpu.dot_dimension_numbers<[1], [0], [0], [1], [0, 0, 1, 1], [], []>} : vector<8x4xbf16>, vector<4x2048xbf16>, vector<8x2048xf32> -> vector<8x2048xf32>
    %50 = arith.addf %43, %49 : vector<8x2048xf32>
    %51 = arith.index_cast %2 : i32 to index
    %c0_31 = arith.constant 0 : index
    %c20 = arith.constant 20 : index
    %52 = vector.load %arg6[%51, %c0_31, %c20] : memref<2x4x2816xbf16, #tpu.memory_space<vmem>>, vector<1x4x2048xbf16>
    %53 = vector.shape_cast %52 : vector<1x4x2048xbf16> to vector<4x2048xbf16>
    %c5 = arith.constant 5 : index
    %c0_32 = arith.constant 0 : index
    %c0_33 = arith.constant 0 : index
    %54 = vector.load %arg3[%c5, %c0_32, %c0_33] : memref<27x8x4xbf16, #tpu.memory_space<vmem>>, vector<1x8x4xbf16>
    %55 = vector.shape_cast %54 : vector<1x8x4xbf16> to vector<8x4xbf16>
    %cst_34 = arith.constant dense<0.000000e+00> : vector<8x2048xf32>
    %56 = tpu.matmul %55, %53, %cst_34 {dimension_numbers = #tpu.dot_dimension_numbers<[1], [0], [0], [1], [0, 0, 1, 1], [], []>} : vector<8x4xbf16>, vector<4x2048xbf16>, vector<8x2048xf32> -> vector<8x2048xf32>
    %57 = arith.addf %50, %56 : vector<8x2048xf32>
    %58 = arith.index_cast %2 : i32 to index
    %c0_35 = arith.constant 0 : index
    %c36 = arith.constant 36 : index
    %59 = vector.load %arg6[%58, %c0_35, %c36] : memref<2x4x2816xbf16, #tpu.memory_space<vmem>>, vector<1x4x2048xbf16>
    %60 = vector.shape_cast %59 : vector<1x4x2048xbf16> to vector<4x2048xbf16>
    %c6 = arith.constant 6 : index
    %c0_36 = arith.constant 0 : index
    %c0_37 = arith.constant 0 : index
    %61 = vector.load %arg3[%c6, %c0_36, %c0_37] : memref<27x8x4xbf16, #tpu.memory_space<vmem>>, vector<1x8x4xbf16>
    %62 = vector.shape_cast %61 : vector<1x8x4xbf16> to vector<8x4xbf16>
    %cst_38 = arith.constant dense<0.000000e+00> : vector<8x2048xf32>
    %63 = tpu.matmul %62, %60, %cst_38 {dimension_numbers = #tpu.dot_dimension_numbers<[1], [0], [0], [1], [0, 0, 1, 1], [], []>} : vector<8x4xbf16>, vector<4x2048xbf16>, vector<8x2048xf32> -> vector<8x2048xf32>
    %64 = arith.addf %57, %63 : vector<8x2048xf32>
    %65 = arith.index_cast %2 : i32 to index
    %c0_39 = arith.constant 0 : index
    %c37 = arith.constant 37 : index
    %66 = vector.load %arg6[%65, %c0_39, %c37] : memref<2x4x2816xbf16, #tpu.memory_space<vmem>>, vector<1x4x2048xbf16>
    %67 = vector.shape_cast %66 : vector<1x4x2048xbf16> to vector<4x2048xbf16>
    %c7 = arith.constant 7 : index
    %c0_40 = arith.constant 0 : index
    %c0_41 = arith.constant 0 : index
    %68 = vector.load %arg3[%c7, %c0_40, %c0_41] : memref<27x8x4xbf16, #tpu.memory_space<vmem>>, vector<1x8x4xbf16>
    %69 = vector.shape_cast %68 : vector<1x8x4xbf16> to vector<8x4xbf16>
    %cst_42 = arith.constant dense<0.000000e+00> : vector<8x2048xf32>
    %70 = tpu.matmul %69, %67, %cst_42 {dimension_numbers = #tpu.dot_dimension_numbers<[1], [0], [0], [1], [0, 0, 1, 1], [], []>} : vector<8x4xbf16>, vector<4x2048xbf16>, vector<8x2048xf32> -> vector<8x2048xf32>
    %71 = arith.addf %64, %70 : vector<8x2048xf32>
    %72 = arith.index_cast %2 : i32 to index
    %c0_43 = arith.constant 0 : index
    %c38 = arith.constant 38 : index
    %73 = vector.load %arg6[%72, %c0_43, %c38] : memref<2x4x2816xbf16, #tpu.memory_space<vmem>>, vector<1x4x2048xbf16>
    %74 = vector.shape_cast %73 : vector<1x4x2048xbf16> to vector<4x2048xbf16>
    %c8 = arith.constant 8 : index
    %c0_44 = arith.constant 0 : index
    %c0_45 = arith.constant 0 : index
    %75 = vector.load %arg3[%c8, %c0_44, %c0_45] : memref<27x8x4xbf16, #tpu.memory_space<vmem>>, vector<1x8x4xbf16>
    %76 = vector.shape_cast %75 : vector<1x8x4xbf16> to vector<8x4xbf16>
    %cst_46 = arith.constant dense<0.000000e+00> : vector<8x2048xf32>
    %77 = tpu.matmul %76, %74, %cst_46 {dimension_numbers = #tpu.dot_dimension_numbers<[1], [0], [0], [1], [0, 0, 1, 1], [], []>} : vector<8x4xbf16>, vector<4x2048xbf16>, vector<8x2048xf32> -> vector<8x2048xf32>
    %78 = arith.addf %71, %77 : vector<8x2048xf32>
    %79 = arith.index_cast %2 : i32 to index
    %c0_47 = arith.constant 0 : index
    %c324 = arith.constant 324 : index
    %80 = vector.load %arg6[%79, %c0_47, %c324] : memref<2x4x2816xbf16, #tpu.memory_space<vmem>>, vector<1x4x2048xbf16>
    %81 = vector.shape_cast %80 : vector<1x4x2048xbf16> to vector<4x2048xbf16>
    %c9 = arith.constant 9 : index
    %c0_48 = arith.constant 0 : index
    %c0_49 = arith.constant 0 : index
    %82 = vector.load %arg3[%c9, %c0_48, %c0_49] : memref<27x8x4xbf16, #tpu.memory_space<vmem>>, vector<1x8x4xbf16>
    %83 = vector.shape_cast %82 : vector<1x8x4xbf16> to vector<8x4xbf16>
    %cst_50 = arith.constant dense<0.000000e+00> : vector<8x2048xf32>
    %84 = tpu.matmul %83, %81, %cst_50 {dimension_numbers = #tpu.dot_dimension_numbers<[1], [0], [0], [1], [0, 0, 1, 1], [], []>} : vector<8x4xbf16>, vector<4x2048xbf16>, vector<8x2048xf32> -> vector<8x2048xf32>
    %85 = arith.addf %78, %84 : vector<8x2048xf32>
    %86 = arith.index_cast %2 : i32 to index
    %c0_51 = arith.constant 0 : index
    %c325 = arith.constant 325 : index
    %87 = vector.load %arg6[%86, %c0_51, %c325] : memref<2x4x2816xbf16, #tpu.memory_space<vmem>>, vector<1x4x2048xbf16>
    %88 = vector.shape_cast %87 : vector<1x4x2048xbf16> to vector<4x2048xbf16>
    %c10 = arith.constant 10 : index
    %c0_52 = arith.constant 0 : index
    %c0_53 = arith.constant 0 : index
    %89 = vector.load %arg3[%c10, %c0_52, %c0_53] : memref<27x8x4xbf16, #tpu.memory_space<vmem>>, vector<1x8x4xbf16>
    %90 = vector.shape_cast %89 : vector<1x8x4xbf16> to vector<8x4xbf16>
    %cst_54 = arith.constant dense<0.000000e+00> : vector<8x2048xf32>
    %91 = tpu.matmul %90, %88, %cst_54 {dimension_numbers = #tpu.dot_dimension_numbers<[1], [0], [0], [1], [0, 0, 1, 1], [], []>} : vector<8x4xbf16>, vector<4x2048xbf16>, vector<8x2048xf32> -> vector<8x2048xf32>
    %92 = arith.addf %85, %91 : vector<8x2048xf32>
    %93 = arith.index_cast %2 : i32 to index
    %c0_55 = arith.constant 0 : index
    %c326 = arith.constant 326 : index
    %94 = vector.load %arg6[%93, %c0_55, %c326] : memref<2x4x2816xbf16, #tpu.memory_space<vmem>>, vector<1x4x2048xbf16>
    %95 = vector.shape_cast %94 : vector<1x4x2048xbf16> to vector<4x2048xbf16>
    %c11 = arith.constant 11 : index
    %c0_56 = arith.constant 0 : index
    %c0_57 = arith.constant 0 : index
    %96 = vector.load %arg3[%c11, %c0_56, %c0_57] : memref<27x8x4xbf16, #tpu.memory_space<vmem>>, vector<1x8x4xbf16>
    %97 = vector.shape_cast %96 : vector<1x8x4xbf16> to vector<8x4xbf16>
    %cst_58 = arith.constant dense<0.000000e+00> : vector<8x2048xf32>
    %98 = tpu.matmul %97, %95, %cst_58 {dimension_numbers = #tpu.dot_dimension_numbers<[1], [0], [0], [1], [0, 0, 1, 1], [], []>} : vector<8x4xbf16>, vector<4x2048xbf16>, vector<8x2048xf32> -> vector<8x2048xf32>
    %99 = arith.addf %92, %98 : vector<8x2048xf32>
    %100 = arith.index_cast %2 : i32 to index
    %c0_59 = arith.constant 0 : index
    %c342 = arith.constant 342 : index
    %101 = vector.load %arg6[%100, %c0_59, %c342] : memref<2x4x2816xbf16, #tpu.memory_space<vmem>>, vector<1x4x2048xbf16>
    %102 = vector.shape_cast %101 : vector<1x4x2048xbf16> to vector<4x2048xbf16>
    %c12 = arith.constant 12 : index
    %c0_60 = arith.constant 0 : index
    %c0_61 = arith.constant 0 : index
    %103 = vector.load %arg3[%c12, %c0_60, %c0_61] : memref<27x8x4xbf16, #tpu.memory_space<vmem>>, vector<1x8x4xbf16>
    %104 = vector.shape_cast %103 : vector<1x8x4xbf16> to vector<8x4xbf16>
    %cst_62 = arith.constant dense<0.000000e+00> : vector<8x2048xf32>
    %105 = tpu.matmul %104, %102, %cst_62 {dimension_numbers = #tpu.dot_dimension_numbers<[1], [0], [0], [1], [0, 0, 1, 1], [], []>} : vector<8x4xbf16>, vector<4x2048xbf16>, vector<8x2048xf32> -> vector<8x2048xf32>
    %106 = arith.addf %99, %105 : vector<8x2048xf32>
    %107 = arith.index_cast %2 : i32 to index
    %c0_63 = arith.constant 0 : index
    %c343 = arith.constant 343 : index
    %108 = vector.load %arg6[%107, %c0_63, %c343] : memref<2x4x2816xbf16, #tpu.memory_space<vmem>>, vector<1x4x2048xbf16>
    %109 = vector.shape_cast %108 : vector<1x4x2048xbf16> to vector<4x2048xbf16>
    %c13 = arith.constant 13 : index
    %c0_64 = arith.constant 0 : index
    %c0_65 = arith.constant 0 : index
    %110 = vector.load %arg3[%c13, %c0_64, %c0_65] : memref<27x8x4xbf16, #tpu.memory_space<vmem>>, vector<1x8x4xbf16>
    %111 = vector.shape_cast %110 : vector<1x8x4xbf16> to vector<8x4xbf16>
    %cst_66 = arith.constant dense<0.000000e+00> : vector<8x2048xf32>
    %112 = tpu.matmul %111, %109, %cst_66 {dimension_numbers = #tpu.dot_dimension_numbers<[1], [0], [0], [1], [0, 0, 1, 1], [], []>} : vector<8x4xbf16>, vector<4x2048xbf16>, vector<8x2048xf32> -> vector<8x2048xf32>
    %113 = arith.addf %106, %112 : vector<8x2048xf32>
    %114 = arith.index_cast %2 : i32 to index
    %c0_67 = arith.constant 0 : index
    %c344 = arith.constant 344 : index
    %115 = vector.load %arg6[%114, %c0_67, %c344] : memref<2x4x2816xbf16, #tpu.memory_space<vmem>>, vector<1x4x2048xbf16>
    %116 = vector.shape_cast %115 : vector<1x4x2048xbf16> to vector<4x2048xbf16>
    %c14 = arith.constant 14 : index
    %c0_68 = arith.constant 0 : index
    %c0_69 = arith.constant 0 : index
    %117 = vector.load %arg3[%c14, %c0_68, %c0_69] : memref<27x8x4xbf16, #tpu.memory_space<vmem>>, vector<1x8x4xbf16>
    %118 = vector.shape_cast %117 : vector<1x8x4xbf16> to vector<8x4xbf16>
    %cst_70 = arith.constant dense<0.000000e+00> : vector<8x2048xf32>
    %119 = tpu.matmul %118, %116, %cst_70 {dimension_numbers = #tpu.dot_dimension_numbers<[1], [0], [0], [1], [0, 0, 1, 1], [], []>} : vector<8x4xbf16>, vector<4x2048xbf16>, vector<8x2048xf32> -> vector<8x2048xf32>
    %120 = arith.addf %113, %119 : vector<8x2048xf32>
    %121 = arith.index_cast %2 : i32 to index
    %c0_71 = arith.constant 0 : index
    %c360 = arith.constant 360 : index
    %122 = vector.load %arg6[%121, %c0_71, %c360] : memref<2x4x2816xbf16, #tpu.memory_space<vmem>>, vector<1x4x2048xbf16>
    %123 = vector.shape_cast %122 : vector<1x4x2048xbf16> to vector<4x2048xbf16>
    %c15 = arith.constant 15 : index
    %c0_72 = arith.constant 0 : index
    %c0_73 = arith.constant 0 : index
    %124 = vector.load %arg3[%c15, %c0_72, %c0_73] : memref<27x8x4xbf16, #tpu.memory_space<vmem>>, vector<1x8x4xbf16>
    %125 = vector.shape_cast %124 : vector<1x8x4xbf16> to vector<8x4xbf16>
    %cst_74 = arith.constant dense<0.000000e+00> : vector<8x2048xf32>
    %126 = tpu.matmul %125, %123, %cst_74 {dimension_numbers = #tpu.dot_dimension_numbers<[1], [0], [0], [1], [0, 0, 1, 1], [], []>} : vector<8x4xbf16>, vector<4x2048xbf16>, vector<8x2048xf32> -> vector<8x2048xf32>
    %127 = arith.addf %120, %126 : vector<8x2048xf32>
    %128 = arith.index_cast %2 : i32 to index
    %c0_75 = arith.constant 0 : index
    %c361 = arith.constant 361 : index
    %129 = vector.load %arg6[%128, %c0_75, %c361] : memref<2x4x2816xbf16, #tpu.memory_space<vmem>>, vector<1x4x2048xbf16>
    %130 = vector.shape_cast %129 : vector<1x4x2048xbf16> to vector<4x2048xbf16>
    %c16 = arith.constant 16 : index
    %c0_76 = arith.constant 0 : index
    %c0_77 = arith.constant 0 : index
    %131 = vector.load %arg3[%c16, %c0_76, %c0_77] : memref<27x8x4xbf16, #tpu.memory_space<vmem>>, vector<1x8x4xbf16>
    %132 = vector.shape_cast %131 : vector<1x8x4xbf16> to vector<8x4xbf16>
    %cst_78 = arith.constant dense<0.000000e+00> : vector<8x2048xf32>
    %133 = tpu.matmul %132, %130, %cst_78 {dimension_numbers = #tpu.dot_dimension_numbers<[1], [0], [0], [1], [0, 0, 1, 1], [], []>} : vector<8x4xbf16>, vector<4x2048xbf16>, vector<8x2048xf32> -> vector<8x2048xf32>
    %134 = arith.addf %127, %133 : vector<8x2048xf32>
    %135 = arith.index_cast %2 : i32 to index
    %c0_79 = arith.constant 0 : index
    %c362 = arith.constant 362 : index
    %136 = vector.load %arg6[%135, %c0_79, %c362] : memref<2x4x2816xbf16, #tpu.memory_space<vmem>>, vector<1x4x2048xbf16>
    %137 = vector.shape_cast %136 : vector<1x4x2048xbf16> to vector<4x2048xbf16>
    %c17 = arith.constant 17 : index
    %c0_80 = arith.constant 0 : index
    %c0_81 = arith.constant 0 : index
    %138 = vector.load %arg3[%c17, %c0_80, %c0_81] : memref<27x8x4xbf16, #tpu.memory_space<vmem>>, vector<1x8x4xbf16>
    %139 = vector.shape_cast %138 : vector<1x8x4xbf16> to vector<8x4xbf16>
    %cst_82 = arith.constant dense<0.000000e+00> : vector<8x2048xf32>
    %140 = tpu.matmul %139, %137, %cst_82 {dimension_numbers = #tpu.dot_dimension_numbers<[1], [0], [0], [1], [0, 0, 1, 1], [], []>} : vector<8x4xbf16>, vector<4x2048xbf16>, vector<8x2048xf32> -> vector<8x2048xf32>
    %141 = arith.addf %134, %140 : vector<8x2048xf32>
    %142 = arith.index_cast %2 : i32 to index
    %c0_83 = arith.constant 0 : index
    %c648 = arith.constant 648 : index
    %143 = vector.load %arg6[%142, %c0_83, %c648] : memref<2x4x2816xbf16, #tpu.memory_space<vmem>>, vector<1x4x2048xbf16>
    %144 = vector.shape_cast %143 : vector<1x4x2048xbf16> to vector<4x2048xbf16>
    %c18_84 = arith.constant 18 : index
    %c0_85 = arith.constant 0 : index
    %c0_86 = arith.constant 0 : index
    %145 = vector.load %arg3[%c18_84, %c0_85, %c0_86] : memref<27x8x4xbf16, #tpu.memory_space<vmem>>, vector<1x8x4xbf16>
    %146 = vector.shape_cast %145 : vector<1x8x4xbf16> to vector<8x4xbf16>
    %cst_87 = arith.constant dense<0.000000e+00> : vector<8x2048xf32>
    %147 = tpu.matmul %146, %144, %cst_87 {dimension_numbers = #tpu.dot_dimension_numbers<[1], [0], [0], [1], [0, 0, 1, 1], [], []>} : vector<8x4xbf16>, vector<4x2048xbf16>, vector<8x2048xf32> -> vector<8x2048xf32>
    %148 = arith.addf %141, %147 : vector<8x2048xf32>
    %149 = arith.index_cast %2 : i32 to index
    %c0_88 = arith.constant 0 : index
    %c649 = arith.constant 649 : index
    %150 = vector.load %arg6[%149, %c0_88, %c649] : memref<2x4x2816xbf16, #tpu.memory_space<vmem>>, vector<1x4x2048xbf16>
    %151 = vector.shape_cast %150 : vector<1x4x2048xbf16> to vector<4x2048xbf16>
    %c19_89 = arith.constant 19 : index
    %c0_90 = arith.constant 0 : index
    %c0_91 = arith.constant 0 : index
    %152 = vector.load %arg3[%c19_89, %c0_90, %c0_91] : memref<27x8x4xbf16, #tpu.memory_space<vmem>>, vector<1x8x4xbf16>
    %153 = vector.shape_cast %152 : vector<1x8x4xbf16> to vector<8x4xbf16>
    %cst_92 = arith.constant dense<0.000000e+00> : vector<8x2048xf32>
    %154 = tpu.matmul %153, %151, %cst_92 {dimension_numbers = #tpu.dot_dimension_numbers<[1], [0], [0], [1], [0, 0, 1, 1], [], []>} : vector<8x4xbf16>, vector<4x2048xbf16>, vector<8x2048xf32> -> vector<8x2048xf32>
    %155 = arith.addf %148, %154 : vector<8x2048xf32>
    %156 = arith.index_cast %2 : i32 to index
    %c0_93 = arith.constant 0 : index
    %c650 = arith.constant 650 : index
    %157 = vector.load %arg6[%156, %c0_93, %c650] : memref<2x4x2816xbf16, #tpu.memory_space<vmem>>, vector<1x4x2048xbf16>
    %158 = vector.shape_cast %157 : vector<1x4x2048xbf16> to vector<4x2048xbf16>
    %c20_94 = arith.constant 20 : index
    %c0_95 = arith.constant 0 : index
    %c0_96 = arith.constant 0 : index
    %159 = vector.load %arg3[%c20_94, %c0_95, %c0_96] : memref<27x8x4xbf16, #tpu.memory_space<vmem>>, vector<1x8x4xbf16>
    %160 = vector.shape_cast %159 : vector<1x8x4xbf16> to vector<8x4xbf16>
    %cst_97 = arith.constant dense<0.000000e+00> : vector<8x2048xf32>
    %161 = tpu.matmul %160, %158, %cst_97 {dimension_numbers = #tpu.dot_dimension_numbers<[1], [0], [0], [1], [0, 0, 1, 1], [], []>} : vector<8x4xbf16>, vector<4x2048xbf16>, vector<8x2048xf32> -> vector<8x2048xf32>
    %162 = arith.addf %155, %161 : vector<8x2048xf32>
    %163 = arith.index_cast %2 : i32 to index
    %c0_98 = arith.constant 0 : index
    %c666 = arith.constant 666 : index
    %164 = vector.load %arg6[%163, %c0_98, %c666] : memref<2x4x2816xbf16, #tpu.memory_space<vmem>>, vector<1x4x2048xbf16>
    %165 = vector.shape_cast %164 : vector<1x4x2048xbf16> to vector<4x2048xbf16>
    %c21 = arith.constant 21 : index
    %c0_99 = arith.constant 0 : index
    %c0_100 = arith.constant 0 : index
    %166 = vector.load %arg3[%c21, %c0_99, %c0_100] : memref<27x8x4xbf16, #tpu.memory_space<vmem>>, vector<1x8x4xbf16>
    %167 = vector.shape_cast %166 : vector<1x8x4xbf16> to vector<8x4xbf16>
    %cst_101 = arith.constant dense<0.000000e+00> : vector<8x2048xf32>
    %168 = tpu.matmul %167, %165, %cst_101 {dimension_numbers = #tpu.dot_dimension_numbers<[1], [0], [0], [1], [0, 0, 1, 1], [], []>} : vector<8x4xbf16>, vector<4x2048xbf16>, vector<8x2048xf32> -> vector<8x2048xf32>
    %169 = arith.addf %162, %168 : vector<8x2048xf32>
    %170 = arith.index_cast %2 : i32 to index
    %c0_102 = arith.constant 0 : index
    %c667 = arith.constant 667 : index
    %171 = vector.load %arg6[%170, %c0_102, %c667] : memref<2x4x2816xbf16, #tpu.memory_space<vmem>>, vector<1x4x2048xbf16>
    %172 = vector.shape_cast %171 : vector<1x4x2048xbf16> to vector<4x2048xbf16>
    %c22 = arith.constant 22 : index
    %c0_103 = arith.constant 0 : index
    %c0_104 = arith.constant 0 : index
    %173 = vector.load %arg3[%c22, %c0_103, %c0_104] : memref<27x8x4xbf16, #tpu.memory_space<vmem>>, vector<1x8x4xbf16>
    %174 = vector.shape_cast %173 : vector<1x8x4xbf16> to vector<8x4xbf16>
    %cst_105 = arith.constant dense<0.000000e+00> : vector<8x2048xf32>
    %175 = tpu.matmul %174, %172, %cst_105 {dimension_numbers = #tpu.dot_dimension_numbers<[1], [0], [0], [1], [0, 0, 1, 1], [], []>} : vector<8x4xbf16>, vector<4x2048xbf16>, vector<8x2048xf32> -> vector<8x2048xf32>
    %176 = arith.addf %169, %175 : vector<8x2048xf32>
    %177 = arith.index_cast %2 : i32 to index
    %c0_106 = arith.constant 0 : index
    %c668 = arith.constant 668 : index
    %178 = vector.load %arg6[%177, %c0_106, %c668] : memref<2x4x2816xbf16, #tpu.memory_space<vmem>>, vector<1x4x2048xbf16>
    %179 = vector.shape_cast %178 : vector<1x4x2048xbf16> to vector<4x2048xbf16>
    %c23 = arith.constant 23 : index
    %c0_107 = arith.constant 0 : index
    %c0_108 = arith.constant 0 : index
    %180 = vector.load %arg3[%c23, %c0_107, %c0_108] : memref<27x8x4xbf16, #tpu.memory_space<vmem>>, vector<1x8x4xbf16>
    %181 = vector.shape_cast %180 : vector<1x8x4xbf16> to vector<8x4xbf16>
    %cst_109 = arith.constant dense<0.000000e+00> : vector<8x2048xf32>
    %182 = tpu.matmul %181, %179, %cst_109 {dimension_numbers = #tpu.dot_dimension_numbers<[1], [0], [0], [1], [0, 0, 1, 1], [], []>} : vector<8x4xbf16>, vector<4x2048xbf16>, vector<8x2048xf32> -> vector<8x2048xf32>
    %183 = arith.addf %176, %182 : vector<8x2048xf32>
    %184 = arith.index_cast %2 : i32 to index
    %c0_110 = arith.constant 0 : index
    %c684 = arith.constant 684 : index
    %185 = vector.load %arg6[%184, %c0_110, %c684] : memref<2x4x2816xbf16, #tpu.memory_space<vmem>>, vector<1x4x2048xbf16>
    %186 = vector.shape_cast %185 : vector<1x4x2048xbf16> to vector<4x2048xbf16>
    %c24 = arith.constant 24 : index
    %c0_111 = arith.constant 0 : index
    %c0_112 = arith.constant 0 : index
    %187 = vector.load %arg3[%c24, %c0_111, %c0_112] : memref<27x8x4xbf16, #tpu.memory_space<vmem>>, vector<1x8x4xbf16>
    %188 = vector.shape_cast %187 : vector<1x8x4xbf16> to vector<8x4xbf16>
    %cst_113 = arith.constant dense<0.000000e+00> : vector<8x2048xf32>
    %189 = tpu.matmul %188, %186, %cst_113 {dimension_numbers = #tpu.dot_dimension_numbers<[1], [0], [0], [1], [0, 0, 1, 1], [], []>} : vector<8x4xbf16>, vector<4x2048xbf16>, vector<8x2048xf32> -> vector<8x2048xf32>
    %190 = arith.addf %183, %189 : vector<8x2048xf32>
    %191 = arith.index_cast %2 : i32 to index
    %c0_114 = arith.constant 0 : index
    %c685 = arith.constant 685 : index
    %192 = vector.load %arg6[%191, %c0_114, %c685] : memref<2x4x2816xbf16, #tpu.memory_space<vmem>>, vector<1x4x2048xbf16>
    %193 = vector.shape_cast %192 : vector<1x4x2048xbf16> to vector<4x2048xbf16>
    %c25 = arith.constant 25 : index
    %c0_115 = arith.constant 0 : index
    %c0_116 = arith.constant 0 : index
    %194 = vector.load %arg3[%c25, %c0_115, %c0_116] : memref<27x8x4xbf16, #tpu.memory_space<vmem>>, vector<1x8x4xbf16>
    %195 = vector.shape_cast %194 : vector<1x8x4xbf16> to vector<8x4xbf16>
    %cst_117 = arith.constant dense<0.000000e+00> : vector<8x2048xf32>
    %196 = tpu.matmul %195, %193, %cst_117 {dimension_numbers = #tpu.dot_dimension_numbers<[1], [0], [0], [1], [0, 0, 1, 1], [], []>} : vector<8x4xbf16>, vector<4x2048xbf16>, vector<8x2048xf32> -> vector<8x2048xf32>
    %197 = arith.addf %190, %196 : vector<8x2048xf32>
    %198 = arith.index_cast %2 : i32 to index
    %c0_118 = arith.constant 0 : index
    %c686 = arith.constant 686 : index
    %199 = vector.load %arg6[%198, %c0_118, %c686] : memref<2x4x2816xbf16, #tpu.memory_space<vmem>>, vector<1x4x2048xbf16>
    %200 = vector.shape_cast %199 : vector<1x4x2048xbf16> to vector<4x2048xbf16>
    %c26 = arith.constant 26 : index
    %c0_119 = arith.constant 0 : index
    %c0_120 = arith.constant 0 : index
    %201 = vector.load %arg3[%c26, %c0_119, %c0_120] : memref<27x8x4xbf16, #tpu.memory_space<vmem>>, vector<1x8x4xbf16>
    %202 = vector.shape_cast %201 : vector<1x8x4xbf16> to vector<8x4xbf16>
    %cst_121 = arith.constant dense<0.000000e+00> : vector<8x2048xf32>
    %203 = tpu.matmul %202, %200, %cst_121 {dimension_numbers = #tpu.dot_dimension_numbers<[1], [0], [0], [1], [0, 0, 1, 1], [], []>} : vector<8x4xbf16>, vector<4x2048xbf16>, vector<8x2048xf32> -> vector<8x2048xf32>
    %204 = arith.addf %197, %203 : vector<8x2048xf32>
    %c0_122 = arith.constant 0 : index
    %c0_123 = arith.constant 0 : index
    %205 = vector.load %arg4[%c0_122, %c0_123] : memref<8x1xf32, #tpu.memory_space<vmem>>, vector<8x1xf32>
    %206 = vector.broadcast %205 : vector<8x1xf32> to vector<8x2048xf32>
    %207 = arith.addf %204, %206 : vector<8x2048xf32>
    %c0_124 = arith.constant 0 : index
    %c0_125 = arith.constant 0 : index
    %208 = vector.load %arg5[%c0_124, %c0_125] : memref<8x2048xf32, #tpu.memory_space<vmem>>, vector<8x2048xf32>
    tpu.vector_store %arg5[%c0_124, %c0_125], %207 {strides = array<i32>} : memref<8x2048xf32, #tpu.memory_space<vmem>>, vector<8x2048xf32>,
    return
  }
  func.func @transform_1(%arg0: i32, %arg1: i32) -> (i32, i32, i32) {
    %c0_i32 = arith.constant 0 : i32
    %c0_i32_0 = arith.constant 0 : i32
    %c0_i32_1 = arith.constant 0 : i32
    %c0_i32_2 = arith.constant 0 : i32
    return %c0_i32, %c0_i32_0, %c0_i32_1 : i32, i32, i32
  }
  func.func @transform_2(%arg0: i32, %arg1: i32) -> (i32, i32) {
    %c0_i32 = arith.constant 0 : i32
    %c0_i32_0 = arith.constant 0 : i32
    %c0_i32_1 = arith.constant 0 : i32
    return %c0_i32, %c0_i32_0 : i32, i32
  }
  func.func @transform_3(%arg0: i32, %arg1: i32) -> (i32, i32) {
    %c3_i32 = arith.constant 3 : i32
    %0 = arith.muli %arg0, %c3_i32 : i32
    %1 = arith.addi %0, %arg1 : i32
    %c0_i32 = arith.constant 0 : i32
    %c0_i32_0 = arith.constant 0 : i32
    return %c0_i32, %1 : i32, i32
  }
}

</mosaic_0001>

<bundles_post_ra>
// kernel: a_call__.1
= control target key start
LH: loop header
LB: loop body
LE: loop exit
PB: predicated region body
PF: predicated region fallthrough
CT: control target
= control target key end

     0   :  { %s15394_s12 = smov 0   ;;  %s15396_s13 = smov 0   ;;  %s20048_s0 = inlined_call_operand.vmem [shape: bf16[4,13056], index: 0, kind: input, shape index: {}]   ;;  %s20049_s1 = inlined_call_operand.vmem [shape: bf16[27,8,4], index: 1, kind: input, shape index: {}]   ;;  %s20050_s2 = inlined_call_operand.vmem [shape: f32[8,1], index: 2, kind: input, shape index: {}]   ;;  %s20051_s3 = inlined_call_operand.vmem [shape: f32[8,12288], index: 3, kind: output, shape index: {}]  }
   0x1   :  { %s15398_s14 = smov 0   ;;  %s15400_s15 = smov 0  }
   0x2   :  { %s15402_s16 = smov 0  }
   0x3 LB: > { %s22_s17 = sadd.s32 1, %s15336_s14  ;;  %s25_s18 = sadd.s32 1, %s15340_s15  ;;  %s15344_s16 = sphi %s15402_s16, %s13_s16   ;;  %s15340_s15 = sphi %s15400_s15, %s20055_s15   ;;  %s15336_s14 = sphi %s15398_s14, %s20054_s14   ;;  %s15332_s13 = sphi %s15396_s13, %s20053_s13   ;;  %s15328_s12 = sphi %s15394_s12, %s20052_s12  }
   0x4   : > { %p23_p0 = scmp.ge.s32.totalorder %s22_s17, 3  ;;  %p14694_p1 = scmp.ge.s32.totalorder %s15344_s16, 1 }
   0x5   : > { %p119_p2 = scmp.lt.s32.totalorder %s15344_s16, 7 }
   0x6   : > { %s20057_s17 = smov (%p23_p0, %s22_s17), 0  ;;  %s20059_s18 = smov (!%p23_p0, %s25_s18), %s15340_s15 }
   0x7   : > { %p120_p3 = pnand %p14694_p1, %p119_p2  ;;  %p27_p4 = scmp.ge.s32.totalorder %s20059_s18, 2 }
   0x8   : > { %s138_s19 = smul.u32 (!%p120_p3), 3, %s15332_s13  ;;  %s15427_s20 = sand.u32 (!%p120_p3), 1, %s15328_s12 }
   0x9   : > { %s20061_s18 = smov (%p27_p4, %s20059_s18), 0  ;;  %123 = sbr.rel (%p120_p3) target bundleno = 1273 (0x4f9), region = 28 }
   0xa   : > { %s15430_s21 = sadd.s32 (!%p120_p3), %s15328_s12, %s138_s19  ;;  %p14697_p6 = scmp.ne.s32.totalorder (!%p120_p3), %s15328_s12, 0 }
   0xb   : > { %s14695_s22 = sshll.u32 (!%p120_p3), %s15430_s21, 4 }
   0xc   : > { %p141_p5 = scmp.lt.s32.totalorder (!%p120_p3), %s14695_s22, 95 }
  0x10   : > { %s20063_s22 = smov (!%p141_p5, %s14695_s22), 95  ;;  %155 = sbr.rel (%p14697_p6) target bundleno = 27 (0x1b), region = 32 }
  0x11   : > { %s14696_s23 = sshll.u32 %s20063_s22, 3  ;;  %s14698_s27 = sshll.u32 (!%p14697_p6), %s15430_s21, 11 }
  0x12   : > { %s15436_s26 = scalar_lea.vmem %s20051_s3, %s14696_s23  ;;  %s15198_s28 = smul.u32 (!%p14697_p6), 44, %s15427_s20 }
  0x13   : > { %s157_s29 = sshra.s32 (!%p14697_p6), %s14698_s27, 7  ;;  %s164_s8 = scalar_lea.sflag (!%p14697_p6), [#allocation3], %s15427_s20 }
  0x14   : > { %s14699_s30 = sshll.u32 (!%p14697_p6), %s157_s29, 1  ;;  %s163_s7 = scalar_lea.vmem (!%p14697_p6), [#allocation2], %s15198_s28 }
  0x15   : > { %s160_s6 = scalar_lea.vmem (!%p14697_p6), %s20048_s0, %s14699_s30 }
  0x16   : > { %v202_v0 = vld [vmem:[%s160_s6] sm:$0xff] (!%p14697_p6)  ;;  %v204_v1 = vld [vmem:[%s160_s6 + $0x8] sm:$0xff] (!%p14697_p6)  ;;  %v206_v2 = vld [vmem:[%s160_s6 + $0x10] sm:$0xff] (!%p14697_p6) }
  0x17   : > { %203 = vst [vmem:[%s163_s7] sm:$0xff] %v202_v0  ;;  %205 = vst [vmem:[%s163_s7 + $0x8] sm:$0xff] %v204_v1  ;;  %v208_v3 = vld [vmem:[%s160_s6 + $0x18] sm:$0xff]  ;;  %v210_v4 = vld [vmem:[%s160_s6 + $0x20] sm:$0xff] }
  0x18   : > { %207 = vst [vmem:[%s163_s7 + $0x10] sm:$0xff] %v206_v2  ;;  %v14701_v5 = vld [vmem:[%s160_s6 + $0x28] sm:$0xf]  ;;  %209 = vst [vmem:[%s163_s7 + $0x18] sm:$0xff] %v208_v3 }
  0x19   : > { %211 = vst [vmem:[%s163_s7 + $0x20] sm:$0xff] %v210_v4  ;;  %14702 = vst [vmem:[%s163_s7 + $0x28] sm:$0xf] %v14701_v5 }
  0x1a   : > { %226 = vsyncadd %s164_s8, 704 }
  0x1b PF: > { %s15199_s9 = smul.u32 44, %s15427_s20  ;;  %s230_s11 = scalar_lea.sflag [#allocation3], %s15427_s20 }
  0x1d   : > { %s15446_s10 = scalar_lea.vmem [#allocation2], %s15199_s9 }
  0x1e   : > { %15324 = dma.done.wait %s230_s11, 704 }
  0x1f   : > { %15325 = vsyncadd %s230_s11, 4294966592  ;;  %s235_s13 = sadd.s32 1, %s15328_s12 }
  0x20   : > { %p14704_p7 = scmp.ge.s32.totalorder %s235_s13, 3 }
  0x21   : > { %s241_s19 = ssub.s32 (!%p14704_p7), 1, %s15427_s20  ;;  %s15200_s22 = sshll.u32 (!%p14704_p7), %s15430_s21, 11 }
  0x22   : > { %239 = sbr.rel (%p14704_p7) target bundleno = 43 (0x2b), region = 73  ;;  %s15201_s23 = sadd.s32 (!%p14704_p7), 2048, %s15200_s22 }
  0x23   : > { %s15202_s24 = smul.u32 (!%p14704_p7), 44, %s241_s19  ;;  %s243_s25 = sshra.s32 (!%p14704_p7), %s15201_s23, 7 }
  0x24   : > { %s14706_s27 = sshll.u32 (!%p14704_p7), %s243_s25, 1  ;;  %s250_s12 = scalar_lea.sflag (!%p14704_p7), [#allocation3], %s241_s19 }
  0x25   : > { %s246_s30 = scalar_lea.vmem (!%p14704_p7), %s20048_s0, %s14706_s27  ;;  %s249_s4 = scalar_lea.vmem (!%p14704_p7), [#allocation2], %s15202_s24 }
  0x26   : > { %v288_v6 = vld [vmem:[%s246_s30] sm:$0xff] (!%p14704_p7)  ;;  %v290_v7 = vld [vmem:[%s246_s30 + $0x8] sm:$0xff] (!%p14704_p7)  ;;  %v292_v8 = vld [vmem:[%s246_s30 + $0x10] sm:$0xff] (!%p14704_p7) }
  0x27   : > { %289 = vst [vmem:[%s249_s4] sm:$0xff] (!%p14704_p7), %v288_v6  ;;  %291 = vst [vmem:[%s249_s4 + $0x8] sm:$0xff] (!%p14704_p7), %v290_v7  ;;  %v294_v9 = vld [vmem:[%s246_s30 + $0x18] sm:$0xff] (!%p14704_p7)  ;;  %v296_v10 = vld [vmem:[%s246_s30 + $0x20] sm:$0xff] (!%p14704_p7) }
  0x28   : > { %293 = vst [vmem:[%s249_s4 + $0x10] sm:$0xff] (!%p14704_p7), %v292_v8  ;;  %v14708_v11 = vld [vmem:[%s246_s30 + $0x28] sm:$0xf] (!%p14704_p7)  ;;  %295 = vst [vmem:[%s249_s4 + $0x18] sm:$0xff] (!%p14704_p7), %v294_v9 }
  0x29   : > { %297 = vst [vmem:[%s249_s4 + $0x20] sm:$0xff] %v296_v10  ;;  %14709 = vst [vmem:[%s249_s4 + $0x28] sm:$0xf] %v14708_v11 }
  0x2a   : > { %312 = vsyncadd %s250_s12, 704 }
  0x2b PF: > { %v330_v13 = vlaneseq  ;;  %v15346_v14 = vmov 1983009808   ;;  %s15347_s20 = smov 127   ;;  %v15348_v26 = vmov 0   ;;  %s15349_s21 = smov 126   ;;  %vm435_vm0 = vcmask 1039360  }
  0x2c   : > { %v328_v15 = vunpack.c.l.s4 %v15346_v14  ;;  %537 = vmatprep.mubr.bf16.mxu0 %v15348_v26  ;;  %578 = vmatprep.mubr.bf16.mxu1 %v15348_v26  ;;  %s15350_s5 = smov 110   ;;  %s15351_s6 = smov 109   ;;  %vm456_vm1 = vcmask 1041408   ;;  %v15622_v55 = vld [vmem:[%s20049_s1 + $0x4] sm:$0xf]  ;;  %vm452_vm2 = vcmask 31744  }
  0x2d   : > { %v331_v16 = vshrl.u32 %v330_v13, 7  ;;  %15271 = vset.pattern.permute.xlu0 %v15348_v26  ;;  %s15352_s9 = smov 108   ;;  %s15353_s19 = smov 92   ;;  %vm1333_vm3 = vcmask 1031168   ;;  %vm1866_vm4 = vcmask 900096   ;;  %vm2399_vm5 = vcmask 891904  }
  0x2e   : > { %v329_v17 = vunpack.c.0.s8 %v328_v15  ;;  %s15354_s24 = smov 91   ;;  %s15355_s28 = smov 90   ;;  %vm2932_vm6 = vcmask 883712   ;;  %vm3465_vm7 = vcmask 752640   ;;  %vm3998_vm8 = vcmask 744448  }
  0x2f   : > { %s15356_s4 = smov 60   ;;  %s15358_s7 = smov 58   ;;  %vm4531_vm9 = vcmask 736256   ;;  %vm5064_vm10 = vcmask 490496   ;;  %vm5597_vm11 = vcmask 482304   ;;  %vm6130_vm12 = vcmask 474112  }
  0x30   : > { %v15456_v19 = vsub.s32 %v329_v17, %v331_v16  ;;  %s15359_s11 = smov 42   ;;  %s15360_s22 = smov 41   ;;  %vm6663_vm13 = vcmask 343040   ;;  %vm7196_vm14 = vcmask 334848   ;;  %vm7729_vm15 = vcmask 326656  }
  0x31   : > { %s15361_s25 = smov 40   ;;  %s15362_s29 = smov 24  }
  0x32   : > { %v313_v12 = vld [vmem:[%s15446_s10] sm:$0xff]  ;;  %v314_v20 = vld [vmem:[%s15446_s10 + $0x8] sm:$0xff]  ;;  %v315_v30 = vld [vmem:[%s15446_s10 + $0x10] sm:$0xff]  ;;  %s15363_s12 = smov 23   ;;  %s15371_s8 = smov 84  }
  0x33   : > { %v326_v18 = vcombine.high %v313_v12, %v313_v12  ;;  %v15460_v21 = vrot.slane %v313_v12, %v15456_v19  ;;  %v15470_v23 = vrot.slane %v314_v20, %v15456_v19  ;;  %v343_v25 = vcombine.high %v314_v20, %v314_v20  ;;  %v316_v36 = vld [vmem:[%s15446_s10 + $0x18] sm:$0xff]  ;;  %v15553_v43 = vld.sshfl [vmem:[%s15446_s10 + $0x20] sm:$0x3 pattern:$0x76325410]  ;;  %s15372_s13 = smov 83  }
  0x34   : > { %v15504_v32 = vrot.slane %v315_v30, %v15456_v19  ;;  %v360_v33 = vcombine.high %v315_v30, %v315_v30  ;;  %v15527_v38 = vrot.slane %v316_v36, %v15456_v19  ;;  %v377_v39 = vcombine.high %v316_v36, %v316_v36 }
  0x35   : > { %v15463_v22 = vrot.slane %v326_v18, %v15456_v19  ;;  %401 = vrot.lane.b32.xlu0 %v15460_v21, %s15347_s20  ;;  %v15485_v27 = vcombine.high %v15460_v21, %v15460_v21  ;;  %v15489_v28 = vcombine.high %v15470_v23, %v15470_v23  ;;  %v15492_v29 = vrot.slane %v343_v25, %v15456_v19 }
  0x36   : > { %v15512_v34 = vcombine.high %v15504_v32, %v15504_v32  ;;  %v15515_v35 = vrot.slane %v360_v33, %v15456_v19  ;;  %v15535_v40 = vcombine.high %v15527_v38, %v15527_v38  ;;  %v15538_v41 = vrot.slane %v377_v39, %v15456_v19 }
  0x37   : > { %405 = vrot.lane.b32.xlu1 %v15463_v22, %s15347_s20  ;;  %v15474_v24 = vcombine.high %v15463_v22, %v15463_v22  ;;  %v15501_v31 = vcombine.high %v15492_v29, %v15492_v29 }
  0x38   : > { %v15524_v37 = vcombine.high %v15515_v35, %v15515_v35  ;;  %v15546_v42 = vcombine.high %v15538_v41, %v15538_v41 }
  0x39   : > { %409 = vrot.lane.b32.xlu0 %v15470_v23, %s15347_s20 }
  0x3b   : > { %407 = vrot.lane.b32.xlu1 %v15474_v24, %s15347_s20 }
  0x3d   : > { %403 = vrot.lane.b32.xlu0 %v15485_v27, %s15347_s20 }
  0x3f   : > { %411 = vrot.lane.b32.xlu1 %v15489_v28, %s15347_s20 }
  0x41   : > { %413 = vrot.lane.b32.xlu0 %v15492_v29, %s15347_s20 }
  0x43   : > { %415 = vrot.lane.b32.xlu1 %v15501_v31, %s15347_s20 }
  0x45   : > { %417 = vrot.lane.b32.xlu0 %v15504_v32, %s15347_s20 }
  0x47   : > { %419 = vrot.lane.b32.xlu1 %v15512_v34, %s15347_s20 }
  0x49   : > { %421 = vrot.lane.b32.xlu0 %v15515_v35, %s15347_s20 }
  0x4b   : > { %423 = vrot.lane.b32.xlu1 %v15524_v37, %s15347_s20 }
  0x4d   : > { %425 = vrot.lane.b32.xlu0 %v15527_v38, %s15347_s20 }
  0x4f   : > { %427 = vrot.lane.b32.xlu1 %v15535_v40, %s15347_s20 }
  0x51   : > { %429 = vrot.lane.b32.xlu0 %v15538_v41, %s15347_s20 }
  0x53   : > { %431 = vrot.lane.b32.xlu1 %v15546_v42, %s15347_s20 }
  0x55   : > { %433 = vrot.lane.b32.xlu0 %v15553_v43, %s15347_s20 }
  0x57   : > { %1299 = vrot.lane.b32.xlu1 %v15460_v21, %s15349_s21 }
  0x59   : > { %1301 = vrot.lane.b32.xlu0 %v15485_v27, %s15349_s21 }
  0x5b   : > { %1303 = vrot.lane.b32.xlu1 %v15463_v22, %s15349_s21 }
  0x5d   : > { %1305 = vrot.lane.b32.xlu0 %v15474_v24, %s15349_s21 }
  0x5f   : > { %1307 = vrot.lane.b32.xlu1 %v15470_v23, %s15349_s21 }
  0x61   : > { %1309 = vrot.lane.b32.xlu0 %v15489_v28, %s15349_s21 }
  0x63   : > { %1311 = vrot.lane.b32.xlu1 %v15492_v29, %s15349_s21 }
  0x65   : > { %1313 = vrot.lane.b32.xlu0 %v15501_v31, %s15349_s21 }
  0x67   : > { %1315 = vrot.lane.b32.xlu1 %v15504_v32, %s15349_s21 }
  0x69   : > { %1317 = vrot.lane.b32.xlu0 %v15512_v34, %s15349_s21 }
  0x6b   : > { %1319 = vrot.lane.b32.xlu1 %v15515_v35, %s15349_s21 }
  0x6d   : > { %1321 = vrot.lane.b32.xlu0 %v15524_v37, %s15349_s21 }
  0x6f   : > { %1323 = vrot.lane.b32.xlu1 %v15527_v38, %s15349_s21 }
  0x71   : > { %1325 = vrot.lane.b32.xlu0 %v15535_v40, %s15349_s21 }
  0x73   : > { %1327 = vrot.lane.b32.xlu1 %v15538_v41, %s15349_s21 }
  0x75   : > { %1329 = vrot.lane.b32.xlu0 %v15546_v42, %s15349_s21 }
  0x77   : > { %1331 = vrot.lane.b32.xlu1 %v15553_v43, %s15349_s21  ;;  %s15357_s21 = smov 59  }
  0x79   : > { %1832 = vrot.lane.b32.xlu0 %v15460_v21, %s15350_s5 }
  0x7b   : > { %1834 = vrot.lane.b32.xlu1 %v15485_v27, %s15350_s5 }
  0x7d   : > { %1836 = vrot.lane.b32.xlu0 %v15463_v22, %s15350_s5 }
  0x7f   : > { %1838 = vrot.lane.b32.xlu1 %v15474_v24, %s15350_s5 }
  0x81   : > { %1840 = vrot.lane.b32.xlu0 %v15470_v23, %s15350_s5 }
  0x83   : > { %1842 = vrot.lane.b32.xlu1 %v15489_v28, %s15350_s5 }
  0x85   : > { %1844 = vrot.lane.b32.xlu0 %v15492_v29, %s15350_s5 }
  0x87   : > { %1846 = vrot.lane.b32.xlu1 %v15501_v31, %s15350_s5 }
  0x89   : > { %1848 = vrot.lane.b32.xlu0 %v15504_v32, %s15350_s5 }
  0x8b   : > { %1850 = vrot.lane.b32.xlu1 %v15512_v34, %s15350_s5 }
  0x8d   : > { %1852 = vrot.lane.b32.xlu0 %v15515_v35, %s15350_s5 }
  0x8f   : > { %1854 = vrot.lane.b32.xlu1 %v15524_v37, %s15350_s5 }
  0x91   : > { %1856 = vrot.lane.b32.xlu0 %v15527_v38, %s15350_s5 }
  0x93   : > { %1858 = vrot.lane.b32.xlu1 %v15535_v40, %s15350_s5 }
  0x95   : > { %1860 = vrot.lane.b32.xlu0 %v15538_v41, %s15350_s5 }
  0x97   : > { %1862 = vrot.lane.b32.xlu1 %v15546_v42, %s15350_s5 }
  0x99   : > { %1864 = vrot.lane.b32.xlu0 %v15553_v43, %s15350_s5  ;;  %s15370_s5 = smov 100  }
  0x9b   : > { %2365 = vrot.lane.b32.xlu1 %v15460_v21, %s15351_s6 }
  0x9d   : > { %2367 = vrot.lane.b32.xlu0 %v15485_v27, %s15351_s6 }
  0x9f   : > { %2369 = vrot.lane.b32.xlu1 %v15463_v22, %s15351_s6 }
  0xa1   : > { %2371 = vrot.lane.b32.xlu0 %v15474_v24, %s15351_s6 }
  0xa3   : > { %2373 = vrot.lane.b32.xlu1 %v15470_v23, %s15351_s6 }
  0xa5   : > { %2375 = vrot.lane.b32.xlu0 %v15489_v28, %s15351_s6 }
  0xa7   : > { %2377 = vrot.lane.b32.xlu1 %v15492_v29, %s15351_s6  ;;  %v402_v44 = vpop.permute.xlu0 %401 }
  0xa9   : > { %v406_v45 = vpop.permute.xlu1 %405  ;;  %2379 = vrot.lane.b32.xlu0 %v15501_v31, %s15351_s6 }
  0xab   : > { %2381 = vrot.lane.b32.xlu1 %v15504_v32, %s15351_s6  ;;  %v410_v46 = vpop.permute.xlu0 %409 }
  0xad   : > { %v408_v47 = vpop.permute.xlu1 %407  ;;  %2383 = vrot.lane.b32.xlu0 %v15512_v34, %s15351_s6 }
  0xae   : > { %v439_v48 = vsel %vm435_vm0, %v408_v47, %v410_v46  ;;  %v438_v49 = vsel %vm435_vm0, %v406_v45, %v408_v47 }
  0xaf   : > { %2385 = vrot.lane.b32.xlu1 %v15515_v35, %s15351_s6  ;;  %v464_v50 = vsel %vm456_vm1, %v438_v49, 0  ;;  %14714 = vmatprep.subr.msk.bf16.mxu1 %vm456_vm1, %v439_v48  ;;  %v404_v51 = vpop.permute.xlu0 %403  ;;  %v15733_v48 = vld [vmem:[%s20049_s1] sm:$0xf] }
  0xb0   : > { %547 = vmatpush1.bf16.msra.mxu1 %v464_v50  ;;  %v437_v53 = vsel %vm435_vm0, %v404_v51, %v406_v45  ;;  %v436_v54 = vsel %vm435_vm0, %v402_v44, %v404_v51  ;;  %v837_v44 = vsel %vm456_vm1, %v15460_v21, 0  ;;  %v843_v45 = vsel %vm456_vm1, %v15463_v22, 0 }
  0xb1   : > { %v412_v52 = vpop.permute.xlu1 %411  ;;  %2387 = vrot.lane.b32.xlu0 %v15524_v37, %s15351_s6  ;;  %14712 = vmatprep.subr.msk.bf16.mxu0 %vm456_vm1, %v437_v53  ;;  %v458_v56 = vsel %vm456_vm1, %v436_v54, 0  ;;  %v849_v51 = vsel %vm456_vm1, %v15470_v23, 0 }
  0xb2   : > { %506 = vmatpush1.bf16.msra.mxu0 %v458_v56  ;;  %v440_v57 = vsel %vm435_vm0, %v410_v46, %v412_v52 }
  0xb3   : > { %2389 = vrot.lane.b32.xlu1 %v15527_v38, %s15351_s6  ;;  %v414_v58 = vpop.permute.xlu0 %413  ;;  %14715 = vmatmul.mubr.msk.bf16.vlgmr.msra.gmra.mrb[0].mxu1 %vm452_vm2, %v15622_v55  ;;  %v470_v62 = vsel %vm456_vm1, %v440_v57, 0  ;;  %v861_v57 = vsel %vm456_vm1, %v15504_v32, 0 }
  0xb4   : > { %v441_v60 = vsel %vm435_vm0, %v412_v52, %v414_v58  ;;  %660 = vmatprep.mubr.bf16.mxu1 %v15348_v26  ;;  %v855_v52 = vsel %vm456_vm1, %v15492_v29, 0 }
  0xb5   : > { %v416_v59 = vpop.permute.xlu1 %415  ;;  %2391 = vrot.lane.b32.xlu0 %v15535_v40, %s15351_s6  ;;  %14713 = vmatmul.mubr.msk.bf16.vlgmr.msra.gmra.mrb[0].mxu0 %vm452_vm2, %v15622_v55 }
  0xb6   : > { %v442_v61 = vsel %vm435_vm0, %v414_v58, %v416_v59  ;;  %14716 = vmatprep.subr.msk.bf16.mxu0 %vm456_vm1, %v441_v60  ;;  %619 = vmatprep.mubr.bf16.mxu0 %v15348_v26  ;;  %v867_v58 = vsel %vm456_vm1, %v15515_v35, 0 }
  0xb7   : > { %2393 = vrot.lane.b32.xlu1 %v15538_v41, %s15351_s6  ;;  %588 = vmatpush1.bf16.msra.mxu0 %v470_v62  ;;  %v418_v63 = vpop.permute.xlu0 %417  ;;  %v476_v2 = vsel %vm456_vm1, %v442_v61, 0 }
  0xb8   : > { %v443_v1 = vsel %vm435_vm0, %v416_v59, %v418_v63 }
  0xb9   : > { %v420_v0 = vpop.permute.xlu1 %419  ;;  %2395 = vrot.lane.b32.xlu0 %v15546_v42, %s15351_s6  ;;  %14718 = vmatprep.subr.msk.bf16.mxu1 %vm456_vm1, %v443_v1 }
  0xba   : > { %629 = vmatpush1.bf16.msra.mxu1 %v476_v2  ;;  %v444_v5 = vsel %vm435_vm0, %v418_v63, %v420_v0  ;;  %v873_v63 = vsel %vm456_vm1, %v15527_v38, 0 }
  0xbb   : > { %2397 = vrot.lane.b32.xlu1 %v15553_v43, %s15351_s6  ;;  %v422_v3 = vpop.permute.xlu0 %421  ;;  %v482_v8 = vsel %vm456_vm1, %v444_v5, 0 }
  0xbc   : > { %v445_v6 = vsel %vm435_vm0, %v420_v0, %v422_v3  ;;  %v879_v0 = vsel %vm456_vm1, %v15538_v41, 0 }
  0xbd   : > { %v424_v4 = vpop.permute.xlu1 %423  ;;  %2898 = vrot.lane.b32.xlu0 %v15460_v21, %s15352_s9  ;;  %14717 = vmatmul.mubr.msk.bf16.vlgmr.msra.gmra.mrb[4].mxu0 %vm452_vm2, %v15622_v55 }
  0xbe   : > { %v446_v7 = vsel %vm435_vm0, %v422_v3, %v424_v4  ;;  %14719 = vmatmul.mubr.msk.bf16.vlgmr.msra.gmra.mrb[4].mxu1 %vm452_vm2, %v15622_v55  ;;  %14720 = vmatprep.subr.msk.bf16.mxu0 %vm456_vm1, %v445_v6 }
  0xbf   : > { %2900 = vrot.lane.b32.xlu1 %v15485_v27, %s15352_s9  ;;  %v426_v9 = vpop.permute.xlu0 %425  ;;  %701 = vmatprep.mubr.bf16.mxu0 %v15348_v26  ;;  %v488_v12 = vsel %vm456_vm1, %v446_v7, 0 }
  0xc0   : > { %670 = vmatpush1.bf16.msra.mxu0 %v482_v8  ;;  %v447_v11 = vsel %vm435_vm0, %v424_v4, %v426_v9  ;;  %742 = vmatprep.mubr.bf16.mxu1 %v15348_v26 }
  0xc1   : > { %v428_v10 = vpop.permute.xlu1 %427  ;;  %2902 = vrot.lane.b32.xlu0 %v15463_v22, %s15352_s9  ;;  %14722 = vmatprep.subr.msk.bf16.mxu1 %vm456_vm1, %v447_v11 }
  0xc2   : > { %711 = vmatpush1.bf16.msra.mxu1 %v488_v12  ;;  %v448_v15 = vsel %vm435_vm0, %v426_v9, %v428_v10 }
  0xc3   : > { %2904 = vrot.lane.b32.xlu1 %v15474_v24, %s15352_s9  ;;  %v430_v13 = vpop.permute.xlu0 %429  ;;  %v494_v18 = vsel %vm456_vm1, %v448_v15, 0  ;;  %v15872_v15 = vld [vmem:[%s20049_s1 + $0x8] sm:$0xf] }
  0xc4   : > { %v449_v16 = vsel %vm435_vm0, %v428_v10, %v430_v13 }
  0xc5   : > { %v432_v14 = vpop.permute.xlu1 %431  ;;  %2906 = vrot.lane.b32.xlu0 %v15470_v23, %s15352_s9  ;;  %14721 = vmatmul.mubr.msk.bf16.vlgmr.msra.gmra.mrb[8].mxu0 %vm452_vm2, %v15622_v55 }
  0xc6   : > { %v450_v17 = vsel %vm435_vm0, %v430_v13, %v432_v14  ;;  %14723 = vmatmul.mubr.msk.bf16.vlgmr.msra.gmra.mrb[8].mxu1 %vm452_vm2, %v15622_v55  ;;  %14724 = vmatprep.subr.msk.bf16.mxu0 %vm456_vm1, %v449_v16 }
  0xc7   : > { %2908 = vrot.lane.b32.xlu1 %v15489_v28, %s15352_s9  ;;  %v434_v20 = vpop.permute.xlu0 %433  ;;  %783 = vmatprep.mubr.bf16.mxu0 %v15348_v26  ;;  %v500_v33 = vsel %vm456_vm1, %v450_v17, 0 }
  0xc8   : > { %752 = vmatpush1.bf16.msra.mxu0 %v494_v18  ;;  %v451_v30 = vsel %vm435_vm0, %v432_v14, %v434_v20  ;;  %824 = vmatprep.mubr.bf16.mxu1 %v15348_v26  ;;  %vm8262_vm0 = vcmask 195584  }
  0xc9   : > { %v15687_v25 = vpop.permute.xlu1 %1299  ;;  %2910 = vrot.lane.b32.xlu0 %v15492_v29, %s15352_s9  ;;  %14726 = vmatprep.subr.msk.bf16.mxu1 %vm456_vm1, %v451_v30 }
  0xca   : > { %793 = vmatpush1.bf16.msra.mxu1 %v500_v33  ;;  %14728 = vmatprep.subr.msk.bf16.mxu0 %vm456_vm1, %v15485_v27 }
  0xcb   : > { %2912 = vrot.lane.b32.xlu1 %v15501_v31, %s15352_s9  ;;  %v15698_v36 = vpop.permute.xlu0 %1301  ;;  %14730 = vmatprep.subr.msk.bf16.mxu1 %vm456_vm1, %v15474_v24 }
  0xcc   : > { %v1334_v5 = vsel %vm1333_vm3, %v15687_v25, %v15698_v36 }
  0xcd   : > { %v15700_v39 = vpop.permute.xlu1 %1303  ;;  %2914 = vrot.lane.b32.xlu0 %v15504_v32, %s15352_s9  ;;  %14725 = vmatmul.mubr.msk.bf16.vlgmr.msra.gmra.mrb[12].mxu0 %vm452_vm2, %v15622_v55  ;;  %v1354_v9 = vsel %vm456_vm1, %v1334_v5, 0 }
  0xce   : > { %14727 = vmatmul.mubr.msk.bf16.vlgmr.msra.gmra.mrb[12].mxu1 %vm452_vm2, %v15622_v55  ;;  %885 = vmatpush1.bf16.msra.mxu0 %v837_v44  ;;  %v1335_v1 = vsel %vm1333_vm3, %v15698_v36, %v15700_v39 }
  0xcf   : > { %2916 = vrot.lane.b32.xlu1 %v15512_v34, %s15352_s9  ;;  %v15718_v46 = vpop.permute.xlu0 %1305  ;;  %926 = vmatpush1.bf16.msra.mxu1 %v843_v45 }
  0xd0   : > { %916 = vmatprep.mubr.bf16.mxu0 %v15348_v26  ;;  %957 = vmatprep.mubr.bf16.mxu1 %v15348_v26  ;;  %v1336_v6 = vsel %vm1333_vm3, %v15700_v39, %v15718_v46 }
  0xd1   : > { %v15720_v47 = vpop.permute.xlu1 %1307  ;;  %2918 = vrot.lane.b32.xlu0 %v15515_v35, %s15352_s9  ;;  %14732 = vmatprep.subr.msk.bf16.mxu0 %vm456_vm1, %v15489_v28  ;;  %v1360_v10 = vsel %vm456_vm1, %v1336_v6, 0 }
  0xd2   : > { %14734 = vmatprep.subr.msk.bf16.mxu1 %vm456_vm1, %v15501_v31  ;;  %v1337_v2 = vsel %vm1333_vm3, %v15718_v46, %v15720_v47 }
  0xd3   : > { %2920 = vrot.lane.b32.xlu1 %v15524_v37, %s15352_s9  ;;  %v15737_v49 = vpop.permute.xlu0 %1309 }
  0xd4   : > { %v1338_v16 = vsel %vm1333_vm3, %v15720_v47, %v15737_v49 }
  0xd5   : > { %v15739_v50 = vpop.permute.xlu1 %1311  ;;  %2922 = vrot.lane.b32.xlu0 %v15527_v38, %s15352_s9  ;;  %14729 = vmatmul.mubr.msk.bf16.vlgmr.msra.gmra.mrb[16].mxu0 %vm452_vm2, %v15733_v48  ;;  %v1366_v25 = vsel %vm456_vm1, %v1338_v16, 0 }
  0xd6   : > { %14731 = vmatmul.mubr.msk.bf16.vlgmr.msra.gmra.mrb[16].mxu1 %vm452_vm2, %v15733_v48  ;;  %967 = vmatpush1.bf16.msra.mxu0 %v849_v51  ;;  %v1339_v11 = vsel %vm1333_vm3, %v15737_v49, %v15739_v50 }
  0xd7   : > { %2924 = vrot.lane.b32.xlu1 %v15535_v40, %s15352_s9  ;;  %v15753_v53 = vpop.permute.xlu0 %1313  ;;  %1008 = vmatpush1.bf16.msra.mxu1 %v855_v52 }
  0xd8   : > { %998 = vmatprep.mubr.bf16.mxu0 %v15348_v26  ;;  %1039 = vmatprep.mubr.bf16.mxu1 %v15348_v26  ;;  %v1340_v17 = vsel %vm1333_vm3, %v15739_v50, %v15753_v53 }
  0xd9   : > { %v15755_v54 = vpop.permute.xlu1 %1315  ;;  %2926 = vrot.lane.b32.xlu0 %v15538_v41, %s15352_s9  ;;  %14736 = vmatprep.subr.msk.bf16.mxu0 %vm456_vm1, %v15512_v34  ;;  %v1372_v30 = vsel %vm456_vm1, %v1340_v17, 0 }
  0xda   : > { %14738 = vmatprep.subr.msk.bf16.mxu1 %vm456_vm1, %v15524_v37  ;;  %v1341_v12 = vsel %vm1333_vm3, %v15753_v53, %v15755_v54 }
  0xdb   : > { %2928 = vrot.lane.b32.xlu1 %v15546_v42, %s15352_s9  ;;  %v15767_v55 = vpop.permute.xlu0 %1317 }
  0xdc   : > { %v1342_v44 = vsel %vm1333_vm3, %v15755_v54, %v15767_v55 }
  0xdd   : > { %v15769_v56 = vpop.permute.xlu1 %1319  ;;  %2930 = vrot.lane.b32.xlu0 %v15553_v43, %s15352_s9  ;;  %14733 = vmatmul.mubr.msk.bf16.vlgmr.msra.gmra.mrb[20].mxu0 %vm452_vm2, %v15733_v48 }
  0xde   : > { %14735 = vmatmul.mubr.msk.bf16.vlgmr.msra.gmra.mrb[20].mxu1 %vm452_vm2, %v15733_v48  ;;  %1049 = vmatpush1.bf16.msra.mxu0 %v861_v57  ;;  %v1343_v33 = vsel %vm1333_vm3, %v15767_v55, %v15769_v56 }
  0xdf   : > { %3431 = vrot.lane.b32.xlu1 %v15460_v21, %s15353_s19  ;;  %v15783_v59 = vpop.permute.xlu0 %1321  ;;  %1090 = vmatpush1.bf16.msra.mxu1 %v867_v58 }
  0xe0   : > { %1080 = vmatprep.mubr.bf16.mxu0 %v15348_v26  ;;  %1121 = vmatprep.mubr.bf16.mxu1 %v15348_v26  ;;  %v1344_v45 = vsel %vm1333_vm3, %v15769_v56, %v15783_v59 }
  0xe1   : > { %v15785_v60 = vpop.permute.xlu1 %1323  ;;  %3433 = vrot.lane.b32.xlu0 %v15485_v27, %s15353_s19  ;;  %14740 = vmatprep.subr.msk.bf16.mxu0 %vm456_vm1, %v15535_v40 }
  0xe2   : > { %14742 = vmatprep.subr.msk.bf16.mxu1 %vm456_vm1, %v15546_v42  ;;  %v1345_v36 = vsel %vm1333_vm3, %v15783_v59, %v15785_v60 }
  0xe3   : > { %3435 = vrot.lane.b32.xlu1 %v15463_v22, %s15353_s19  ;;  %v15797_v61 = vpop.permute.xlu0 %1325 }
  0xe4   : > { %v1346_v50 = vsel %vm1333_vm3, %v15785_v60, %v15797_v61 }
  0xe5   : > { %v15799_v62 = vpop.permute.xlu1 %1327  ;;  %3437 = vrot.lane.b32.xlu0 %v15474_v24, %s15353_s19  ;;  %14737 = vmatmul.mubr.msk.bf16.vlgmr.msra.gmra.mrb[24].mxu0 %vm452_vm2, %v15733_v48 }
  0xe6   : > { %14739 = vmatmul.mubr.msk.bf16.vlgmr.msra.gmra.mrb[24].mxu1 %vm452_vm2, %v15733_v48  ;;  %1131 = vmatpush1.bf16.msra.mxu0 %v873_v63  ;;  %v16030_v63 = vld [vmem:[%s20049_s1 + $0xc] sm:$0xf] }
  0xe7   : > { %3439 = vrot.lane.b32.xlu1 %v15470_v23, %s15353_s19  ;;  %1172 = vmatpush1.bf16.msra.mxu1 %v879_v0  ;;  %v15819_v3 = vpop.permute.xlu0 %1329 }
  0xe8   : > { %14746 = vmatprep.subr.msk.bf16.mxu0 %vm456_vm1, %v1335_v1  ;;  %14748 = vmatprep.subr.msk.bf16.mxu1 %vm456_vm1, %v1337_v2  ;;  %v1348_v51 = vsel %vm1333_vm3, %v15799_v62, %v15819_v3 }
  0xe9   : > { %v15821_v4 = vpop.permute.xlu1 %1331  ;;  %3441 = vrot.lane.b32.xlu0 %v15489_v28, %s15353_s19  ;;  %1162 = vmatprep.mubr.bf16.mxu0 %v15348_v26 }
  0xea   : > { %1203 = vmatprep.mubr.bf16.mxu1 %v15348_v26 }
  0xeb   : > { %3443 = vrot.lane.b32.xlu1 %v15492_v29, %s15353_s19  ;;  %v15837_v7 = vpop.permute.xlu0 %1832 }
  0xed   : > { %v15839_v8 = vpop.permute.xlu1 %1834  ;;  %3445 = vrot.lane.b32.xlu0 %v15501_v31, %s15353_s19  ;;  %14741 = vmatmul.mubr.msk.bf16.vlgmr.msra.gmra.mrb[28].mxu0 %vm452_vm2, %v15733_v48 }
  0xee   : > { %14743 = vmatmul.mubr.msk.bf16.vlgmr.msra.gmra.mrb[28].mxu1 %vm452_vm2, %v15733_v48  ;;  %1402 = vmatpush1.bf16.msra.mxu0 %v1354_v9  ;;  %v1349_v48 = vsel %vm1333_vm3, %v15819_v3, %v15821_v4  ;;  %v1867_v56 = vsel %vm1866_vm4, %v15837_v7, %v15839_v8 }
  0xef   : > { %3447 = vrot.lane.b32.xlu1 %v15504_v32, %s15353_s19  ;;  %1443 = vmatpush1.bf16.msra.mxu1 %v1360_v10  ;;  %v15857_v13 = vpop.permute.xlu0 %1836 }
  0xf0   : > { %14750 = vmatprep.subr.msk.bf16.mxu0 %vm456_vm1, %v1339_v11  ;;  %14752 = vmatprep.subr.msk.bf16.mxu1 %vm456_vm1, %v1341_v12 }
  0xf1   : > { %v15859_v14 = vpop.permute.xlu1 %1838  ;;  %3449 = vrot.lane.b32.xlu0 %v15512_v34, %s15353_s19  ;;  %1433 = vmatprep.mubr.bf16.mxu0 %v15348_v26 }
  0xf2   : > { %1474 = vmatprep.mubr.bf16.mxu1 %v15348_v26  ;;  %v1869_v57 = vsel %vm1866_vm4, %v15857_v13, %v15859_v14 }
  0xf3   : > { %3451 = vrot.lane.b32.xlu1 %v15515_v35, %s15353_s19  ;;  %v15880_v18 = vpop.permute.xlu0 %1840 }
  0xf4   : > { %v1870_v54 = vsel %vm1866_vm4, %v15859_v14, %v15880_v18 }
  0xf5   : > { %v15882_v20 = vpop.permute.xlu1 %1842  ;;  %3453 = vrot.lane.b32.xlu0 %v15524_v37, %s15353_s19  ;;  %14747 = vmatmul.mubr.msk.bf16.vlgmr.msra.gmra.mrb[32].mxu0 %vm452_vm2, %v15872_v15 }
  0xf6   : > { %14749 = vmatmul.mubr.msk.bf16.vlgmr.msra.gmra.mrb[32].mxu1 %vm452_vm2, %v15872_v15  ;;  %1484 = vmatpush1.bf16.msra.mxu0 %v1366_v25 }
  0xf7   : > { %3455 = vrot.lane.b32.xlu1 %v15527_v38, %s15353_s19  ;;  %1525 = vmatpush1.bf16.msra.mxu1 %v1372_v30  ;;  %v15900_v39 = vpop.permute.xlu0 %1844 }
  0xf8   : > { %14754 = vmatprep.subr.msk.bf16.mxu0 %vm456_vm1, %v1343_v33  ;;  %14756 = vmatprep.subr.msk.bf16.mxu1 %vm456_vm1, %v1345_v36  ;;  %v1872_v60 = vsel %vm1866_vm4, %v15882_v20, %v15900_v39 }
  0xf9   : > { %v15902_v38 = vpop.permute.xlu1 %1846  ;;  %3457 = vrot.lane.b32.xlu0 %v15535_v40, %s15353_s19  ;;  %1515 = vmatprep.mubr.bf16.mxu0 %v15348_v26  ;;  %v1378_v40 = vsel %vm456_vm1, %v1342_v44, 0 }
  0xfa   : > { %1556 = vmatprep.mubr.bf16.mxu1 %v15348_v26  ;;  %v1873_v2 = vsel %vm1866_vm4, %v15900_v39, %v15902_v38 }
  0xfb   : > { %3459 = vrot.lane.b32.xlu1 %v15538_v41, %s15353_s19  ;;  %v15918_v46 = vpop.permute.xlu0 %1848  ;;  %v1384_v41 = vsel %vm456_vm1, %v1344_v45, 0  ;;  %v1905_v5 = vsel %vm456_vm1, %v1873_v2, 0 }
  0xfd   : > { %v15920_v47 = vpop.permute.xlu1 %1850  ;;  %3461 = vrot.lane.b32.xlu0 %v15546_v42, %s15353_s19  ;;  %14751 = vmatmul.mubr.msk.bf16.vlgmr.msra.gmra.mrb[36].mxu0 %vm452_vm2, %v15872_v15  ;;  %v1347_v42 = vsel %vm1333_vm3, %v15797_v61, %v15799_v62  ;;  %v3880_v62 = vld [vmem:[%s15446_s10 + $0x18] sm:$0xff]  ;;  %vm8795_vm3 = vcmask 187392  }
  0xfe   : > { %14753 = vmatmul.mubr.msk.bf16.vlgmr.msra.gmra.mrb[36].mxu1 %vm452_vm2, %v15872_v15  ;;  %1566 = vmatpush1.bf16.msra.mxu0 %v1378_v40  ;;  %v16033_v0 = vrot.slane %v3880_v62, %v15456_v19  ;;  %v3940_v1 = vcombine.high %v3880_v62, %v3880_v62  ;;  %v1875_v11 = vsel %vm1866_vm4, %v15918_v46, %v15920_v47  ;;  %v4411_v40 = vld [vmem:[%s15446_s10 + $0x8] sm:$0xff] }
  0xff   : > { %3463 = vrot.lane.b32.xlu1 %v15553_v43, %s15353_s19  ;;  %1607 = vmatpush1.bf16.msra.mxu1 %v1384_v41  ;;  %v15938_v49 = vpop.permute.xlu0 %1852  ;;  %v1911_v16 = vsel %vm456_vm1, %v1875_v11, 0 }
 0x100   : > { %14758 = vmatprep.subr.msk.bf16.mxu0 %vm456_vm1, %v1347_v42  ;;  %14760 = vmatprep.subr.msk.bf16.mxu1 %vm456_vm1, %v1349_v48  ;;  %v16057_v6 = vcombine.high %v16033_v0, %v16033_v0  ;;  %v16060_v7 = vrot.slane %v3940_v1, %v15456_v19 }
 0x101   : > { %v15940_v43 = vpop.permute.xlu1 %1854  ;;  %3964 = vrot.lane.b32.xlu0 %v15460_v21, %s15354_s24  ;;  %1597 = vmatprep.mubr.bf16.mxu0 %v15348_v26  ;;  %v1390_v21 = vsel %vm456_vm1, %v1346_v50, 0  ;;  %v4439_v50 = vcombine.high %v4411_v40, %v4411_v40 }
 0x102   : > { %1638 = vmatprep.mubr.bf16.mxu1 %v15348_v26  ;;  %v16082_v10 = vcombine.high %v16060_v7, %v16060_v7  ;;  %v1877_v12 = vsel %vm1866_vm4, %v15938_v49, %v15940_v43 }
 0x103   : > { %3966 = vrot.lane.b32.xlu1 %v15485_v27, %s15354_s24  ;;  %v15956_v52 = vpop.permute.xlu0 %1856  ;;  %v1396_v27 = vsel %vm456_vm1, %v1348_v51, 0  ;;  %v1917_v17 = vsel %vm456_vm1, %v1877_v12, 0 }
 0x105   : > { %v15958_v53 = vpop.permute.xlu1 %1858  ;;  %3968 = vrot.lane.b32.xlu0 %v15463_v22, %s15354_s24  ;;  %14755 = vmatmul.mubr.msk.bf16.vlgmr.msra.gmra.mrb[40].mxu0 %vm452_vm2, %v15872_v15  ;;  %v1868_v22 = vsel %vm1866_vm4, %v15839_v8, %v15857_v13 }
 0x106   : > { %14757 = vmatmul.mubr.msk.bf16.vlgmr.msra.gmra.mrb[40].mxu1 %vm452_vm2, %v15872_v15  ;;  %1648 = vmatpush1.bf16.msra.mxu0 %v1390_v21  ;;  %v1879_v45 = vsel %vm1866_vm4, %v15956_v52, %v15958_v53 }
 0x107   : > { %3970 = vrot.lane.b32.xlu1 %v15474_v24, %s15354_s24  ;;  %1689 = vmatpush1.bf16.msra.mxu1 %v1396_v27  ;;  %v15976_v55 = vpop.permute.xlu0 %1860  ;;  %v1923_v42 = vsel %vm456_vm1, %v1879_v45, 0 }
 0x108   : > { %14764 = vmatprep.subr.msk.bf16.mxu0 %vm456_vm1, %v1868_v22  ;;  %14766 = vmatprep.subr.msk.bf16.mxu1 %vm456_vm1, %v1870_v54  ;;  %v1880_v33 = vsel %vm1866_vm4, %v15958_v53, %v15976_v55  ;;  %v4453_v22 = vrot.slane %v4439_v50, %v15456_v19 }
 0x109   : > { %v15978_v24 = vpop.permute.xlu1 %1862  ;;  %3972 = vrot.lane.b32.xlu0 %v15470_v23, %s15354_s24  ;;  %1679 = vmatprep.mubr.bf16.mxu0 %v15348_v26  ;;  %v1887_v23 = vsel %vm456_vm1, %v1867_v56, 0  ;;  %v4412_v56 = vld [vmem:[%s15446_s10 + $0x10] sm:$0xff] }
 0x10a   : > { %1720 = vmatprep.mubr.bf16.mxu1 %v15348_v26 }
 0x10b   : > { %3974 = vrot.lane.b32.xlu1 %v15489_v28, %s15354_s24  ;;  %v15994_v58 = vpop.permute.xlu0 %1864  ;;  %v1893_v28 = vsel %vm456_vm1, %v1869_v57, 0 }
 0x10c   : > { %v1882_v30 = vsel %vm1866_vm4, %v15978_v24, %v15994_v58  ;;  %v4455_v58 = vcombine.high %v4453_v22, %v4453_v22 }
 0x10d   : > { %v15996_v59 = vpop.permute.xlu1 %2365  ;;  %3976 = vrot.lane.b32.xlu0 %v15492_v29, %s15354_s24  ;;  %14759 = vmatmul.mubr.msk.bf16.vlgmr.msra.gmra.mrb[44].mxu0 %vm452_vm2, %v15872_v15  ;;  %v1874_v29 = vsel %vm1866_vm4, %v15902_v38, %v15918_v46  ;;  %v1881_v46 = vsel %vm1866_vm4, %v15976_v55, %v15978_v24 }
 0x10e   : > { %14761 = vmatmul.mubr.msk.bf16.vlgmr.msra.gmra.mrb[44].mxu1 %vm452_vm2, %v15872_v15  ;;  %1935 = vmatpush1.bf16.msra.mxu0 %v1887_v23  ;;  %v4410_v15 = vld [vmem:[%s15446_s10] sm:$0xff] }
 0x10f   : > { %3978 = vrot.lane.b32.xlu1 %v15501_v31, %s15354_s24  ;;  %1976 = vmatpush1.bf16.msra.mxu1 %v1893_v28  ;;  %v16014_v61 = vpop.permute.xlu0 %2367  ;;  %v4422_v25 = vcombine.high %v4410_v15, %v4410_v15  ;;  %v4463_v28 = vrot.slane %v4412_v56, %v15456_v19 }
 0x110   : > { %14768 = vmatprep.subr.msk.bf16.mxu0 %vm456_vm1, %v1872_v60  ;;  %14770 = vmatprep.subr.msk.bf16.mxu1 %vm456_vm1, %v1874_v29  ;;  %v2400_v54 = vsel %vm2399_vm5, %v15996_v59, %v16014_v61  ;;  %v4456_v60 = vcombine.high %v4412_v56, %v4412_v56 }
 0x111   : > { %v16016_v31 = vpop.permute.xlu1 %2369  ;;  %3980 = vrot.lane.b32.xlu0 %v15504_v32, %s15354_s24  ;;  %1966 = vmatprep.mubr.bf16.mxu0 %v15348_v26  ;;  %v1871_v32 = vsel %vm1866_vm4, %v15880_v18, %v15882_v20  ;;  %v16106_v18 = vld.sshfl [vmem:[%s15446_s10 + $0x20] sm:$0x3 pattern:$0x76325410]  ;;  %v4429_v20 = vrot.slane %v4410_v15, %v15456_v19  ;;  %v4436_v44 = vrot.slane %v4422_v25, %v15456_v19  ;;  %v2420_v59 = vsel %vm456_vm1, %v2400_v54, 0  ;;  %v4945_v54 = vld [vmem:[%s15446_s10 + $0x14] sm:$0xff] }
 0x112   : > { %2007 = vmatprep.mubr.bf16.mxu1 %v15348_v26  ;;  %v1899_v4 = vsel %vm456_vm1, %v1871_v32, 0  ;;  %v2401_v51 = vsel %vm2399_vm5, %v16014_v61, %v16016_v31  ;;  %v4470_v1 = vrot.slane %v4456_v60, %v15456_v19  ;;  %v16202_v32 = vld [vmem:[%s20049_s1 + $0x10] sm:$0xf] }
 0x113   : > { %3982 = vrot.lane.b32.xlu1 %v15512_v34, %s15354_s24  ;;  %v16041_v34 = vpop.permute.xlu0 %2371  ;;  %v4437_v38 = vcombine.high %v4429_v20, %v4429_v20  ;;  %v4438_v48 = vcombine.high %v4436_v44, %v4436_v44 }
 0x114   : > { %v2402_v55 = vsel %vm2399_vm5, %v16016_v31, %v16041_v34 }
 0x115   : > { %v16043_v3 = vpop.permute.xlu1 %2373  ;;  %3984 = vrot.lane.b32.xlu0 %v15515_v35, %s15354_s24  ;;  %14765 = vmatmul.mubr.msk.bf16.vlgmr.msra.gmra.mrb[48].mxu0 %vm452_vm2, %v16030_v63  ;;  %v1876_v35 = vsel %vm1866_vm4, %v15920_v47, %v15938_v49  ;;  %v1929_v49 = vsel %vm456_vm1, %v1881_v46, 0  ;;  %v2426_v23 = vsel %vm456_vm1, %v2402_v55, 0  ;;  %v4944_v46 = vld [vmem:[%s15446_s10 + $0xc] sm:$0xff] }
 0x116   : > { %14767 = vmatmul.mubr.msk.bf16.vlgmr.msra.gmra.mrb[48].mxu1 %vm452_vm2, %v16030_v63  ;;  %2017 = vmatpush1.bf16.msra.mxu0 %v1899_v4 }
 0x117   : > { %3986 = vrot.lane.b32.xlu1 %v15524_v37, %s15354_s24  ;;  %2058 = vmatpush1.bf16.msra.mxu1 %v1905_v5  ;;  %v1878_v37 = vsel %vm1866_vm4, %v15940_v43, %v15956_v52  ;;  %v16068_v8 = vpop.permute.xlu0 %2375  ;;  %v4446_v43 = vrot.slane %v4411_v40, %v15456_v19  ;;  %v2403_v52 = vsel %vm2399_vm5, %v16041_v34, %v16043_v3  ;;  %vm9328_vm4 = vcmask 179200  }
 0x118   : > { %14772 = vmatprep.subr.msk.bf16.mxu0 %vm456_vm1, %v1876_v35  ;;  %14774 = vmatprep.subr.msk.bf16.mxu1 %vm456_vm1, %v1878_v37  ;;  %v2404_v2 = vsel %vm2399_vm5, %v16043_v3, %v16068_v8  ;;  %v4472_v35 = vcombine.high %v4470_v1, %v4470_v1 }
 0x119   : > { %v16070_v9 = vpop.permute.xlu1 %2377  ;;  %3988 = vrot.lane.b32.xlu0 %v16033_v0, %s15354_s24  ;;  %2048 = vmatprep.mubr.bf16.mxu0 %v15348_v26  ;;  %v4454_v27 = vcombine.high %v4446_v43, %v4446_v43  ;;  %v2432_v3 = vsel %vm456_vm1, %v2404_v2, 0  ;;  %v4946_v2 = vld [vmem:[%s15446_s10 + $0x1c] sm:$0xff] }
 0x11a   : > { %2089 = vmatprep.mubr.bf16.mxu1 %v15348_v26  ;;  %v2405_v29 = vsel %vm2399_vm5, %v16068_v8, %v16070_v9 }
 0x11b   : > { %3990 = vrot.lane.b32.xlu1 %v16057_v6, %s15354_s24  ;;  %v16090_v13 = vpop.permute.xlu0 %2379 }
 0x11c   : > { %v2406_v34 = vsel %vm2399_vm5, %v16070_v9, %v16090_v13 }
 0x11d   : > { %v16092_v14 = vpop.permute.xlu1 %2381  ;;  %3992 = vrot.lane.b32.xlu0 %v16060_v7, %s15354_s24  ;;  %14769 = vmatmul.mubr.msk.bf16.vlgmr.msra.gmra.mrb[52].mxu0 %vm452_vm2, %v16030_v63  ;;  %v2438_v37 = vsel %vm456_vm1, %v2406_v34, 0 }
 0x11e   : > { %14771 = vmatmul.mubr.msk.bf16.vlgmr.msra.gmra.mrb[52].mxu1 %vm452_vm2, %v16030_v63  ;;  %2099 = vmatpush1.bf16.msra.mxu0 %v1911_v16  ;;  %v2407_v61 = vsel %vm2399_vm5, %v16090_v13, %v16092_v14 }
 0x11f   : > { %3994 = vrot.lane.b32.xlu1 %v16082_v10, %s15354_s24  ;;  %2140 = vmatpush1.bf16.msra.mxu1 %v1917_v17  ;;  %v16115_v36 = vpop.permute.xlu0 %2383  ;;  %v4943_v17 = vld [vmem:[%s15446_s10 + $0x4] sm:$0xff] }
 0x120   : > { %14776 = vmatprep.subr.msk.bf16.mxu0 %vm456_vm1, %v1880_v33  ;;  %14778 = vmatprep.subr.msk.bf16.mxu1 %vm456_vm1, %v1882_v30  ;;  %v2408_v13 = vsel %vm2399_vm5, %v16092_v14, %v16115_v36  ;;  %v16261_v30 = vrot.slane %v4943_v17, %v15456_v19 }
 0x121   : > { %v16117_v39 = vpop.permute.xlu1 %2385  ;;  %3996 = vrot.lane.b32.xlu0 %v16106_v18, %s15354_s24  ;;  %2130 = vmatprep.mubr.bf16.mxu0 %v15348_v26  ;;  %v2444_v14 = vsel %vm456_vm1, %v2408_v13, 0 }
 0x122   : > { %2171 = vmatprep.mubr.bf16.mxu1 %v15348_v26  ;;  %v2409_v8 = vsel %vm2399_vm5, %v16115_v36, %v16117_v39 }
 0x123   : > { %4497 = vrot.lane.b32.xlu1 %v4429_v20, %s15355_s28  ;;  %v16133_v47 = vpop.permute.xlu0 %2387 }
 0x124   : > { %v2410_v15 = vsel %vm2399_vm5, %v16117_v39, %v16133_v47 }
 0x125   : > { %v16136_v41 = vpop.permute.xlu1 %2389  ;;  %4499 = vrot.lane.b32.xlu0 %v4437_v38, %s15355_s28  ;;  %14773 = vmatmul.mubr.msk.bf16.vlgmr.msra.gmra.mrb[56].mxu0 %vm452_vm2, %v16030_v63  ;;  %v2450_v25 = vsel %vm456_vm1, %v2410_v15, 0  ;;  %v16285_v38 = vcombine.high %v16261_v30, %v16261_v30 }
 0x126   : > { %14775 = vmatmul.mubr.msk.bf16.vlgmr.msra.gmra.mrb[56].mxu1 %vm452_vm2, %v16030_v63  ;;  %2181 = vmatpush1.bf16.msra.mxu0 %v1923_v42  ;;  %v2411_v9 = vsel %vm2399_vm5, %v16133_v47, %v16136_v41  ;;  %v4972_v42 = vcombine.high %v4944_v46, %v4944_v46 }
 0x127   : > { %4501 = vrot.lane.b32.xlu1 %v4436_v44, %s15355_s28  ;;  %2222 = vmatpush1.bf16.msra.mxu1 %v1929_v49  ;;  %v16153_v53 = vpop.permute.xlu0 %2391 }
 0x128   : > { %14782 = vmatprep.subr.msk.bf16.mxu0 %vm456_vm1, %v2401_v51  ;;  %14784 = vmatprep.subr.msk.bf16.mxu1 %vm456_vm1, %v2403_v52  ;;  %v2412_v44 = vsel %vm2399_vm5, %v16136_v41, %v16153_v53 }
 0x129   : > { %v16157_v21 = vpop.permute.xlu1 %2393  ;;  %4503 = vrot.lane.b32.xlu0 %v4438_v48, %s15355_s28  ;;  %2212 = vmatprep.mubr.bf16.mxu0 %v15348_v26  ;;  %v2456_v40 = vsel %vm456_vm1, %v2412_v44, 0  ;;  %v16313_v48 = vrot.slane %v4944_v46, %v15456_v19 }
 0x12a   : > { %2253 = vmatprep.mubr.bf16.mxu1 %v15348_v26 }
 0x12b   : > { %4505 = vrot.lane.b32.xlu1 %v4446_v43, %s15355_s28  ;;  %v16170_v24 = vpop.permute.xlu0 %2395  ;;  %v16335_v52 = vcombine.high %v16313_v48, %v16313_v48 }
 0x12d   : > { %v2398_v57 = vpop.permute.xlu1 %2397  ;;  %4507 = vrot.lane.b32.xlu0 %v4454_v27, %s15355_s28  ;;  %14777 = vmatmul.mubr.msk.bf16.vlgmr.msra.gmra.mrb[60].mxu0 %vm452_vm2, %v16030_v63 }
 0x12e   : > { %14779 = vmatmul.mubr.msk.bf16.vlgmr.msra.gmra.mrb[60].mxu1 %vm452_vm2, %v16030_v63  ;;  %2468 = vmatpush1.bf16.msra.mxu0 %v2420_v59  ;;  %v4471_v63 = vcombine.high %v4463_v28, %v4463_v28  ;;  %v16366_v59 = vrot.slane %v4945_v54, %v15456_v19 }
 0x12f   : > { %4509 = vrot.lane.b32.xlu1 %v4453_v22, %s15355_s28  ;;  %2509 = vmatpush1.bf16.msra.mxu1 %v2426_v23  ;;  %v16188_v31 = vpop.permute.xlu0 %2898 }
 0x130   : > { %14786 = vmatprep.subr.msk.bf16.mxu0 %vm456_vm1, %v2405_v29  ;;  %14788 = vmatprep.subr.msk.bf16.mxu1 %vm456_vm1, %v2407_v61 }
 0x131   : > { %v16192_v62 = vpop.permute.xlu1 %2900  ;;  %4511 = vrot.lane.b32.xlu0 %v4455_v58, %s15355_s28  ;;  %2499 = vmatprep.mubr.bf16.mxu0 %v15348_v26 }
 0x132   : > { %2540 = vmatprep.mubr.bf16.mxu1 %v15348_v26 }
 0x133   : > { %4513 = vrot.lane.b32.xlu1 %v4463_v28, %s15355_s28  ;;  %v16210_v4 = vpop.permute.xlu0 %2902 }
 0x134   : > { %v2934_v49 = vsel %vm2932_vm6, %v16192_v62, %v16210_v4 }
 0x135   : > { %v16212_v5 = vpop.permute.xlu1 %2904  ;;  %4515 = vrot.lane.b32.xlu0 %v4471_v63, %s15355_s28  ;;  %14783 = vmatmul.mubr.msk.bf16.vlgmr.msra.gmra.mrb[64].mxu0 %vm452_vm2, %v16202_v32 }
 0x136   : > { %14785 = vmatmul.mubr.msk.bf16.vlgmr.msra.gmra.mrb[64].mxu1 %vm452_vm2, %v16202_v32  ;;  %2550 = vmatpush1.bf16.msra.mxu0 %v2432_v3  ;;  %v2935_v27 = vsel %vm2932_vm6, %v16210_v4, %v16212_v5  ;;  %v16422_v3 = vrot.slane %v4946_v2, %v15456_v19 }
 0x137   : > { %4517 = vrot.lane.b32.xlu1 %v4470_v1, %s15355_s28  ;;  %2591 = vmatpush1.bf16.msra.mxu1 %v2438_v37  ;;  %v16228_v11 = vpop.permute.xlu0 %2906  ;;  %v5006_v37 = vcombine.high %v4946_v2, %v4946_v2 }
 0x138   : > { %14790 = vmatprep.subr.msk.bf16.mxu0 %vm456_vm1, %v2409_v8  ;;  %14792 = vmatprep.subr.msk.bf16.mxu1 %vm456_vm1, %v2411_v9  ;;  %v2936_v43 = vsel %vm2932_vm6, %v16212_v5, %v16228_v11  ;;  %v16442_v13 = vcombine.high %v16422_v3, %v16422_v3 }
 0x139   : > { %v16232_v12 = vpop.permute.xlu1 %2908  ;;  %4519 = vrot.lane.b32.xlu0 %v4472_v35, %s15355_s28  ;;  %2581 = vmatprep.mubr.bf16.mxu0 %v15348_v26  ;;  %v16445_v15 = vrot.slane %v5006_v37, %v15456_v19 }
 0x13a   : > { %2622 = vmatprep.mubr.bf16.mxu1 %v15348_v26  ;;  %v2937_v63 = vsel %vm2932_vm6, %v16228_v11, %v16232_v12 }
 0x13b   : > { %4521 = vrot.lane.b32.xlu1 %v16033_v0, %s15355_s28  ;;  %v16245_v16 = vpop.permute.xlu0 %2910  ;;  %v4955_v0 = vcombine.high %v4943_v17, %v4943_v17  ;;  %v2965_v5 = vsel %vm456_vm1, %v2937_v63, 0 }
 0x13c   : > { %v2938_v23 = vsel %vm2932_vm6, %v16232_v12, %v16245_v16 }
 0x13d   : > { %v16248_v20 = vpop.permute.xlu1 %2912  ;;  %4523 = vrot.lane.b32.xlu0 %v16057_v6, %s15355_s28  ;;  %14787 = vmatmul.mubr.msk.bf16.vlgmr.msra.gmra.mrb[68].mxu0 %vm452_vm2, %v16202_v32  ;;  %v2415_v6 = vsel %vm2399_vm5, %v16170_v24, %v2398_v57  ;;  %v16278_v39 = vrot.slane %v4955_v0, %v15456_v19  ;;  %v2959_v57 = vsel %vm456_vm1, %v2935_v27, 0 }
 0x13e   : > { %14789 = vmatmul.mubr.msk.bf16.vlgmr.msra.gmra.mrb[68].mxu1 %vm452_vm2, %v16202_v32  ;;  %2632 = vmatpush1.bf16.msra.mxu0 %v2444_v14  ;;  %v2939_v1 = vsel %vm2932_vm6, %v16245_v16, %v16248_v20 }
 0x13f   : > { %4525 = vrot.lane.b32.xlu1 %v16060_v7, %s15355_s28  ;;  %2673 = vmatpush1.bf16.msra.mxu1 %v2450_v25  ;;  %v2413_v7 = vsel %vm2399_vm5, %v16153_v53, %v16157_v21  ;;  %v16268_v33 = vpop.permute.xlu0 %2914  ;;  %v16338_v53 = vrot.slane %v4972_v42, %v15456_v19  ;;  %v2971_v35 = vsel %vm456_vm1, %v2939_v1, 0 }
 0x140   : > { %14794 = vmatprep.subr.msk.bf16.mxu0 %vm456_vm1, %v2413_v7  ;;  %14796 = vmatprep.subr.msk.bf16.mxu1 %vm456_vm1, %v2415_v6  ;;  %v2940_v28 = vsel %vm2932_vm6, %v16248_v20, %v16268_v33  ;;  %v16469_v6 = vcombine.high %v16445_v15, %v16445_v15 }
 0x141   : > { %v16272_v36 = vpop.permute.xlu1 %2916  ;;  %4527 = vrot.lane.b32.xlu0 %v16082_v10, %s15355_s28  ;;  %2663 = vmatprep.mubr.bf16.mxu0 %v15348_v26  ;;  %v2414_v10 = vsel %vm2399_vm5, %v16157_v21, %v16170_v24  ;;  %v2933_v21 = vsel %vm2932_vm6, %v16188_v31, %v16192_v62  ;;  %v4989_v24 = vcombine.high %v4945_v54, %v4945_v54  ;;  %v16394_v62 = vld [vmem:[%s20049_s1 + $0x14] sm:$0xf]  ;;  %vm9861_vm5 = vcmask 982016  }
 0x142   : > { %2704 = vmatprep.mubr.bf16.mxu1 %v15348_v26  ;;  %v2462_v41 = vsel %vm456_vm1, %v2414_v10, 0  ;;  %v2953_v56 = vsel %vm456_vm1, %v2933_v21, 0  ;;  %v16363_v58 = vcombine.high %v16338_v53, %v16338_v53  ;;  %v16389_v31 = vcombine.high %v16366_v59, %v16366_v59  ;;  %v16487_v10 = vld.sshfl [vmem:[%s15446_s10 + $0x24] sm:$0x3 pattern:$0x76325410] }
 0x143   : > { %4529 = vrot.lane.b32.xlu1 %v16106_v18, %s15355_s28  ;;  %v16293_v45 = vpop.permute.xlu0 %2918  ;;  %v16304_v18 = vcombine.high %v16278_v39, %v16278_v39  ;;  %v16382_v61 = vrot.slane %v4989_v24, %v15456_v19  ;;  %v2941_v16 = vsel %vm2932_vm6, %v16268_v33, %v16272_v36 }
 0x144   : > { %v2942_v8 = vsel %vm2932_vm6, %v16272_v36, %v16293_v45  ;;  %v2977_v14 = vsel %vm456_vm1, %v2941_v16, 0 }
 0x145   : > { %v16296_v47 = vpop.permute.xlu1 %2920  ;;  %5030 = vrot.lane.b32.xlu0 %v16261_v30, %s15356_s4  ;;  %14791 = vmatmul.mubr.msk.bf16.vlgmr.msra.gmra.mrb[72].mxu0 %vm452_vm2, %v16202_v32  ;;  %v16413_v4 = vcombine.high %v16382_v61, %v16382_v61 }
 0x146   : > { %14793 = vmatmul.mubr.msk.bf16.vlgmr.msra.gmra.mrb[72].mxu1 %vm452_vm2, %v16202_v32  ;;  %2714 = vmatpush1.bf16.msra.mxu0 %v2456_v40  ;;  %v2943_v17 = vsel %vm2932_vm6, %v16293_v45, %v16296_v47 }
 0x147   : > { %5032 = vrot.lane.b32.xlu1 %v16285_v38, %s15356_s4  ;;  %2755 = vmatpush1.bf16.msra.mxu1 %v2462_v41  ;;  %v16321_v50 = vpop.permute.xlu0 %2922  ;;  %v2983_v25 = vsel %vm456_vm1, %v2943_v17, 0 }
 0x148   : > { %14800 = vmatprep.subr.msk.bf16.mxu0 %vm456_vm1, %v2934_v49  ;;  %14802 = vmatprep.subr.msk.bf16.mxu1 %vm456_vm1, %v2936_v43  ;;  %v2944_v9 = vsel %vm2932_vm6, %v16296_v47, %v16321_v50 }
 0x149   : > { %v16325_v51 = vpop.permute.xlu1 %2924  ;;  %5034 = vrot.lane.b32.xlu0 %v16278_v39, %s15356_s4  ;;  %2745 = vmatprep.mubr.bf16.mxu0 %v15348_v26 }
 0x14a   : > { %2786 = vmatprep.mubr.bf16.mxu1 %v15348_v26  ;;  %v2945_v45 = vsel %vm2932_vm6, %v16321_v50, %v16325_v51 }
 0x14b   : > { %5036 = vrot.lane.b32.xlu1 %v16304_v18, %s15356_s4  ;;  %v16346_v22 = vpop.permute.xlu0 %2926  ;;  %v2989_v41 = vsel %vm456_vm1, %v2945_v45, 0 }
 0x14c   : > { %v2946_v33 = vsel %vm2932_vm6, %v16325_v51, %v16346_v22 }
 0x14d   : > { %v16349_v55 = vpop.permute.xlu1 %2928  ;;  %5038 = vrot.lane.b32.xlu0 %v16313_v48, %s15356_s4  ;;  %14795 = vmatmul.mubr.msk.bf16.vlgmr.msra.gmra.mrb[76].mxu0 %vm452_vm2, %v16202_v32 }
 0x14e   : > { %14797 = vmatmul.mubr.msk.bf16.vlgmr.msra.gmra.mrb[76].mxu1 %vm452_vm2, %v16202_v32  ;;  %3001 = vmatpush1.bf16.msra.mxu0 %v2953_v56  ;;  %v2947_v46 = vsel %vm2932_vm6, %v16346_v22, %v16349_v55 }
 0x14f   : > { %5040 = vrot.lane.b32.xlu1 %v16335_v52, %s15356_s4  ;;  %3042 = vmatpush1.bf16.msra.mxu1 %v2959_v57  ;;  %v2931_v60 = vpop.permute.xlu0 %2930  ;;  %v2995_v42 = vsel %vm456_vm1, %v2947_v46, 0 }
 0x150   : > { %14804 = vmatprep.subr.msk.bf16.mxu0 %vm456_vm1, %v2938_v23  ;;  %14806 = vmatprep.subr.msk.bf16.mxu1 %vm456_vm1, %v2940_v28  ;;  %v2948_v7 = vsel %vm2932_vm6, %v16349_v55, %v2931_v60  ;;  %v16559_v60 = vld [vmem:[%s20049_s1 + $0x18] sm:$0xf]  ;;  %vm10394_vm6 = vcmask 973824  }
 0x151   : > { %v16376_v29 = vpop.permute.xlu1 %3431  ;;  %5042 = vrot.lane.b32.xlu0 %v16338_v53, %s15356_s4  ;;  %3032 = vmatprep.mubr.bf16.mxu0 %v15348_v26 }
 0x152   : > { %3073 = vmatprep.mubr.bf16.mxu1 %v15348_v26 }
 0x153   : > { %5044 = vrot.lane.b32.xlu1 %v16363_v58, %s15356_s4  ;;  %v16402_v32 = vpop.permute.xlu0 %3433 }
 0x154   : > { %v3466_v21 = vsel %vm3465_vm7, %v16376_v29, %v16402_v32 }
 0x155   : > { %v16405_v34 = vpop.permute.xlu1 %3435  ;;  %5046 = vrot.lane.b32.xlu0 %v16366_v59, %s15356_s4  ;;  %14801 = vmatmul.mubr.msk.bf16.vlgmr.msra.gmra.mrb[80].mxu0 %vm452_vm2, %v16394_v62  ;;  %v3486_v55 = vsel %vm456_vm1, %v3466_v21, 0 }
 0x156   : > { %14803 = vmatmul.mubr.msk.bf16.vlgmr.msra.gmra.mrb[80].mxu1 %vm452_vm2, %v16394_v62  ;;  %3083 = vmatpush1.bf16.msra.mxu0 %v2965_v5  ;;  %v3467_v49 = vsel %vm3465_vm7, %v16402_v32, %v16405_v34 }
 0x157   : > { %5048 = vrot.lane.b32.xlu1 %v16389_v31, %s15356_s4  ;;  %3124 = vmatpush1.bf16.msra.mxu1 %v2971_v35  ;;  %v3438_v11 = vpop.permute.xlu0 %3437 }
 0x158   : > { %14808 = vmatprep.subr.msk.bf16.mxu0 %vm456_vm1, %v2942_v8  ;;  %14810 = vmatprep.subr.msk.bf16.mxu1 %vm456_vm1, %v2944_v9  ;;  %v3468_v27 = vsel %vm3465_vm7, %v16405_v34, %v3438_v11 }
 0x159   : > { %v16432_v12 = vpop.permute.xlu1 %3439  ;;  %5050 = vrot.lane.b32.xlu0 %v16382_v61, %s15356_s4  ;;  %3114 = vmatprep.mubr.bf16.mxu0 %v15348_v26  ;;  %v3492_v24 = vsel %vm456_vm1, %v3468_v27, 0 }
 0x15a   : > { %3155 = vmatprep.mubr.bf16.mxu1 %v15348_v26  ;;  %v3469_v43 = vsel %vm3465_vm7, %v3438_v11, %v16432_v12 }
 0x15b   : > { %5052 = vrot.lane.b32.xlu1 %v16413_v4, %s15356_s4  ;;  %v16453_v20 = vpop.permute.xlu0 %3441 }
 0x15c   : > { %v3470_v29 = vsel %vm3465_vm7, %v16432_v12, %v16453_v20 }
 0x15d   : > { %v16455_v0 = vpop.permute.xlu1 %3443  ;;  %5054 = vrot.lane.b32.xlu0 %v16422_v3, %s15356_s4  ;;  %14805 = vmatmul.mubr.msk.bf16.vlgmr.msra.gmra.mrb[84].mxu0 %vm452_vm2, %v16394_v62  ;;  %v3498_v32 = vsel %vm456_vm1, %v3470_v29, 0 }
 0x15e   : > { %14807 = vmatmul.mubr.msk.bf16.vlgmr.msra.gmra.mrb[84].mxu1 %vm452_vm2, %v16394_v62  ;;  %3165 = vmatpush1.bf16.msra.mxu0 %v2977_v14  ;;  %v3471_v56 = vsel %vm3465_vm7, %v16453_v20, %v16455_v0 }
 0x15f   : > { %5056 = vrot.lane.b32.xlu1 %v16442_v13, %s15356_s4  ;;  %3206 = vmatpush1.bf16.msra.mxu1 %v2983_v25  ;;  %v3446_v36 = vpop.permute.xlu0 %3445 }
 0x160   : > { %14812 = vmatprep.subr.msk.bf16.mxu0 %vm456_vm1, %v2946_v33  ;;  %14814 = vmatprep.subr.msk.bf16.mxu1 %vm456_vm1, %v2948_v7 }
 0x161   : > { %v16478_v44 = vpop.permute.xlu1 %3447  ;;  %5058 = vrot.lane.b32.xlu0 %v16445_v15, %s15356_s4  ;;  %3196 = vmatprep.mubr.bf16.mxu0 %v15348_v26 }
 0x162   : > { %3237 = vmatprep.mubr.bf16.mxu1 %v15348_v26  ;;  %v3473_v57 = vsel %vm3465_vm7, %v3446_v36, %v16478_v44 }
 0x163   : > { %5060 = vrot.lane.b32.xlu1 %v16469_v6, %s15356_s4  ;;  %v16495_v47 = vpop.permute.xlu0 %3449 }
 0x164   : > { %v3474_v8 = vsel %vm3465_vm7, %v16478_v44, %v16495_v47 }
 0x165   : > { %v16497_v40 = vpop.permute.xlu1 %3451  ;;  %5062 = vrot.lane.b32.xlu0 %v16487_v10, %s15356_s4  ;;  %14809 = vmatmul.mubr.msk.bf16.vlgmr.msra.gmra.mrb[88].mxu0 %vm452_vm2, %v16394_v62  ;;  %v3510_v16 = vsel %vm456_vm1, %v3474_v8, 0 }
 0x166   : > { %14811 = vmatmul.mubr.msk.bf16.vlgmr.msra.gmra.mrb[88].mxu1 %vm452_vm2, %v16394_v62  ;;  %3247 = vmatpush1.bf16.msra.mxu0 %v2989_v41  ;;  %v3475_v34 = vsel %vm3465_vm7, %v16495_v47, %v16497_v40 }
 0x167   : > { %5563 = vrot.lane.b32.xlu1 %v16261_v30, %s15357_s21  ;;  %3288 = vmatpush1.bf16.msra.mxu1 %v2995_v42  ;;  %v3454_v50 = vpop.permute.xlu0 %3453 }
 0x168   : > { %14818 = vmatprep.subr.msk.bf16.mxu0 %vm456_vm1, %v3467_v49  ;;  %14820 = vmatprep.subr.msk.bf16.mxu1 %vm456_vm1, %v3469_v43  ;;  %v3476_v9 = vsel %vm3465_vm7, %v16497_v40, %v3454_v50 }
 0x169   : > { %v16516_v51 = vpop.permute.xlu1 %3455  ;;  %5565 = vrot.lane.b32.xlu0 %v16285_v38, %s15357_s21  ;;  %3278 = vmatprep.mubr.bf16.mxu0 %v15348_v26  ;;  %v3516_v17 = vsel %vm456_vm1, %v3476_v9, 0 }
 0x16a   : > { %3319 = vmatprep.mubr.bf16.mxu1 %v15348_v26  ;;  %v3477_v5 = vsel %vm3465_vm7, %v3454_v50, %v16516_v51 }
 0x16b   : > { %5567 = vrot.lane.b32.xlu1 %v16278_v39, %s15357_s21  ;;  %v16529_v22 = vpop.permute.xlu0 %3457 }
 0x16c   : > { %v3478_v7 = vsel %vm3465_vm7, %v16516_v51, %v16529_v22 }
 0x16d   : > { %v16531_v54 = vpop.permute.xlu1 %3459  ;;  %5569 = vrot.lane.b32.xlu0 %v16304_v18, %s15357_s21  ;;  %14813 = vmatmul.mubr.msk.bf16.vlgmr.msra.gmra.mrb[92].mxu0 %vm452_vm2, %v16394_v62  ;;  %v3522_v45 = vsel %vm456_vm1, %v3478_v7, 0 }
 0x16e   : > { %14815 = vmatmul.mubr.msk.bf16.vlgmr.msra.gmra.mrb[92].mxu1 %vm452_vm2, %v16394_v62  ;;  %3534 = vmatpush1.bf16.msra.mxu0 %v3486_v55  ;;  %v3472_v62 = vsel %vm3465_vm7, %v16455_v0, %v3446_v36  ;;  %v3479_v0 = vsel %vm3465_vm7, %v16529_v22, %v16531_v54 }
 0x16f   : > { %5571 = vrot.lane.b32.xlu1 %v16313_v48, %s15357_s21  ;;  %3575 = vmatpush1.bf16.msra.mxu1 %v3492_v24  ;;  %v3462_v23 = vpop.permute.xlu0 %3461  ;;  %v3504_v2 = vsel %vm456_vm1, %v3472_v62, 0 }
 0x170   : > { %14822 = vmatprep.subr.msk.bf16.mxu0 %vm456_vm1, %v3471_v56  ;;  %14824 = vmatprep.subr.msk.bf16.mxu1 %vm456_vm1, %v3473_v57  ;;  %v3480_v33 = vsel %vm3465_vm7, %v16531_v54, %v3462_v23 }
 0x171   : > { %v3464_v28 = vpop.permute.xlu1 %3463  ;;  %5573 = vrot.lane.b32.xlu0 %v16335_v52, %s15357_s21  ;;  %3565 = vmatprep.mubr.bf16.mxu0 %v15348_v26  ;;  %v3528_v46 = vsel %vm456_vm1, %v3480_v33, 0 }
 0x172   : > { %3606 = vmatprep.mubr.bf16.mxu1 %v15348_v26  ;;  %v3481_v20 = vsel %vm3465_vm7, %v3462_v23, %v3464_v28  ;;  %vm10927_vm7 = vcmask 965632  }
 0x173   : > { %5575 = vrot.lane.b32.xlu1 %v16338_v53, %s15357_s21  ;;  %v16566_v63 = vpop.permute.xlu0 %3964 }
 0x175   : > { %v16568_v1 = vpop.permute.xlu1 %3966  ;;  %5577 = vrot.lane.b32.xlu0 %v16363_v58, %s15357_s21  ;;  %14819 = vmatmul.mubr.msk.bf16.vlgmr.msra.gmra.mrb[96].mxu0 %vm452_vm2, %v16559_v60 }
 0x176   : > { %14821 = vmatmul.mubr.msk.bf16.vlgmr.msra.gmra.mrb[96].mxu1 %vm452_vm2, %v16559_v60  ;;  %3616 = vmatpush1.bf16.msra.mxu0 %v3498_v32  ;;  %v3999_v54 = vsel %vm3998_vm8, %v16566_v63, %v16568_v1 }
 0x177   : > { %5579 = vrot.lane.b32.xlu1 %v16366_v59, %s15357_s21  ;;  %3657 = vmatpush1.bf16.msra.mxu1 %v3504_v2  ;;  %v16585_v35 = vpop.permute.xlu0 %3968  ;;  %v4019_v23 = vsel %vm456_vm1, %v3999_v54, 0 }
 0x178   : > { %14826 = vmatprep.subr.msk.bf16.mxu0 %vm456_vm1, %v3475_v34  ;;  %14828 = vmatprep.subr.msk.bf16.mxu1 %vm456_vm1, %v3477_v5  ;;  %v4000_v40 = vsel %vm3998_vm8, %v16568_v1, %v16585_v35  ;;  %v16720_v34 = vld [vmem:[%s20049_s1 + $0x1c] sm:$0xf] }
 0x179   : > { %v3971_v37 = vpop.permute.xlu1 %3970  ;;  %5581 = vrot.lane.b32.xlu0 %v16389_v31, %s15357_s21  ;;  %3647 = vmatprep.mubr.bf16.mxu0 %v15348_v26 }
 0x17a   : > { %3688 = vmatprep.mubr.bf16.mxu1 %v15348_v26  ;;  %v4001_v55 = vsel %vm3998_vm8, %v16585_v35, %v3971_v37 }
 0x17b   : > { %5583 = vrot.lane.b32.xlu1 %v16382_v61, %s15357_s21  ;;  %v16600_v11 = vpop.permute.xlu0 %3972  ;;  %v4025_v28 = vsel %vm456_vm1, %v4001_v55, 0 }
 0x17c   : > { %v4002_v41 = vsel %vm3998_vm8, %v3971_v37, %v16600_v11 }
 0x17d   : > { %v16602_v12 = vpop.permute.xlu1 %3974  ;;  %5585 = vrot.lane.b32.xlu0 %v16413_v4, %s15357_s21  ;;  %14823 = vmatmul.mubr.msk.bf16.vlgmr.msra.gmra.mrb[100].mxu0 %vm452_vm2, %v16559_v60 }
 0x17e   : > { %14825 = vmatmul.mubr.msk.bf16.vlgmr.msra.gmra.mrb[100].mxu1 %vm452_vm2, %v16559_v60  ;;  %3698 = vmatpush1.bf16.msra.mxu0 %v3510_v16  ;;  %v4003_v37 = vsel %vm3998_vm8, %v16600_v11, %v16602_v12 }
 0x17f   : > { %5587 = vrot.lane.b32.xlu1 %v16422_v3, %s15357_s21  ;;  %3739 = vmatpush1.bf16.msra.mxu1 %v3516_v17  ;;  %v16618_v14 = vpop.permute.xlu0 %3976  ;;  %v4031_v11 = vsel %vm456_vm1, %v4003_v37, 0 }
 0x180   : > { %14830 = vmatprep.subr.msk.bf16.mxu0 %vm456_vm1, %v3479_v0  ;;  %14832 = vmatprep.subr.msk.bf16.mxu1 %vm456_vm1, %v3481_v20  ;;  %v4004_v29 = vsel %vm3998_vm8, %v16602_v12, %v16618_v14 }
 0x181   : > { %v16622_v25 = vpop.permute.xlu1 %3978  ;;  %5589 = vrot.lane.b32.xlu0 %v16442_v13, %s15357_s21  ;;  %3729 = vmatprep.mubr.bf16.mxu0 %v15348_v26 }
 0x182   : > { %3770 = vmatprep.mubr.bf16.mxu1 %v15348_v26  ;;  %v4005_v8 = vsel %vm3998_vm8, %v16618_v14, %v16622_v25 }
 0x183   : > { %5591 = vrot.lane.b32.xlu1 %v16445_v15, %s15357_s21  ;;  %v16635_v36 = vpop.permute.xlu0 %3980  ;;  %v4037_v12 = vsel %vm456_vm1, %v4005_v8, 0 }
 0x184   : > { %v4006_v62 = vsel %vm3998_vm8, %v16622_v25, %v16635_v36 }
 0x185   : > { %v16637_v44 = vpop.permute.xlu1 %3982  ;;  %5593 = vrot.lane.b32.xlu0 %v16469_v6, %s15357_s21  ;;  %14827 = vmatmul.mubr.msk.bf16.vlgmr.msra.gmra.mrb[104].mxu0 %vm452_vm2, %v16559_v60 }
 0x186   : > { %14829 = vmatmul.mubr.msk.bf16.vlgmr.msra.gmra.mrb[104].mxu1 %vm452_vm2, %v16559_v60  ;;  %v16649_v47 = vpop.f32.mrb[0].mxu1  ;;  %3780 = vmatpush1.bf16.msra.mxu0 %v3522_v45 }
 0x187   : > { %5595 = vrot.lane.b32.xlu1 %v16487_v10, %s15357_s21  ;;  %3821 = vmatpush1.bf16.msra.mxu1 %v3528_v46  ;;  %v16656_v42 = vpop.permute.xlu0 %3984  ;;  %v16658_v49 = vpop.f32.mrb[1].mxu1 }
 0x188   : > { %14836 = vmatprep.subr.msk.bf16.mxu0 %vm456_vm1, %v4000_v40  ;;  %14838 = vmatprep.subr.msk.bf16.mxu1 %vm456_vm1, %v4002_v41  ;;  %v16664_v50 = vpop.f32.mrb[0].mxu0  ;;  %v584_v21 = vpop.f32.mrb[2].mxu1  ;;  %v4008_v14 = vsel %vm3998_vm8, %v16637_v44, %v16656_v42 }
 0x189   : > { %v16662_v43 = vpop.permute.xlu1 %3986  ;;  %6096 = vrot.lane.b32.xlu0 %v16261_v30, %s15358_s7  ;;  %3811 = vmatprep.mubr.bf16.mxu0 %v15348_v26  ;;  %v16669_v51 = vpop.f32.mrb[1].mxu0 }
 0x18a   : > { %3852 = vmatprep.mubr.bf16.mxu1 %v15348_v26  ;;  %v543_v27 = vpop.f32.mrb[2].mxu0  ;;  %v585_v22 = vpop.f32.mrb[3].mxu1 }
 0x18b   : > { %6098 = vrot.lane.b32.xlu1 %v16285_v38, %s15358_s7  ;;  %v16679_v24 = vpop.permute.xlu0 %3988  ;;  %v544_v56 = vpop.f32.mrb[3].mxu0  ;;  %v4007_v27 = vsel %vm3998_vm8, %v16635_v36, %v16637_v44  ;;  %v4009_v22 = vsel %vm3998_vm8, %v16656_v42, %v16662_v43 }
 0x18c   : > { %v4010_v25 = vsel %vm3998_vm8, %v16662_v43, %v16679_v24  ;;  %v4043_v36 = vsel %vm456_vm1, %v4007_v27, 0  ;;  %v4049_v44 = vsel %vm456_vm1, %v4009_v22, 0 }
 0x18d   : > { %v16681_v57 = vpop.permute.xlu1 %3990  ;;  %6100 = vrot.lane.b32.xlu0 %v16278_v39, %s15358_s7  ;;  %14831 = vmatmul.mubr.msk.bf16.vlgmr.msra.gmra.mrb[108].mxu0 %vm452_vm2, %v16559_v60 }
 0x18e   : > { %14833 = vmatmul.mubr.msk.bf16.vlgmr.msra.gmra.mrb[108].mxu1 %vm452_vm2, %v16559_v60  ;;  %4067 = vmatpush1.bf16.msra.mxu0 %v4019_v23 }
 0x18f   : > { %6102 = vrot.lane.b32.xlu1 %v16304_v18, %s15358_s7  ;;  %4108 = vmatpush1.bf16.msra.mxu1 %v4025_v28  ;;  %v16699_v63 = vpop.permute.xlu0 %3992 }
 0x190   : > { %14840 = vmatprep.subr.msk.bf16.mxu0 %vm456_vm1, %v4004_v29  ;;  %14842 = vmatprep.subr.msk.bf16.mxu1 %vm456_vm1, %v4006_v62  ;;  %v16705_v1 = vpop.f32.mrb[4].mxu0  ;;  %v4012_v43 = vsel %vm3998_vm8, %v16681_v57, %v16699_v63 }
 0x191   : > { %v16703_v60 = vpop.permute.xlu1 %3994  ;;  %6104 = vrot.lane.b32.xlu0 %v16313_v48, %s15358_s7  ;;  %4098 = vmatprep.mubr.bf16.mxu0 %v15348_v26  ;;  %v16710_v32 = vpop.f32.mrb[4].mxu1 }
 0x192   : > { %v16712_v2 = vpop.f32.mrb[5].mxu0  ;;  %4139 = vmatprep.mubr.bf16.mxu1 %v15348_v26  ;;  %v16722_v5 = vpop.f32.mrb[5].mxu1 }
 0x193   : > { %6106 = vrot.lane.b32.xlu1 %v16335_v52, %s15358_s7  ;;  %v625_v35 = vpop.f32.mrb[6].mxu0  ;;  %v3997_v9 = vpop.permute.xlu0 %3996 }
 0x194   : > { %v666_v16 = vpop.f32.mrb[6].mxu1  ;;  %v626_v20 = vpop.f32.mrb[7].mxu0  ;;  %v4014_v42 = vsel %vm3998_vm8, %v16703_v60, %v3997_v9 }
 0x195   : > { %v16730_v17 = vpop.permute.xlu1 %4497  ;;  %6108 = vrot.lane.b32.xlu0 %v16338_v53, %s15358_s7  ;;  %14837 = vmatmul.mubr.msk.bf16.vlgmr.msra.gmra.mrb[112].mxu0 %vm452_vm2, %v16720_v34  ;;  %v667_v0 = vpop.f32.mrb[7].mxu1  ;;  %v4011_v20 = vsel %vm3998_vm8, %v16679_v24, %v16681_v57 }
 0x196   : > { %14839 = vmatmul.mubr.msk.bf16.vlgmr.msra.gmra.mrb[112].mxu1 %vm452_vm2, %v16720_v34  ;;  %4149 = vmatpush1.bf16.msra.mxu0 %v4031_v11  ;;  %v4013_v0 = vsel %vm3998_vm8, %v16699_v63, %v16703_v60  ;;  %v4055_v24 = vsel %vm456_vm1, %v4011_v20, 0  ;;  %vm11460_vm8 = vcmask 834560  }
 0x197   : > { %6110 = vrot.lane.b32.xlu1 %v16363_v58, %s15358_s7  ;;  %4190 = vmatpush1.bf16.msra.mxu1 %v4037_v12  ;;  %v16748_v7 = vpop.permute.xlu0 %4499  ;;  %v4061_v57 = vsel %vm456_vm1, %v4013_v0, 0 }
 0x198   : > { %14844 = vmatprep.subr.msk.bf16.mxu0 %vm456_vm1, %v4008_v14  ;;  %14846 = vmatprep.subr.msk.bf16.mxu1 %vm456_vm1, %v4010_v25  ;;  %v16754_v45 = vpop.f32.mrb[8].mxu0 }
 0x199   : > { %v16752_v33 = vpop.permute.xlu1 %4501  ;;  %6112 = vrot.lane.b32.xlu0 %v16366_v59, %s15358_s7  ;;  %4180 = vmatprep.mubr.bf16.mxu0 %v15348_v26  ;;  %v16759_v46 = vpop.f32.mrb[8].mxu1 }
 0x19a   : > { %v16761_v40 = vpop.f32.mrb[9].mxu0  ;;  %4221 = vmatprep.mubr.bf16.mxu1 %v15348_v26  ;;  %v16766_v41 = vpop.f32.mrb[9].mxu1  ;;  %v4533_v63 = vsel %vm4531_vm9, %v16748_v7, %v16752_v33 }
 0x19b   : > { %6114 = vrot.lane.b32.xlu1 %v16389_v31, %s15358_s7  ;;  %v707_v21 = vpop.f32.mrb[10].mxu0  ;;  %v16774_v54 = vpop.permute.xlu0 %4503 }
 0x19c   : > { %v748_v55 = vpop.f32.mrb[10].mxu1  ;;  %v708_v23 = vpop.f32.mrb[11].mxu0 }
 0x19d   : > { %v16776_v56 = vpop.permute.xlu1 %4505  ;;  %6116 = vrot.lane.b32.xlu0 %v16382_v61, %s15358_s7  ;;  %14841 = vmatmul.mubr.msk.bf16.vlgmr.msra.gmra.mrb[116].mxu0 %vm452_vm2, %v16720_v34  ;;  %v749_v28 = vpop.f32.mrb[11].mxu1 }
 0x19e   : > { %14843 = vmatmul.mubr.msk.bf16.vlgmr.msra.gmra.mrb[116].mxu1 %vm452_vm2, %v16720_v34  ;;  %4231 = vmatpush1.bf16.msra.mxu0 %v4043_v36  ;;  %v4535_v60 = vsel %vm4531_vm9, %v16774_v54, %v16776_v56 }
 0x19f   : > { %6118 = vrot.lane.b32.xlu1 %v16413_v4, %s15358_s7  ;;  %4272 = vmatpush1.bf16.msra.mxu1 %v4049_v44  ;;  %v16793_v29 = vpop.permute.xlu0 %4507 }
 0x1a0   : > { %14848 = vmatprep.subr.msk.bf16.mxu0 %vm456_vm1, %v4012_v43  ;;  %14850 = vmatprep.subr.msk.bf16.mxu1 %vm456_vm1, %v4014_v42  ;;  %v16799_v35 = vpop.f32.mrb[12].mxu0 }
 0x1a1   : > { %v16797_v62 = vpop.permute.xlu1 %4509  ;;  %6120 = vrot.lane.b32.xlu0 %v16422_v3, %s15358_s7  ;;  %v16803_v37 = vpop.f32.mrb[12].mxu1  ;;  %4262 = vmatprep.mubr.bf16.mxu0 %v15348_v26 }
 0x1a2   : > { %v16806_v8 = vpop.f32.mrb[13].mxu0  ;;  %4303 = vmatprep.mubr.bf16.mxu1 %v15348_v26  ;;  %v16811_v9 = vpop.f32.mrb[13].mxu1 }
 0x1a3   : > { %6122 = vrot.lane.b32.xlu1 %v16442_v13, %s15358_s7  ;;  %v789_v16 = vpop.f32.mrb[14].mxu0  ;;  %v16819_v11 = vpop.permute.xlu0 %4511 }
 0x1a4   : > { %v830_v12 = vpop.f32.mrb[14].mxu1  ;;  %v790_v25 = vpop.f32.mrb[15].mxu0  ;;  %v4532_v16 = vsel %vm4531_vm9, %v16730_v17, %v16748_v7 }
 0x1a5   : > { %v16821_v14 = vpop.permute.xlu1 %4513  ;;  %6124 = vrot.lane.b32.xlu0 %v16445_v15, %s15358_s7  ;;  %14845 = vmatmul.mubr.msk.bf16.vlgmr.msra.gmra.mrb[120].mxu0 %vm452_vm2, %v16720_v34  ;;  %v831_v21 = vpop.f32.mrb[15].mxu1 }
 0x1a6   : > { %14847 = vmatmul.mubr.msk.bf16.vlgmr.msra.gmra.mrb[120].mxu1 %vm452_vm2, %v16720_v34  ;;  %4313 = vmatpush1.bf16.msra.mxu0 %v4055_v24 }
 0x1a7   : > { %6126 = vrot.lane.b32.xlu1 %v16469_v6, %s15358_s7  ;;  %4354 = vmatpush1.bf16.msra.mxu1 %v4061_v57  ;;  %v16839_v27 = vpop.permute.xlu0 %4515 }
 0x1a8   : > { %14854 = vmatprep.subr.msk.bf16.mxu0 %vm456_vm1, %v4533_v63  ;;  %14856 = vmatprep.subr.msk.bf16.mxu1 %vm456_vm1, %v4535_v60  ;;  %v918_v55 = vpop.f32.mrb[16].mxu0 }
 0x1a9   : > { %v16843_v22 = vpop.permute.xlu1 %4517  ;;  %v16846_v23 = vadd.f32 %v918_v55, %v16664_v50  ;;  %v959_v28 = vpop.f32.mrb[16].mxu1  ;;  %6128 = vrot.lane.b32.xlu0 %v16487_v10, %s15358_s7  ;;  %4344 = vmatprep.mubr.bf16.mxu0 %v15348_v26  ;;  %s15364_s7 = smov 22  }
 0x1aa   : > { %v920_v36 = vpop.f32.mrb[17].mxu0  ;;  %v16852_v44 = vadd.f32 %v959_v28, %v16649_v47  ;;  %v961_v43 = vpop.f32.mrb[17].mxu1  ;;  %4385 = vmatprep.mubr.bf16.mxu1 %v15348_v26  ;;  %v4534_v47 = vsel %vm4531_vm9, %v16752_v33, %v16774_v54  ;;  %v4539_v33 = vsel %vm4531_vm9, %v16819_v11, %v16821_v14 }
 0x1ab   : > { %v16855_v42 = vadd.f32 %v920_v36, %v16669_v51  ;;  %6629 = vrot.lane.b32.xlu1 %v16261_v30, %s15359_s11  ;;  %v922_v50 = vpop.f32.mrb[18].mxu0  ;;  %v16867_v20 = vadd.f32 %v961_v43, %v16658_v49  ;;  %v16869_v51 = vpop.permute.xlu0 %4519  ;;  %v4552_v49 = vsel %vm456_vm1, %v4532_v16, 0  ;;  %v4558_v7 = vsel %vm456_vm1, %v4534_v47, 0 }
 0x1ac   : > { %v963_v0 = vpop.f32.mrb[18].mxu1  ;;  %v923_v30 = vpop.f32.mrb[19].mxu0 }
 0x1ad   : > { %v16871_v12 = vpop.permute.xlu1 %4521  ;;  %6631 = vrot.lane.b32.xlu0 %v16285_v38, %s15359_s11  ;;  %14849 = vmatmul.mubr.msk.bf16.vlgmr.msra.gmra.mrb[124].mxu0 %vm452_vm2, %v16720_v34  ;;  %v964_v17 = vpop.f32.mrb[19].mxu1  ;;  %v4537_v38 = vsel %vm4531_vm9, %v16793_v29, %v16797_v62 }
 0x1ae   : > { %14851 = vmatmul.mubr.msk.bf16.vlgmr.msra.gmra.mrb[124].mxu1 %vm452_vm2, %v16720_v34  ;;  %4600 = vmatpush1.bf16.msra.mxu0 %v4552_v49 }
 0x1af   : > { %6633 = vrot.lane.b32.xlu1 %v16278_v39, %s15359_s11  ;;  %4641 = vmatpush1.bf16.msra.mxu1 %v4558_v7  ;;  %v16889_v54 = vpop.permute.xlu0 %4523  ;;  %v4542_v7 = vsel %vm4531_vm9, %v16843_v22, %v16869_v51 }
 0x1b0   : > { %14858 = vmatprep.subr.msk.bf16.mxu0 %vm456_vm1, %v4537_v38  ;;  %14860 = vmatprep.subr.msk.bf16.mxu1 %vm456_vm1, %v4539_v33  ;;  %v1000_v34 = vpop.f32.mrb[20].mxu0 }
 0x1b1   : > { %v16893_v39 = vpop.permute.xlu1 %4525  ;;  %v16896_v25 = vadd.f32 %v1000_v34, %v16705_v1  ;;  %v1041_v21 = vpop.f32.mrb[20].mxu1  ;;  %6635 = vrot.lane.b32.xlu0 %v16304_v18, %s15359_s11  ;;  %4631 = vmatprep.mubr.bf16.mxu0 %v15348_v26  ;;  %v16913_v1 = vld [vmem:[%s20049_s1 + $0x20] sm:$0xf] }
 0x1b2   : > { %v1002_v24 = vpop.f32.mrb[21].mxu0  ;;  %v16902_v57 = vadd.f32 %v1041_v21, %v16710_v32  ;;  %v1043_v60 = vpop.f32.mrb[21].mxu1  ;;  %4672 = vmatprep.mubr.bf16.mxu1 %v15348_v26  ;;  %v4536_v32 = vsel %vm4531_vm9, %v16776_v56, %v16793_v29  ;;  %v4543_v29 = vsel %vm4531_vm9, %v16869_v51, %v16871_v12 }
 0x1b3   : > { %v16905_v63 = vadd.f32 %v1002_v24, %v16712_v2  ;;  %6637 = vrot.lane.b32.xlu1 %v16313_v48, %s15359_s11  ;;  %v1004_v18 = vpop.f32.mrb[22].mxu0  ;;  %v4538_v2 = vsel %vm4531_vm9, %v16797_v62, %v16819_v11  ;;  %v16922_v55 = vadd.f32 %v1043_v60, %v16722_v5  ;;  %v16924_v48 = vpop.permute.xlu0 %4527  ;;  %v4564_v5 = vsel %vm456_vm1, %v4536_v32, 0 }
 0x1b4   : > { %v1045_v28 = vpop.f32.mrb[22].mxu1  ;;  %v1005_v43 = vpop.f32.mrb[23].mxu0  ;;  %v4570_v56 = vsel %vm456_vm1, %v4538_v2, 0 }
 0x1b5   : > { %v4530_v36 = vpop.permute.xlu1 %4529  ;;  %6639 = vrot.lane.b32.xlu0 %v16335_v52, %s15359_s11  ;;  %14855 = vmatmul.mubr.msk.bf16.vlgmr.msra.gmra.mrb[128].mxu0 %vm452_vm2, %v16913_v1  ;;  %v1046_v50 = vpop.f32.mrb[23].mxu1  ;;  %v4541_v52 = vsel %vm4531_vm9, %v16839_v27, %v16843_v22  ;;  %v7075_v28 = vld [vmem:[%s15446_s10 + $0x4] sm:$0xff] }
 0x1b6   : > { %14857 = vmatmul.mubr.msk.bf16.vlgmr.msra.gmra.mrb[128].mxu1 %vm452_vm2, %v16913_v1  ;;  %4682 = vmatpush1.bf16.msra.mxu0 %v4564_v5  ;;  %v4547_v22 = vsel %vm4531_vm9, %v16924_v48, %v4530_v36 }
 0x1b7   : > { %6641 = vrot.lane.b32.xlu1 %v16338_v53, %s15359_s11  ;;  %4723 = vmatpush1.bf16.msra.mxu1 %v4570_v56  ;;  %v16942_v62 = vpop.permute.xlu0 %5030 }
 0x1b8   : > { %14862 = vmatprep.subr.msk.bf16.mxu0 %vm456_vm1, %v4541_v52  ;;  %14864 = vmatprep.subr.msk.bf16.mxu1 %vm456_vm1, %v4543_v29  ;;  %v1082_v11 = vpop.f32.mrb[24].mxu0 }
 0x1b9   : > { %v16946_v53 = vpop.permute.xlu1 %5032  ;;  %v16949_v16 = vadd.f32 %v1082_v11, %v16754_v45  ;;  %v1123_v47 = vpop.f32.mrb[24].mxu1  ;;  %6643 = vrot.lane.b32.xlu0 %v16363_v58, %s15359_s11  ;;  %4713 = vmatprep.mubr.bf16.mxu0 %v15348_v26  ;;  %v4540_v58 = vsel %vm4531_vm9, %v16821_v14, %v16839_v27  ;;  %v4582_v27 = vsel %vm456_vm1, %v4542_v7, 0  ;;  %v7076_v7 = vld [vmem:[%s15446_s10 + $0xc] sm:$0xff] }
 0x1ba   : > { %v1084_v0 = vpop.f32.mrb[25].mxu0  ;;  %v16955_v30 = vadd.f32 %v1123_v47, %v16759_v46  ;;  %v1125_v49 = vpop.f32.mrb[25].mxu1  ;;  %4754 = vmatprep.mubr.bf16.mxu1 %v15348_v26 }
 0x1bb   : > { %v16958_v17 = vadd.f32 %v1084_v0, %v16761_v40  ;;  %6645 = vrot.lane.b32.xlu1 %v16366_v59, %s15359_s11  ;;  %v1086_v45 = vpop.f32.mrb[26].mxu0  ;;  %v16970_v46 = vadd.f32 %v1125_v49, %v16766_v41  ;;  %v16972_v40 = vpop.permute.xlu0 %5034  ;;  %v4576_v41 = vsel %vm456_vm1, %v4540_v58, 0 }
 0x1bc   : > { %v1127_v38 = vpop.f32.mrb[26].mxu1  ;;  %v1087_v59 = vpop.f32.mrb[27].mxu0 }
 0x1bd   : > { %v16974_v33 = vpop.permute.xlu1 %5036  ;;  %6647 = vrot.lane.b32.xlu0 %v16389_v31, %s15359_s11  ;;  %14859 = vmatmul.mubr.msk.bf16.vlgmr.msra.gmra.mrb[132].mxu0 %vm452_vm2, %v16913_v1  ;;  %v1128_v14 = vpop.f32.mrb[27].mxu1  ;;  %v4545_v31 = vsel %vm4531_vm9, %v16889_v54, %v16893_v39  ;;  %v5065_v38 = vsel %vm5064_vm10, %v16942_v62, %v16946_v53 }
 0x1be   : > { %14861 = vmatmul.mubr.msk.bf16.vlgmr.msra.gmra.mrb[132].mxu1 %vm452_vm2, %v16913_v1  ;;  %4764 = vmatpush1.bf16.msra.mxu0 %v4576_v41 }
 0x1bf   : > { %6649 = vrot.lane.b32.xlu1 %v16382_v61, %s15359_s11  ;;  %4805 = vmatpush1.bf16.msra.mxu1 %v4582_v27  ;;  %v16991_v51 = vpop.permute.xlu0 %5038  ;;  %v7104_v27 = vcombine.high %v7076_v7, %v7076_v7 }
 0x1c0   : > { %14866 = vmatprep.subr.msk.bf16.mxu0 %vm456_vm1, %v4545_v31  ;;  %14868 = vmatprep.subr.msk.bf16.mxu1 %vm456_vm1, %v4547_v22  ;;  %v1164_v34 = vpop.f32.mrb[28].mxu0  ;;  %v5068_v5 = vsel %vm5064_vm10, %v16974_v33, %v16991_v51 }
 0x1c1   : > { %v16995_v61 = vpop.permute.xlu1 %5040  ;;  %v16998_v21 = vadd.f32 %v1164_v34, %v16799_v35  ;;  %v1205_v24 = vpop.f32.mrb[28].mxu1  ;;  %6651 = vrot.lane.b32.xlu0 %v16413_v4, %s15359_s11  ;;  %4795 = vmatprep.mubr.bf16.mxu0 %v15348_v26  ;;  %v4544_v4 = vsel %vm4531_vm9, %v16871_v12, %v16889_v54  ;;  %v17031_v54 = vrot.slane %v7075_v28, %v15456_v19 }
 0x1c2   : > { %v1166_v60 = vpop.f32.mrb[29].mxu0  ;;  %v17004_v18 = vadd.f32 %v1205_v24, %v16803_v37  ;;  %v1207_v2 = vpop.f32.mrb[29].mxu1  ;;  %4836 = vmatprep.mubr.bf16.mxu1 %v15348_v26  ;;  %v4546_v37 = vsel %vm4531_vm9, %v16893_v39, %v16924_v48  ;;  %v7087_v48 = vcombine.high %v7075_v28, %v7075_v28  ;;  %vm11993_vm9 = vcmask 826368  }
 0x1c3   : > { %v17007_v32 = vadd.f32 %v1166_v60, %v16806_v8  ;;  %6653 = vrot.lane.b32.xlu1 %v16422_v3, %s15359_s11  ;;  %v1168_v35 = vpop.f32.mrb[30].mxu0  ;;  %v17020_v36 = vadd.f32 %v1207_v2, %v16811_v9  ;;  %v17022_v8 = vpop.permute.xlu0 %5042  ;;  %v4588_v9 = vsel %vm456_vm1, %v4544_v4, 0  ;;  %v4594_v39 = vsel %vm456_vm1, %v4546_v37, 0 }
 0x1c4   : > { %v1209_v43 = vpop.f32.mrb[30].mxu1  ;;  %v1169_v3 = vpop.f32.mrb[31].mxu0  ;;  %v17059_v0 = vcombine.high %v17031_v54, %v17031_v54  ;;  %v5070_v22 = vsel %vm5064_vm10, %v16995_v61, %v17022_v8 }
 0x1c5   : > { %v17024_v50 = vpop.permute.xlu1 %5044  ;;  %6655 = vrot.lane.b32.xlu0 %v16442_v13, %s15359_s11  ;;  %14863 = vmatmul.mubr.msk.bf16.vlgmr.msra.gmra.mrb[136].mxu0 %vm452_vm2, %v16913_v1  ;;  %v1210_v12 = vpop.f32.mrb[31].mxu1  ;;  %v5066_v13 = vsel %vm5064_vm10, %v16946_v53, %v16972_v40  ;;  %v17092_v53 = vrot.slane %v7076_v7, %v15456_v19 }
 0x1c6   : > { %14865 = vmatmul.mubr.msk.bf16.vlgmr.msra.gmra.mrb[136].mxu1 %vm452_vm2, %v16913_v1  ;;  %4846 = vmatpush1.bf16.msra.mxu0 %v4588_v9  ;;  %v17141_v12 = vrot.slane %v7104_v27, %v15456_v19  ;;  %v5071_v9 = vsel %vm5064_vm10, %v17022_v8, %v17024_v50 }
 0x1c7   : > { %6657 = vrot.lane.b32.xlu1 %v16445_v15, %s15359_s11  ;;  %4887 = vmatpush1.bf16.msra.mxu1 %v4594_v39  ;;  %v17045_v56 = vpop.permute.xlu0 %5046  ;;  %v17124_v28 = vcombine.high %v17092_v53, %v17092_v53  ;;  %v5103_v8 = vsel %vm456_vm1, %v5071_v9, 0 }
 0x1c8   : > { %14872 = vmatprep.subr.msk.bf16.mxu0 %vm456_vm1, %v5066_v13  ;;  %14874 = vmatprep.subr.msk.bf16.mxu1 %vm456_vm1, %v5068_v5  ;;  %v1435_v52 = vpop.f32.mrb[32].mxu0  ;;  %v5072_v31 = vsel %vm5064_vm10, %v17024_v50, %v17045_v56  ;;  %v17172_v50 = vcombine.high %v17141_v12, %v17141_v12 }
 0x1c9   : > { %v17049_v15 = vpop.permute.xlu1 %5048  ;;  %v17052_v29 = vadd.f32 %v1435_v52, %v16846_v23  ;;  %v1476_v11 = vpop.f32.mrb[32].mxu1  ;;  %6659 = vrot.lane.b32.xlu0 %v16469_v6, %s15359_s11  ;;  %4877 = vmatprep.mubr.bf16.mxu0 %v15348_v26  ;;  %v17071_v23 = vrot.slane %v7087_v48, %v15456_v19 }
 0x1ca   : > { %v1437_v47 = vpop.f32.mrb[33].mxu0  ;;  %v17062_v49 = vadd.f32 %v1476_v11, %v16852_v44  ;;  %v1478_v58 = vpop.f32.mrb[33].mxu1  ;;  %4918 = vmatprep.mubr.bf16.mxu1 %v15348_v26  ;;  %v5067_v44 = vsel %vm5064_vm10, %v16972_v40, %v16974_v33 }
 0x1cb   : > { %v17065_v45 = vadd.f32 %v1437_v47, %v16855_v42  ;;  %6661 = vrot.lane.b32.xlu1 %v16487_v10, %s15359_s11  ;;  %v1439_v6 = vpop.f32.mrb[34].mxu0  ;;  %v17081_v42 = vadd.f32 %v1478_v58, %v16867_v20  ;;  %v17083_v59 = vpop.permute.xlu0 %5050  ;;  %v5085_v20 = vsel %vm456_vm1, %v5065_v38, 0  ;;  %v5091_v40 = vsel %vm456_vm1, %v5067_v44, 0  ;;  %s15365_s11 = smov 120  }
 0x1cc   : > { %v1480_v10 = vpop.f32.mrb[34].mxu1  ;;  %v1440_v41 = vpop.f32.mrb[35].mxu0  ;;  %v17102_v33 = vcombine.high %v17071_v23, %v17071_v23  ;;  %v5074_v47 = vsel %vm5064_vm10, %v17049_v15, %v17083_v59 }
 0x1cd   : > { %v17085_v14 = vpop.permute.xlu1 %5052  ;;  %7162 = vrot.lane.b32.xlu0 %v17031_v54, %s15360_s22  ;;  %14867 = vmatmul.mubr.msk.bf16.vlgmr.msra.gmra.mrb[140].mxu0 %vm452_vm2, %v16913_v1  ;;  %v1481_v62 = vpop.f32.mrb[35].mxu1 }
 0x1ce   : > { %14869 = vmatmul.mubr.msk.bf16.vlgmr.msra.gmra.mrb[140].mxu1 %vm452_vm2, %v16913_v1  ;;  %5133 = vmatpush1.bf16.msra.mxu0 %v5085_v20 }
 0x1cf   : > { %7164 = vrot.lane.b32.xlu1 %v17059_v0, %s15360_s22  ;;  %5174 = vmatpush1.bf16.msra.mxu1 %v5091_v40  ;;  %v17110_v1 = vpop.permute.xlu0 %5054 }
 0x1d0   : > { %14876 = vmatprep.subr.msk.bf16.mxu0 %vm456_vm1, %v5070_v22  ;;  %14878 = vmatprep.subr.msk.bf16.mxu1 %vm456_vm1, %v5072_v31  ;;  %v1517_v24 = vpop.f32.mrb[36].mxu0  ;;  %v5076_v58 = vsel %vm5064_vm10, %v17085_v14, %v17110_v1  ;;  %v7078_v31 = vld [vmem:[%s15446_s10 + $0x1c] sm:$0xff] }
 0x1d1   : > { %v17114_v34 = vpop.permute.xlu1 %5056  ;;  %v17117_v60 = vadd.f32 %v1517_v24, %v16896_v25  ;;  %v1558_v2 = vpop.f32.mrb[36].mxu1  ;;  %7166 = vrot.lane.b32.xlu0 %v17071_v23, %s15360_s22  ;;  %5164 = vmatprep.mubr.bf16.mxu0 %v15348_v26  ;;  %v17138_v25 = vld [vmem:[%s20049_s1 + $0x24] sm:$0xf]  ;;  %v5073_v24 = vsel %vm5064_vm10, %v17045_v56, %v17049_v15  ;;  %v17225_v15 = vrot.slane %v7078_v31, %v15456_v19 }
 0x1d2   : > { %v1519_v35 = vpop.f32.mrb[37].mxu0  ;;  %v17127_v4 = vadd.f32 %v1558_v2, %v16902_v57  ;;  %v1560_v43 = vpop.f32.mrb[37].mxu1  ;;  %5205 = vmatprep.mubr.bf16.mxu1 %v15348_v26  ;;  %v7077_v57 = vld [vmem:[%s15446_s10 + $0x14] sm:$0xff] }
 0x1d3   : > { %v17130_v37 = vadd.f32 %v1519_v35, %v16905_v63  ;;  %7168 = vrot.lane.b32.xlu1 %v17102_v33, %s15360_s22  ;;  %v1521_v3 = vpop.f32.mrb[38].mxu0  ;;  %v5069_v63 = vsel %vm5064_vm10, %v16991_v51, %v16995_v61  ;;  %v17151_v39 = vadd.f32 %v1560_v43, %v16922_v55  ;;  %v17153_v48 = vpop.permute.xlu0 %5058  ;;  %v17162_v61 = vrot.slane %v7077_v57, %v15456_v19 }
 0x1d4   : > { %v1562_v13 = vpop.f32.mrb[38].mxu1  ;;  %v1522_v52 = vpop.f32.mrb[39].mxu0  ;;  %v5097_v55 = vsel %vm456_vm1, %v5069_v63, 0  ;;  %v7121_v11 = vcombine.high %v7077_v57, %v7077_v57  ;;  %v7138_v57 = vcombine.high %v7078_v31, %v7078_v31  ;;  %v5078_v9 = vsel %vm5064_vm10, %v17114_v34, %v17153_v48 }
 0x1d5   : > { %v17155_v5 = vpop.permute.xlu1 %5060  ;;  %7170 = vrot.lane.b32.xlu0 %v17092_v53, %s15360_s22  ;;  %14873 = vmatmul.mubr.msk.bf16.vlgmr.msra.gmra.mrb[144].mxu0 %vm452_vm2, %v17138_v25  ;;  %v1563_v51 = vpop.f32.mrb[39].mxu1  ;;  %v17192_v62 = vcombine.high %v17162_v61, %v17162_v61 }
 0x1d6   : > { %14875 = vmatmul.mubr.msk.bf16.vlgmr.msra.gmra.mrb[144].mxu1 %vm452_vm2, %v17138_v25  ;;  %5215 = vmatpush1.bf16.msra.mxu0 %v5097_v55  ;;  %v17204_v22 = vrot.slane %v7121_v11, %v15456_v19 }
 0x1d7   : > { %7172 = vrot.lane.b32.xlu1 %v17124_v28, %s15360_s22  ;;  %5256 = vmatpush1.bf16.msra.mxu1 %v5103_v8  ;;  %v5063_v6 = vpop.permute.xlu0 %5062 }
 0x1d8   : > { %14880 = vmatprep.subr.msk.bf16.mxu0 %vm456_vm1, %v5074_v47  ;;  %14882 = vmatprep.subr.msk.bf16.mxu1 %vm456_vm1, %v5076_v58  ;;  %v1599_v38 = vpop.f32.mrb[40].mxu0  ;;  %v5080_v63 = vsel %vm5064_vm10, %v17155_v5, %v5063_v6  ;;  %v17254_v47 = vcombine.high %v17225_v15, %v17225_v15 }
 0x1d9   : > { %v17182_v7 = vpop.permute.xlu1 %5563  ;;  %v17185_v44 = vadd.f32 %v1599_v38, %v16949_v16  ;;  %v1640_v10 = vpop.f32.mrb[40].mxu1  ;;  %7174 = vrot.lane.b32.xlu0 %v17141_v12, %s15360_s22  ;;  %5246 = vmatprep.mubr.bf16.mxu0 %v15348_v26 }
 0x1da   : > { %v1601_v41 = vpop.f32.mrb[41].mxu0  ;;  %v17195_v20 = vadd.f32 %v1640_v10, %v16955_v30  ;;  %v1642_v27 = vpop.f32.mrb[41].mxu1  ;;  %5287 = vmatprep.mubr.bf16.mxu1 %v15348_v26  ;;  %v5075_v30 = vsel %vm5064_vm10, %v17083_v59, %v17085_v14  ;;  %v17235_v14 = vcombine.high %v17204_v22, %v17204_v22  ;;  %v17266_v10 = vrot.slane %v7138_v57, %v15456_v19 }
 0x1db   : > { %v17198_v40 = vadd.f32 %v1601_v41, %v16958_v17  ;;  %7176 = vrot.lane.b32.xlu1 %v17172_v50, %s15360_s22  ;;  %v1603_v16 = vpop.f32.mrb[42].mxu0  ;;  %v17214_v17 = vadd.f32 %v1642_v27, %v16970_v46  ;;  %v17216_v2 = vpop.permute.xlu0 %5565  ;;  %v5109_v46 = vsel %vm456_vm1, %v5073_v24, 0  ;;  %v5115_v59 = vsel %vm456_vm1, %v5075_v30, 0 }
 0x1dc   : > { %v1644_v35 = vpop.f32.mrb[42].mxu1  ;;  %v1604_v3 = vpop.f32.mrb[43].mxu0  ;;  %v5077_v41 = vsel %vm5064_vm10, %v17110_v1, %v17114_v34 }
 0x1dd   : > { %v17218_v43 = vpop.permute.xlu1 %5567  ;;  %7178 = vrot.lane.b32.xlu0 %v17162_v61, %s15360_s22  ;;  %14877 = vmatmul.mubr.msk.bf16.vlgmr.msra.gmra.mrb[148].mxu0 %vm452_vm2, %v17138_v25  ;;  %v1645_v56 = vpop.f32.mrb[43].mxu1 }
 0x1de   : > { %14879 = vmatmul.mubr.msk.bf16.vlgmr.msra.gmra.mrb[148].mxu1 %vm452_vm2, %v17138_v25  ;;  %5297 = vmatpush1.bf16.msra.mxu0 %v5109_v46 }
 0x1df   : > { %7180 = vrot.lane.b32.xlu1 %v17192_v62, %s15360_s22  ;;  %5338 = vmatpush1.bf16.msra.mxu1 %v5115_v59  ;;  %v5570_v13 = vpop.permute.xlu0 %5569 }
 0x1e0   : > { %14884 = vmatprep.subr.msk.bf16.mxu0 %vm456_vm1, %v5078_v9  ;;  %14886 = vmatprep.subr.msk.bf16.mxu1 %vm456_vm1, %v5080_v63  ;;  %v1681_v51 = vpop.f32.mrb[44].mxu0 }
 0x1e1   : > { %v17244_v52 = vpop.permute.xlu1 %5571  ;;  %v17247_v55 = vadd.f32 %v1681_v51, %v16998_v21  ;;  %v1722_v8 = vpop.f32.mrb[44].mxu1  ;;  %7182 = vrot.lane.b32.xlu0 %v17204_v22, %s15360_s22  ;;  %5328 = vmatprep.mubr.bf16.mxu0 %v15348_v26 }
 0x1e2   : > { %v1683_v11 = vpop.f32.mrb[45].mxu0  ;;  %v17257_v58 = vadd.f32 %v1722_v8, %v17004_v18  ;;  %v1724_v38 = vpop.f32.mrb[45].mxu1  ;;  %5369 = vmatprep.mubr.bf16.mxu1 %v15348_v26  ;;  %v5079_v18 = vsel %vm5064_vm10, %v17153_v48, %v17155_v5  ;;  %v17293_v48 = vcombine.high %v17266_v10, %v17266_v10  ;;  %v5599_v5 = vsel %vm5597_vm11, %v17216_v2, %v17218_v43 }
 0x1e3   : > { %v17260_v6 = vadd.f32 %v1683_v11, %v17007_v32  ;;  %7184 = vrot.lane.b32.xlu1 %v17235_v14, %s15360_s22  ;;  %v1685_v21 = vpop.f32.mrb[46].mxu0  ;;  %v17275_v32 = vadd.f32 %v1724_v38, %v17020_v36  ;;  %v17277_v27 = vpop.permute.xlu0 %5573  ;;  %v5121_v36 = vsel %vm456_vm1, %v5077_v41, 0  ;;  %v5127_v34 = vsel %vm456_vm1, %v5079_v18, 0 }
 0x1e4   : > { %v1726_v16 = vpop.f32.mrb[46].mxu1  ;;  %v1686_v24 = vpop.f32.mrb[47].mxu0  ;;  %v5601_v30 = vsel %vm5597_vm11, %v5570_v13, %v17244_v52  ;;  %v5598_v11 = vsel %vm5597_vm11, %v17182_v7, %v17216_v2  ;;  %vm12526_vm10 = vcmask 818176  }
 0x1e5   : > { %v17279_v31 = vpop.permute.xlu1 %5575  ;;  %7186 = vrot.lane.b32.xlu0 %v17225_v15, %s15360_s22  ;;  %14881 = vmatmul.mubr.msk.bf16.vlgmr.msra.gmra.mrb[152].mxu0 %vm452_vm2, %v17138_v25  ;;  %v1727_v1 = vpop.f32.mrb[47].mxu1 }
 0x1e6   : > { %14883 = vmatmul.mubr.msk.bf16.vlgmr.msra.gmra.mrb[152].mxu1 %vm452_vm2, %v17138_v25  ;;  %5379 = vmatpush1.bf16.msra.mxu0 %v5121_v36  ;;  %v5603_v2 = vsel %vm5597_vm11, %v17277_v27, %v17279_v31 }
 0x1e7   : > { %7188 = vrot.lane.b32.xlu1 %v17254_v47, %s15360_s22  ;;  %5420 = vmatpush1.bf16.msra.mxu1 %v5127_v34  ;;  %v5578_v35 = vpop.permute.xlu0 %5577 }
 0x1e8   : > { %14890 = vmatprep.subr.msk.bf16.mxu0 %vm456_vm1, %v5599_v5  ;;  %14892 = vmatprep.subr.msk.bf16.mxu1 %vm456_vm1, %v5601_v30  ;;  %v1968_v56 = vpop.f32.mrb[48].mxu0 }
 0x1e9   : > { %v17302_v3 = vpop.permute.xlu1 %5579  ;;  %v17305_v46 = vadd.f32 %v1968_v56, %v17052_v29  ;;  %v2009_v59 = vpop.f32.mrb[48].mxu1  ;;  %7190 = vrot.lane.b32.xlu0 %v17266_v10, %s15360_s22  ;;  %5410 = vmatprep.mubr.bf16.mxu0 %v15348_v26  ;;  %v17320_v29 = vld.sshfl [vmem:[%s15446_s10 + $0x24] sm:$0x3 pattern:$0x76325410] }
 0x1ea   : > { %v1970_v57 = vpop.f32.mrb[49].mxu0  ;;  %v17311_v63 = vadd.f32 %v2009_v59, %v17062_v49  ;;  %v2011_v51 = vpop.f32.mrb[49].mxu1  ;;  %5451 = vmatprep.mubr.bf16.mxu1 %v15348_v26  ;;  %v5600_v49 = vsel %vm5597_vm11, %v17218_v43, %v5570_v13  ;;  %v5605_v43 = vsel %vm5597_vm11, %v5578_v35, %v17302_v3 }
 0x1eb   : > { %v17314_v9 = vadd.f32 %v1970_v57, %v17065_v45  ;;  %7192 = vrot.lane.b32.xlu1 %v17293_v48, %s15360_s22  ;;  %v1972_v8 = vpop.f32.mrb[50].mxu0  ;;  %v17328_v38 = vadd.f32 %v2011_v51, %v17081_v42  ;;  %v17330_v45 = vpop.permute.xlu0 %5581  ;;  %v5618_v42 = vsel %vm456_vm1, %v5598_v11, 0  ;;  %v5624_v7 = vsel %vm456_vm1, %v5600_v49, 0 }
 0x1ec   : > { %v2013_v21 = vpop.f32.mrb[50].mxu1  ;;  %v1973_v18 = vpop.f32.mrb[51].mxu0 }
 0x1ed   : > { %v17332_v41 = vpop.permute.xlu1 %5583  ;;  %7194 = vrot.lane.b32.xlu0 %v17320_v29, %s15360_s22  ;;  %14885 = vmatmul.mubr.msk.bf16.vlgmr.msra.gmra.mrb[156].mxu0 %vm452_vm2, %v17138_v25  ;;  %v2014_v16 = vpop.f32.mrb[51].mxu1  ;;  %s15366_s22 = smov 119  }
 0x1ee   : > { %14887 = vmatmul.mubr.msk.bf16.vlgmr.msra.gmra.mrb[156].mxu1 %vm452_vm2, %v17138_v25  ;;  %5666 = vmatpush1.bf16.msra.mxu0 %v5618_v42 }
 0x1ef   : > { %7695 = vrot.lane.b32.xlu1 %v17031_v54, %s15361_s25  ;;  %5707 = vmatpush1.bf16.msra.mxu1 %v5624_v7  ;;  %v5586_v13 = vpop.permute.xlu0 %5585 }
 0x1f0   : > { %14894 = vmatprep.subr.msk.bf16.mxu0 %vm456_vm1, %v5603_v2  ;;  %14896 = vmatprep.subr.msk.bf16.mxu1 %vm456_vm1, %v5605_v43  ;;  %v2050_v25 = vpop.f32.mrb[52].mxu0 }
 0x1f1   : > { %v17351_v24 = vpop.permute.xlu1 %5587  ;;  %v17354_v1 = vadd.f32 %v2050_v25, %v17117_v60  ;;  %v2091_v36 = vpop.f32.mrb[52].mxu1  ;;  %7697 = vrot.lane.b32.xlu0 %v17059_v0, %s15361_s25  ;;  %5697 = vmatprep.mubr.bf16.mxu0 %v15348_v26  ;;  %v17371_v60 = vld [vmem:[%s20049_s1 + $0x28] sm:$0xf] }
 0x1f2   : > { %v2052_v34 = vpop.f32.mrb[53].mxu0  ;;  %v17360_v5 = vadd.f32 %v2091_v36, %v17127_v4  ;;  %v2093_v56 = vpop.f32.mrb[53].mxu1  ;;  %5738 = vmatprep.mubr.bf16.mxu1 %v15348_v26  ;;  %v5602_v4 = vsel %vm5597_vm11, %v17244_v52, %v17277_v27  ;;  %v5607_v27 = vsel %vm5597_vm11, %v17330_v45, %v17332_v41 }
 0x1f3   : > { %v17363_v30 = vadd.f32 %v2052_v34, %v17130_v37  ;;  %7699 = vrot.lane.b32.xlu1 %v17071_v23, %s15361_s25  ;;  %v2054_v59 = vpop.f32.mrb[54].mxu0  ;;  %v5604_v37 = vsel %vm5597_vm11, %v17279_v31, %v5578_v35  ;;  %v17379_v57 = vadd.f32 %v2093_v56, %v17151_v39  ;;  %v17381_v51 = vpop.permute.xlu0 %5589  ;;  %v5630_v39 = vsel %vm456_vm1, %v5602_v4, 0 }
 0x1f4   : > { %v2095_v8 = vpop.f32.mrb[54].mxu1  ;;  %v2055_v49 = vpop.f32.mrb[55].mxu0  ;;  %v5636_v52 = vsel %vm456_vm1, %v5604_v37, 0  ;;  %v5609_v31 = vsel %vm5597_vm11, %v5586_v13, %v17351_v24  ;;  %v5606_v34 = vsel %vm5597_vm11, %v17302_v3, %v17330_v45  ;;  %v5608_v56 = vsel %vm5597_vm11, %v17332_v41, %v5586_v13 }
 0x1f5   : > { %v17383_v11 = vpop.permute.xlu1 %5591  ;;  %7701 = vrot.lane.b32.xlu0 %v17102_v33, %s15361_s25  ;;  %14891 = vmatmul.mubr.msk.bf16.vlgmr.msra.gmra.mrb[160].mxu0 %vm452_vm2, %v17371_v60  ;;  %v2096_v21 = vpop.f32.mrb[55].mxu1  ;;  %v5648_v3 = vsel %vm456_vm1, %v5608_v56, 0 }
 0x1f6   : > { %14893 = vmatmul.mubr.msk.bf16.vlgmr.msra.gmra.mrb[160].mxu1 %vm452_vm2, %v17371_v60  ;;  %5748 = vmatpush1.bf16.msra.mxu0 %v5630_v39  ;;  %v5611_v41 = vsel %vm5597_vm11, %v17381_v51, %v17383_v11 }
 0x1f7   : > { %7703 = vrot.lane.b32.xlu1 %v17092_v53, %s15361_s25  ;;  %5789 = vmatpush1.bf16.msra.mxu1 %v5636_v52  ;;  %v5594_v35 = vpop.permute.xlu0 %5593 }
 0x1f8   : > { %14898 = vmatprep.subr.msk.bf16.mxu0 %vm456_vm1, %v5607_v27  ;;  %14900 = vmatprep.subr.msk.bf16.mxu1 %vm456_vm1, %v5609_v31  ;;  %v2132_v16 = vpop.f32.mrb[56].mxu0 }
 0x1f9   : > { %v5596_v18 = vpop.permute.xlu1 %5595  ;;  %v17403_v42 = vadd.f32 %v2132_v16, %v17185_v44  ;;  %v2173_v7 = vpop.f32.mrb[56].mxu1  ;;  %7705 = vrot.lane.b32.xlu0 %v17124_v28, %s15361_s25  ;;  %5779 = vmatprep.mubr.bf16.mxu0 %v15348_v26 }
 0x1fa   : > { %v2134_v2 = vpop.f32.mrb[57].mxu0  ;;  %v17409_v43 = vadd.f32 %v2173_v7, %v17195_v20  ;;  %v2175_v36 = vpop.f32.mrb[57].mxu1  ;;  %5820 = vmatprep.mubr.bf16.mxu1 %v15348_v26  ;;  %v5613_v45 = vsel %vm5597_vm11, %v5594_v35, %v5596_v18  ;;  %v5610_v7 = vsel %vm5597_vm11, %v17351_v24, %v17381_v51 }
 0x1fb   : > { %v17412_v25 = vadd.f32 %v2134_v2, %v17198_v40  ;;  %7707 = vrot.lane.b32.xlu1 %v17141_v12, %s15361_s25  ;;  %v2136_v44 = vpop.f32.mrb[58].mxu0  ;;  %v17423_v20 = vadd.f32 %v2175_v36, %v17214_v17  ;;  %v17425_v59 = vpop.permute.xlu0 %6096  ;;  %v5642_v17 = vsel %vm456_vm1, %v5606_v34, 0  ;;  %v5612_v2 = vsel %vm5597_vm11, %v17383_v11, %v5594_v35 }
 0x1fc   : > { %v2177_v40 = vpop.f32.mrb[58].mxu1  ;;  %v2137_v37 = vpop.f32.mrb[59].mxu0  ;;  %v5660_v11 = vsel %vm456_vm1, %v5612_v2, 0  ;;  %vm13059_vm11 = vcmask 687104  }
 0x1fd   : > { %v17427_v4 = vpop.permute.xlu1 %6098  ;;  %7709 = vrot.lane.b32.xlu0 %v17172_v50, %s15361_s25  ;;  %14895 = vmatmul.mubr.msk.bf16.vlgmr.msra.gmra.mrb[164].mxu0 %vm452_vm2, %v17371_v60  ;;  %v2178_v8 = vpop.f32.mrb[59].mxu1 }
 0x1fe   : > { %14897 = vmatmul.mubr.msk.bf16.vlgmr.msra.gmra.mrb[164].mxu1 %vm452_vm2, %v17371_v60  ;;  %5830 = vmatpush1.bf16.msra.mxu0 %v5642_v17 }
 0x1ff   : > { %7711 = vrot.lane.b32.xlu1 %v17162_v61, %s15361_s25  ;;  %5871 = vmatpush1.bf16.msra.mxu1 %v5648_v3  ;;  %v6101_v13 = vpop.permute.xlu0 %6100 }
 0x200   : > { %14902 = vmatprep.subr.msk.bf16.mxu0 %vm456_vm1, %v5611_v41  ;;  %14904 = vmatprep.subr.msk.bf16.mxu1 %vm456_vm1, %v5613_v45  ;;  %v2214_v21 = vpop.f32.mrb[60].mxu0  ;;  %v6132_v35 = vsel %vm6130_vm12, %v17427_v4, %v6101_v13 }
 0x201   : > { %v6103_v49 = vpop.permute.xlu1 %6102  ;;  %v17446_v39 = vadd.f32 %v2214_v21, %v17247_v55  ;;  %v2255_v52 = vpop.f32.mrb[60].mxu1  ;;  %7713 = vrot.lane.b32.xlu0 %v17192_v62, %s15361_s25  ;;  %5861 = vmatprep.mubr.bf16.mxu0 %v15348_v26 }
 0x202   : > { %v2216_v27 = vpop.f32.mrb[61].mxu0  ;;  %v17452_v31 = vadd.f32 %v2255_v52, %v17257_v58  ;;  %v2257_v16 = vpop.f32.mrb[61].mxu1  ;;  %5902 = vmatprep.mubr.bf16.mxu1 %v15348_v26  ;;  %v6131_v52 = vsel %vm6130_vm12, %v17425_v59, %v17427_v4 }
 0x203   : > { %v17455_v18 = vadd.f32 %v2216_v27, %v17260_v6  ;;  %7715 = vrot.lane.b32.xlu1 %v17204_v22, %s15361_s25  ;;  %v2218_v55 = vpop.f32.mrb[62].mxu0  ;;  %v17466_v58 = vadd.f32 %v2257_v16, %v17275_v32  ;;  %v17468_v36 = vpop.permute.xlu0 %6104  ;;  %v5654_v32 = vsel %vm456_vm1, %v5610_v7, 0  ;;  %v6133_v27 = vsel %vm6130_vm12, %v6101_v13, %v6103_v49 }
 0x204   : > { %v2259_v6 = vpop.f32.mrb[62].mxu1  ;;  %v2219_v34 = vpop.f32.mrb[63].mxu0  ;;  %v6134_v24 = vsel %vm6130_vm12, %v6103_v49, %v17468_v36  ;;  %v6157_v13 = vsel %vm456_vm1, %v6133_v27, 0 }
 0x205   : > { %v17470_v44 = vpop.permute.xlu1 %6106  ;;  %7717 = vrot.lane.b32.xlu0 %v17235_v14, %s15361_s25  ;;  %14899 = vmatmul.mubr.msk.bf16.vlgmr.msra.gmra.mrb[168].mxu0 %vm452_vm2, %v17371_v60  ;;  %v2260_v51 = vpop.f32.mrb[63].mxu1 }
 0x206   : > { %14901 = vmatmul.mubr.msk.bf16.vlgmr.msra.gmra.mrb[168].mxu1 %vm452_vm2, %v17371_v60  ;;  %5912 = vmatpush1.bf16.msra.mxu0 %v5654_v32 }
 0x207   : > { %7719 = vrot.lane.b32.xlu1 %v17225_v15, %s15361_s25  ;;  %5953 = vmatpush1.bf16.msra.mxu1 %v5660_v11  ;;  %v6109_v56 = vpop.permute.xlu0 %6108 }
 0x208   : > { %14908 = vmatprep.subr.msk.bf16.mxu0 %vm456_vm1, %v6132_v35  ;;  %14910 = vmatprep.subr.msk.bf16.mxu1 %vm456_vm1, %v6134_v24  ;;  %v2501_v37 = vpop.f32.mrb[64].mxu0  ;;  %v6136_v49 = vsel %vm6130_vm12, %v17470_v44, %v6109_v56 }
 0x209   : > { %v6111_v40 = vpop.permute.xlu1 %6110  ;;  %v17489_v8 = vadd.f32 %v2501_v37, %v17305_v46  ;;  %v2542_v17 = vpop.f32.mrb[64].mxu1  ;;  %7721 = vrot.lane.b32.xlu0 %v17254_v47, %s15361_s25  ;;  %5943 = vmatprep.mubr.bf16.mxu0 %v15348_v26 }
 0x20a   : > { %v2503_v3 = vpop.f32.mrb[65].mxu0  ;;  %v17495_v45 = vadd.f32 %v2542_v17, %v17311_v63  ;;  %v2544_v21 = vpop.f32.mrb[65].mxu1  ;;  %5984 = vmatprep.mubr.bf16.mxu1 %v15348_v26  ;;  %v6137_v37 = vsel %vm6130_vm12, %v6109_v56, %v6111_v40 }
 0x20b   : > { %v17498_v41 = vadd.f32 %v2503_v3, %v17314_v9  ;;  %7723 = vrot.lane.b32.xlu1 %v17266_v10, %s15361_s25  ;;  %v2505_v46 = vpop.f32.mrb[66].mxu0  ;;  %v17508_v16 = vadd.f32 %v2544_v21, %v17328_v38  ;;  %v17510_v63 = vpop.permute.xlu0 %6112  ;;  %v6151_v38 = vsel %vm456_vm1, %v6131_v52, 0  ;;  %v6169_v56 = vsel %vm456_vm1, %v6137_v37, 0 }
 0x20c   : > { %v2546_v9 = vpop.f32.mrb[66].mxu1  ;;  %v2506_v7 = vpop.f32.mrb[67].mxu0  ;;  %v6138_v59 = vsel %vm6130_vm12, %v6111_v40, %v17510_v63 }
 0x20d   : > { %v17512_v55 = vpop.permute.xlu1 %6114  ;;  %7725 = vrot.lane.b32.xlu0 %v17293_v48, %s15361_s25  ;;  %14903 = vmatmul.mubr.msk.bf16.vlgmr.msra.gmra.mrb[172].mxu0 %vm452_vm2, %v17371_v60  ;;  %v2547_v4 = vpop.f32.mrb[67].mxu1 }
 0x20e   : > { %14905 = vmatmul.mubr.msk.bf16.vlgmr.msra.gmra.mrb[172].mxu1 %vm452_vm2, %v17371_v60  ;;  %6199 = vmatpush1.bf16.msra.mxu0 %v6151_v38 }
 0x20f   : > { %7727 = vrot.lane.b32.xlu1 %v17320_v29, %s15361_s25  ;;  %6240 = vmatpush1.bf16.msra.mxu1 %v6157_v13  ;;  %v6117_v2 = vpop.permute.xlu0 %6116  ;;  %s15367_s25 = smov 118  }
 0x210   : > { %14912 = vmatprep.subr.msk.bf16.mxu0 %vm456_vm1, %v6136_v49  ;;  %14914 = vmatprep.subr.msk.bf16.mxu1 %vm456_vm1, %v6138_v59  ;;  %v2583_v34 = vpop.f32.mrb[68].mxu0 }
 0x211   : > { %v6119_v6 = vpop.permute.xlu1 %6118  ;;  %v17531_v24 = vadd.f32 %v2583_v34, %v17354_v1  ;;  %v2624_v60 = vpop.f32.mrb[68].mxu1  ;;  %8228 = vrot.lane.b32.xlu0 %v17031_v54, %s15362_s29  ;;  %6230 = vmatprep.mubr.bf16.mxu0 %v15348_v26  ;;  %v17548_v1 = vld [vmem:[%s20049_s1 + $0x2c] sm:$0xf] }
 0x212   : > { %v2585_v51 = vpop.f32.mrb[69].mxu0  ;;  %v17537_v32 = vadd.f32 %v2624_v60, %v17360_v5  ;;  %v2626_v35 = vpop.f32.mrb[69].mxu1  ;;  %6271 = vmatprep.mubr.bf16.mxu1 %v15348_v26  ;;  %v6135_v5 = vsel %vm6130_vm12, %v17468_v36, %v17470_v44  ;;  %v6141_v38 = vsel %vm6130_vm12, %v6117_v2, %v6119_v6 }
 0x213   : > { %v17540_v11 = vadd.f32 %v2585_v51, %v17363_v30  ;;  %8230 = vrot.lane.b32.xlu1 %v17059_v0, %s15362_s29  ;;  %v2587_v54 = vpop.f32.mrb[70].mxu0  ;;  %v17555_v30 = vadd.f32 %v2626_v35, %v17379_v57  ;;  %v17557_v17 = vpop.permute.xlu0 %6120  ;;  %v6163_v57 = vsel %vm456_vm1, %v6135_v5, 0 }
 0x214   : > { %v2628_v0 = vpop.f32.mrb[70].mxu1  ;;  %v2588_v21 = vpop.f32.mrb[71].mxu0  ;;  %v6142_v36 = vsel %vm6130_vm12, %v6119_v6, %v17557_v17 }
 0x215   : > { %v17559_v3 = vpop.permute.xlu1 %6122  ;;  %8232 = vrot.lane.b32.xlu0 %v17071_v23, %s15362_s29  ;;  %14909 = vmatmul.mubr.msk.bf16.vlgmr.msra.gmra.mrb[176].mxu0 %vm452_vm2, %v17548_v1  ;;  %v2629_v44 = vpop.f32.mrb[71].mxu1  ;;  %v6140_v23 = vsel %vm6130_vm12, %v17512_v55, %v6117_v2 }
 0x216   : > { %14911 = vmatmul.mubr.msk.bf16.vlgmr.msra.gmra.mrb[176].mxu1 %vm452_vm2, %v17548_v1  ;;  %6281 = vmatpush1.bf16.msra.mxu0 %v6163_v57 }
 0x217   : > { %8234 = vrot.lane.b32.xlu1 %v17102_v33, %s15362_s29  ;;  %6322 = vmatpush1.bf16.msra.mxu1 %v6169_v56  ;;  %v6125_v40 = vpop.permute.xlu0 %6124 }
 0x218   : > { %14916 = vmatprep.subr.msk.bf16.mxu0 %vm456_vm1, %v6140_v23  ;;  %14918 = vmatprep.subr.msk.bf16.mxu1 %vm456_vm1, %v6142_v36  ;;  %v2665_v52 = vpop.f32.mrb[72].mxu0 }
 0x219   : > { %v6127_v46 = vpop.permute.xlu1 %6126  ;;  %v17578_v33 = vadd.f32 %v2665_v52, %v17403_v42  ;;  %v2706_v27 = vpop.f32.mrb[72].mxu1  ;;  %8236 = vrot.lane.b32.xlu0 %v17092_v53, %s15362_s29  ;;  %6312 = vmatprep.mubr.bf16.mxu0 %v15348_v26  ;;  %v6139_v53 = vsel %vm6130_vm12, %v17510_v63, %v17512_v55  ;;  %v6181_v63 = vsel %vm456_vm1, %v6141_v38, 0  ;;  %v6144_v55 = vsel %vm6130_vm12, %v17559_v3, %v6125_v40  ;;  %v8674_v38 = vld [vmem:[%s15446_s10 + $0x4] sm:$0xff] }
 0x21a   : > { %v2667_v9 = vpop.f32.mrb[73].mxu0  ;;  %v17584_v7 = vadd.f32 %v2706_v27, %v17409_v43  ;;  %v2708_v4 = vpop.f32.mrb[73].mxu1  ;;  %6353 = vmatprep.mubr.bf16.mxu1 %v15348_v26  ;;  %v6145_v0 = vsel %vm6130_vm12, %v6125_v40, %v6127_v46 }
 0x21b   : > { %v17587_v59 = vadd.f32 %v2667_v9, %v17412_v25  ;;  %8238 = vrot.lane.b32.xlu1 %v17124_v28, %s15362_s29  ;;  %v2669_v42 = vpop.f32.mrb[74].mxu0  ;;  %v17597_v13 = vadd.f32 %v2708_v4, %v17423_v20  ;;  %v6129_v43 = vpop.permute.xlu0 %6128  ;;  %v6175_v20 = vsel %vm456_vm1, %v6139_v53, 0 }
 0x21c   : > { %v2710_v49 = vpop.f32.mrb[74].mxu1  ;;  %v2670_v34 = vpop.f32.mrb[75].mxu0  ;;  %v6146_v60 = vsel %vm6130_vm12, %v6127_v46, %v6129_v43 }
 0x21d   : > { %v17599_v25 = vpop.permute.xlu1 %6629  ;;  %8240 = vrot.lane.b32.xlu0 %v17141_v12, %s15362_s29  ;;  %14913 = vmatmul.mubr.msk.bf16.vlgmr.msra.gmra.mrb[180].mxu0 %vm452_vm2, %v17548_v1  ;;  %v2711_v28 = vpop.f32.mrb[75].mxu1  ;;  %v17692_v34 = vrot.slane %v8674_v38, %v15456_v19 }
 0x21e   : > { %14915 = vmatmul.mubr.msk.bf16.vlgmr.msra.gmra.mrb[180].mxu1 %vm452_vm2, %v17548_v1  ;;  %6363 = vmatpush1.bf16.msra.mxu0 %v6175_v20 }
 0x21f   : > { %8242 = vrot.lane.b32.xlu1 %v17172_v50, %s15362_s29  ;;  %6404 = vmatpush1.bf16.msra.mxu1 %v6181_v63  ;;  %v6632_v12 = vpop.permute.xlu0 %6631 }
 0x220   : > { %14920 = vmatprep.subr.msk.bf16.mxu0 %vm456_vm1, %v6144_v55  ;;  %14922 = vmatprep.subr.msk.bf16.mxu1 %vm456_vm1, %v6146_v60  ;;  %v2747_v6 = vpop.f32.mrb[76].mxu0  ;;  %v6664_v4 = vsel %vm6663_vm13, %v17599_v25, %v6632_v12 }
 0x221   : > { %v6634_v2 = vpop.permute.xlu1 %6633  ;;  %v17617_v50 = vadd.f32 %v2747_v6, %v17446_v39  ;;  %v2788_v51 = vpop.f32.mrb[76].mxu1  ;;  %8244 = vrot.lane.b32.xlu0 %v17162_v61, %s15362_s29  ;;  %6394 = vmatprep.mubr.bf16.mxu0 %v15348_v26  ;;  %v6143_v61 = vsel %vm6130_vm12, %v17557_v17, %v17559_v3  ;;  %v6193_v3 = vsel %vm456_vm1, %v6145_v0, 0  ;;  %v8675_v0 = vld [vmem:[%s15446_s10 + $0xc] sm:$0xff]  ;;  %vm13592_vm12 = vcmask 678912  }
 0x222   : > { %v2749_v35 = vpop.f32.mrb[77].mxu0  ;;  %v17623_v54 = vadd.f32 %v2788_v51, %v17452_v31  ;;  %v2790_v37 = vpop.f32.mrb[77].mxu1  ;;  %6435 = vmatprep.mubr.bf16.mxu1 %v15348_v26  ;;  %v17722_v51 = vld [vmem:[%s20049_s1 + $0x30] sm:$0xf] }
 0x223   : > { %v17626_v5 = vadd.f32 %v2749_v35, %v17455_v18  ;;  %8246 = vrot.lane.b32.xlu1 %v17192_v62, %s15362_s29  ;;  %v2751_v39 = vpop.f32.mrb[78].mxu0  ;;  %v17636_v21 = vadd.f32 %v2790_v37, %v17466_v58  ;;  %v6636_v31 = vpop.permute.xlu0 %6635  ;;  %v6187_v58 = vsel %vm456_vm1, %v6143_v61, 0 }
 0x224   : > { %v2792_v36 = vpop.f32.mrb[78].mxu1  ;;  %v2752_v44 = vpop.f32.mrb[79].mxu0 }
 0x225   : > { %v17638_v18 = vpop.permute.xlu1 %6637  ;;  %8248 = vrot.lane.b32.xlu0 %v17204_v22, %s15362_s29  ;;  %14917 = vmatmul.mubr.msk.bf16.vlgmr.msra.gmra.mrb[184].mxu0 %vm452_vm2, %v17548_v1  ;;  %v2793_v17 = vpop.f32.mrb[79].mxu1  ;;  %v6665_v22 = vsel %vm6663_vm13, %v6632_v12, %v6634_v2  ;;  %v17705_v12 = vcombine.high %v17692_v34, %v17692_v34 }
 0x226   : > { %v6667_v62 = vsel %vm6663_vm13, %v6636_v31, %v17638_v18  ;;  %14919 = vmatmul.mubr.msk.bf16.vlgmr.msra.gmra.mrb[184].mxu1 %vm452_vm2, %v17548_v1  ;;  %6445 = vmatpush1.bf16.msra.mxu0 %v6187_v58  ;;  %v17750_v58 = vrot.slane %v8675_v0, %v15456_v19 }
 0x227   : > { %8250 = vrot.lane.b32.xlu1 %v17235_v14, %s15362_s29  ;;  %6486 = vmatpush1.bf16.msra.mxu1 %v6193_v3  ;;  %v6640_v57 = vpop.permute.xlu0 %6639  ;;  %v8703_v3 = vcombine.high %v8675_v0, %v8675_v0 }
 0x228   : > { %14926 = vmatprep.subr.msk.bf16.mxu0 %vm456_vm1, %v6665_v22  ;;  %14928 = vmatprep.subr.msk.bf16.mxu1 %vm456_vm1, %v6667_v62  ;;  %v3034_v23 = vpop.f32.mrb[80].mxu0 }
 0x229   : > { %v6642_v56 = vpop.permute.xlu1 %6641  ;;  %v17656_v14 = vadd.f32 %v3034_v23, %v17489_v8  ;;  %v3075_v40 = vpop.f32.mrb[80].mxu1  ;;  %8252 = vrot.lane.b32.xlu0 %v17225_v15, %s15362_s29  ;;  %6476 = vmatprep.mubr.bf16.mxu0 %v15348_v26  ;;  %v6666_v15 = vsel %vm6663_vm13, %v6634_v2, %v6636_v31 }
 0x22a   : > { %v3036_v46 = vpop.f32.mrb[81].mxu0  ;;  %v17662_v52 = vadd.f32 %v3075_v40, %v17495_v45  ;;  %v3077_v9 = vpop.f32.mrb[81].mxu1  ;;  %6517 = vmatprep.mubr.bf16.mxu1 %v15348_v26  ;;  %v6690_v25 = vsel %vm456_vm1, %v6666_v15, 0  ;;  %v6669_v60 = vsel %vm6663_vm13, %v6640_v57, %v6642_v56 }
 0x22b   : > { %v17665_v27 = vadd.f32 %v3036_v46, %v17498_v41  ;;  %8254 = vrot.lane.b32.xlu1 %v17254_v47, %s15362_s29  ;;  %v3038_v8 = vpop.f32.mrb[82].mxu0  ;;  %v17674_v42 = vadd.f32 %v3077_v9, %v17508_v16  ;;  %v6644_v45 = vpop.permute.xlu0 %6643  ;;  %v6684_v16 = vsel %vm456_vm1, %v6664_v4, 0 }
 0x22c   : > { %v3079_v53 = vpop.f32.mrb[82].mxu1  ;;  %v3039_v43 = vpop.f32.mrb[83].mxu0  ;;  %v6670_v35 = vsel %vm6663_vm13, %v6642_v56, %v6644_v45  ;;  %v17763_v8 = vcombine.high %v17750_v58, %v17750_v58 }
 0x22d   : > { %v17677_v41 = vpop.permute.xlu1 %6645  ;;  %8256 = vrot.lane.b32.xlu0 %v17266_v10, %s15362_s29  ;;  %14921 = vmatmul.mubr.msk.bf16.vlgmr.msra.gmra.mrb[188].mxu0 %vm452_vm2, %v17548_v1  ;;  %v3080_v49 = vpop.f32.mrb[83].mxu1  ;;  %v8686_v10 = vcombine.high %v8674_v38, %v8674_v38  ;;  %v6702_v17 = vsel %vm456_vm1, %v6670_v35, 0 }
 0x22e   : > { %v6671_v47 = vsel %vm6663_vm13, %v6644_v45, %v17677_v41  ;;  %14923 = vmatmul.mubr.msk.bf16.vlgmr.msra.gmra.mrb[188].mxu1 %vm452_vm2, %v17548_v1  ;;  %6732 = vmatpush1.bf16.msra.mxu0 %v6684_v16  ;;  %v17775_v45 = vrot.slane %v8703_v3, %v15456_v19  ;;  %v8676_v49 = vld [vmem:[%s15446_s10 + $0x14] sm:$0xff] }
 0x22f   : > { %8258 = vrot.lane.b32.xlu1 %v17293_v48, %s15362_s29  ;;  %6773 = vmatpush1.bf16.msra.mxu1 %v6690_v25  ;;  %v6648_v28 = vpop.permute.xlu0 %6647 }
 0x230   : > { %14930 = vmatprep.subr.msk.bf16.mxu0 %vm456_vm1, %v6669_v60  ;;  %14932 = vmatprep.subr.msk.bf16.mxu1 %vm456_vm1, %v6671_v47  ;;  %v3116_v20 = vpop.f32.mrb[84].mxu0  ;;  %v6672_v38 = vsel %vm6663_vm13, %v17677_v41, %v6648_v28  ;;  %v17791_v41 = vcombine.high %v17775_v45, %v17775_v45 }
 0x231   : > { %v6650_v48 = vpop.permute.xlu1 %6649  ;;  %v17698_v1 = vadd.f32 %v3116_v20, %v17531_v24  ;;  %v3157_v63 = vpop.f32.mrb[84].mxu1  ;;  %8260 = vrot.lane.b32.xlu0 %v17320_v29, %s15362_s29  ;;  %6763 = vmatprep.mubr.bf16.mxu0 %v15348_v26  ;;  %v17717_v29 = vrot.slane %v8686_v10, %v15456_v19  ;;  %v8720_v20 = vcombine.high %v8676_v49, %v8676_v49  ;;  %s15368_s29 = smov 102  }
 0x232   : > { %v3118_v55 = vpop.f32.mrb[85].mxu0  ;;  %v17708_v2 = vadd.f32 %v3157_v63, %v17537_v32  ;;  %v3159_v24 = vpop.f32.mrb[85].mxu1  ;;  %6804 = vmatprep.mubr.bf16.mxu1 %v15348_v26  ;;  %v6673_v22 = vsel %vm6663_vm13, %v6648_v28, %v6650_v48 }
 0x233   : > { %v17711_v6 = vadd.f32 %v3118_v55, %v17540_v11  ;;  %8761 = vrot.lane.b32.xlu1 %v17692_v34, %s15363_s12  ;;  %v3120_v32 = vpop.f32.mrb[86].mxu0  ;;  %v6668_v11 = vsel %vm6663_vm13, %v17638_v18, %v6640_v57  ;;  %v17728_v37 = vadd.f32 %v3159_v24, %v17555_v30  ;;  %v6652_v39 = vpop.permute.xlu0 %6651  ;;  %v17741_v30 = vcombine.high %v17717_v29, %v17717_v29 }
 0x234   : > { %v3161_v61 = vpop.f32.mrb[86].mxu1  ;;  %v3121_v36 = vpop.f32.mrb[87].mxu0  ;;  %v6696_v62 = vsel %vm456_vm1, %v6668_v11, 0  ;;  %v6674_v43 = vsel %vm6663_vm13, %v6650_v48, %v6652_v39  ;;  %v17800_v48 = vrot.slane %v8676_v49, %v15456_v19 }
 0x235   : > { %v17731_v31 = vpop.permute.xlu1 %6653  ;;  %8763 = vrot.lane.b32.xlu0 %v17705_v12, %s15363_s12  ;;  %14927 = vmatmul.mubr.msk.bf16.vlgmr.msra.gmra.mrb[192].mxu0 %vm452_vm2, %v17722_v51  ;;  %v3162_v44 = vpop.f32.mrb[87].mxu1  ;;  %v6714_v28 = vsel %vm456_vm1, %v6674_v43, 0 }
 0x236   : > { %v6675_v18 = vsel %vm6663_vm13, %v6652_v39, %v17731_v31  ;;  %14929 = vmatmul.mubr.msk.bf16.vlgmr.msra.gmra.mrb[192].mxu1 %vm452_vm2, %v17722_v51  ;;  %6814 = vmatpush1.bf16.msra.mxu0 %v6696_v62  ;;  %v17813_v61 = vcombine.high %v17800_v48, %v17800_v48 }
 0x237   : > { %8765 = vrot.lane.b32.xlu1 %v17717_v29, %s15363_s12  ;;  %6855 = vmatpush1.bf16.msra.mxu1 %v6702_v17  ;;  %v6656_v57 = vpop.permute.xlu0 %6655 }
 0x238   : > { %14934 = vmatprep.subr.msk.bf16.mxu0 %vm456_vm1, %v6673_v22  ;;  %14936 = vmatprep.subr.msk.bf16.mxu1 %vm456_vm1, %v6675_v18  ;;  %v3198_v23 = vpop.f32.mrb[88].mxu0  ;;  %v17825_v18 = vrot.slane %v8720_v20, %v15456_v19  ;;  %v6676_v62 = vsel %vm6663_vm13, %v17731_v31, %v6656_v57  ;;  %v8677_v22 = vld [vmem:[%s15446_s10 + $0x1c] sm:$0xff] }
 0x239   : > { %v6658_v56 = vpop.permute.xlu1 %6657  ;;  %v17756_v40 = vadd.f32 %v3198_v23, %v17578_v33  ;;  %v3239_v46 = vpop.f32.mrb[88].mxu1  ;;  %8767 = vrot.lane.b32.xlu0 %v17741_v30, %s15363_s12  ;;  %6845 = vmatprep.mubr.bf16.mxu0 %v15348_v26 }
 0x23a   : > { %v3200_v9 = vpop.f32.mrb[89].mxu0  ;;  %v17766_v4 = vadd.f32 %v3239_v46, %v17584_v7  ;;  %v3241_v33 = vpop.f32.mrb[89].mxu1  ;;  %6886 = vmatprep.mubr.bf16.mxu1 %v15348_v26  ;;  %v6677_v63 = vsel %vm6663_vm13, %v6656_v57, %v6658_v56  ;;  %v17841_v57 = vcombine.high %v17825_v18, %v17825_v18 }
 0x23b   : > { %v17769_v15 = vadd.f32 %v3200_v9, %v17587_v59  ;;  %8769 = vrot.lane.b32.xlu1 %v17750_v58, %s15363_s12  ;;  %v3202_v53 = vpop.f32.mrb[90].mxu0  ;;  %v17781_v7 = vadd.f32 %v3241_v33, %v17597_v13  ;;  %v6660_v59 = vpop.permute.xlu0 %6659  ;;  %v6708_v13 = vsel %vm456_vm1, %v6672_v38, 0  ;;  %v17850_v33 = vrot.slane %v8677_v22, %v15456_v19 }
 0x23c   : > { %v3243_v47 = vpop.f32.mrb[90].mxu1  ;;  %v3203_v25 = vpop.f32.mrb[91].mxu0  ;;  %v6678_v17 = vsel %vm6663_vm13, %v6658_v56, %v6660_v59  ;;  %v8737_v53 = vcombine.high %v8677_v22, %v8677_v22 }
 0x23d   : > { %v6662_v16 = vpop.permute.xlu1 %6661  ;;  %8771 = vrot.lane.b32.xlu0 %v17763_v8, %s15363_s12  ;;  %14931 = vmatmul.mubr.msk.bf16.vlgmr.msra.gmra.mrb[196].mxu0 %vm452_vm2, %v17722_v51  ;;  %v3244_v60 = vpop.f32.mrb[91].mxu1  ;;  %v6726_v56 = vsel %vm456_vm1, %v6678_v17, 0 }
 0x23e   : > { %v6679_v10 = vsel %vm6663_vm13, %v6660_v59, %v6662_v16  ;;  %14933 = vmatmul.mubr.msk.bf16.vlgmr.msra.gmra.mrb[196].mxu1 %vm452_vm2, %v17722_v51  ;;  %6896 = vmatpush1.bf16.msra.mxu0 %v6708_v13  ;;  %vm14125_vm13 = vcmask 670720  }
 0x23f   : > { %8773 = vrot.lane.b32.xlu1 %v17775_v45, %s15363_s12  ;;  %6937 = vmatpush1.bf16.msra.mxu1 %v6714_v28  ;;  %v7163_v55 = vpop.permute.xlu0 %7162 }
 0x240   : > { %14938 = vmatprep.subr.msk.bf16.mxu0 %vm456_vm1, %v6677_v63  ;;  %14940 = vmatprep.subr.msk.bf16.mxu1 %vm456_vm1, %v6679_v10  ;;  %v3280_v32 = vpop.f32.mrb[92].mxu0  ;;  %v17863_v10 = vcombine.high %v17850_v33, %v17850_v33 }
 0x241   : > { %v7165_v24 = vpop.permute.xlu1 %7164  ;;  %v17806_v11 = vadd.f32 %v3280_v32, %v17617_v50  ;;  %v3321_v35 = vpop.f32.mrb[92].mxu1  ;;  %8775 = vrot.lane.b32.xlu0 %v17791_v41, %s15363_s12  ;;  %6927 = vmatprep.mubr.bf16.mxu0 %v15348_v26 }
 0x242   : > { %v3282_v39 = vpop.f32.mrb[93].mxu0  ;;  %v17816_v0 = vadd.f32 %v3321_v35, %v17623_v54  ;;  %v3323_v50 = vpop.f32.mrb[93].mxu1  ;;  %6968 = vmatprep.mubr.bf16.mxu1 %v15348_v26  ;;  %v7197_v63 = vsel %vm7196_vm14, %v7163_v55, %v7165_v24 }
 0x243   : > { %v17819_v36 = vadd.f32 %v3282_v39, %v17626_v5  ;;  %8777 = vrot.lane.b32.xlu1 %v17800_v48, %s15363_s12  ;;  %v3284_v44 = vpop.f32.mrb[94].mxu0  ;;  %v17831_v54 = vadd.f32 %v3323_v50, %v17636_v21  ;;  %v7167_v5 = vpop.permute.xlu0 %7166  ;;  %v6720_v21 = vsel %vm456_vm1, %v6676_v62, 0 }
 0x244   : > { %v3325_v3 = vpop.f32.mrb[94].mxu1  ;;  %v3285_v46 = vpop.f32.mrb[95].mxu0  ;;  %v7198_v9 = vsel %vm7196_vm14, %v7165_v24, %v7167_v5 }
 0x245   : > { %v7169_v23 = vpop.permute.xlu1 %7168  ;;  %8779 = vrot.lane.b32.xlu0 %v17813_v61, %s15363_s12  ;;  %14935 = vmatmul.mubr.msk.bf16.vlgmr.msra.gmra.mrb[200].mxu0 %vm452_vm2, %v17722_v51  ;;  %v3326_v31 = vpop.f32.mrb[95].mxu1 }
 0x246   : > { %14937 = vmatmul.mubr.msk.bf16.vlgmr.msra.gmra.mrb[200].mxu1 %vm452_vm2, %v17722_v51  ;;  %6978 = vmatpush1.bf16.msra.mxu0 %v6720_v21  ;;  %v7199_v32 = vsel %vm7196_vm14, %v7167_v5, %v7169_v23  ;;  %v17898_v5 = vld.sshfl [vmem:[%s15446_s10 + $0x24] sm:$0x3 pattern:$0x76325410] }
 0x247   : > { %8781 = vrot.lane.b32.xlu1 %v17825_v18, %s15363_s12  ;;  %7019 = vmatpush1.bf16.msra.mxu1 %v6726_v56  ;;  %v7171_v38 = vpop.permute.xlu0 %7170  ;;  %v7223_v24 = vsel %vm456_vm1, %v7199_v32, 0 }
 0x248   : > { %14944 = vmatprep.subr.msk.bf16.mxu0 %vm456_vm1, %v7198_v9  ;;  %v3567_v59 = vpop.f32.mrb[96].mxu0  ;;  %v7200_v47 = vsel %vm7196_vm14, %v7169_v23, %v7171_v38  ;;  %7009 = vmatprep.mubr.bf16.mxu0 %v15348_v26 }
 0x249   : > { %v7173_v43 = vpop.permute.xlu1 %7172  ;;  %v17856_v49 = vadd.f32 %v3567_v59, %v17656_v14  ;;  %v3608_v16 = vpop.f32.mrb[96].mxu1  ;;  %8783 = vrot.lane.b32.xlu0 %v17841_v57, %s15363_s12  ;;  %14946 = vmatprep.subr.msk.bf16.mxu1 %vm456_vm1, %v7200_v47  ;;  %v17875_v14 = vrot.slane %v8737_v53, %v15456_v19 }
 0x24a   : > { %v3569_v25 = vpop.f32.mrb[97].mxu0  ;;  %v17866_v60 = vadd.f32 %v3608_v16, %v17662_v52  ;;  %v3610_v28 = vpop.f32.mrb[97].mxu1  ;;  %7050 = vmatprep.mubr.bf16.mxu1 %v15348_v26  ;;  %v7201_v59 = vsel %vm7196_vm14, %v7171_v38, %v7173_v43 }
 0x24b   : > { %v17869_v13 = vadd.f32 %v3569_v25, %v17665_v27  ;;  %8785 = vrot.lane.b32.xlu1 %v17850_v33, %s15363_s12  ;;  %v3571_v20 = vpop.f32.mrb[98].mxu0  ;;  %v17880_v52 = vadd.f32 %v3610_v28, %v17674_v42  ;;  %v7175_v35 = vpop.permute.xlu0 %7174  ;;  %v17889_v55 = vcombine.high %v17875_v14, %v17875_v14  ;;  %v7217_v42 = vsel %vm456_vm1, %v7197_v63, 0 }
 0x24c   : > { %v3612_v27 = vpop.f32.mrb[98].mxu1  ;;  %v3572_v50 = vpop.f32.mrb[99].mxu0  ;;  %v7202_v44 = vsel %vm7196_vm14, %v7173_v43, %v7175_v35 }
 0x24d   : > { %v7177_v39 = vpop.permute.xlu1 %7176  ;;  %8787 = vrot.lane.b32.xlu0 %v17863_v10, %s15363_s12  ;;  %14939 = vmatmul.mubr.msk.bf16.vlgmr.msra.gmra.mrb[204].mxu0 %vm452_vm2, %v17722_v51  ;;  %v3613_v62 = vpop.f32.mrb[99].mxu1 }
 0x24e   : > { %14941 = vmatmul.mubr.msk.bf16.vlgmr.msra.gmra.mrb[204].mxu1 %vm452_vm2, %v17722_v51  ;;  %7265 = vmatpush1.bf16.msra.mxu0 %v7217_v42 }
 0x24f   : > { %8789 = vrot.lane.b32.xlu1 %v17875_v14, %s15363_s12  ;;  %7306 = vmatpush1.bf16.msra.mxu1 %v7223_v24  ;;  %v7179_v17 = vpop.permute.xlu0 %7178 }
 0x250   : > { %14948 = vmatprep.subr.msk.bf16.mxu0 %vm456_vm1, %v7202_v44  ;;  %v3649_v22 = vpop.f32.mrb[100].mxu0  ;;  %v7204_v23 = vsel %vm7196_vm14, %v7177_v39, %v7179_v17  ;;  %7296 = vmatprep.mubr.bf16.mxu0 %v15348_v26 }
 0x251   : > { %v7181_v3 = vpop.permute.xlu1 %7180  ;;  %v17904_v46 = vadd.f32 %v3649_v22, %v17698_v1  ;;  %v3690_v51 = vpop.f32.mrb[100].mxu1  ;;  %8791 = vrot.lane.b32.xlu0 %v17889_v55, %s15363_s12  ;;  %14950 = vmatprep.subr.msk.bf16.mxu1 %vm456_vm1, %v7204_v23  ;;  %v17921_v1 = vld [vmem:[%s20049_s1 + $0x34] sm:$0xf] }
 0x252   : > { %v3651_v9 = vpop.f32.mrb[101].mxu0  ;;  %v17910_v31 = vadd.f32 %v3690_v51, %v17708_v2  ;;  %v3692_v56 = vpop.f32.mrb[101].mxu1  ;;  %7337 = vmatprep.mubr.bf16.mxu1 %v15348_v26  ;;  %v7203_v2 = vsel %vm7196_vm14, %v7175_v35, %v7177_v39  ;;  %v7205_v42 = vsel %vm7196_vm14, %v7179_v17, %v7181_v3 }
 0x253   : > { %v17913_v21 = vadd.f32 %v3651_v9, %v17711_v6  ;;  %8793 = vrot.lane.b32.xlu1 %v17898_v5, %s15363_s12  ;;  %v3653_v53 = vpop.f32.mrb[102].mxu0  ;;  %v17926_v47 = vadd.f32 %v3692_v56, %v17728_v37  ;;  %v7183_v6 = vpop.permute.xlu0 %7182  ;;  %v7229_v37 = vsel %vm456_vm1, %v7201_v59, 0  ;;  %v7235_v38 = vsel %vm456_vm1, %v7203_v2, 0  ;;  %s15369_s12 = smov 101  }
 0x254   : > { %v3694_v16 = vpop.f32.mrb[102].mxu1  ;;  %v3654_v28 = vpop.f32.mrb[103].mxu0  ;;  %v7206_v20 = vsel %vm7196_vm14, %v7181_v3, %v7183_v6 }
 0x255   : > { %v7185_v25 = vpop.permute.xlu1 %7184  ;;  %9294 = vrot.lane.b32.xlu0 %v17692_v34, %s15364_s7  ;;  %14945 = vmatmul.mubr.msk.bf16.vlgmr.msra.gmra.mrb[208].mxu0 %vm452_vm2, %v17921_v1  ;;  %v3695_v63 = vpop.f32.mrb[103].mxu1 }
 0x256   : > { %14947 = vmatmul.mubr.msk.bf16.vlgmr.msra.gmra.mrb[208].mxu1 %vm452_vm2, %v17921_v1  ;;  %7347 = vmatpush1.bf16.msra.mxu0 %v7229_v37 }
 0x257   : > { %9296 = vrot.lane.b32.xlu1 %v17705_v12, %s15364_s7  ;;  %7388 = vmatpush1.bf16.msra.mxu1 %v7235_v38  ;;  %v7187_v43 = vpop.permute.xlu0 %7186 }
 0x258   : > { %14952 = vmatprep.subr.msk.bf16.mxu0 %vm456_vm1, %v7206_v20  ;;  %v3731_v32 = vpop.f32.mrb[104].mxu0  ;;  %v7208_v35 = vsel %vm7196_vm14, %v7185_v25, %v7187_v43  ;;  %7378 = vmatprep.mubr.bf16.mxu0 %v15348_v26 }
 0x259   : > { %v7189_v34 = vpop.permute.xlu1 %7188  ;;  %v17943_v12 = vadd.f32 %v3731_v32, %v17756_v40  ;;  %v3772_v27 = vpop.f32.mrb[104].mxu1  ;;  %9298 = vrot.lane.b32.xlu0 %v17717_v29, %s15364_s7  ;;  %14954 = vmatprep.subr.msk.bf16.mxu1 %vm456_vm1, %v7208_v35  ;;  %v7207_v29 = vsel %vm7196_vm14, %v7183_v6, %v7185_v25 }
 0x25a   : > { %v3733_v39 = vpop.f32.mrb[105].mxu0  ;;  %v17949_v50 = vadd.f32 %v3772_v27, %v17766_v4  ;;  %v3774_v62 = vpop.f32.mrb[105].mxu1  ;;  %7419 = vmatprep.mubr.bf16.mxu1 %v15348_v26  ;;  %v7247_v17 = vsel %vm456_vm1, %v7207_v29, 0  ;;  %v7209_v25 = vsel %vm7196_vm14, %v7187_v43, %v7189_v34 }
 0x25b   : > { %v17952_v44 = vadd.f32 %v3733_v39, %v17769_v15  ;;  %9300 = vrot.lane.b32.xlu1 %v17741_v30, %s15364_s7  ;;  %v3735_v40 = vpop.f32.mrb[106].mxu0  ;;  %v17960_v24 = vadd.f32 %v3774_v62, %v17781_v7  ;;  %v7191_v22 = vpop.permute.xlu0 %7190  ;;  %v7241_v7 = vsel %vm456_vm1, %v7205_v42, 0 }
 0x25c   : > { %v3776_v4 = vpop.f32.mrb[106].mxu1  ;;  %v3736_v51 = vpop.f32.mrb[107].mxu0  ;;  %v7210_v30 = vsel %vm7196_vm14, %v7189_v34, %v7191_v22 }
 0x25d   : > { %v7193_v23 = vpop.permute.xlu1 %7192  ;;  %9302 = vrot.lane.b32.xlu0 %v17750_v58, %s15364_s7  ;;  %14949 = vmatmul.mubr.msk.bf16.vlgmr.msra.gmra.mrb[212].mxu0 %vm452_vm2, %v17921_v1  ;;  %v3777_v15 = vpop.f32.mrb[107].mxu1 }
 0x25e   : > { %14951 = vmatmul.mubr.msk.bf16.vlgmr.msra.gmra.mrb[212].mxu1 %vm452_vm2, %v17921_v1  ;;  %7429 = vmatpush1.bf16.msra.mxu0 %v7241_v7 }
 0x25f   : > { %9304 = vrot.lane.b32.xlu1 %v17763_v8, %s15364_s7  ;;  %7470 = vmatpush1.bf16.msra.mxu1 %v7247_v17  ;;  %v7195_v3 = vpop.permute.xlu0 %7194 }
 0x260   : > { %14956 = vmatprep.subr.msk.bf16.mxu0 %vm456_vm1, %v7210_v30  ;;  %v7212_v58 = vsel %vm7196_vm14, %v7193_v23, %v7195_v3  ;;  %v3813_v56 = vpop.f32.mrb[108].mxu0  ;;  %7460 = vmatprep.mubr.bf16.mxu0 %v15348_v26  ;;  %v9740_v30 = vld [vmem:[%s15446_s10 + $0xa] sm:$0xff] }
 0x261   : > { %v7696_v9 = vpop.permute.xlu1 %7695  ;;  %v17977_v8 = vadd.f32 %v3813_v56, %v17806_v11  ;;  %v3854_v53 = vpop.f32.mrb[108].mxu1  ;;  %9306 = vrot.lane.b32.xlu0 %v17775_v45, %s15364_s7  ;;  %14958 = vmatprep.subr.msk.bf16.mxu1 %vm456_vm1, %v7212_v58  ;;  %v7211_v45 = vsel %vm7196_vm14, %v7191_v22, %v7193_v23  ;;  %v18052_v58 = vrot.slane %v9740_v30, %v15456_v19 }
 0x262   : > { %v3815_v59 = vpop.f32.mrb[109].mxu0  ;;  %v17983_v2 = vadd.f32 %v3854_v53, %v17816_v0  ;;  %v3856_v16 = vpop.f32.mrb[109].mxu1  ;;  %7501 = vmatprep.mubr.bf16.mxu1 %v15348_v26  ;;  %v7259_v38 = vsel %vm456_vm1, %v7211_v45, 0 }
 0x263   : > { %v17986_v6 = vadd.f32 %v3815_v59, %v17819_v36  ;;  %9308 = vrot.lane.b32.xlu1 %v17791_v41, %s15364_s7  ;;  %v3817_v11 = vpop.f32.mrb[110].mxu0  ;;  %v17994_v28 = vadd.f32 %v3856_v16, %v17831_v54  ;;  %v7698_v0 = vpop.permute.xlu0 %7697  ;;  %v7253_v54 = vsel %vm456_vm1, %v7209_v25, 0  ;;  %v9752_v59 = vcombine.high %v9740_v30, %v9740_v30 }
 0x264   : > { %v3858_v20 = vpop.f32.mrb[110].mxu1  ;;  %v3818_v36 = vpop.f32.mrb[111].mxu0 }
 0x265   : > { %v7700_v63 = vpop.permute.xlu1 %7699  ;;  %9310 = vrot.lane.b32.xlu0 %v17800_v48, %s15364_s7  ;;  %14953 = vmatmul.mubr.msk.bf16.vlgmr.msra.gmra.mrb[216].mxu0 %vm452_vm2, %v17921_v1  ;;  %v3859_v37 = vpop.f32.mrb[111].mxu1  ;;  %v18089_v36 = vrot.slane %v9752_v59, %v15456_v19 }
 0x266   : > { %v7731_v41 = vsel %vm7729_vm15, %v7698_v0, %v7700_v63  ;;  %14955 = vmatmul.mubr.msk.bf16.vlgmr.msra.gmra.mrb[216].mxu1 %vm452_vm2, %v17921_v1  ;;  %7511 = vmatpush1.bf16.msra.mxu0 %v7253_v54 }
 0x267   : > { %9312 = vrot.lane.b32.xlu1 %v17813_v61, %s15364_s7  ;;  %7552 = vmatpush1.bf16.msra.mxu1 %v7259_v38  ;;  %v7702_v43 = vpop.permute.xlu0 %7701 }
 0x268   : > { %14962 = vmatprep.subr.msk.bf16.mxu0 %vm456_vm1, %v7731_v41  ;;  %v4100_v34 = vpop.f32.mrb[112].mxu0  ;;  %7542 = vmatprep.mubr.bf16.mxu0 %v15348_v26  ;;  %v7732_v42 = vsel %vm7729_vm15, %v7700_v63, %v7702_v43  ;;  %v18080_v63 = vcombine.high %v18052_v58, %v18052_v58  ;;  %v9741_v41 = vld [vmem:[%s15446_s10 + $0x12] sm:$0xff] }
 0x269   : > { %v7704_v48 = vpop.permute.xlu1 %7703  ;;  %v18010_v32 = vadd.f32 %v4100_v34, %v17856_v49  ;;  %v4141_v61 = vpop.f32.mrb[112].mxu1  ;;  %9314 = vrot.lane.b32.xlu0 %v17825_v18, %s15364_s7  ;;  %7583 = vmatprep.mubr.bf16.mxu1 %v15348_v26  ;;  %v7730_v18 = vsel %vm7729_vm15, %v7696_v9, %v7698_v0  ;;  %v7756_v51 = vsel %vm456_vm1, %v7732_v42, 0  ;;  %v9769_v42 = vcombine.high %v9741_v41, %v9741_v41 }
 0x26a   : > { %v4102_v35 = vpop.f32.mrb[113].mxu0  ;;  %v7733_v27 = vsel %vm7729_vm15, %v7702_v43, %v7704_v48  ;;  %v18017_v39 = vadd.f32 %v4141_v61, %v17866_v60  ;;  %v4143_v40 = vpop.f32.mrb[113].mxu1  ;;  %v18096_v43 = vcombine.high %v18089_v36, %v18089_v36 }
 0x26b   : > { %v18020_v62 = vadd.f32 %v4102_v35, %v17869_v13  ;;  %9316 = vrot.lane.b32.xlu1 %v17841_v57, %s15364_s7  ;;  %14964 = vmatprep.subr.msk.bf16.mxu1 %vm456_vm1, %v7733_v27  ;;  %v4104_v49 = vpop.f32.mrb[114].mxu0  ;;  %v18028_v29 = vadd.f32 %v4143_v40, %v17880_v52  ;;  %v7706_v60 = vpop.permute.xlu0 %7705  ;;  %v7750_v52 = vsel %vm456_vm1, %v7730_v18, 0  ;;  %v18106_v27 = vrot.slane %v9741_v41, %v15456_v19 }
 0x26c   : > { %v4145_v22 = vpop.f32.mrb[114].mxu1  ;;  %v4105_v13 = vpop.f32.mrb[115].mxu0  ;;  %v7734_v16 = vsel %vm7729_vm15, %v7704_v48, %v7706_v60 }
 0x26d   : > { %v7708_v4 = vpop.permute.xlu1 %7707  ;;  %9318 = vrot.lane.b32.xlu0 %v17850_v33, %s15364_s7  ;;  %14957 = vmatmul.mubr.msk.bf16.vlgmr.msra.gmra.mrb[220].mxu0 %vm452_vm2, %v17921_v1  ;;  %v4146_v23 = vpop.f32.mrb[115].mxu1 }
 0x26e   : > { %v7735_v57 = vsel %vm7729_vm15, %v7706_v60, %v7708_v4  ;;  %14959 = vmatmul.mubr.msk.bf16.vlgmr.msra.gmra.mrb[220].mxu1 %vm452_vm2, %v17921_v1  ;;  %7798 = vmatpush1.bf16.msra.mxu0 %v7750_v52 }
 0x26f   : > { %9320 = vrot.lane.b32.xlu1 %v17863_v10, %s15364_s7  ;;  %7839 = vmatpush1.bf16.msra.mxu1 %v7756_v51  ;;  %v7710_v33 = vpop.permute.xlu0 %7709  ;;  %v18129_v51 = vcombine.high %v18106_v27, %v18106_v27 }
 0x270   : > { %14966 = vmatprep.subr.msk.bf16.mxu0 %vm456_vm1, %v7735_v57  ;;  %v4182_v7 = vpop.f32.mrb[116].mxu0  ;;  %7829 = vmatprep.mubr.bf16.mxu0 %v15348_v26 }
 0x271   : > { %v7712_v15 = vpop.permute.xlu1 %7711  ;;  %v18045_v17 = vadd.f32 %v4182_v7, %v17904_v46  ;;  %v4223_v10 = vpop.f32.mrb[116].mxu1  ;;  %9322 = vrot.lane.b32.xlu0 %v17875_v14, %s15364_s7  ;;  %7870 = vmatprep.mubr.bf16.mxu1 %v15348_v26  ;;  %v18066_v14 = vld [vmem:[%s20049_s1 + $0x38] sm:$0xf] }
 0x272   : > { %v4184_v1 = vpop.f32.mrb[117].mxu0  ;;  %v7737_v3 = vsel %vm7729_vm15, %v7710_v33, %v7712_v15  ;;  %v18055_v9 = vadd.f32 %v4223_v10, %v17910_v31  ;;  %v4225_v46 = vpop.f32.mrb[117].mxu1  ;;  %v7736_v31 = vsel %vm7729_vm15, %v7708_v4, %v7710_v33  ;;  %v18138_v33 = vrot.slane %v9769_v42, %v15456_v19 }
 0x273   : > { %v18058_v56 = vadd.f32 %v4184_v1, %v17913_v21  ;;  %9324 = vrot.lane.b32.xlu1 %v17889_v55, %s15364_s7  ;;  %14968 = vmatprep.subr.msk.bf16.mxu1 %vm456_vm1, %v7737_v3  ;;  %v4186_v53 = vpop.f32.mrb[118].mxu0  ;;  %v18071_v21 = vadd.f32 %v4225_v46, %v17926_v47  ;;  %v7714_v11 = vpop.permute.xlu0 %7713  ;;  %v7762_v47 = vsel %vm456_vm1, %v7734_v16, 0 }
 0x274   : > { %v4227_v25 = vpop.f32.mrb[118].mxu1  ;;  %v4187_v45 = vpop.f32.mrb[119].mxu0  ;;  %v7738_v60 = vsel %vm7729_vm15, %v7712_v15, %v7714_v11  ;;  %v9742_v15 = vld [vmem:[%s15446_s10 + $0x1a] sm:$0xff]  ;;  %v18145_v3 = vcombine.high %v18138_v33, %v18138_v33 }
 0x275   : > { %v7716_v55 = vpop.permute.xlu1 %7715  ;;  %9326 = vrot.lane.b32.xlu0 %v17898_v5, %s15364_s7  ;;  %14963 = vmatmul.mubr.msk.bf16.vlgmr.msra.gmra.mrb[224].mxu0 %vm452_vm2, %v18066_v14  ;;  %v4228_v20 = vpop.f32.mrb[119].mxu1  ;;  %v7768_v5 = vsel %vm456_vm1, %v7736_v31, 0  ;;  %v18155_v31 = vrot.slane %v9742_v15, %v15456_v19  ;;  %v9786_v45 = vcombine.high %v9742_v15, %v9742_v15 }
 0x276   : > { %v7739_v0 = vsel %vm7729_vm15, %v7714_v11, %v7716_v55  ;;  %14965 = vmatmul.mubr.msk.bf16.vlgmr.msra.gmra.mrb[224].mxu1 %vm452_vm2, %v18066_v14  ;;  %7880 = vmatpush1.bf16.msra.mxu0 %v7762_v47 }
 0x277   : > { %9827 = vrot.lane.b32.xlu1 %v18052_v58, %s15365_s11  ;;  %7921 = vmatpush1.bf16.msra.mxu1 %v7768_v5  ;;  %v7718_v37 = vpop.permute.xlu0 %7717 }
 0x278   : > { %14970 = vmatprep.subr.msk.bf16.mxu0 %vm456_vm1, %v7739_v0  ;;  %v4264_v38 = vpop.f32.mrb[120].mxu0  ;;  %7911 = vmatprep.mubr.bf16.mxu0 %v15348_v26  ;;  %v7740_v22 = vsel %vm7729_vm15, %v7716_v55, %v7718_v37 }
 0x279   : > { %v7720_v54 = vpop.permute.xlu1 %7719  ;;  %v18099_v48 = vadd.f32 %v4264_v38, %v17943_v12  ;;  %v4305_v34 = vpop.f32.mrb[120].mxu1  ;;  %9829 = vrot.lane.b32.xlu0 %v18080_v63, %s15365_s11  ;;  %7952 = vmatprep.mubr.bf16.mxu1 %v15348_v26  ;;  %v7780_v30 = vsel %vm456_vm1, %v7740_v22, 0 }
 0x27a   : > { %v4266_v61 = vpop.f32.mrb[121].mxu0  ;;  %v7741_v35 = vsel %vm7729_vm15, %v7718_v37, %v7720_v54  ;;  %v18109_v40 = vadd.f32 %v4305_v34, %v17949_v50  ;;  %v4307_v12 = vpop.f32.mrb[121].mxu1  ;;  %v18186_v34 = vrot.slane %v9786_v45, %v15456_v19 }
 0x27b   : > { %v18112_v49 = vadd.f32 %v4266_v61, %v17952_v44  ;;  %9831 = vrot.lane.b32.xlu1 %v18089_v36, %s15365_s11  ;;  %14972 = vmatprep.subr.msk.bf16.mxu1 %vm456_vm1, %v7741_v35  ;;  %v4268_v18 = vpop.f32.mrb[122].mxu0  ;;  %v18120_v4 = vadd.f32 %v4307_v12, %v17960_v24  ;;  %v7722_v50 = vpop.permute.xlu0 %7721  ;;  %v7774_v24 = vsel %vm456_vm1, %v7738_v60, 0  ;;  %v9743_v35 = vld [vmem:[%s15446_s10 + $0x22] sm:$0xff] }
 0x27c   : > { %v4309_v13 = vpop.f32.mrb[122].mxu1  ;;  %v4269_v57 = vpop.f32.mrb[123].mxu0  ;;  %v7742_v0 = vsel %vm7729_vm15, %v7720_v54, %v7722_v50  ;;  %v18177_v54 = vcombine.high %v18155_v31, %v18155_v31 }
 0x27d   : > { %v7724_v44 = vpop.permute.xlu1 %7723  ;;  %9833 = vrot.lane.b32.xlu0 %v18096_v43, %s15365_s11  ;;  %14967 = vmatmul.mubr.msk.bf16.vlgmr.msra.gmra.mrb[228].mxu0 %vm452_vm2, %v18066_v14  ;;  %v4310_v52 = vpop.f32.mrb[123].mxu1  ;;  %v18200_v13 = vcombine.high %v18186_v34, %v18186_v34 }
 0x27e   : > { %v7743_v23 = vsel %vm7729_vm15, %v7722_v50, %v7724_v44  ;;  %14969 = vmatmul.mubr.msk.bf16.vlgmr.msra.gmra.mrb[228].mxu1 %vm452_vm2, %v18066_v14  ;;  %7962 = vmatpush1.bf16.msra.mxu0 %v7774_v24  ;;  %v9803_v24 = vcombine.high %v9743_v35, %v9743_v35 }
 0x27f   : > { %9835 = vrot.lane.b32.xlu1 %v18106_v27, %s15365_s11  ;;  %8003 = vmatpush1.bf16.msra.mxu1 %v7780_v30  ;;  %v7726_v7 = vpop.permute.xlu0 %7725 }
 0x280   : > { %14974 = vmatprep.subr.msk.bf16.mxu0 %vm456_vm1, %v7743_v23  ;;  %v4346_v1 = vpop.f32.mrb[124].mxu0  ;;  %7993 = vmatprep.mubr.bf16.mxu0 %v15348_v26  ;;  %v7744_v20 = vsel %vm7729_vm15, %v7724_v44, %v7726_v7 }
 0x281   : > { %v7728_v10 = vpop.permute.xlu1 %7727  ;;  %v18149_v53 = vadd.f32 %v4346_v1, %v17977_v8  ;;  %v4387_v59 = vpop.f32.mrb[124].mxu1  ;;  %9837 = vrot.lane.b32.xlu0 %v18129_v51, %s15365_s11  ;;  %8034 = vmatprep.mubr.bf16.mxu1 %v15348_v26  ;;  %v7792_v38 = vsel %vm456_vm1, %v7744_v20, 0 }
 0x282   : > { %v7745_v46 = vsel %vm7729_vm15, %v7726_v7, %v7728_v10  ;;  %v4348_v16 = vpop.f32.mrb[125].mxu0  ;;  %v18158_v11 = vadd.f32 %v4387_v59, %v17983_v2  ;;  %v4389_v55 = vpop.f32.mrb[125].mxu1 }
 0x283   : > { %v18161_v25 = vadd.f32 %v4348_v16, %v17986_v6  ;;  %9839 = vrot.lane.b32.xlu1 %v18138_v33, %s15365_s11  ;;  %14976 = vmatprep.subr.msk.bf16.mxu1 %vm456_vm1, %v7745_v46  ;;  %v4350_v8 = vpop.f32.mrb[126].mxu0  ;;  %v18169_v47 = vadd.f32 %v4389_v55, %v17994_v28  ;;  %v8229_v2 = vpop.permute.xlu0 %8228  ;;  %v7786_v28 = vsel %vm456_vm1, %v7742_v0, 0  ;;  %v18233_v55 = vrot.slane %v9803_v24, %v15456_v19 }
 0x284   : > { %v4391_v5 = vpop.f32.mrb[126].mxu1  ;;  %v4351_v41 = vpop.f32.mrb[127].mxu0 }
 0x285   : > { %v8231_v6 = vpop.permute.xlu1 %8230  ;;  %9841 = vrot.lane.b32.xlu0 %v18145_v3, %s15365_s11  ;;  %14971 = vmatmul.mubr.msk.bf16.vlgmr.msra.gmra.mrb[232].mxu0 %vm452_vm2, %v18066_v14  ;;  %v4392_v37 = vpop.f32.mrb[127].mxu1  ;;  %v18247_v41 = vcombine.high %v18233_v55, %v18233_v55 }
 0x286   : > { %14973 = vmatmul.mubr.msk.bf16.vlgmr.msra.gmra.mrb[232].mxu1 %vm452_vm2, %v18066_v14  ;;  %8044 = vmatpush1.bf16.msra.mxu0 %v7786_v28  ;;  %v8263_v30 = vsel %vm8262_vm0, %v8229_v2, %v8231_v6 }
 0x287   : > { %9843 = vrot.lane.b32.xlu1 %v18155_v31, %s15365_s11  ;;  %8085 = vmatpush1.bf16.msra.mxu1 %v7792_v38  ;;  %v8233_v61 = vpop.permute.xlu0 %8232  ;;  %v18261_v38 = vld [vmem:[%s20049_s1 + $0x3c] sm:$0xf] }
 0x288   : > { %v4633_v18 = vpop.f32.mrb[128].mxu0  ;;  %v8264_v42 = vsel %vm8262_vm0, %v8231_v6, %v8233_v61  ;;  %8075 = vmatprep.mubr.bf16.mxu0 %v15348_v26  ;;  %8116 = vmatprep.mubr.bf16.mxu1 %v15348_v26 }
 0x289   : > { %v8235_v12 = vpop.permute.xlu1 %8234  ;;  %v18193_v60 = vadd.f32 %v4633_v18, %v18010_v32  ;;  %v4674_v22 = vpop.f32.mrb[128].mxu1  ;;  %9845 = vrot.lane.b32.xlu0 %v18177_v54, %s15365_s11  ;;  %14980 = vmatprep.subr.msk.bf16.mxu0 %vm456_vm1, %v8264_v42  ;;  %v18211_v32 = vrot.slane %v9743_v35, %v15456_v19 }
 0x28a   : > { %v4635_v50 = vpop.f32.mrb[129].mxu0  ;;  %v18203_v44 = vadd.f32 %v4674_v22, %v18017_v39  ;;  %v4676_v23 = vpop.f32.mrb[129].mxu1  ;;  %v8265_v10 = vsel %vm8262_vm0, %v8233_v61, %v8235_v12 }
 0x28b   : > { %v18206_v57 = vadd.f32 %v4635_v50, %v18020_v62  ;;  %9847 = vrot.lane.b32.xlu1 %v18186_v34, %s15365_s11  ;;  %v4637_v52 = vpop.f32.mrb[130].mxu0  ;;  %v18215_v15 = vadd.f32 %v4676_v23, %v18028_v29  ;;  %v8237_v7 = vpop.permute.xlu0 %8236  ;;  %v18225_v16 = vcombine.high %v18211_v32, %v18211_v32  ;;  %v8283_v29 = vsel %vm456_vm1, %v8263_v30, 0 }
 0x28c   : > { %v4678_v39 = vpop.f32.mrb[130].mxu1  ;;  %v8266_v1 = vsel %vm8262_vm0, %v8235_v12, %v8237_v7  ;;  %v4638_v46 = vpop.f32.mrb[131].mxu0  ;;  %v8289_v8 = vsel %vm456_vm1, %v8265_v10, 0 }
 0x28d   : > { %v8239_v62 = vpop.permute.xlu1 %8238  ;;  %9849 = vrot.lane.b32.xlu0 %v18200_v13, %s15365_s11  ;;  %14975 = vmatmul.mubr.msk.bf16.vlgmr.msra.gmra.mrb[236].mxu0 %vm452_vm2, %v18066_v14  ;;  %v4679_v59 = vpop.f32.mrb[131].mxu1 }
 0x28e   : > { %14977 = vmatmul.mubr.msk.bf16.vlgmr.msra.gmra.mrb[236].mxu1 %vm452_vm2, %v18066_v14  ;;  %8331 = vmatpush1.bf16.msra.mxu0 %v8283_v29  ;;  %v8267_v35 = vsel %vm8262_vm0, %v8237_v7, %v8239_v62 }
 0x28f   : > { %9851 = vrot.lane.b32.xlu1 %v18211_v32, %s15365_s11  ;;  %14982 = vmatprep.subr.msk.bf16.mxu1 %vm456_vm1, %v8266_v1  ;;  %v8241_v45 = vpop.permute.xlu0 %8240 }
 0x290   : > { %8372 = vmatpush1.bf16.msra.mxu1 %v8289_v8  ;;  %v4715_v20 = vpop.f32.mrb[132].mxu0  ;;  %v8268_v2 = vsel %vm8262_vm0, %v8239_v62, %v8241_v45  ;;  %8362 = vmatprep.mubr.bf16.mxu0 %v15348_v26 }
 0x291   : > { %v8243_v0 = vpop.permute.xlu1 %8242  ;;  %v18240_v14 = vadd.f32 %v4715_v20, %v18045_v17  ;;  %v4756_v5 = vpop.f32.mrb[132].mxu1  ;;  %9853 = vrot.lane.b32.xlu0 %v18225_v16, %s15365_s11  ;;  %14984 = vmatprep.subr.msk.bf16.mxu0 %vm456_vm1, %v8268_v2 }
 0x292   : > { %v4717_v6 = vpop.f32.mrb[133].mxu0  ;;  %v18250_v37 = vadd.f32 %v4756_v5, %v18055_v9  ;;  %v4758_v17 = vpop.f32.mrb[133].mxu1  ;;  %8403 = vmatprep.mubr.bf16.mxu1 %v15348_v26  ;;  %v8269_v42 = vsel %vm8262_vm0, %v8241_v45, %v8243_v0 }
 0x293   : > { %v18253_v28 = vadd.f32 %v4717_v6, %v18058_v56  ;;  %9855 = vrot.lane.b32.xlu1 %v18233_v55, %s15365_s11  ;;  %v4719_v61 = vpop.f32.mrb[134].mxu0  ;;  %v18265_v9 = vadd.f32 %v4758_v17, %v18071_v21  ;;  %v8245_v12 = vpop.permute.xlu0 %8244  ;;  %v18268_v56 = vld.sshfl [vmem:[%s15446_s10 + $0x2a] sm:$0x3 pattern:$0x76325410]  ;;  %v8295_v21 = vsel %vm456_vm1, %v8267_v35, 0 }
 0x294   : > { %v4760_v18 = vpop.f32.mrb[134].mxu1  ;;  %v8270_v50 = vsel %vm8262_vm0, %v8243_v0, %v8245_v12  ;;  %v4720_v23 = vpop.f32.mrb[135].mxu0  ;;  %v8301_v24 = vsel %vm456_vm1, %v8269_v42, 0 }
 0x295   : > { %v8247_v22 = vpop.permute.xlu1 %8246  ;;  %9857 = vrot.lane.b32.xlu0 %v18247_v41, %s15365_s11  ;;  %14981 = vmatmul.mubr.msk.bf16.vlgmr.msra.gmra.mrb[240].mxu0 %vm452_vm2, %v18261_v38  ;;  %v4761_v52 = vpop.f32.mrb[135].mxu1 }
 0x296   : > { %14983 = vmatmul.mubr.msk.bf16.vlgmr.msra.gmra.mrb[240].mxu1 %vm452_vm2, %v18261_v38  ;;  %8413 = vmatpush1.bf16.msra.mxu0 %v8295_v21  ;;  %v8271_v45 = vsel %vm8262_vm0, %v8245_v12, %v8247_v22 }
 0x297   : > { %9859 = vrot.lane.b32.xlu1 %v18268_v56, %s15365_s11  ;;  %14986 = vmatprep.subr.msk.bf16.mxu1 %vm456_vm1, %v8270_v50  ;;  %v8249_v30 = vpop.permute.xlu0 %8248 }
 0x298   : > { %8454 = vmatpush1.bf16.msra.mxu1 %v8301_v24  ;;  %v4797_v39 = vpop.f32.mrb[136].mxu0  ;;  %v8272_v10 = vsel %vm8262_vm0, %v8247_v22, %v8249_v30  ;;  %8444 = vmatprep.mubr.bf16.mxu0 %v15348_v26 }
 0x299   : > { %v8251_v7 = vpop.permute.xlu1 %8250  ;;  %v18286_v62 = vadd.f32 %v4797_v39, %v18099_v48  ;;  %v4838_v1 = vpop.f32.mrb[136].mxu1  ;;  %10360 = vrot.lane.b32.xlu0 %v18052_v58, %s15366_s22  ;;  %14988 = vmatprep.subr.msk.bf16.mxu0 %vm456_vm1, %v8272_v10 }
 0x29a   : > { %v4799_v46 = vpop.f32.mrb[137].mxu0  ;;  %v18292_v59 = vadd.f32 %v4838_v1, %v18109_v40  ;;  %v4840_v8 = vpop.f32.mrb[137].mxu1  ;;  %8485 = vmatprep.mubr.bf16.mxu1 %v15348_v26  ;;  %v8273_v40 = vsel %vm8262_vm0, %v8249_v30, %v8251_v7 }
 0x29b   : > { %v18295_v29 = vadd.f32 %v4799_v46, %v18112_v49  ;;  %10362 = vrot.lane.b32.xlu1 %v18080_v63, %s15366_s22  ;;  %v4801_v48 = vpop.f32.mrb[138].mxu0  ;;  %v18302_v0 = vadd.f32 %v4840_v8, %v18120_v4  ;;  %v8253_v20 = vpop.permute.xlu0 %8252  ;;  %v8307_v4 = vsel %vm456_vm1, %v8271_v45, 0  ;;  %v8313_v61 = vsel %vm456_vm1, %v8273_v40, 0 }
 0x29c   : > { %v4842_v2 = vpop.f32.mrb[138].mxu1  ;;  %v8274_v49 = vsel %vm8262_vm0, %v8251_v7, %v8253_v20  ;;  %v4802_v6 = vpop.f32.mrb[139].mxu0 }
 0x29d   : > { %v8255_v5 = vpop.permute.xlu1 %8254  ;;  %10364 = vrot.lane.b32.xlu0 %v18089_v36, %s15366_s22  ;;  %14985 = vmatmul.mubr.msk.bf16.vlgmr.msra.gmra.mrb[244].mxu0 %vm452_vm2, %v18261_v38  ;;  %v4843_v17 = vpop.f32.mrb[139].mxu1 }
 0x29e   : > { %14987 = vmatmul.mubr.msk.bf16.vlgmr.msra.gmra.mrb[244].mxu1 %vm452_vm2, %v18261_v38  ;;  %8495 = vmatpush1.bf16.msra.mxu0 %v8307_v4  ;;  %v8275_v30 = vsel %vm8262_vm0, %v8253_v20, %v8255_v5 }
 0x29f   : > { %10366 = vrot.lane.b32.xlu1 %v18096_v43, %s15366_s22  ;;  %14990 = vmatprep.subr.msk.bf16.mxu1 %vm456_vm1, %v8274_v49  ;;  %v8257_v35 = vpop.permute.xlu0 %8256 }
 0x2a0   : > { %8536 = vmatpush1.bf16.msra.mxu1 %v8313_v61  ;;  %v4879_v18 = vpop.f32.mrb[140].mxu0  ;;  %v8276_v42 = vsel %vm8262_vm0, %v8255_v5, %v8257_v35  ;;  %8526 = vmatprep.mubr.bf16.mxu0 %v15348_v26 }
 0x2a1   : > { %v8259_v12 = vpop.permute.xlu1 %8258  ;;  %v18320_v22 = vadd.f32 %v4879_v18, %v18149_v53  ;;  %v4920_v50 = vpop.f32.mrb[140].mxu1  ;;  %10368 = vrot.lane.b32.xlu0 %v18106_v27, %s15366_s22  ;;  %14992 = vmatprep.subr.msk.bf16.mxu0 %vm456_vm1, %v8276_v42 }
 0x2a2   : > { %v4881_v23 = vpop.f32.mrb[141].mxu0  ;;  %v18326_v52 = vadd.f32 %v4920_v50, %v18158_v11  ;;  %v4922_v24 = vpop.f32.mrb[141].mxu1  ;;  %8567 = vmatprep.mubr.bf16.mxu1 %v15348_v26  ;;  %v8277_v11 = vsel %vm8262_vm0, %v8257_v35, %v8259_v12 }
 0x2a3   : > { %v18329_v21 = vadd.f32 %v4881_v23, %v18161_v25  ;;  %10370 = vrot.lane.b32.xlu1 %v18129_v51, %s15366_s22  ;;  %v4883_v53 = vpop.f32.mrb[142].mxu0  ;;  %v18336_v7 = vadd.f32 %v4922_v24, %v18169_v47  ;;  %v8261_v39 = vpop.permute.xlu0 %8260  ;;  %v8319_v47 = vsel %vm456_vm1, %v8275_v30, 0  ;;  %v8325_v48 = vsel %vm456_vm1, %v8277_v11, 0 }
 0x2a4   : > { %v4924_v10 = vpop.f32.mrb[142].mxu1  ;;  %v8278_v1 = vsel %vm8262_vm0, %v8259_v12, %v8261_v39  ;;  %v4884_v46 = vpop.f32.mrb[143].mxu0 }
 0x2a5   : > { %v8762_v25 = vpop.permute.xlu1 %8761  ;;  %10372 = vrot.lane.b32.xlu0 %v18138_v33, %s15366_s22  ;;  %14989 = vmatmul.mubr.msk.bf16.vlgmr.msra.gmra.mrb[248].mxu0 %vm452_vm2, %v18261_v38  ;;  %v4925_v8 = vpop.f32.mrb[143].mxu1 }
 0x2a6   : > { %14991 = vmatmul.mubr.msk.bf16.vlgmr.msra.gmra.mrb[248].mxu1 %vm452_vm2, %v18261_v38  ;;  %8577 = vmatpush1.bf16.msra.mxu0 %v8319_v47 }
 0x2a7   : > { %10374 = vrot.lane.b32.xlu1 %v18145_v3, %s15366_s22  ;;  %14994 = vmatprep.subr.msk.bf16.mxu1 %vm456_vm1, %v8278_v1  ;;  %v8764_v45 = vpop.permute.xlu0 %8763 }
 0x2a8   : > { %8618 = vmatpush1.bf16.msra.mxu1 %v8325_v48  ;;  %v5166_v2 = vpop.f32.mrb[144].mxu0  ;;  %8608 = vmatprep.mubr.bf16.mxu0 %v15348_v26  ;;  %v8796_v35 = vsel %vm8795_vm3, %v8762_v25, %v8764_v45 }
 0x2a9   : > { %v8766_v20 = vpop.permute.xlu1 %8765  ;;  %v18353_v40 = vadd.f32 %v5166_v2, %v18193_v60  ;;  %v5207_v5 = vpop.f32.mrb[144].mxu1  ;;  %10376 = vrot.lane.b32.xlu0 %v18155_v31, %s15366_s22  ;;  %8649 = vmatprep.mubr.bf16.mxu1 %v15348_v26 }
 0x2aa   : > { %v5168_v49 = vpop.f32.mrb[145].mxu0  ;;  %v8797_v6 = vsel %vm8795_vm3, %v8764_v45, %v8766_v20  ;;  %v18360_v17 = vadd.f32 %v5207_v5, %v18203_v44  ;;  %v5209_v61 = vpop.f32.mrb[145].mxu1 }
 0x2ab   : > { %v18363_v4 = vadd.f32 %v5168_v49, %v18206_v57  ;;  %10378 = vrot.lane.b32.xlu1 %v18177_v54, %s15366_s22  ;;  %14998 = vmatprep.subr.msk.bf16.mxu0 %vm456_vm1, %v8797_v6  ;;  %v5170_v60 = vpop.f32.mrb[146].mxu0  ;;  %v18370_v12 = vadd.f32 %v5209_v61, %v18215_v15  ;;  %v8768_v18 = vpop.permute.xlu0 %8767  ;;  %v8816_v15 = vsel %vm456_vm1, %v8796_v35, 0 }
 0x2ac   : > { %v5211_v42 = vpop.f32.mrb[146].mxu1  ;;  %v8798_v44 = vsel %vm8795_vm3, %v8766_v20, %v8768_v18  ;;  %v5171_v23 = vpop.f32.mrb[147].mxu0 }
 0x2ad   : > { %v8770_v50 = vpop.permute.xlu1 %8769  ;;  %10380 = vrot.lane.b32.xlu0 %v18186_v34, %s15366_s22  ;;  %14993 = vmatmul.mubr.msk.bf16.vlgmr.msra.gmra.mrb[252].mxu0 %vm452_vm2, %v18261_v38  ;;  %v8822_v24 = vsel %vm456_vm1, %v8798_v44, 0  ;;  %v5212_v53 = vpop.f32.mrb[147].mxu1 }
 0x2ae   : > { %v8799_v57 = vsel %vm8795_vm3, %v8768_v18, %v8770_v50  ;;  %14995 = vmatmul.mubr.msk.bf16.vlgmr.msra.gmra.mrb[252].mxu1 %vm452_vm2, %v18261_v38  ;;  %8864 = vmatpush1.bf16.msra.mxu0 %v8816_v15 }
 0x2af   : > { %10382 = vrot.lane.b32.xlu1 %v18200_v13, %s15366_s22  ;;  %15000 = vmatprep.subr.msk.bf16.mxu1 %vm456_vm1, %v8799_v57  ;;  %v8772_v30 = vpop.permute.xlu0 %8771 }
 0x2b0   : > { %8905 = vmatpush1.bf16.msra.mxu1 %v8822_v24  ;;  %v5248_v10 = vpop.f32.mrb[148].mxu0  ;;  %8895 = vmatprep.mubr.bf16.mxu0 %v15348_v26  ;;  %v8800_v45 = vsel %vm8795_vm3, %v8770_v50, %v8772_v30 }
 0x2b1   : > { %v8774_v39 = vpop.permute.xlu1 %8773  ;;  %v18387_v11 = vadd.f32 %v5248_v10, %v18240_v14  ;;  %v5289_v1 = vpop.f32.mrb[148].mxu1  ;;  %10384 = vrot.lane.b32.xlu0 %v18211_v32, %s15366_s22  ;;  %8936 = vmatprep.mubr.bf16.mxu1 %v15348_v26  ;;  %v18405_v14 = vld [vmem:[%s20049_s1 + $0x40] sm:$0xf] }
 0x2b2   : > { %v5250_v25 = vpop.f32.mrb[149].mxu0  ;;  %v8801_v38 = vsel %vm8795_vm3, %v8772_v30, %v8774_v39  ;;  %v18394_v46 = vadd.f32 %v5289_v1, %v18250_v37  ;;  %v5291_v47 = vpop.f32.mrb[149].mxu1 }
 0x2b3   : > { %v18397_v8 = vadd.f32 %v5250_v25, %v18253_v28  ;;  %10386 = vrot.lane.b32.xlu1 %v18225_v16, %s15366_s22  ;;  %15002 = vmatprep.subr.msk.bf16.mxu0 %vm456_vm1, %v8801_v38  ;;  %v5252_v48 = vpop.f32.mrb[150].mxu0  ;;  %v18409_v37 = vadd.f32 %v5291_v47, %v18265_v9  ;;  %v8776_v20 = vpop.permute.xlu0 %8775  ;;  %v8828_v9 = vsel %vm456_vm1, %v8800_v45, 0 }
 0x2b4   : > { %v5293_v28 = vpop.f32.mrb[150].mxu1  ;;  %v8802_v2 = vsel %vm8795_vm3, %v8774_v39, %v8776_v20  ;;  %v5253_v49 = vpop.f32.mrb[151].mxu0 }
 0x2b5   : > { %v8778_v5 = vpop.permute.xlu1 %8777  ;;  %10388 = vrot.lane.b32.xlu0 %v18233_v55, %s15366_s22  ;;  %14999 = vmatmul.mubr.msk.bf16.vlgmr.msra.gmra.mrb[0].mxu0 %vm452_vm2, %v18405_v14  ;;  %v8834_v61 = vsel %vm456_vm1, %v8802_v2, 0  ;;  %v5294_v60 = vpop.f32.mrb[151].mxu1 }
 0x2b6   : > { %v8803_v6 = vsel %vm8795_vm3, %v8776_v20, %v8778_v5  ;;  %15001 = vmatmul.mubr.msk.bf16.vlgmr.msra.gmra.mrb[0].mxu1 %vm452_vm2, %v18405_v14  ;;  %8946 = vmatpush1.bf16.msra.mxu0 %v8828_v9 }
 0x2b7   : > { %10390 = vrot.lane.b32.xlu1 %v18247_v41, %s15366_s22  ;;  %15004 = vmatprep.subr.msk.bf16.mxu1 %vm456_vm1, %v8803_v6  ;;  %v8780_v35 = vpop.permute.xlu0 %8779 }
 0x2b8   : > { %8987 = vmatpush1.bf16.msra.mxu1 %v8834_v61  ;;  %v5330_v42 = vpop.f32.mrb[152].mxu0  ;;  %8977 = vmatprep.mubr.bf16.mxu0 %v15348_v26  ;;  %v8804_v30 = vsel %vm8795_vm3, %v8778_v5, %v8780_v35 }
 0x2b9   : > { %v8782_v18 = vpop.permute.xlu1 %8781  ;;  %v18426_v44 = vadd.f32 %v5330_v42, %v18286_v62  ;;  %v5371_v50 = vpop.f32.mrb[152].mxu1  ;;  %10392 = vrot.lane.b32.xlu0 %v18268_v56, %s15366_s22  ;;  %9018 = vmatprep.mubr.bf16.mxu1 %v15348_v26 }
 0x2ba   : > { %v5332_v23 = vpop.f32.mrb[153].mxu0  ;;  %v8805_v57 = vsel %vm8795_vm3, %v8780_v35, %v8782_v18  ;;  %v18433_v24 = vadd.f32 %v5371_v50, %v18292_v59  ;;  %v5373_v15 = vpop.f32.mrb[153].mxu1 }
 0x2bb   : > { %v18436_v53 = vadd.f32 %v5332_v23, %v18295_v29  ;;  %10893 = vrot.lane.b32.xlu1 %v18052_v58, %s15367_s25  ;;  %15006 = vmatprep.subr.msk.bf16.mxu0 %vm456_vm1, %v8805_v57  ;;  %v5334_v62 = vpop.f32.mrb[154].mxu0  ;;  %v18443_v39 = vadd.f32 %v5373_v15, %v18302_v0  ;;  %v8784_v10 = vpop.permute.xlu0 %8783  ;;  %v8840_v0 = vsel %vm456_vm1, %v8804_v30, 0 }
 0x2bc   : > { %v5375_v1 = vpop.f32.mrb[154].mxu1  ;;  %v8806_v59 = vsel %vm8795_vm3, %v8782_v18, %v8784_v10  ;;  %v5335_v29 = vpop.f32.mrb[155].mxu0 }
 0x2bd   : > { %v8786_v25 = vpop.permute.xlu1 %8785  ;;  %10895 = vrot.lane.b32.xlu0 %v18080_v63, %s15367_s25  ;;  %15003 = vmatmul.mubr.msk.bf16.vlgmr.msra.gmra.mrb[4].mxu0 %vm452_vm2, %v18405_v14  ;;  %v8846_v47 = vsel %vm456_vm1, %v8806_v59, 0  ;;  %v5376_v48 = vpop.f32.mrb[155].mxu1 }
 0x2be   : > { %v8807_v38 = vsel %vm8795_vm3, %v8784_v10, %v8786_v25  ;;  %15005 = vmatmul.mubr.msk.bf16.vlgmr.msra.gmra.mrb[4].mxu1 %vm452_vm2, %v18405_v14  ;;  %9028 = vmatpush1.bf16.msra.mxu0 %v8840_v0 }
 0x2bf   : > { %10897 = vrot.lane.b32.xlu1 %v18089_v36, %s15367_s25  ;;  %15008 = vmatprep.subr.msk.bf16.mxu1 %vm456_vm1, %v8807_v38  ;;  %v8788_v45 = vpop.permute.xlu0 %8787 }
 0x2c0   : > { %9069 = vmatpush1.bf16.msra.mxu1 %v8846_v47  ;;  %v5412_v28 = vpop.f32.mrb[156].mxu0  ;;  %9059 = vmatprep.mubr.bf16.mxu0 %v15348_v26  ;;  %v8808_v35 = vsel %vm8795_vm3, %v8786_v25, %v8788_v45 }
 0x2c1   : > { %v8790_v20 = vpop.permute.xlu1 %8789  ;;  %v18460_v2 = vadd.f32 %v5412_v28, %v18320_v22  ;;  %v5453_v5 = vpop.f32.mrb[156].mxu1  ;;  %10899 = vrot.lane.b32.xlu0 %v18096_v43, %s15367_s25  ;;  %9100 = vmatprep.mubr.bf16.mxu1 %v15348_v26 }
 0x2c2   : > { %v5414_v49 = vpop.f32.mrb[157].mxu0  ;;  %v8809_v6 = vsel %vm8795_vm3, %v8788_v45, %v8790_v20  ;;  %v18467_v61 = vadd.f32 %v5453_v5, %v18326_v52  ;;  %v5455_v9 = vpop.f32.mrb[157].mxu1 }
 0x2c3   : > { %v18470_v60 = vadd.f32 %v5414_v49, %v18329_v21  ;;  %10901 = vrot.lane.b32.xlu1 %v18106_v27, %s15367_s25  ;;  %15010 = vmatprep.subr.msk.bf16.mxu0 %vm456_vm1, %v8809_v6  ;;  %v5416_v22 = vpop.f32.mrb[158].mxu0  ;;  %v18477_v18 = vadd.f32 %v5455_v9, %v18336_v7  ;;  %v8792_v42 = vpop.permute.xlu0 %8791  ;;  %v8852_v7 = vsel %vm456_vm1, %v8808_v35, 0 }
 0x2c4   : > { %v5457_v50 = vpop.f32.mrb[158].mxu1  ;;  %v8810_v52 = vsel %vm8795_vm3, %v8790_v20, %v8792_v42  ;;  %v5417_v57 = vpop.f32.mrb[159].mxu0 }
 0x2c5   : > { %v8794_v23 = vpop.permute.xlu1 %8793  ;;  %10903 = vrot.lane.b32.xlu0 %v18129_v51, %s15367_s25  ;;  %15007 = vmatmul.mubr.msk.bf16.vlgmr.msra.gmra.mrb[8].mxu0 %vm452_vm2, %v18405_v14  ;;  %v8858_v15 = vsel %vm456_vm1, %v8810_v52, 0  ;;  %v5458_v62 = vpop.f32.mrb[159].mxu1 }
 0x2c6   : > { %v8811_v21 = vsel %vm8795_vm3, %v8792_v42, %v8794_v23  ;;  %15009 = vmatmul.mubr.msk.bf16.vlgmr.msra.gmra.mrb[8].mxu1 %vm452_vm2, %v18405_v14  ;;  %9110 = vmatpush1.bf16.msra.mxu0 %v8852_v7 }
 0x2c7   : > { %10905 = vrot.lane.b32.xlu1 %v18138_v33, %s15367_s25  ;;  %15012 = vmatprep.subr.msk.bf16.mxu1 %vm456_vm1, %v8811_v21  ;;  %v9295_v30 = vpop.permute.xlu0 %9294  ;;  %v18538_v21 = vld [vmem:[%s20049_s1 + $0x44] sm:$0xf] }
 0x2c8   : > { %9151 = vmatpush1.bf16.msra.mxu1 %v8858_v15  ;;  %v5699_v1 = vpop.f32.mrb[160].mxu0  ;;  %9141 = vmatprep.mubr.bf16.mxu0 %v15348_v26 }
 0x2c9   : > { %v9297_v10 = vpop.permute.xlu1 %9296  ;;  %v5740_v59 = vpop.f32.mrb[160].mxu1  ;;  %10907 = vrot.lane.b32.xlu0 %v18145_v3, %s15367_s25  ;;  %9182 = vmatprep.mubr.bf16.mxu1 %v15348_v26  ;;  %v18497_v29 = vadd.f32 %v5699_v1, %v18353_v40 }
 0x2ca   : > { %v5701_v25 = vpop.f32.mrb[161].mxu0  ;;  %v5742_v38 = vpop.f32.mrb[161].mxu1  ;;  %v18502_v48 = vadd.f32 %v5740_v59, %v18360_v17  ;;  %v9329_v5 = vsel %vm9328_vm4, %v9295_v30, %v9297_v10 }
 0x2cb   : > { %10909 = vrot.lane.b32.xlu1 %v18155_v31, %s15367_s25  ;;  %v5703_v47 = vpop.f32.mrb[162].mxu0  ;;  %v18505_v0 = vadd.f32 %v5701_v25, %v18363_v4  ;;  %v9299_v45 = vpop.permute.xlu0 %9298  ;;  %v18508_v28 = vadd.f32 %v5742_v38, %v18370_v12  ;;  %v9349_v12 = vsel %vm456_vm1, %v9329_v5, 0 }
 0x2cc   : > { %v5744_v20 = vpop.f32.mrb[162].mxu1  ;;  %v9330_v49 = vsel %vm9328_vm4, %v9297_v10, %v9299_v45  ;;  %v5704_v6 = vpop.f32.mrb[163].mxu0 }
 0x2cd   : > { %v9301_v40 = vpop.permute.xlu1 %9300  ;;  %10911 = vrot.lane.b32.xlu0 %v18177_v54, %s15367_s25  ;;  %15011 = vmatmul.mubr.msk.bf16.vlgmr.msra.gmra.mrb[12].mxu0 %vm452_vm2, %v18405_v14  ;;  %v5745_v17 = vpop.f32.mrb[163].mxu1 }
 0x2ce   : > { %v9331_v4 = vsel %vm9328_vm4, %v9299_v45, %v9301_v40  ;;  %15013 = vmatmul.mubr.msk.bf16.vlgmr.msra.gmra.mrb[12].mxu1 %vm452_vm2, %v18405_v14  ;;  %15016 = vmatprep.subr.msk.bf16.mxu0 %vm456_vm1, %v9330_v49 }
 0x2cf   : > { %10913 = vrot.lane.b32.xlu1 %v18186_v34, %s15367_s25  ;;  %v9303_v9 = vpop.permute.xlu0 %9302  ;;  %9428 = vmatprep.mubr.bf16.mxu0 %v15348_v26  ;;  %v9355_v14 = vsel %vm456_vm1, %v9331_v4, 0 }
 0x2d0   : > { %9397 = vmatpush1.bf16.msra.mxu0 %v9349_v12  ;;  %v5781_v35 = vpop.f32.mrb[164].mxu0  ;;  %v9332_v42 = vsel %vm9328_vm4, %v9301_v40, %v9303_v9  ;;  %9469 = vmatprep.mubr.bf16.mxu1 %v15348_v26 }
 0x2d1   : > { %v9305_v22 = vpop.permute.xlu1 %9304  ;;  %v5822_v50 = vpop.f32.mrb[164].mxu1  ;;  %10915 = vrot.lane.b32.xlu0 %v18200_v13, %s15367_s25  ;;  %15018 = vmatprep.subr.msk.bf16.mxu1 %vm456_vm1, %v9332_v42  ;;  %v18531_v23 = vadd.f32 %v5781_v35, %v18387_v11 }
 0x2d2   : > { %v5783_v52 = vpop.f32.mrb[165].mxu0  ;;  %v5824_v57 = vpop.f32.mrb[165].mxu1  ;;  %9438 = vmatpush1.bf16.msra.mxu1 %v9355_v14  ;;  %v18541_v62 = vadd.f32 %v5822_v50, %v18394_v46 }
 0x2d3   : > { %10917 = vrot.lane.b32.xlu1 %v18211_v32, %s15367_s25  ;;  %v5785_v15 = vpop.f32.mrb[166].mxu0  ;;  %v18544_v7 = vadd.f32 %v5783_v52, %v18397_v8  ;;  %v9307_v30 = vpop.permute.xlu0 %9306  ;;  %v18547_v10 = vadd.f32 %v5824_v57, %v18409_v37  ;;  %v9333_v32 = vsel %vm9328_vm4, %v9303_v9, %v9305_v22 }
 0x2d4   : > { %v5826_v11 = vpop.f32.mrb[166].mxu1  ;;  %v9334_v59 = vsel %vm9328_vm4, %v9305_v22, %v9307_v30  ;;  %v5786_v25 = vpop.f32.mrb[167].mxu0  ;;  %v9361_v37 = vsel %vm456_vm1, %v9333_v32, 0 }
 0x2d5   : > { %v9309_v1 = vpop.permute.xlu1 %9308  ;;  %10919 = vrot.lane.b32.xlu0 %v18225_v16, %s15367_s25  ;;  %15017 = vmatmul.mubr.msk.bf16.vlgmr.msra.gmra.mrb[16].mxu0 %vm452_vm2, %v18538_v21  ;;  %v5827_v46 = vpop.f32.mrb[167].mxu1 }
 0x2d6   : > { %v9335_v8 = vsel %vm9328_vm4, %v9307_v30, %v9309_v1  ;;  %15019 = vmatmul.mubr.msk.bf16.vlgmr.msra.gmra.mrb[16].mxu1 %vm452_vm2, %v18538_v21  ;;  %15020 = vmatprep.subr.msk.bf16.mxu0 %vm456_vm1, %v9334_v59 }
 0x2d7   : > { %10921 = vrot.lane.b32.xlu1 %v18233_v55, %s15367_s25  ;;  %v9311_v38 = vpop.permute.xlu0 %9310  ;;  %9510 = vmatprep.mubr.bf16.mxu0 %v15348_v26  ;;  %v9367_v5 = vsel %vm456_vm1, %v9335_v8, 0 }
 0x2d8   : > { %9479 = vmatpush1.bf16.msra.mxu0 %v9361_v37  ;;  %v5863_v47 = vpop.f32.mrb[168].mxu0  ;;  %v9336_v45 = vsel %vm9328_vm4, %v9309_v1, %v9311_v38  ;;  %9551 = vmatprep.mubr.bf16.mxu1 %v15348_v26 }
 0x2d9   : > { %v9313_v16 = vpop.permute.xlu1 %9312  ;;  %v5904_v20 = vpop.f32.mrb[168].mxu1  ;;  %10923 = vrot.lane.b32.xlu0 %v18247_v41, %s15367_s25  ;;  %15022 = vmatprep.subr.msk.bf16.mxu1 %vm456_vm1, %v9336_v45  ;;  %v18570_v40 = vadd.f32 %v5863_v47, %v18426_v44 }
 0x2da   : > { %v5865_v55 = vpop.f32.mrb[169].mxu0  ;;  %v5906_v49 = vpop.f32.mrb[169].mxu1  ;;  %9520 = vmatpush1.bf16.msra.mxu1 %v9367_v5  ;;  %v18575_v17 = vadd.f32 %v5904_v20, %v18433_v24  ;;  %v9337_v44 = vsel %vm9328_vm4, %v9311_v38, %v9313_v16 }
 0x2db   : > { %10925 = vrot.lane.b32.xlu1 %v18268_v56, %s15367_s25  ;;  %v5867_v6 = vpop.f32.mrb[170].mxu0  ;;  %v18578_v4 = vadd.f32 %v5865_v55, %v18436_v53  ;;  %v9315_v41 = vpop.permute.xlu0 %9314  ;;  %v18581_v9 = vadd.f32 %v5906_v49, %v18443_v39  ;;  %v9373_v53 = vsel %vm456_vm1, %v9337_v44, 0 }
 0x2dc   : > { %v5908_v12 = vpop.f32.mrb[170].mxu1  ;;  %v9338_v35 = vsel %vm9328_vm4, %v9313_v16, %v9315_v41  ;;  %v5868_v42 = vpop.f32.mrb[171].mxu0  ;;  %v11342_v6 = vld [vmem:[%s15446_s10 + $0x22] sm:$0xff] }
 0x2dd   : > { %v9317_v22 = vpop.permute.xlu1 %9316  ;;  %11426 = vrot.lane.b32.xlu0 %v18052_v58, %s15368_s29  ;;  %15021 = vmatmul.mubr.msk.bf16.vlgmr.msra.gmra.mrb[20].mxu0 %vm452_vm2, %v18538_v21  ;;  %v5909_v56 = vpop.f32.mrb[171].mxu1  ;;  %v11402_v42 = vcombine.high %v11342_v6, %v11342_v6 }
 0x2de   : > { %v9339_v24 = vsel %vm9328_vm4, %v9315_v41, %v9317_v22  ;;  %15023 = vmatmul.mubr.msk.bf16.vlgmr.msra.gmra.mrb[20].mxu1 %vm452_vm2, %v18538_v21  ;;  %15024 = vmatprep.subr.msk.bf16.mxu0 %vm456_vm1, %v9338_v35 }
 0x2df   : > { %11428 = vrot.lane.b32.xlu1 %v18080_v63, %s15368_s29  ;;  %v9319_v39 = vpop.permute.xlu0 %9318  ;;  %9592 = vmatprep.mubr.bf16.mxu0 %v15348_v26  ;;  %v9379_v57 = vsel %vm456_vm1, %v9339_v24, 0 }
 0x2e0   : > { %9561 = vmatpush1.bf16.msra.mxu0 %v9373_v53  ;;  %v5945_v50 = vpop.f32.mrb[172].mxu0  ;;  %v9340_v52 = vsel %vm9328_vm4, %v9317_v22, %v9319_v39  ;;  %9633 = vmatprep.mubr.bf16.mxu1 %v15348_v26 }
 0x2e1   : > { %v9321_v58 = vpop.permute.xlu1 %9320  ;;  %v5986_v14 = vpop.f32.mrb[172].mxu1  ;;  %11430 = vrot.lane.b32.xlu0 %v18089_v36, %s15368_s29  ;;  %15026 = vmatprep.subr.msk.bf16.mxu1 %vm456_vm1, %v9340_v52  ;;  %v18604_v15 = vadd.f32 %v5945_v50, %v18460_v2 }
 0x2e2   : > { %v5947_v63 = vpop.f32.mrb[173].mxu0  ;;  %v5988_v30 = vpop.f32.mrb[173].mxu1  ;;  %9602 = vmatpush1.bf16.msra.mxu1 %v9379_v57  ;;  %v18609_v32 = vadd.f32 %v5986_v14, %v18467_v61  ;;  %v9341_v2 = vsel %vm9328_vm4, %v9319_v39, %v9321_v58 }
 0x2e3   : > { %11432 = vrot.lane.b32.xlu1 %v18096_v43, %s15368_s29  ;;  %v5949_v11 = vpop.f32.mrb[174].mxu0  ;;  %v18612_v1 = vadd.f32 %v5947_v63, %v18470_v60  ;;  %v9323_v36 = vpop.permute.xlu0 %9322  ;;  %v18615_v25 = vadd.f32 %v5988_v30, %v18477_v18  ;;  %v9385_v60 = vsel %vm456_vm1, %v9341_v2, 0  ;;  %v18696_v30 = vrot.slane %v11402_v42, %v15456_v19 }
 0x2e4   : > { %v5990_v59 = vpop.f32.mrb[174].mxu1  ;;  %v9342_v8 = vsel %vm9328_vm4, %v9321_v58, %v9323_v36  ;;  %v5950_v37 = vpop.f32.mrb[175].mxu0 }
 0x2e5   : > { %v9325_v46 = vpop.permute.xlu1 %9324  ;;  %11434 = vrot.lane.b32.xlu0 %v18106_v27, %s15368_s29  ;;  %15025 = vmatmul.mubr.msk.bf16.vlgmr.msra.gmra.mrb[24].mxu0 %vm452_vm2, %v18538_v21  ;;  %v5991_v43 = vpop.f32.mrb[175].mxu1  ;;  %v11872_v37 = vld [vmem:[%s15446_s10 + $0xa] sm:$0xff] }
 0x2e6   : > { %v9343_v61 = vsel %vm9328_vm4, %v9323_v36, %v9325_v46  ;;  %15027 = vmatmul.mubr.msk.bf16.vlgmr.msra.gmra.mrb[24].mxu1 %vm452_vm2, %v18538_v21  ;;  %15028 = vmatprep.subr.msk.bf16.mxu0 %vm456_vm1, %v9342_v8 }
 0x2e7   : > { %11436 = vrot.lane.b32.xlu1 %v18129_v51, %s15368_s29  ;;  %v9327_v18 = vpop.permute.xlu0 %9326  ;;  %9674 = vmatprep.mubr.bf16.mxu0 %v15348_v26  ;;  %v9391_v20 = vsel %vm456_vm1, %v9343_v61, 0 }
 0x2e8   : > { %9643 = vmatpush1.bf16.msra.mxu0 %v9385_v60  ;;  %v9344_v27 = vsel %vm9328_vm4, %v9325_v46, %v9327_v18  ;;  %v6232_v16 = vpop.f32.mrb[176].mxu0  ;;  %9715 = vmatprep.mubr.bf16.mxu1 %v15348_v26 }
 0x2e9   : > { %v9828_v38 = vpop.permute.xlu1 %9827  ;;  %v18634_v51 = vadd.f32 %v6232_v16, %v18497_v29  ;;  %v6273_v47 = vpop.f32.mrb[176].mxu1  ;;  %11438 = vrot.lane.b32.xlu0 %v18138_v33, %s15368_s29  ;;  %15030 = vmatprep.subr.msk.bf16.mxu1 %vm456_vm1, %v9344_v27 }
 0x2ea   : > { %v6234_v45 = vpop.f32.mrb[177].mxu0  ;;  %v18641_v55 = vadd.f32 %v6273_v47, %v18502_v48  ;;  %v6275_v49 = vpop.f32.mrb[177].mxu1  ;;  %9684 = vmatpush1.bf16.msra.mxu1 %v9391_v20  ;;  %v18729_v20 = vrot.slane %v11872_v37, %v15456_v19 }
 0x2eb   : > { %v18644_v5 = vadd.f32 %v6234_v45, %v18505_v0  ;;  %11440 = vrot.lane.b32.xlu1 %v18145_v3, %s15368_s29  ;;  %v6236_v29 = vpop.f32.mrb[178].mxu0  ;;  %v18650_v33 = vadd.f32 %v6275_v49, %v18508_v28  ;;  %v9830_v41 = vpop.permute.xlu0 %9829  ;;  %v18660_v28 = vrot.slane %v11342_v6, %v15456_v19  ;;  %v18741_v6 = vld.sshfl [vmem:[%s15446_s10 + $0x2a] sm:$0x3 pattern:$0x76325410] }
 0x2ec   : > { %v6277_v12 = vpop.f32.mrb[178].mxu1  ;;  %v9862_v44 = vsel %vm9861_vm5, %v9828_v38, %v9830_v41  ;;  %v6237_v48 = vpop.f32.mrb[179].mxu0  ;;  %v18755_v42 = vcombine.high %v18729_v20, %v18729_v20 }
 0x2ed   : > { %v9832_v22 = vpop.permute.xlu1 %9831  ;;  %11442 = vrot.lane.b32.xlu0 %v18155_v31, %s15368_s29  ;;  %15029 = vmatmul.mubr.msk.bf16.vlgmr.msra.gmra.mrb[28].mxu0 %vm452_vm2, %v18538_v21  ;;  %v9882_v0 = vsel %vm456_vm1, %v9862_v44, 0  ;;  %v6278_v35 = vpop.f32.mrb[179].mxu1  ;;  %v18679_v52 = vcombine.high %v18660_v28, %v18660_v28  ;;  %v11884_v12 = vcombine.high %v11872_v37, %v11872_v37 }
 0x2ee   : > { %v9863_v3 = vsel %vm9861_vm5, %v9830_v41, %v9832_v22  ;;  %15031 = vmatmul.mubr.msk.bf16.vlgmr.msra.gmra.mrb[28].mxu1 %vm452_vm2, %v18538_v21  ;;  %9961 = vmatprep.mubr.bf16.mxu0 %v15348_v26 }
 0x2ef   : > { %11444 = vrot.lane.b32.xlu1 %v18177_v54, %s15368_s29  ;;  %15034 = vmatprep.subr.msk.bf16.mxu0 %vm456_vm1, %v9863_v3  ;;  %v9834_v31 = vpop.permute.xlu0 %9833 }
 0x2f0   : > { %9930 = vmatpush1.bf16.msra.mxu0 %v9882_v0  ;;  %v9864_v56 = vsel %vm9861_vm5, %v9832_v22, %v9834_v31  ;;  %v6314_v53 = vpop.f32.mrb[180].mxu0  ;;  %10002 = vmatprep.mubr.bf16.mxu1 %v15348_v26 }
 0x2f1   : > { %v9836_v24 = vpop.permute.xlu1 %9835  ;;  %v18671_v39 = vadd.f32 %v6314_v53, %v18531_v23  ;;  %v6355_v54 = vpop.f32.mrb[180].mxu1  ;;  %11446 = vrot.lane.b32.xlu0 %v18186_v34, %s15368_s29  ;;  %v9888_v50 = vsel %vm456_vm1, %v9864_v56, 0  ;;  %v18693_v34 = vld [vmem:[%s20049_s1 + $0x48] sm:$0xf]  ;;  %v11873_v56 = vld [vmem:[%s15446_s10 + $0x12] sm:$0xff] }
 0x2f2   : > { %v6316_v21 = vpop.f32.mrb[181].mxu0  ;;  %v9865_v58 = vsel %vm9861_vm5, %v9834_v31, %v9836_v24  ;;  %v18682_v14 = vadd.f32 %v6355_v54, %v18541_v62  ;;  %v6357_v23 = vpop.f32.mrb[181].mxu1  ;;  %v18762_v31 = vrot.slane %v11884_v12, %v15456_v19 }
 0x2f3   : > { %v18685_v63 = vadd.f32 %v6316_v21, %v18544_v7  ;;  %11448 = vrot.lane.b32.xlu1 %v18200_v13, %s15368_s29  ;;  %15036 = vmatprep.subr.msk.bf16.mxu1 %vm456_vm1, %v9865_v58  ;;  %v6318_v57 = vpop.f32.mrb[182].mxu0  ;;  %v18699_v62 = vadd.f32 %v6357_v23, %v18547_v10  ;;  %v9838_v7 = vpop.permute.xlu0 %9837  ;;  %v18714_v10 = vcombine.high %v18696_v30, %v18696_v30 }
 0x2f4   : > { %9971 = vmatpush1.bf16.msra.mxu1 %v9888_v50  ;;  %v6359_v11 = vpop.f32.mrb[182].mxu1  ;;  %v9866_v13 = vsel %vm9861_vm5, %v9836_v24, %v9838_v7  ;;  %v6319_v59 = vpop.f32.mrb[183].mxu0  ;;  %v18771_v58 = vcombine.high %v18762_v31, %v18762_v31 }
 0x2f5   : > { %v9840_v36 = vpop.permute.xlu1 %9839  ;;  %11450 = vrot.lane.b32.xlu0 %v18660_v28, %s15368_s29  ;;  %15035 = vmatmul.mubr.msk.bf16.vlgmr.msra.gmra.mrb[32].mxu0 %vm452_vm2, %v18693_v34  ;;  %v9894_v46 = vsel %vm456_vm1, %v9866_v13, 0  ;;  %v6360_v8 = vpop.f32.mrb[183].mxu1  ;;  %v18781_v13 = vrot.slane %v11873_v56, %v15456_v19 }
 0x2f6   : > { %v9867_v2 = vsel %vm9861_vm5, %v9838_v7, %v9840_v36  ;;  %10043 = vmatprep.mubr.bf16.mxu0 %v15348_v26 }
 0x2f7   : > { %11452 = vrot.lane.b32.xlu1 %v18679_v52, %s15368_s29  ;;  %15037 = vmatmul.mubr.msk.bf16.vlgmr.msra.gmra.mrb[32].mxu1 %vm452_vm2, %v18693_v34  ;;  %v9842_v43 = vpop.permute.xlu0 %9841 }
 0x2f8   : > { %15038 = vmatprep.subr.msk.bf16.mxu0 %vm456_vm1, %v9867_v2  ;;  %v9868_v61 = vsel %vm9861_vm5, %v9840_v36, %v9842_v43  ;;  %v6396_v18 = vpop.f32.mrb[184].mxu0  ;;  %10084 = vmatprep.mubr.bf16.mxu1 %v15348_v26 }
 0x2f9   : > { %10012 = vmatpush1.bf16.msra.mxu0 %v9894_v46  ;;  %v9844_v60 = vpop.permute.xlu1 %9843  ;;  %v18722_v27 = vadd.f32 %v6396_v18, %v18570_v40  ;;  %v6437_v38 = vpop.f32.mrb[184].mxu1  ;;  %11454 = vrot.lane.b32.xlu0 %v18696_v30, %s15368_s29  ;;  %v9900_v45 = vsel %vm456_vm1, %v9868_v61, 0  ;;  %v11901_v46 = vcombine.high %v11873_v56, %v11873_v56 }
 0x2fa   : > { %v6398_v16 = vpop.f32.mrb[185].mxu0  ;;  %v9869_v47 = vsel %vm9861_vm5, %v9842_v43, %v9844_v60  ;;  %v18732_v49 = vadd.f32 %v6437_v38, %v18575_v17  ;;  %v6439_v40 = vpop.f32.mrb[185].mxu1  ;;  %v18804_v38 = vcombine.high %v18781_v13, %v18781_v13 }
 0x2fb   : > { %v18735_v29 = vadd.f32 %v6398_v16, %v18578_v4  ;;  %11456 = vrot.lane.b32.xlu1 %v18714_v10, %s15368_s29  ;;  %15040 = vmatprep.subr.msk.bf16.mxu1 %vm456_vm1, %v9869_v47  ;;  %v6400_v41 = vpop.f32.mrb[186].mxu0  ;;  %v18744_v44 = vadd.f32 %v6439_v40, %v18581_v9  ;;  %v9846_v17 = vpop.permute.xlu0 %9845  ;;  %v18811_v16 = vrot.slane %v11901_v46, %v15456_v19  ;;  %v11874_v47 = vld [vmem:[%s15446_s10 + $0x1a] sm:$0xff] }
 0x2fc   : > { %10053 = vmatpush1.bf16.msra.mxu1 %v9900_v45  ;;  %v6441_v22 = vpop.f32.mrb[186].mxu1  ;;  %v9870_v4 = vsel %vm9861_vm5, %v9844_v60, %v9846_v17  ;;  %v6401_v3 = vpop.f32.mrb[187].mxu0 }
 0x2fd   : > { %v9848_v48 = vpop.permute.xlu1 %9847  ;;  %11458 = vrot.lane.b32.xlu0 %v18741_v6, %s15368_s29  ;;  %15039 = vmatmul.mubr.msk.bf16.vlgmr.msra.gmra.mrb[36].mxu0 %vm452_vm2, %v18693_v34  ;;  %v9906_v35 = vsel %vm456_vm1, %v9870_v4, 0  ;;  %v6442_v9 = vpop.f32.mrb[187].mxu1 }
 0x2fe   : > { %v9871_v0 = vsel %vm9861_vm5, %v9846_v17, %v9848_v48  ;;  %10125 = vmatprep.mubr.bf16.mxu0 %v15348_v26  ;;  %v18820_v17 = vcombine.high %v18811_v16, %v18811_v16 }
 0x2ff   : > { %11959 = vrot.lane.b32.xlu1 %v18729_v20, %s15369_s12  ;;  %15041 = vmatmul.mubr.msk.bf16.vlgmr.msra.gmra.mrb[36].mxu1 %vm452_vm2, %v18693_v34  ;;  %v9850_v24 = vpop.permute.xlu0 %9849 }
 0x300   : > { %15042 = vmatprep.subr.msk.bf16.mxu0 %vm456_vm1, %v9871_v0  ;;  %v9872_v53 = vsel %vm9861_vm5, %v9848_v48, %v9850_v24  ;;  %v6478_v21 = vpop.f32.mrb[188].mxu0  ;;  %10166 = vmatprep.mubr.bf16.mxu1 %v15348_v26 }
 0x301   : > { %10094 = vmatpush1.bf16.msra.mxu0 %v9906_v35  ;;  %v9852_v54 = vpop.permute.xlu1 %9851  ;;  %v18774_v50 = vadd.f32 %v6478_v21, %v18604_v15  ;;  %v6519_v23 = vpop.f32.mrb[188].mxu1  ;;  %11961 = vrot.lane.b32.xlu0 %v18755_v42, %s15369_s12  ;;  %v9912_v11 = vsel %vm456_vm1, %v9872_v53, 0  ;;  %v18830_v35 = vrot.slane %v11874_v47, %v15456_v19  ;;  %v11918_v53 = vcombine.high %v11874_v47, %v11874_v47 }
 0x302   : > { %v6480_v57 = vpop.f32.mrb[189].mxu0  ;;  %v9873_v7 = vsel %vm9861_vm5, %v9850_v24, %v9852_v54  ;;  %v18784_v36 = vadd.f32 %v6519_v23, %v18609_v32  ;;  %v6521_v15 = vpop.f32.mrb[189].mxu1 }
 0x303   : > { %v18787_v59 = vadd.f32 %v6480_v57, %v18612_v1  ;;  %11963 = vrot.lane.b32.xlu1 %v18762_v31, %s15369_s12  ;;  %15044 = vmatprep.subr.msk.bf16.mxu1 %vm456_vm1, %v9873_v7  ;;  %v6482_v2 = vpop.f32.mrb[190].mxu0  ;;  %v18793_v8 = vadd.f32 %v6521_v15, %v18615_v25  ;;  %v9854_v37 = vpop.permute.xlu0 %9853  ;;  %v18850_v7 = vcombine.high %v18830_v35, %v18830_v35 }
 0x304   : > { %10135 = vmatpush1.bf16.msra.mxu1 %v9912_v11  ;;  %v6523_v43 = vpop.f32.mrb[190].mxu1  ;;  %v9874_v32 = vsel %vm9861_vm5, %v9852_v54, %v9854_v37  ;;  %v6483_v1 = vpop.f32.mrb[191].mxu0  ;;  %v18858_v11 = vrot.slane %v11918_v53, %v15456_v19 }
 0x305   : > { %v9856_v61 = vpop.permute.xlu1 %9855  ;;  %11965 = vrot.lane.b32.xlu0 %v18771_v58, %s15369_s12  ;;  %15043 = vmatmul.mubr.msk.bf16.vlgmr.msra.gmra.mrb[40].mxu0 %vm452_vm2, %v18693_v34  ;;  %v9918_v18 = vsel %vm456_vm1, %v9874_v32, 0  ;;  %v6524_v25 = vpop.f32.mrb[191].mxu1 }
 0x306   : > { %v9875_v60 = vsel %vm9861_vm5, %v9854_v37, %v9856_v61  ;;  %10207 = vmatprep.mubr.bf16.mxu0 %v15348_v26  ;;  %v18872_v1 = vcombine.high %v18858_v11, %v18858_v11  ;;  %v18885_v25 = vld [vmem:[%s20049_s1 + $0x4c] sm:$0xf] }
 0x307   : > { %11967 = vrot.lane.b32.xlu1 %v18781_v13, %s15369_s12  ;;  %15045 = vmatmul.mubr.msk.bf16.vlgmr.msra.gmra.mrb[40].mxu1 %vm452_vm2, %v18693_v34  ;;  %v9858_v45 = vpop.permute.xlu0 %9857 }
 0x308   : > { %15046 = vmatprep.subr.msk.bf16.mxu0 %vm456_vm1, %v9875_v60  ;;  %v9876_v40 = vsel %vm9861_vm5, %v9856_v61, %v9858_v45  ;;  %v6765_v12 = vpop.f32.mrb[192].mxu0  ;;  %10248 = vmatprep.mubr.bf16.mxu1 %v15348_v26 }
 0x309   : > { %10176 = vmatpush1.bf16.msra.mxu0 %v9918_v18  ;;  %v9860_v41 = vpop.permute.xlu1 %9859  ;;  %v18824_v4 = vadd.f32 %v6765_v12, %v18634_v51  ;;  %v6806_v48 = vpop.f32.mrb[192].mxu1  ;;  %11969 = vrot.lane.b32.xlu0 %v18804_v38, %s15369_s12  ;;  %v9924_v0 = vsel %vm456_vm1, %v9876_v40, 0 }
 0x30a   : > { %v9877_v22 = vsel %vm9861_vm5, %v9858_v45, %v9860_v41  ;;  %v6767_v3 = vpop.f32.mrb[193].mxu0  ;;  %v18833_v9 = vadd.f32 %v6806_v48, %v18641_v55  ;;  %v6808_v24 = vpop.f32.mrb[193].mxu1 }
 0x30b   : > { %v18836_v56 = vadd.f32 %v6767_v3, %v18644_v5  ;;  %11971 = vrot.lane.b32.xlu1 %v18811_v16, %s15369_s12  ;;  %15048 = vmatprep.subr.msk.bf16.mxu1 %vm456_vm1, %v9877_v22  ;;  %v6769_v51 = vpop.f32.mrb[194].mxu0  ;;  %v18842_v54 = vadd.f32 %v6808_v24, %v18650_v33  ;;  %v10361_v21 = vpop.permute.xlu0 %10360 }
 0x30c   : > { %10217 = vmatpush1.bf16.msra.mxu1 %v9924_v0  ;;  %v6810_v23 = vpop.f32.mrb[194].mxu1  ;;  %v6770_v57 = vpop.f32.mrb[195].mxu0 }
 0x30d   : > { %v10363_v55 = vpop.permute.xlu1 %10362  ;;  %11973 = vrot.lane.b32.xlu0 %v18820_v17, %s15369_s12  ;;  %15047 = vmatmul.mubr.msk.bf16.vlgmr.msra.gmra.mrb[44].mxu0 %vm452_vm2, %v18693_v34  ;;  %v6811_v5 = vpop.f32.mrb[195].mxu1 }
 0x30e   : > { %v10395_v33 = vsel %vm10394_vm6, %v10361_v21, %v10363_v55  ;;  %10494 = vmatprep.mubr.bf16.mxu0 %v15348_v26 }
 0x30f   : > { %11975 = vrot.lane.b32.xlu1 %v18830_v35, %s15369_s12  ;;  %15049 = vmatmul.mubr.msk.bf16.vlgmr.msra.gmra.mrb[44].mxu1 %vm452_vm2, %v18693_v34  ;;  %v10365_v15 = vpop.permute.xlu0 %10364  ;;  %v10415_v61 = vsel %vm456_vm1, %v10395_v33, 0 }
 0x310   : > { %10535 = vmatprep.mubr.bf16.mxu1 %v15348_v26  ;;  %v6847_v46 = vpop.f32.mrb[196].mxu0  ;;  %v10396_v37 = vsel %vm10394_vm6, %v10363_v55, %v10365_v15 }
 0x311   : > { %v10367_v2 = vpop.permute.xlu1 %10366  ;;  %v18864_v43 = vadd.f32 %v6847_v46, %v18671_v39  ;;  %v6888_v32 = vpop.f32.mrb[196].mxu1  ;;  %11977 = vrot.lane.b32.xlu0 %v18850_v7, %s15369_s12  ;;  %15052 = vmatprep.subr.msk.bf16.mxu0 %vm456_vm1, %v10396_v37 }
 0x312   : > { %v6849_v34 = vpop.f32.mrb[197].mxu0  ;;  %v18875_v60 = vadd.f32 %v6888_v32, %v18682_v14  ;;  %v6890_v39 = vpop.f32.mrb[197].mxu1  ;;  %10463 = vmatpush1.bf16.msra.mxu0 %v10415_v61  ;;  %v10397_v45 = vsel %vm10394_vm6, %v10365_v15, %v10367_v2 }
 0x313   : > { %v18878_v18 = vadd.f32 %v6849_v34, %v18685_v63  ;;  %11979 = vrot.lane.b32.xlu1 %v18858_v11, %s15369_s12  ;;  %v6851_v47 = vpop.f32.mrb[198].mxu0  ;;  %v18889_v40 = vadd.f32 %v6890_v39, %v18699_v62  ;;  %v10369_v14 = vpop.permute.xlu0 %10368  ;;  %v10421_v62 = vsel %vm456_vm1, %v10397_v45, 0 }
 0x314   : > { %v6892_v41 = vpop.f32.mrb[198].mxu1  ;;  %v10398_v12 = vsel %vm10394_vm6, %v10367_v2, %v10369_v14  ;;  %v6852_v22 = vpop.f32.mrb[199].mxu0 }
 0x315   : > { %v10371_v63 = vpop.permute.xlu1 %10370  ;;  %11981 = vrot.lane.b32.xlu0 %v18872_v1, %s15369_s12  ;;  %15053 = vmatmul.mubr.msk.bf16.vlgmr.msra.gmra.mrb[48].mxu0 %vm452_vm2, %v18885_v25  ;;  %v6893_v48 = vpop.f32.mrb[199].mxu1 }
 0x316   : > { %15054 = vmatprep.subr.msk.bf16.mxu1 %vm456_vm1, %v10398_v12  ;;  %v10399_v3 = vsel %vm10394_vm6, %v10369_v14, %v10371_v63  ;;  %10576 = vmatprep.mubr.bf16.mxu0 %v15348_v26 }
 0x317   : > { %11983 = vrot.lane.b32.xlu1 %v18660_v28, %s15369_s12  ;;  %10504 = vmatpush1.bf16.msra.mxu1 %v10421_v62  ;;  %v10373_v0 = vpop.permute.xlu0 %10372 }
 0x318   : > { %v6929_v51 = vpop.f32.mrb[200].mxu0  ;;  %v10400_v53 = vsel %vm10394_vm6, %v10371_v63, %v10373_v0 }
 0x319   : > { %v10375_v24 = vpop.permute.xlu1 %10374  ;;  %v18904_v21 = vadd.f32 %v6929_v51, %v18722_v27  ;;  %v6970_v23 = vpop.f32.mrb[200].mxu1  ;;  %11985 = vrot.lane.b32.xlu0 %v18679_v52, %s15369_s12  ;;  %15056 = vmatprep.subr.msk.bf16.mxu0 %vm456_vm1, %v10400_v53  ;;  %v10427_v27 = vsel %vm456_vm1, %v10399_v3, 0 }
 0x31a   : > { %v6931_v55 = vpop.f32.mrb[201].mxu0  ;;  %v18910_v57 = vadd.f32 %v6970_v23, %v18732_v49  ;;  %v6972_v33 = vpop.f32.mrb[201].mxu1  ;;  %15055 = vmatmul.mubr.msk.bf16.vlgmr.msra.gmra.mrb[48].mxu1 %vm452_vm2, %v18885_v25  ;;  %v10401_v2 = vsel %vm10394_vm6, %v10373_v0, %v10375_v24  ;;  %10545 = vmatpush1.bf16.msra.mxu0 %v10427_v27 }
 0x31b   : > { %v18913_v5 = vadd.f32 %v6931_v55, %v18735_v29  ;;  %11987 = vrot.lane.b32.xlu1 %v18696_v30, %s15369_s12  ;;  %v6933_v15 = vpop.f32.mrb[202].mxu0  ;;  %v18922_v46 = vadd.f32 %v6972_v33, %v18744_v44  ;;  %v10377_v49 = vpop.permute.xlu0 %10376  ;;  %10617 = vmatprep.mubr.bf16.mxu1 %v15348_v26  ;;  %v10433_v44 = vsel %vm456_vm1, %v10401_v2, 0 }
 0x31c   : > { %v6974_v37 = vpop.f32.mrb[202].mxu1  ;;  %v10402_v32 = vsel %vm10394_vm6, %v10375_v24, %v10377_v49  ;;  %v6934_v34 = vpop.f32.mrb[203].mxu0 }
 0x31d   : > { %v10379_v29 = vpop.permute.xlu1 %10378  ;;  %11989 = vrot.lane.b32.xlu0 %v18714_v10, %s15369_s12  ;;  %15058 = vmatprep.subr.msk.bf16.mxu1 %vm456_vm1, %v10402_v32  ;;  %v6975_v61 = vpop.f32.mrb[203].mxu1 }
 0x31e   : > { %15057 = vmatmul.mubr.msk.bf16.vlgmr.msra.gmra.mrb[52].mxu0 %vm452_vm2, %v18885_v25  ;;  %v10403_v39 = vsel %vm10394_vm6, %v10377_v49, %v10379_v29  ;;  %10586 = vmatpush1.bf16.msra.mxu1 %v10433_v44 }
 0x31f   : > { %11991 = vrot.lane.b32.xlu1 %v18741_v6, %s15369_s12  ;;  %v10381_v47 = vpop.permute.xlu0 %10380  ;;  %10658 = vmatprep.mubr.bf16.mxu0 %v15348_v26 }
 0x320   : > { %v7011_v14 = vpop.f32.mrb[204].mxu0  ;;  %v10404_v41 = vsel %vm10394_vm6, %v10379_v29, %v10381_v47 }
 0x321   : > { %v10383_v45 = vpop.permute.xlu1 %10382  ;;  %v18938_v63 = vadd.f32 %v7011_v14, %v18774_v50  ;;  %v7052_v12 = vpop.f32.mrb[204].mxu1  ;;  %12492 = vrot.lane.b32.xlu0 %v18729_v20, %s15370_s5  ;;  %15060 = vmatprep.subr.msk.bf16.mxu0 %vm456_vm1, %v10404_v41  ;;  %v10439_v50 = vsel %vm456_vm1, %v10403_v39, 0 }
 0x322   : > { %v7013_v22 = vpop.f32.mrb[205].mxu0  ;;  %v18944_v48 = vadd.f32 %v7052_v12, %v18784_v36  ;;  %v7054_v3 = vpop.f32.mrb[205].mxu1  ;;  %15059 = vmatmul.mubr.msk.bf16.vlgmr.msra.gmra.mrb[52].mxu1 %vm452_vm2, %v18885_v25  ;;  %v10405_v24 = vsel %vm10394_vm6, %v10381_v47, %v10383_v45  ;;  %10627 = vmatpush1.bf16.msra.mxu0 %v10439_v50 }
 0x323   : > { %v18947_v62 = vadd.f32 %v7013_v22, %v18787_v59  ;;  %12494 = vrot.lane.b32.xlu1 %v18755_v42, %s15370_s5  ;;  %v7015_v0 = vpop.f32.mrb[206].mxu0  ;;  %v18956_v51 = vadd.f32 %v7054_v3, %v18793_v8  ;;  %v10385_v36 = vpop.permute.xlu0 %10384  ;;  %10699 = vmatprep.mubr.bf16.mxu1 %v15348_v26  ;;  %v10445_v8 = vsel %vm456_vm1, %v10405_v24, 0 }
 0x324   : > { %v7056_v53 = vpop.f32.mrb[206].mxu1  ;;  %v10406_v23 = vsel %vm10394_vm6, %v10383_v45, %v10385_v36  ;;  %v7016_v55 = vpop.f32.mrb[207].mxu0 }
 0x325   : > { %v10387_v59 = vpop.permute.xlu1 %10386  ;;  %12496 = vrot.lane.b32.xlu0 %v18762_v31, %s15370_s5  ;;  %15062 = vmatprep.subr.msk.bf16.mxu1 %vm456_vm1, %v10406_v23  ;;  %v7057_v33 = vpop.f32.mrb[207].mxu1 }
 0x326   : > { %15061 = vmatmul.mubr.msk.bf16.vlgmr.msra.gmra.mrb[56].mxu0 %vm452_vm2, %v18885_v25  ;;  %v10407_v27 = vsel %vm10394_vm6, %v10385_v36, %v10387_v59  ;;  %10668 = vmatpush1.bf16.msra.mxu1 %v10445_v8 }
 0x327   : > { %12498 = vrot.lane.b32.xlu1 %v18771_v58, %s15370_s5  ;;  %v10389_v15 = vpop.permute.xlu0 %10388  ;;  %10740 = vmatprep.mubr.bf16.mxu0 %v15348_v26 }
 0x328   : > { %v7298_v49 = vpop.f32.mrb[208].mxu0  ;;  %v10408_v37 = vsel %vm10394_vm6, %v10387_v59, %v10389_v15 }
 0x329   : > { %v10391_v2 = vpop.permute.xlu1 %10390  ;;  %v18972_v29 = vadd.f32 %v7298_v49, %v18824_v4  ;;  %v7339_v32 = vpop.f32.mrb[208].mxu1  ;;  %12500 = vrot.lane.b32.xlu0 %v18781_v13, %s15370_s5  ;;  %15064 = vmatprep.subr.msk.bf16.mxu0 %vm456_vm1, %v10408_v37  ;;  %v10451_v4 = vsel %vm456_vm1, %v10407_v27, 0 }
 0x32a   : > { %v7300_v34 = vpop.f32.mrb[209].mxu0  ;;  %v18978_v61 = vadd.f32 %v7339_v32, %v18833_v9  ;;  %v7341_v39 = vpop.f32.mrb[209].mxu1  ;;  %15063 = vmatmul.mubr.msk.bf16.vlgmr.msra.gmra.mrb[56].mxu1 %vm452_vm2, %v18885_v25  ;;  %v10409_v45 = vsel %vm10394_vm6, %v10389_v15, %v10391_v2  ;;  %10709 = vmatpush1.bf16.msra.mxu0 %v10451_v4  ;;  %v19030_v32 = vld [vmem:[%s20049_s1 + $0x50] sm:$0xf] }
 0x32b   : > { %v18981_v44 = vadd.f32 %v7300_v34, %v18836_v56  ;;  %12502 = vrot.lane.b32.xlu1 %v18804_v38, %s15370_s5  ;;  %v7302_v47 = vpop.f32.mrb[210].mxu0  ;;  %v18990_v14 = vadd.f32 %v7341_v39, %v18842_v54  ;;  %v10393_v9 = vpop.permute.xlu0 %10392  ;;  %10781 = vmatprep.mubr.bf16.mxu1 %v15348_v26  ;;  %v10457_v54 = vsel %vm456_vm1, %v10409_v45, 0 }
 0x32c   : > { %v7343_v41 = vpop.f32.mrb[210].mxu1  ;;  %v10410_v56 = vsel %vm10394_vm6, %v10391_v2, %v10393_v9  ;;  %v7303_v22 = vpop.f32.mrb[211].mxu0 }
 0x32d   : > { %v10894_v12 = vpop.permute.xlu1 %10893  ;;  %12504 = vrot.lane.b32.xlu0 %v18811_v16, %s15370_s5  ;;  %15066 = vmatprep.subr.msk.bf16.mxu1 %vm456_vm1, %v10410_v56  ;;  %v7344_v3 = vpop.f32.mrb[211].mxu1 }
 0x32e   : > { %15065 = vmatmul.mubr.msk.bf16.vlgmr.msra.gmra.mrb[60].mxu0 %vm452_vm2, %v18885_v25  ;;  %10750 = vmatpush1.bf16.msra.mxu1 %v10457_v54 }
 0x32f   : > { %12506 = vrot.lane.b32.xlu1 %v18820_v17, %s15370_s5  ;;  %v10896_v50 = vpop.permute.xlu0 %10895  ;;  %11027 = vmatprep.mubr.bf16.mxu0 %v15348_v26 }
 0x330   : > { %v10928_v0 = vsel %vm10927_vm7, %v10894_v12, %v10896_v50  ;;  %v7380_v36 = vpop.f32.mrb[212].mxu0 }
 0x331   : > { %v10898_v24 = vpop.permute.xlu1 %10897  ;;  %v19005_v53 = vadd.f32 %v7380_v36, %v18864_v43  ;;  %v7421_v59 = vpop.f32.mrb[212].mxu1  ;;  %12508 = vrot.lane.b32.xlu0 %v18830_v35, %s15370_s5  ;;  %v10948_v33 = vsel %vm456_vm1, %v10928_v0, 0 }
 0x332   : > { %v7382_v23 = vpop.f32.mrb[213].mxu0  ;;  %v10929_v55 = vsel %vm10927_vm7, %v10896_v50, %v10898_v24  ;;  %v19012_v8 = vadd.f32 %v7421_v59, %v18875_v60  ;;  %v7423_v15 = vpop.f32.mrb[213].mxu1  ;;  %15067 = vmatmul.mubr.msk.bf16.vlgmr.msra.gmra.mrb[60].mxu1 %vm452_vm2, %v18885_v25 }
 0x333   : > { %v19015_v27 = vadd.f32 %v7382_v23, %v18878_v18  ;;  %12510 = vrot.lane.b32.xlu1 %v18850_v7, %s15370_s5  ;;  %v7384_v43 = vpop.f32.mrb[214].mxu0  ;;  %v19022_v2 = vadd.f32 %v7423_v15, %v18889_v40  ;;  %15070 = vmatprep.subr.msk.bf16.mxu0 %vm456_vm1, %v10929_v55  ;;  %v10900_v49 = vpop.permute.xlu0 %10899 }
 0x334   : > { %v7425_v37 = vpop.f32.mrb[214].mxu1  ;;  %11068 = vmatprep.mubr.bf16.mxu1 %v15348_v26  ;;  %10996 = vmatpush1.bf16.msra.mxu0 %v10948_v33  ;;  %v10930_v60 = vsel %vm10927_vm7, %v10898_v24, %v10900_v49  ;;  %v7385_v25 = vpop.f32.mrb[215].mxu0 }
 0x335   : > { %v10902_v18 = vpop.permute.xlu1 %10901  ;;  %12512 = vrot.lane.b32.xlu0 %v18858_v11, %s15370_s5  ;;  %v10954_v34 = vsel %vm456_vm1, %v10930_v60, 0  ;;  %v7426_v39 = vpop.f32.mrb[215].mxu1 }
 0x336   : > { %v10931_v40 = vsel %vm10927_vm7, %v10900_v49, %v10902_v18 }
 0x337   : > { %12514 = vrot.lane.b32.xlu1 %v18872_v1, %s15370_s5  ;;  %15072 = vmatprep.subr.msk.bf16.mxu1 %vm456_vm1, %v10931_v40  ;;  %v10904_v4 = vpop.permute.xlu0 %10903 }
 0x338   : > { %15071 = vmatmul.mubr.msk.bf16.vlgmr.msra.gmra.mrb[64].mxu0 %vm452_vm2, %v19030_v32  ;;  %11037 = vmatpush1.bf16.msra.mxu1 %v10954_v34  ;;  %v10932_v47 = vsel %vm10927_vm7, %v10902_v18, %v10904_v4  ;;  %v7462_v9 = vpop.f32.mrb[216].mxu0 }
 0x339   : > { %v10906_v45 = vpop.permute.xlu1 %10905  ;;  %11109 = vmatprep.mubr.bf16.mxu0 %v15348_v26  ;;  %v19044_v41 = vadd.f32 %v7462_v9, %v18904_v21  ;;  %v7503_v56 = vpop.f32.mrb[216].mxu1  ;;  %12516 = vrot.lane.b32.xlu0 %v18660_v28, %s15370_s5  ;;  %v10960_v3 = vsel %vm456_vm1, %v10932_v47, 0 }
 0x33a   : > { %v7464_v12 = vpop.f32.mrb[217].mxu0  ;;  %v10933_v22 = vsel %vm10927_vm7, %v10904_v4, %v10906_v45  ;;  %v19051_v54 = vadd.f32 %v7503_v56, %v18910_v57  ;;  %v7505_v0 = vpop.f32.mrb[217].mxu1 }
 0x33b   : > { %v19054_v50 = vadd.f32 %v7464_v12, %v18913_v5  ;;  %12518 = vrot.lane.b32.xlu1 %v18679_v52, %s15370_s5  ;;  %15073 = vmatmul.mubr.msk.bf16.vlgmr.msra.gmra.mrb[64].mxu1 %vm452_vm2, %v19030_v32  ;;  %v7466_v21 = vpop.f32.mrb[218].mxu0  ;;  %v19061_v28 = vadd.f32 %v7505_v0, %v18922_v46  ;;  %v10908_v24 = vpop.permute.xlu0 %10907 }
 0x33c   : > { %15074 = vmatprep.subr.msk.bf16.mxu0 %vm456_vm1, %v10933_v22  ;;  %v7507_v36 = vpop.f32.mrb[218].mxu1  ;;  %11150 = vmatprep.mubr.bf16.mxu1 %v15348_v26  ;;  %v10934_v57 = vsel %vm10927_vm7, %v10906_v45, %v10908_v24  ;;  %v7467_v59 = vpop.f32.mrb[219].mxu0 }
 0x33d   : > { %11078 = vmatpush1.bf16.msra.mxu0 %v10960_v3  ;;  %v10910_v5 = vpop.permute.xlu1 %10909  ;;  %12520 = vrot.lane.b32.xlu0 %v18696_v30, %s15370_s5  ;;  %v10966_v23 = vsel %vm456_vm1, %v10934_v57, 0  ;;  %v7508_v46 = vpop.f32.mrb[219].mxu1 }
 0x33e   : > { %v10935_v52 = vsel %vm10927_vm7, %v10908_v24, %v10910_v5 }
 0x33f   : > { %12522 = vrot.lane.b32.xlu1 %v18714_v10, %s15370_s5  ;;  %15076 = vmatprep.subr.msk.bf16.mxu1 %vm456_vm1, %v10935_v52  ;;  %v10912_v55 = vpop.permute.xlu0 %10911 }
 0x340   : > { %15075 = vmatmul.mubr.msk.bf16.vlgmr.msra.gmra.mrb[68].mxu0 %vm452_vm2, %v19030_v32  ;;  %11119 = vmatpush1.bf16.msra.mxu1 %v10966_v23  ;;  %v10936_v33 = vsel %vm10927_vm7, %v10910_v5, %v10912_v55  ;;  %v7544_v43 = vpop.f32.mrb[220].mxu0 }
 0x341   : > { %v10914_v15 = vpop.permute.xlu1 %10913  ;;  %11191 = vmatprep.mubr.bf16.mxu0 %v15348_v26  ;;  %v19078_v30 = vadd.f32 %v7544_v43, %v18938_v63  ;;  %v7585_v49 = vpop.f32.mrb[220].mxu1  ;;  %12524 = vrot.lane.b32.xlu0 %v18741_v6, %s15370_s5  ;;  %v10972_v60 = vsel %vm456_vm1, %v10936_v33, 0 }
 0x342   : > { %v7546_v10 = vpop.f32.mrb[221].mxu0  ;;  %v10937_v37 = vsel %vm10927_vm7, %v10912_v55, %v10914_v15  ;;  %v19085_v18 = vadd.f32 %v7585_v49, %v18944_v48  ;;  %v7587_v40 = vpop.f32.mrb[221].mxu1 }
 0x343   : > { %v19088_v25 = vadd.f32 %v7546_v10, %v18947_v62  ;;  %13025 = vrot.lane.b32.xlu1 %v18729_v20, %s15371_s8  ;;  %15077 = vmatmul.mubr.msk.bf16.vlgmr.msra.gmra.mrb[68].mxu1 %vm452_vm2, %v19030_v32  ;;  %v7548_v63 = vpop.f32.mrb[222].mxu0  ;;  %v19095_v34 = vadd.f32 %v7587_v40, %v18956_v51  ;;  %v10916_v39 = vpop.permute.xlu0 %10915 }
 0x344   : > { %15078 = vmatprep.subr.msk.bf16.mxu0 %vm456_vm1, %v10937_v37  ;;  %v7589_v48 = vpop.f32.mrb[222].mxu1  ;;  %11232 = vmatprep.mubr.bf16.mxu1 %v15348_v26  ;;  %v10938_v62 = vsel %vm10927_vm7, %v10914_v15, %v10916_v39  ;;  %v7549_v47 = vpop.f32.mrb[223].mxu0  ;;  %v12941_v63 = vld [vmem:[%s15446_s10 + $0x22] sm:$0xff] }
 0x345   : > { %11160 = vmatpush1.bf16.msra.mxu0 %v10972_v60  ;;  %v10918_v4 = vpop.permute.xlu1 %10917  ;;  %13027 = vrot.lane.b32.xlu0 %v18755_v42, %s15371_s8  ;;  %v10978_v45 = vsel %vm456_vm1, %v10938_v62, 0  ;;  %v7590_v51 = vpop.f32.mrb[223].mxu1  ;;  %v19178_v48 = vld [vmem:[%s20049_s1 + $0x54] sm:$0xf]  ;;  %v13001_v62 = vcombine.high %v12941_v63, %v12941_v63 }
 0x346   : > { %v10939_v20 = vsel %vm10927_vm7, %v10916_v39, %v10918_v4 }
 0x347   : > { %13029 = vrot.lane.b32.xlu1 %v18762_v31, %s15371_s8  ;;  %15080 = vmatprep.subr.msk.bf16.mxu1 %vm456_vm1, %v10939_v20  ;;  %v10920_v9 = vpop.permute.xlu0 %10919 }
 0x348   : > { %15079 = vmatmul.mubr.msk.bf16.vlgmr.msra.gmra.mrb[72].mxu0 %vm452_vm2, %v19030_v32  ;;  %11201 = vmatpush1.bf16.msra.mxu1 %v10978_v45  ;;  %v10940_v56 = vsel %vm10927_vm7, %v10918_v4, %v10920_v9  ;;  %v7831_v22 = vpop.f32.mrb[224].mxu0 }
 0x349   : > { %v10922_v12 = vpop.permute.xlu1 %10921  ;;  %11273 = vmatprep.mubr.bf16.mxu0 %v15348_v26  ;;  %v19112_v42 = vadd.f32 %v7831_v22, %v18972_v29  ;;  %v7872_v3 = vpop.f32.mrb[224].mxu1  ;;  %13031 = vrot.lane.b32.xlu0 %v18771_v58, %s15371_s8  ;;  %v10984_v21 = vsel %vm456_vm1, %v10940_v56, 0 }
 0x34a   : > { %v7833_v31 = vpop.f32.mrb[225].mxu0  ;;  %v10941_v0 = vsel %vm10927_vm7, %v10920_v9, %v10922_v12  ;;  %v19119_v24 = vadd.f32 %v7872_v3, %v18978_v61  ;;  %v7874_v57 = vpop.f32.mrb[225].mxu1  ;;  %v19204_v3 = vrot.slane %v13001_v62, %v15456_v19 }
 0x34b   : > { %v19122_v36 = vadd.f32 %v7833_v31, %v18981_v44  ;;  %13033 = vrot.lane.b32.xlu1 %v18781_v13, %s15371_s8  ;;  %15081 = vmatmul.mubr.msk.bf16.vlgmr.msra.gmra.mrb[72].mxu1 %vm452_vm2, %v19030_v32  ;;  %v7835_v29 = vpop.f32.mrb[226].mxu0  ;;  %v19129_v58 = vadd.f32 %v7874_v57, %v18990_v14  ;;  %v10924_v5 = vpop.permute.xlu0 %10923 }
 0x34c   : > { %15082 = vmatprep.subr.msk.bf16.mxu0 %vm456_vm1, %v10941_v0  ;;  %v7876_v59 = vpop.f32.mrb[226].mxu1  ;;  %11314 = vmatprep.mubr.bf16.mxu1 %v15348_v26  ;;  %v10942_v61 = vsel %vm10927_vm7, %v10922_v12, %v10924_v5  ;;  %v7836_v52 = vpop.f32.mrb[227].mxu0  ;;  %v13471_v0 = vld [vmem:[%s15446_s10 + $0xa] sm:$0xff] }
 0x34d   : > { %11242 = vmatpush1.bf16.msra.mxu0 %v10984_v21  ;;  %v10926_v44 = vpop.permute.xlu1 %10925  ;;  %13035 = vrot.lane.b32.xlu0 %v18804_v38, %s15371_s8  ;;  %v10990_v23 = vsel %vm456_vm1, %v10942_v61, 0  ;;  %v7877_v14 = vpop.f32.mrb[227].mxu1 }
 0x34e   : > { %v10943_v13 = vsel %vm10927_vm7, %v10924_v5, %v10926_v44  ;;  %v19218_v44 = vcombine.high %v19204_v3, %v19204_v3 }
 0x34f   : > { %13037 = vrot.lane.b32.xlu1 %v18811_v16, %s15371_s8  ;;  %15084 = vmatprep.subr.msk.bf16.mxu1 %vm456_vm1, %v10943_v13  ;;  %v11427_v46 = vpop.permute.xlu0 %11426  ;;  %v13483_v13 = vcombine.high %v13471_v0, %v13471_v0 }
 0x350   : > { %15083 = vmatmul.mubr.msk.bf16.vlgmr.msra.gmra.mrb[76].mxu0 %vm452_vm2, %v19030_v32  ;;  %11283 = vmatpush1.bf16.msra.mxu1 %v10990_v23  ;;  %v7913_v33 = vpop.f32.mrb[228].mxu0 }
 0x351   : > { %v11429_v55 = vpop.permute.xlu1 %11428  ;;  %11560 = vmatprep.mubr.bf16.mxu0 %v15348_v26  ;;  %v19145_v38 = vadd.f32 %v7913_v33, %v19005_v53  ;;  %v7954_v15 = vpop.f32.mrb[228].mxu1  ;;  %13039 = vrot.lane.b32.xlu0 %v18820_v17, %s15371_s8 }
 0x352   : > { %v7915_v16 = vpop.f32.mrb[229].mxu0  ;;  %v11461_v43 = vsel %vm11460_vm8, %v11427_v46, %v11429_v55  ;;  %v19151_v49 = vadd.f32 %v7954_v15, %v19012_v8  ;;  %v7956_v37 = vpop.f32.mrb[229].mxu1 }
 0x353   : > { %v19154_v10 = vadd.f32 %v7915_v16, %v19015_v27  ;;  %13041 = vrot.lane.b32.xlu1 %v18830_v35, %s15371_s8  ;;  %15085 = vmatmul.mubr.msk.bf16.vlgmr.msra.gmra.mrb[76].mxu1 %vm452_vm2, %v19030_v32  ;;  %v7917_v53 = vpop.f32.mrb[230].mxu0  ;;  %v19161_v60 = vadd.f32 %v7956_v37, %v19022_v2  ;;  %v11431_v17 = vpop.permute.xlu0 %11430  ;;  %v11481_v35 = vsel %vm456_vm1, %v11461_v43, 0  ;;  %v19173_v2 = vrot.slane %v12941_v63, %v15456_v19 }
 0x354   : > { %v7958_v40 = vpop.f32.mrb[230].mxu1  ;;  %11601 = vmatprep.mubr.bf16.mxu1 %v15348_v26  ;;  %v11462_v27 = vsel %vm11460_vm8, %v11429_v55, %v11431_v17  ;;  %v7918_v39 = vpop.f32.mrb[231].mxu0 }
 0x355   : > { %v11433_v8 = vpop.permute.xlu1 %11432  ;;  %13043 = vrot.lane.b32.xlu0 %v18850_v7, %s15371_s8  ;;  %15088 = vmatprep.subr.msk.bf16.mxu0 %vm456_vm1, %v11462_v27  ;;  %v7959_v32 = vpop.f32.mrb[231].mxu1  ;;  %v19191_v56 = vcombine.high %v19173_v2, %v19173_v2  ;;  %v13472_v27 = vld [vmem:[%s15446_s10 + $0x12] sm:$0xff] }
 0x356   : > { %11529 = vmatpush1.bf16.msra.mxu0 %v11481_v35  ;;  %v11463_v7 = vsel %vm11460_vm8, %v11431_v17, %v11433_v8 }
 0x357   : > { %13045 = vrot.lane.b32.xlu1 %v18858_v11, %s15371_s8  ;;  %v11435_v4 = vpop.permute.xlu0 %11434 }
 0x358   : > { %v7995_v20 = vpop.f32.mrb[232].mxu0  ;;  %v11464_v45 = vsel %vm11460_vm8, %v11433_v8, %v11435_v4  ;;  %v19253_v8 = vrot.slane %v13483_v13, %v15456_v19 }
 0x359   : > { %v11437_v47 = vpop.permute.xlu1 %11436  ;;  %v19183_v11 = vadd.f32 %v7995_v20, %v19044_v41  ;;  %v8036_v51 = vpop.f32.mrb[232].mxu1  ;;  %13047 = vrot.lane.b32.xlu0 %v18872_v1, %s15371_s8  ;;  %15089 = vmatmul.mubr.msk.bf16.vlgmr.msra.gmra.mrb[80].mxu0 %vm452_vm2, %v19178_v48  ;;  %v11487_v1 = vsel %vm456_vm1, %v11463_v7, 0  ;;  %v13500_v20 = vcombine.high %v13472_v27, %v13472_v27 }
 0x35a   : > { %v7997_v9 = vpop.f32.mrb[233].mxu0  ;;  %v19194_v12 = vadd.f32 %v8036_v51, %v19051_v54  ;;  %v8038_v41 = vpop.f32.mrb[233].mxu1  ;;  %15090 = vmatprep.subr.msk.bf16.mxu1 %vm456_vm1, %v11464_v45  ;;  %v11465_v21 = vsel %vm11460_vm8, %v11435_v4, %v11437_v47  ;;  %11642 = vmatprep.mubr.bf16.mxu0 %v15348_v26  ;;  %v19266_v4 = vrot.slane %v13472_v27, %v15456_v19 }
 0x35b   : > { %v19197_v22 = vadd.f32 %v7997_v9, %v19054_v50  ;;  %13049 = vrot.lane.b32.xlu1 %v19173_v2, %s15371_s8  ;;  %v7999_v31 = vpop.f32.mrb[234].mxu0  ;;  %v19209_v54 = vadd.f32 %v8038_v41, %v19061_v28  ;;  %11570 = vmatpush1.bf16.msra.mxu1 %v11487_v1  ;;  %v11439_v50 = vpop.permute.xlu0 %11438  ;;  %v19221_v28 = vrot.slane %v13471_v0, %v15456_v19  ;;  %v11493_v52 = vsel %vm456_vm1, %v11465_v21, 0 }
 0x35c   : > { %v8040_v57 = vpop.f32.mrb[234].mxu1  ;;  %v11466_v29 = vsel %vm11460_vm8, %v11437_v47, %v11439_v50  ;;  %v8000_v59 = vpop.f32.mrb[235].mxu0  ;;  %v19275_v47 = vcombine.high %v19253_v8, %v19253_v8 }
 0x35d   : > { %v11441_v5 = vpop.permute.xlu1 %11440  ;;  %13051 = vrot.lane.b32.xlu0 %v19191_v56, %s15371_s8  ;;  %15092 = vmatprep.subr.msk.bf16.mxu0 %vm456_vm1, %v11466_v29  ;;  %v8041_v61 = vpop.f32.mrb[235].mxu1  ;;  %v19239_v37 = vcombine.high %v19221_v28, %v19221_v28 }
 0x35e   : > { %15091 = vmatmul.mubr.msk.bf16.vlgmr.msra.gmra.mrb[80].mxu1 %vm452_vm2, %v19178_v48  ;;  %v11467_v23 = vsel %vm11460_vm8, %v11439_v50, %v11441_v5  ;;  %11611 = vmatpush1.bf16.msra.mxu0 %v11493_v52  ;;  %v19288_v50 = vcombine.high %v19266_v4, %v19266_v4  ;;  %v19302_v61 = vrot.slane %v13500_v20, %v15456_v19  ;;  %v13473_v52 = vld [vmem:[%s15446_s10 + $0x1a] sm:$0xff] }
 0x35f   : > { %13053 = vrot.lane.b32.xlu1 %v19204_v3, %s15371_s8  ;;  %v11443_v14 = vpop.permute.xlu0 %11442  ;;  %11683 = vmatprep.mubr.bf16.mxu1 %v15348_v26  ;;  %v11499_v53 = vsel %vm456_vm1, %v11467_v23, 0 }
 0x360   : > { %v11468_v46 = vsel %vm11460_vm8, %v11441_v5, %v11443_v14  ;;  %v8077_v33 = vpop.f32.mrb[236].mxu0 }
 0x361   : > { %v11445_v55 = vpop.permute.xlu1 %11444  ;;  %v19232_v15 = vadd.f32 %v8077_v33, %v19078_v30  ;;  %v8118_v16 = vpop.f32.mrb[236].mxu1  ;;  %13055 = vrot.lane.b32.xlu0 %v19218_v44, %s15371_s8  ;;  %15094 = vmatprep.subr.msk.bf16.mxu1 %vm456_vm1, %v11468_v46 }
 0x362   : > { %v8079_v43 = vpop.f32.mrb[237].mxu0  ;;  %v19243_v17 = vadd.f32 %v8118_v16, %v19085_v18  ;;  %v8120_v30 = vpop.f32.mrb[237].mxu1  ;;  %15093 = vmatmul.mubr.msk.bf16.vlgmr.msra.gmra.mrb[84].mxu0 %vm452_vm2, %v19178_v48  ;;  %v11469_v39 = vsel %vm11460_vm8, %v11443_v14, %v11445_v55  ;;  %11652 = vmatpush1.bf16.msra.mxu1 %v11499_v53  ;;  %v19315_v16 = vrot.slane %v13473_v52, %v15456_v19 }
 0x363   : > { %v19246_v40 = vadd.f32 %v8079_v43, %v19088_v25  ;;  %13057 = vrot.lane.b32.xlu1 %v18741_v6, %s15371_s8  ;;  %v8081_v63 = vpop.f32.mrb[238].mxu0  ;;  %v19258_v18 = vadd.f32 %v8120_v30, %v19095_v34  ;;  %v11447_v25 = vpop.permute.xlu0 %11446  ;;  %11724 = vmatprep.mubr.bf16.mxu0 %v15348_v26  ;;  %v11505_v34 = vsel %vm456_vm1, %v11469_v39, 0  ;;  %v19324_v43 = vcombine.high %v19302_v61, %v19302_v61 }
 0x364   : > { %v8122_v35 = vpop.f32.mrb[238].mxu1  ;;  %v11470_v6 = vsel %vm11460_vm8, %v11445_v55, %v11447_v25  ;;  %v8082_v62 = vpop.f32.mrb[239].mxu0  ;;  %v13517_v53 = vcombine.high %v13473_v52, %v13473_v52 }
 0x365   : > { %v11449_v32 = vpop.permute.xlu1 %11448  ;;  %13558 = vrot.lane.b32.xlu0 %v19221_v28, %s15372_s13  ;;  %15096 = vmatprep.subr.msk.bf16.mxu0 %vm456_vm1, %v11470_v6  ;;  %v8123_v7 = vpop.f32.mrb[239].mxu1  ;;  %v19337_v62 = vcombine.high %v19315_v16, %v19315_v16 }
 0x366   : > { %15095 = vmatmul.mubr.msk.bf16.vlgmr.msra.gmra.mrb[84].mxu1 %vm452_vm2, %v19178_v48  ;;  %v11471_v45 = vsel %vm11460_vm8, %v11447_v25, %v11449_v32  ;;  %11693 = vmatpush1.bf16.msra.mxu0 %v11505_v34 }
 0x367   : > { %13560 = vrot.lane.b32.xlu1 %v19239_v37, %s15372_s13  ;;  %v11451_v51 = vpop.permute.xlu0 %11450  ;;  %11765 = vmatprep.mubr.bf16.mxu1 %v15348_v26  ;;  %v11511_v57 = vsel %vm456_vm1, %v11471_v45, 0 }
 0x368   : > { %v11472_v9 = vsel %vm11460_vm8, %v11449_v32, %v11451_v51  ;;  %v8364_v1 = vpop.f32.mrb[240].mxu0 }
 0x369   : > { %v11453_v41 = vpop.permute.xlu1 %11452  ;;  %v19281_v31 = vadd.f32 %v8364_v1, %v19112_v42  ;;  %v8405_v0 = vpop.f32.mrb[240].mxu1  ;;  %13562 = vrot.lane.b32.xlu0 %v19253_v8, %s15372_s13  ;;  %15098 = vmatprep.subr.msk.bf16.mxu1 %vm456_vm1, %v11472_v9 }
 0x36a   : > { %v8366_v21 = vpop.f32.mrb[241].mxu0  ;;  %v19292_v29 = vadd.f32 %v8405_v0, %v19119_v24  ;;  %v8407_v42 = vpop.f32.mrb[241].mxu1  ;;  %15097 = vmatmul.mubr.msk.bf16.vlgmr.msra.gmra.mrb[88].mxu0 %vm452_vm2, %v19178_v48  ;;  %v11473_v13 = vsel %vm11460_vm8, %v11451_v51, %v11453_v41  ;;  %11734 = vmatpush1.bf16.msra.mxu1 %v11511_v57  ;;  %v19351_v51 = vrot.slane %v13517_v53, %v15456_v19 }
 0x36b   : > { %v19295_v5 = vadd.f32 %v8366_v21, %v19122_v36  ;;  %13564 = vrot.lane.b32.xlu1 %v19275_v47, %s15372_s13  ;;  %v8368_v59 = vpop.f32.mrb[242].mxu0  ;;  %v19307_v24 = vadd.f32 %v8407_v42, %v19129_v58  ;;  %v11455_v36 = vpop.permute.xlu0 %11454  ;;  %11806 = vmatprep.mubr.bf16.mxu0 %v15348_v26  ;;  %v11517_v58 = vsel %vm456_vm1, %v11473_v13, 0 }
 0x36c   : > { %v8409_v23 = vpop.f32.mrb[242].mxu1  ;;  %v11474_v14 = vsel %vm11460_vm8, %v11453_v41, %v11455_v36  ;;  %v8369_v55 = vpop.f32.mrb[243].mxu0 }
 0x36d   : > { %v11457_v46 = vpop.permute.xlu1 %11456  ;;  %13566 = vrot.lane.b32.xlu0 %v19266_v4, %s15372_s13  ;;  %15100 = vmatprep.subr.msk.bf16.mxu0 %vm456_vm1, %v11474_v14  ;;  %v8410_v33 = vpop.f32.mrb[243].mxu1 }
 0x36e   : > { %15099 = vmatmul.mubr.msk.bf16.vlgmr.msra.gmra.mrb[88].mxu1 %vm452_vm2, %v19178_v48  ;;  %v11475_v30 = vsel %vm11460_vm8, %v11455_v36, %v11457_v46  ;;  %11775 = vmatpush1.bf16.msra.mxu0 %v11517_v58  ;;  %v19376_v36 = vld [vmem:[%s20049_s1 + $0x58] sm:$0xf] }
 0x36f   : > { %13568 = vrot.lane.b32.xlu1 %v19288_v50, %s15372_s13  ;;  %v11459_v63 = vpop.permute.xlu0 %11458  ;;  %11847 = vmatprep.mubr.bf16.mxu1 %v15348_v26  ;;  %v11523_v7 = vsel %vm456_vm1, %v11475_v30, 0 }
 0x370   : > { %v11476_v27 = vsel %vm11460_vm8, %v11457_v46, %v11459_v63  ;;  %v8446_v25 = vpop.f32.mrb[244].mxu0 }
 0x371   : > { %v11960_v39 = vpop.permute.xlu1 %11959  ;;  %v19330_v35 = vadd.f32 %v8446_v25, %v19145_v38  ;;  %v8487_v6 = vpop.f32.mrb[244].mxu1  ;;  %13570 = vrot.lane.b32.xlu0 %v19302_v61, %s15372_s13  ;;  %15102 = vmatprep.subr.msk.bf16.mxu1 %vm456_vm1, %v11476_v27 }
 0x372   : > { %v8448_v32 = vpop.f32.mrb[245].mxu0  ;;  %v19341_v34 = vadd.f32 %v8487_v6, %v19151_v49  ;;  %v8489_v20 = vpop.f32.mrb[245].mxu1  ;;  %15101 = vmatmul.mubr.msk.bf16.vlgmr.msra.gmra.mrb[92].mxu0 %vm452_vm2, %v19178_v48  ;;  %11816 = vmatpush1.bf16.msra.mxu1 %v11523_v7 }
 0x373   : > { %v19344_v38 = vadd.f32 %v8448_v32, %v19154_v10  ;;  %13572 = vrot.lane.b32.xlu1 %v19324_v43, %s15372_s13  ;;  %v8450_v45 = vpop.f32.mrb[246].mxu0  ;;  %v19354_v9 = vadd.f32 %v8489_v20, %v19161_v60  ;;  %v11962_v49 = vpop.permute.xlu0 %11961  ;;  %12093 = vmatprep.mubr.bf16.mxu0 %v15348_v26  ;;  %v19368_v60 = vcombine.high %v19351_v51, %v19351_v51 }
 0x374   : > { %v8491_v41 = vpop.f32.mrb[246].mxu1  ;;  %v11994_v10 = vsel %vm11993_vm9, %v11960_v39, %v11962_v49  ;;  %v8451_v0 = vpop.f32.mrb[247].mxu0 }
 0x375   : > { %v11964_v1 = vpop.permute.xlu1 %11963  ;;  %v12014_v21 = vsel %vm456_vm1, %v11994_v10, 0  ;;  %13574 = vrot.lane.b32.xlu0 %v19315_v16, %s15372_s13  ;;  %v8492_v19 = vpop.f32.mrb[247].mxu1 }
 0x376   : > { %v11995_v57 = vsel %vm11993_vm9, %v11962_v49, %v11964_v1  ;;  %15103 = vmatmul.mubr.msk.bf16.vlgmr.msra.gmra.mrb[92].mxu1 %vm452_vm2, %v19178_v48 }
 0x377   : > { %13576 = vrot.lane.b32.xlu1 %v19337_v62, %s15372_s13  ;;  %15106 = vmatprep.subr.msk.bf16.mxu0 %vm456_vm1, %v11995_v57  ;;  %v11966_v42 = vpop.permute.xlu0 %11965 }
 0x378   : > { %12134 = vmatprep.mubr.bf16.mxu1 %v15348_v26  ;;  %12062 = vmatpush1.bf16.msra.mxu0 %v12014_v21  ;;  %v11996_v59 = vsel %vm11993_vm9, %v11964_v1, %v11966_v42  ;;  %v8528_v13 = vpop.f32.mrb[248].mxu0 }
 0x379   : > { %v11968_v52 = vpop.permute.xlu1 %11967  ;;  %v12020_v48 = vsel %vm456_vm1, %v11996_v59, 0  ;;  %v19381_v14 = vadd.f32 %v8528_v13, %v19183_v11  ;;  %v8569_v46 = vpop.f32.mrb[248].mxu1  ;;  %13578 = vrot.lane.b32.xlu0 %v19351_v51, %s15372_s13 }
 0x37a   : > { %v11997_v23 = vsel %vm11993_vm9, %v11966_v42, %v11968_v52  ;;  %v8530_v55 = vpop.f32.mrb[249].mxu0  ;;  %v19386_v33 = vadd.f32 %v8569_v46, %v19194_v12  ;;  %v8571_v53 = vpop.f32.mrb[249].mxu1  ;;  %v19429_v42 = vld.sshfl [vmem:[%s15446_s10 + $0x2a] sm:$0x3 pattern:$0x76325410] }
 0x37b   : > { %v19389_v58 = vadd.f32 %v8530_v55, %v19197_v22  ;;  %13580 = vrot.lane.b32.xlu1 %v19368_v60, %s15372_s13  ;;  %15108 = vmatprep.subr.msk.bf16.mxu1 %vm456_vm1, %v11997_v23  ;;  %v8532_v30 = vpop.f32.mrb[250].mxu0  ;;  %v19395_v11 = vadd.f32 %v8571_v53, %v19209_v54  ;;  %v11970_v63 = vpop.permute.xlu0 %11969  ;;  %s15373_s10 = smov 82  }
 0x37c   : > { %15107 = vmatmul.mubr.msk.bf16.vlgmr.msra.gmra.mrb[96].mxu0 %vm452_vm2, %v19376_v36  ;;  %12103 = vmatpush1.bf16.msra.mxu1 %v12020_v48  ;;  %v8573_v12 = vpop.f32.mrb[250].mxu1  ;;  %v11998_v27 = vsel %vm11993_vm9, %v11968_v52, %v11970_v63  ;;  %v8533_v39 = vpop.f32.mrb[251].mxu0 }
 0x37d   : > { %v11972_v22 = vpop.permute.xlu1 %11971  ;;  %12175 = vmatprep.mubr.bf16.mxu0 %v15348_v26  ;;  %v12026_v25 = vsel %vm456_vm1, %v11998_v27, 0  ;;  %13582 = vrot.lane.b32.xlu0 %v19173_v2, %s15372_s13  ;;  %v8574_v54 = vpop.f32.mrb[251].mxu1 }
 0x37e   : > { %v11999_v6 = vsel %vm11993_vm9, %v11970_v63, %v11972_v22 }
 0x37f   : > { %13584 = vrot.lane.b32.xlu1 %v19191_v56, %s15372_s13  ;;  %15109 = vmatmul.mubr.msk.bf16.vlgmr.msra.gmra.mrb[96].mxu1 %vm452_vm2, %v19376_v36  ;;  %v11974_v32 = vpop.permute.xlu0 %11973 }
 0x380   : > { %15110 = vmatprep.subr.msk.bf16.mxu0 %vm456_vm1, %v11999_v6  ;;  %12216 = vmatprep.mubr.bf16.mxu1 %v15348_v26  ;;  %v12000_v7 = vsel %vm11993_vm9, %v11972_v22, %v11974_v32  ;;  %v8610_v45 = vpop.f32.mrb[252].mxu0 }
 0x381   : > { %12144 = vmatpush1.bf16.msra.mxu0 %v12026_v25  ;;  %v11976_v20 = vpop.permute.xlu1 %11975  ;;  %v12032_v49 = vsel %vm456_vm1, %v12000_v7, 0  ;;  %v19415_v10 = vadd.f32 %v8610_v45, %v19232_v15  ;;  %v8651_v1 = vpop.f32.mrb[252].mxu1  ;;  %13586 = vrot.lane.b32.xlu0 %v19204_v3, %s15372_s13 }
 0x382   : > { %v12001_v41 = vsel %vm11993_vm9, %v11974_v32, %v11976_v20  ;;  %v8612_v0 = vpop.f32.mrb[253].mxu0  ;;  %v19420_v21 = vadd.f32 %v8651_v1, %v19243_v17  ;;  %v8653_v19 = vpop.f32.mrb[253].mxu1 }
 0x383   : > { %v19423_v57 = vadd.f32 %v8612_v0, %v19246_v40  ;;  %13588 = vrot.lane.b32.xlu1 %v19218_v44, %s15372_s13  ;;  %15112 = vmatprep.subr.msk.bf16.mxu1 %vm456_vm1, %v12001_v41  ;;  %v8614_v15 = vpop.f32.mrb[254].mxu0  ;;  %v19432_v59 = vadd.f32 %v8653_v19, %v19258_v18  ;;  %v11978_v17 = vpop.permute.xlu0 %11977 }
 0x384   : > { %15111 = vmatmul.mubr.msk.bf16.vlgmr.msra.gmra.mrb[100].mxu0 %vm452_vm2, %v19376_v36  ;;  %12185 = vmatpush1.bf16.msra.mxu1 %v12032_v49  ;;  %v8655_v52 = vpop.f32.mrb[254].mxu1  ;;  %v12002_v40 = vsel %vm11993_vm9, %v11976_v20, %v11978_v17  ;;  %v8615_v48 = vpop.f32.mrb[255].mxu0 }
 0x385   : > { %v11980_v13 = vpop.permute.xlu1 %11979  ;;  %12257 = vmatprep.mubr.bf16.mxu0 %v15348_v26  ;;  %v12038_v23 = vsel %vm456_vm1, %v12002_v40, 0  ;;  %13590 = vrot.lane.b32.xlu0 %v19429_v42, %s15372_s13  ;;  %v8656_v18 = vpop.f32.mrb[255].mxu1 }
 0x386   : > { %v12003_v46 = vsel %vm11993_vm9, %v11978_v17, %v11980_v13 }
 0x387   : > { %14091 = vrot.lane.b32.xlu1 %v19221_v28, %s15373_s10  ;;  %15113 = vmatmul.mubr.msk.bf16.vlgmr.msra.gmra.mrb[100].mxu1 %vm452_vm2, %v19376_v36  ;;  %v11982_v55 = vpop.permute.xlu0 %11981 }
 0x388   : > { %15114 = vmatprep.subr.msk.bf16.mxu0 %vm456_vm1, %v12003_v46  ;;  %12298 = vmatprep.mubr.bf16.mxu1 %v15348_v26  ;;  %v12004_v53 = vsel %vm11993_vm9, %v11980_v13, %v11982_v55  ;;  %v8897_v63 = vpop.f32.mrb[0].mxu0 }
 0x389   : > { %12226 = vmatpush1.bf16.msra.mxu0 %v12038_v23  ;;  %v11984_v30 = vpop.permute.xlu1 %11983  ;;  %v12044_v12 = vsel %vm456_vm1, %v12004_v53, 0  ;;  %v19452_v22 = vadd.f32 %v8897_v63, %v19281_v31  ;;  %v8938_v28 = vpop.f32.mrb[0].mxu1  ;;  %14093 = vrot.lane.b32.xlu0 %v19239_v37, %s15373_s10 }
 0x38a   : > { %v12005_v27 = vsel %vm11993_vm9, %v11982_v55, %v11984_v30  ;;  %v8899_v39 = vpop.f32.mrb[1].mxu0  ;;  %v19457_v25 = vadd.f32 %v8938_v28, %v19292_v29  ;;  %v8940_v54 = vpop.f32.mrb[1].mxu1 }
 0x38b   : > { %v19460_v6 = vadd.f32 %v8899_v39, %v19295_v5  ;;  %14095 = vrot.lane.b32.xlu1 %v19253_v8, %s15373_s10  ;;  %15116 = vmatprep.subr.msk.bf16.mxu1 %vm456_vm1, %v12005_v27  ;;  %v8901_v32 = vpop.f32.mrb[2].mxu0  ;;  %v19466_v31 = vadd.f32 %v8940_v54, %v19307_v24  ;;  %v11986_v37 = vpop.permute.xlu0 %11985 }
 0x38c   : > { %15115 = vmatmul.mubr.msk.bf16.vlgmr.msra.gmra.mrb[104].mxu0 %vm452_vm2, %v19376_v36  ;;  %12267 = vmatpush1.bf16.msra.mxu1 %v12044_v12  ;;  %v8942_v29 = vpop.f32.mrb[2].mxu1  ;;  %v12006_v7 = vsel %vm11993_vm9, %v11984_v30, %v11986_v37  ;;  %v8902_v20 = vpop.f32.mrb[3].mxu0 }
 0x38d   : > { %v11988_v5 = vpop.permute.xlu1 %11987  ;;  %12339 = vmatprep.mubr.bf16.mxu0 %v15348_v26  ;;  %v12050_v8 = vsel %vm456_vm1, %v12006_v7, 0  ;;  %14097 = vrot.lane.b32.xlu0 %v19275_v47, %s15373_s10  ;;  %v8943_v24 = vpop.f32.mrb[3].mxu1 }
 0x38e   : > { %v12007_v45 = vsel %vm11993_vm9, %v11986_v37, %v11988_v5 }
 0x38f   : > { %14099 = vrot.lane.b32.xlu1 %v19266_v4, %s15373_s10  ;;  %15117 = vmatmul.mubr.msk.bf16.vlgmr.msra.gmra.mrb[104].mxu1 %vm452_vm2, %v19376_v36  ;;  %v11990_v49 = vpop.permute.xlu0 %11989 }
 0x390   : > { %15118 = vmatprep.subr.msk.bf16.mxu0 %vm456_vm1, %v12007_v45  ;;  %12380 = vmatprep.mubr.bf16.mxu1 %v15348_v26  ;;  %v12008_v41 = vsel %vm11993_vm9, %v11988_v5, %v11990_v49  ;;  %v8979_v0 = vpop.f32.mrb[4].mxu0 }
 0x391   : > { %12308 = vmatpush1.bf16.msra.mxu0 %v12050_v8  ;;  %v11992_v1 = vpop.permute.xlu1 %11991  ;;  %v12056_v19 = vsel %vm456_vm1, %v12008_v41, 0  ;;  %v19486_v15 = vadd.f32 %v8979_v0, %v19330_v35  ;;  %v9020_v4 = vpop.f32.mrb[4].mxu1  ;;  %14101 = vrot.lane.b32.xlu0 %v19288_v50, %s15373_s10 }
 0x392   : > { %v12009_v47 = vsel %vm11993_vm9, %v11990_v49, %v11992_v1  ;;  %v8981_v17 = vpop.f32.mrb[5].mxu0  ;;  %v19491_v52 = vadd.f32 %v9020_v4, %v19341_v34  ;;  %v9022_v13 = vpop.f32.mrb[5].mxu1 }
 0x393   : > { %v19494_v40 = vadd.f32 %v8981_v17, %v19344_v38  ;;  %14103 = vrot.lane.b32.xlu1 %v19302_v61, %s15373_s10  ;;  %15120 = vmatprep.subr.msk.bf16.mxu1 %vm456_vm1, %v12009_v47  ;;  %v8983_v48 = vpop.f32.mrb[6].mxu0  ;;  %v19500_v35 = vadd.f32 %v9022_v13, %v19354_v9  ;;  %v12493_v50 = vpop.permute.xlu0 %12492 }
 0x394   : > { %15119 = vmatmul.mubr.msk.bf16.vlgmr.msra.gmra.mrb[108].mxu0 %vm452_vm2, %v19376_v36  ;;  %12349 = vmatpush1.bf16.msra.mxu1 %v12056_v19  ;;  %v9024_v34 = vpop.f32.mrb[6].mxu1  ;;  %v8984_v38 = vpop.f32.mrb[7].mxu0 }
 0x395   : > { %v12495_v23 = vpop.permute.xlu1 %12494  ;;  %12626 = vmatprep.mubr.bf16.mxu0 %v15348_v26  ;;  %14105 = vrot.lane.b32.xlu0 %v19324_v43, %s15373_s10  ;;  %v9025_v61 = vpop.f32.mrb[7].mxu1 }
 0x396   : > { %v12527_v46 = vsel %vm12526_vm10, %v12493_v50, %v12495_v23 }
 0x397   : > { %14107 = vrot.lane.b32.xlu1 %v19315_v16, %s15373_s10  ;;  %15121 = vmatmul.mubr.msk.bf16.vlgmr.msra.gmra.mrb[108].mxu1 %vm452_vm2, %v19376_v36  ;;  %v12497_v9 = vpop.permute.xlu0 %12496  ;;  %v12547_v30 = vsel %vm456_vm1, %v12527_v46, 0 }
 0x398   : > { %12667 = vmatprep.mubr.bf16.mxu1 %v15348_v26  ;;  %v12528_v18 = vsel %vm12526_vm10, %v12495_v23, %v12497_v9  ;;  %v9061_v53 = vpop.f32.mrb[8].mxu0 }
 0x399   : > { %v12499_v55 = vpop.permute.xlu1 %12498  ;;  %v19516_v43 = vadd.f32 %v9061_v53, %v19381_v14  ;;  %v9102_v63 = vpop.f32.mrb[8].mxu1  ;;  %14109 = vrot.lane.b32.xlu0 %v19337_v62, %s15373_s10  ;;  %15124 = vmatprep.subr.msk.bf16.mxu0 %vm456_vm1, %v12528_v18  ;;  %v19532_v14 = vld [vmem:[%s20049_s1 + $0x5c] sm:$0xf] }
 0x39a   : > { %v9063_v16 = vpop.f32.mrb[9].mxu0  ;;  %v19522_v36 = vadd.f32 %v9102_v63, %v19386_v33  ;;  %v9104_v27 = vpop.f32.mrb[9].mxu1  ;;  %12595 = vmatpush1.bf16.msra.mxu0 %v12547_v30  ;;  %v12529_v28 = vsel %vm12526_vm10, %v12497_v9, %v12499_v55 }
 0x39b   : > { %v19525_v12 = vadd.f32 %v9063_v16, %v19389_v58  ;;  %14111 = vrot.lane.b32.xlu1 %v19351_v51, %s15373_s10  ;;  %v9065_v62 = vpop.f32.mrb[10].mxu0  ;;  %v19536_v39 = vadd.f32 %v9104_v27, %v19395_v11  ;;  %v12501_v33 = vpop.permute.xlu0 %12500  ;;  %v12553_v29 = vsel %vm456_vm1, %v12529_v28, 0 }
 0x39c   : > { %v9106_v54 = vpop.f32.mrb[10].mxu1  ;;  %v12530_v58 = vsel %vm12526_vm10, %v12499_v55, %v12501_v33  ;;  %v9066_v37 = vpop.f32.mrb[11].mxu0 }
 0x39d   : > { %v12503_v32 = vpop.permute.xlu1 %12502  ;;  %14113 = vrot.lane.b32.xlu0 %v19368_v60, %s15373_s10  ;;  %15125 = vmatmul.mubr.msk.bf16.vlgmr.msra.gmra.mrb[112].mxu0 %vm452_vm2, %v19532_v14  ;;  %v9107_v51 = vpop.f32.mrb[11].mxu1 }
 0x39e   : > { %15126 = vmatprep.subr.msk.bf16.mxu1 %vm456_vm1, %v12530_v58  ;;  %v12531_v11 = vsel %vm12526_vm10, %v12501_v33, %v12503_v32  ;;  %12708 = vmatprep.mubr.bf16.mxu0 %v15348_v26 }
 0x39f   : > { %14115 = vrot.lane.b32.xlu1 %v19173_v2, %s15373_s10  ;;  %12636 = vmatpush1.bf16.msra.mxu1 %v12553_v29  ;;  %v12505_v7 = vpop.permute.xlu0 %12504  ;;  %v12559_v24 = vsel %vm456_vm1, %v12531_v11, 0 }
 0x3a0   : > { %v12532_v5 = vsel %vm12526_vm10, %v12503_v32, %v12505_v7  ;;  %v9143_v20 = vpop.f32.mrb[12].mxu0 }
 0x3a1   : > { %v12507_v60 = vpop.permute.xlu1 %12506  ;;  %v19551_v8 = vadd.f32 %v9143_v20, %v19415_v10  ;;  %v9184_v45 = vpop.f32.mrb[12].mxu1  ;;  %14117 = vrot.lane.b32.xlu0 %v19191_v56, %s15373_s10  ;;  %15128 = vmatprep.subr.msk.bf16.mxu0 %vm456_vm1, %v12532_v5 }
 0x3a2   : > { %v9145_v2 = vpop.f32.mrb[13].mxu0  ;;  %v19558_v49 = vadd.f32 %v9184_v45, %v19420_v21  ;;  %v9186_v1 = vpop.f32.mrb[13].mxu1  ;;  %15127 = vmatmul.mubr.msk.bf16.vlgmr.msra.gmra.mrb[112].mxu1 %vm452_vm2, %v19532_v14  ;;  %v12533_v56 = vsel %vm12526_vm10, %v12505_v7, %v12507_v60  ;;  %12677 = vmatpush1.bf16.msra.mxu0 %v12559_v24 }
 0x3a3   : > { %v19561_v41 = vadd.f32 %v9145_v2, %v19423_v57  ;;  %14119 = vrot.lane.b32.xlu1 %v19204_v3, %s15373_s10  ;;  %v9147_v10 = vpop.f32.mrb[14].mxu0  ;;  %v19569_v0 = vadd.f32 %v9186_v1, %v19432_v59  ;;  %v12509_v19 = vpop.permute.xlu0 %12508  ;;  %12749 = vmatprep.mubr.bf16.mxu1 %v15348_v26  ;;  %v12565_v17 = vsel %vm456_vm1, %v12533_v56, 0 }
 0x3a4   : > { %v9188_v21 = vpop.f32.mrb[14].mxu1  ;;  %v12534_v57 = vsel %vm12526_vm10, %v12507_v60, %v12509_v19  ;;  %v9148_v4 = vpop.f32.mrb[15].mxu0 }
 0x3a5   : > { %v12511_v47 = vpop.permute.xlu1 %12510  ;;  %14121 = vrot.lane.b32.xlu0 %v19218_v44, %s15373_s10  ;;  %15130 = vmatprep.subr.msk.bf16.mxu1 %vm456_vm1, %v12534_v57  ;;  %v9189_v3 = vpop.f32.mrb[15].mxu1 }
 0x3a6   : > { %v12535_v59 = vsel %vm12526_vm10, %v12509_v19, %v12511_v47  ;;  %15129 = vmatmul.mubr.msk.bf16.vlgmr.msra.gmra.mrb[116].mxu0 %vm452_vm2, %v19532_v14  ;;  %12718 = vmatpush1.bf16.msra.mxu1 %v12565_v17 }
 0x3a7   : > { %14123 = vrot.lane.b32.xlu1 %v19429_v42, %s15373_s10  ;;  %v12513_v13 = vpop.permute.xlu0 %12512  ;;  %12790 = vmatprep.mubr.bf16.mxu0 %v15348_v26  ;;  %v12571_v34 = vsel %vm456_vm1, %v12535_v59, 0 }
 0x3a8   : > { %v12536_v48 = vsel %vm12526_vm10, %v12511_v47, %v12513_v13  ;;  %v9430_v50 = vpop.f32.mrb[16].mxu0 }
 0x3a9   : > { %v12515_v44 = vpop.permute.xlu1 %12514  ;;  %v19586_v23 = vadd.f32 %v9430_v50, %v19452_v22  ;;  %v9471_v38 = vpop.f32.mrb[16].mxu1  ;;  %15132 = vmatprep.subr.msk.bf16.mxu0 %vm456_vm1, %v12536_v48 }
 0x3aa   : > { %v9432_v61 = vpop.f32.mrb[17].mxu0  ;;  %v12537_v42 = vsel %vm12526_vm10, %v12513_v13, %v12515_v44  ;;  %v19591_v46 = vadd.f32 %v9471_v38, %v19457_v25  ;;  %v9473_v18 = vpop.f32.mrb[17].mxu1  ;;  %15131 = vmatmul.mubr.msk.bf16.vlgmr.msra.gmra.mrb[116].mxu1 %vm452_vm2, %v19532_v14  ;;  %12759 = vmatpush1.bf16.msra.mxu0 %v12571_v34 }
 0x3ab   : > { %v19594_v9 = vadd.f32 %v9432_v61, %v19460_v6  ;;  %v9434_v55 = vpop.f32.mrb[18].mxu0  ;;  %v19599_v22 = vadd.f32 %v9473_v18, %v19466_v31  ;;  %v12517_v53 = vpop.permute.xlu0 %12516  ;;  %12831 = vmatprep.mubr.bf16.mxu1 %v15348_v26  ;;  %v12577_v6 = vsel %vm456_vm1, %v12537_v42, 0 }
 0x3ac   : > { %v9475_v30 = vpop.f32.mrb[18].mxu1  ;;  %v12538_v63 = vsel %vm12526_vm10, %v12515_v44, %v12517_v53  ;;  %v9435_v16 = vpop.f32.mrb[19].mxu0 }
 0x3ad   : > { %v12519_v25 = vpop.permute.xlu1 %12518  ;;  %15134 = vmatprep.subr.msk.bf16.mxu1 %vm456_vm1, %v12538_v63  ;;  %v9476_v27 = vpop.f32.mrb[19].mxu1 }
 0x3ae   : > { %v12539_v62 = vsel %vm12526_vm10, %v12517_v53, %v12519_v25  ;;  %15133 = vmatmul.mubr.msk.bf16.vlgmr.msra.gmra.mrb[120].mxu0 %vm452_vm2, %v19532_v14  ;;  %12800 = vmatpush1.bf16.msra.mxu1 %v12577_v6 }
 0x3af   : > { %v12521_v31 = vpop.permute.xlu0 %12520  ;;  %12872 = vmatprep.mubr.bf16.mxu0 %v15348_v26  ;;  %v12583_v58 = vsel %vm456_vm1, %v12539_v62, 0 }
 0x3b0   : > { %v12540_v28 = vsel %vm12526_vm10, %v12519_v25, %v12521_v31  ;;  %v9512_v54 = vpop.f32.mrb[20].mxu0 }
 0x3b1   : > { %v12523_v33 = vpop.permute.xlu1 %12522  ;;  %v19612_v32 = vadd.f32 %v9512_v54, %v19486_v15  ;;  %v9553_v37 = vpop.f32.mrb[20].mxu1  ;;  %15136 = vmatprep.subr.msk.bf16.mxu0 %vm456_vm1, %v12540_v28 }
 0x3b2   : > { %v9514_v51 = vpop.f32.mrb[21].mxu0  ;;  %v12541_v29 = vsel %vm12526_vm10, %v12521_v31, %v12523_v33  ;;  %v19617_v11 = vadd.f32 %v9553_v37, %v19491_v52  ;;  %v9555_v5 = vpop.f32.mrb[21].mxu1  ;;  %15135 = vmatmul.mubr.msk.bf16.vlgmr.msra.gmra.mrb[120].mxu1 %vm452_vm2, %v19532_v14  ;;  %12841 = vmatpush1.bf16.msra.mxu0 %v12583_v58 }
 0x3b3   : > { %v19620_v7 = vadd.f32 %v9514_v51, %v19494_v40  ;;  %v9516_v60 = vpop.f32.mrb[22].mxu0  ;;  %v19625_v15 = vadd.f32 %v9555_v5, %v19500_v35  ;;  %v12525_v20 = vpop.permute.xlu0 %12524  ;;  %12913 = vmatprep.mubr.bf16.mxu1 %v15348_v26  ;;  %v12589_v40 = vsel %vm456_vm1, %v12541_v29, 0 }
 0x3b4   : > { %v9557_v45 = vpop.f32.mrb[22].mxu1  ;;  %v12542_v2 = vsel %vm12526_vm10, %v12523_v33, %v12525_v20  ;;  %v9517_v24 = vpop.f32.mrb[23].mxu0 }
 0x3b5   : > { %v13026_v52 = vpop.permute.xlu1 %13025  ;;  %15138 = vmatprep.subr.msk.bf16.mxu1 %vm456_vm1, %v12542_v2  ;;  %v9558_v1 = vpop.f32.mrb[23].mxu1 }
 0x3b6   : > { %15137 = vmatmul.mubr.msk.bf16.vlgmr.msra.gmra.mrb[124].mxu0 %vm452_vm2, %v19532_v14  ;;  %12882 = vmatpush1.bf16.msra.mxu1 %v12589_v40 }
 0x3b7   : > { %v13028_v35 = vpop.permute.xlu0 %13027  ;;  %13159 = vmatprep.mubr.bf16.mxu0 %v15348_v26 }
 0x3b8   : > { %v13060_v10 = vsel %vm13059_vm11, %v13026_v52, %v13028_v35  ;;  %v9594_v19 = vpop.f32.mrb[24].mxu0 }
 0x3b9   : > { %v13030_v56 = vpop.permute.xlu1 %13029  ;;  %v13080_v21 = vsel %vm456_vm1, %v13060_v10, 0  ;;  %v19638_v47 = vadd.f32 %v9594_v19, %v19516_v43  ;;  %v9635_v4 = vpop.f32.mrb[24].mxu1 }
 0x3ba   : > { %v13061_v57 = vsel %vm13059_vm11, %v13028_v35, %v13030_v56  ;;  %v9596_v3 = vpop.f32.mrb[25].mxu0  ;;  %v19641_v17 = vadd.f32 %v9635_v4, %v19522_v36  ;;  %v9637_v13 = vpop.f32.mrb[25].mxu1  ;;  %15139 = vmatmul.mubr.msk.bf16.vlgmr.msra.gmra.mrb[124].mxu1 %vm452_vm2, %v19532_v14  ;;  %v19655_v36 = vld [vmem:[%s20049_s1 + $0x60] sm:$0xf] }
 0x3bb   : > { %v19644_v59 = vadd.f32 %v9596_v3, %v19525_v12  ;;  %15142 = vmatprep.subr.msk.bf16.mxu0 %vm456_vm1, %v13061_v57  ;;  %v9598_v48 = vpop.f32.mrb[26].mxu0  ;;  %v19650_v44 = vadd.f32 %v9637_v13, %v19536_v39  ;;  %v13032_v43 = vpop.permute.xlu0 %13031  ;;  %13200 = vmatprep.mubr.bf16.mxu1 %v15348_v26 }
 0x3bc   : > { %13128 = vmatpush1.bf16.msra.mxu0 %v13080_v21  ;;  %v9639_v50 = vpop.f32.mrb[26].mxu1  ;;  %v13062_v12 = vsel %vm13059_vm11, %v13030_v56, %v13032_v43  ;;  %v9599_v14 = vpop.f32.mrb[27].mxu0 }
 0x3bd   : > { %v13034_v34 = vpop.permute.xlu1 %13033  ;;  %v13086_v38 = vsel %vm456_vm1, %v13062_v12, 0  ;;  %v9640_v39 = vpop.f32.mrb[27].mxu1 }
 0x3be   : > { %v13063_v61 = vsel %vm13059_vm11, %v13032_v43, %v13034_v34 }
 0x3bf   : > { %15143 = vmatmul.mubr.msk.bf16.vlgmr.msra.gmra.mrb[128].mxu0 %vm452_vm2, %v19655_v36  ;;  %15144 = vmatprep.subr.msk.bf16.mxu1 %vm456_vm1, %v13063_v61  ;;  %v13036_v42 = vpop.permute.xlu0 %13035 }
 0x3c0   : > { %13169 = vmatpush1.bf16.msra.mxu1 %v13086_v38  ;;  %13241 = vmatprep.mubr.bf16.mxu0 %v15348_v26  ;;  %v13064_v18 = vsel %vm13059_vm11, %v13034_v34, %v13036_v42  ;;  %v9676_v53 = vpop.f32.mrb[28].mxu0 }
 0x3c1   : > { %v13038_v55 = vpop.permute.xlu1 %13037  ;;  %v13092_v30 = vsel %vm456_vm1, %v13064_v18, 0  ;;  %v19669_v25 = vadd.f32 %v9676_v53, %v19551_v8  ;;  %v9717_v16 = vpop.f32.mrb[28].mxu1 }
 0x3c2   : > { %v13065_v63 = vsel %vm13059_vm11, %v13036_v42, %v13038_v55  ;;  %v9678_v6 = vpop.f32.mrb[29].mxu0  ;;  %v19672_v27 = vadd.f32 %v9717_v16, %v19558_v49  ;;  %v9719_v31 = vpop.f32.mrb[29].mxu1 }
 0x3c3   : > { %v19675_v62 = vadd.f32 %v9678_v6, %v19561_v41  ;;  %15145 = vmatmul.mubr.msk.bf16.vlgmr.msra.gmra.mrb[128].mxu1 %vm452_vm2, %v19655_v36  ;;  %15146 = vmatprep.subr.msk.bf16.mxu0 %vm456_vm1, %v13065_v63  ;;  %v9680_v28 = vpop.f32.mrb[30].mxu0  ;;  %v19681_v33 = vadd.f32 %v9719_v31, %v19569_v0  ;;  %v13040_v8 = vpop.permute.xlu0 %13039 }
 0x3c4   : > { %13210 = vmatpush1.bf16.msra.mxu0 %v13092_v30  ;;  %v9721_v54 = vpop.f32.mrb[30].mxu1  ;;  %13282 = vmatprep.mubr.bf16.mxu1 %v15348_v26  ;;  %v13066_v49 = vsel %vm13059_vm11, %v13038_v55, %v13040_v8  ;;  %v9681_v41 = vpop.f32.mrb[31].mxu0 }
 0x3c5   : > { %v13042_v58 = vpop.permute.xlu1 %13041  ;;  %v13098_v37 = vsel %vm456_vm1, %v13066_v49, 0  ;;  %v9722_v29 = vpop.f32.mrb[31].mxu1  ;;  %v14537_v54 = vld [vmem:[%s20050_s2] sm:$0xff] }
 0x3c6   : > { %v13067_v51 = vsel %vm13059_vm11, %v13040_v8, %v13042_v58  ;;  %14540 = vperm.xlu0 %15271, %v14537_v54  }
 0x3c7   : > { %15147 = vmatmul.mubr.msk.bf16.vlgmr.msra.gmra.mrb[132].mxu0 %vm452_vm2, %v19655_v36  ;;  %15148 = vmatprep.subr.msk.bf16.mxu1 %vm456_vm1, %v13067_v51  ;;  %v13044_v0 = vpop.permute.xlu0 %13043 }
 0x3c8   : > { %13251 = vmatpush1.bf16.msra.mxu1 %v13098_v37  ;;  %13323 = vmatprep.mubr.bf16.mxu0 %v15348_v26  ;;  %v13068_v5 = vsel %vm13059_vm11, %v13042_v58, %v13044_v0  ;;  %v9963_v20 = vpop.f32.mrb[32].mxu0 }
 0x3c9   : > { %v13046_v60 = vpop.permute.xlu1 %13045  ;;  %v13104_v45 = vsel %vm456_vm1, %v13068_v5, 0  ;;  %v19695_v52 = vadd.f32 %v9963_v20, %v19586_v23  ;;  %v9965_v40 = vpop.f32.mrb[33].mxu0 }
 0x3ca   : > { %v13069_v2 = vsel %vm13059_vm11, %v13044_v0, %v13046_v60  ;;  %v10004_v24 = vpop.f32.mrb[32].mxu1  ;;  %v19701_v35 = vadd.f32 %v9965_v40, %v19594_v9  ;;  %v9967_v56 = vpop.f32.mrb[34].mxu0 }
 0x3cb   : > { %v19698_v1 = vadd.f32 %v10004_v24, %v19591_v46  ;;  %v10006_v10 = vpop.f32.mrb[33].mxu1  ;;  %15149 = vmatmul.mubr.msk.bf16.vlgmr.msra.gmra.mrb[132].mxu1 %vm452_vm2, %v19655_v36  ;;  %15150 = vmatprep.subr.msk.bf16.mxu0 %vm456_vm1, %v13069_v2  ;;  %v13048_v23 = vpop.permute.xlu0 %13047 }
 0x3cc   : > { %v19707_v19 = vadd.f32 %v10006_v10, %v19599_v22  ;;  %13292 = vmatpush1.bf16.msra.mxu0 %v13104_v45  ;;  %v10008_v21 = vpop.f32.mrb[34].mxu1  ;;  %13364 = vmatprep.mubr.bf16.mxu1 %v15348_v26  ;;  %v13070_v46 = vsel %vm13059_vm11, %v13046_v60, %v13048_v23  ;;  %v9968_v9 = vpop.f32.mrb[35].mxu0 }
 0x3cd   : > { %v13050_v57 = vpop.permute.xlu1 %13049  ;;  %v13110_v4 = vsel %vm456_vm1, %v13070_v46, 0  ;;  %v10009_v13 = vpop.f32.mrb[35].mxu1 }
 0x3ce   : > { %v13071_v3 = vsel %vm13059_vm11, %v13048_v23, %v13050_v57 }
 0x3cf   : > { %15151 = vmatmul.mubr.msk.bf16.vlgmr.msra.gmra.mrb[136].mxu0 %vm452_vm2, %v19655_v36  ;;  %15152 = vmatprep.subr.msk.bf16.mxu1 %vm456_vm1, %v13071_v3  ;;  %v13052_v22 = vpop.permute.xlu0 %13051 }
 0x3d0   : > { %13333 = vmatpush1.bf16.msra.mxu1 %v13110_v4  ;;  %13405 = vmatprep.mubr.bf16.mxu0 %v15348_v26  ;;  %v13072_v48 = vsel %vm13059_vm11, %v13050_v57, %v13052_v22  ;;  %v10045_v50 = vpop.f32.mrb[36].mxu0 }
 0x3d1   : > { %v13054_v43 = vpop.permute.xlu1 %13053  ;;  %v13116_v12 = vsel %vm456_vm1, %v13072_v48, 0  ;;  %v19721_v14 = vadd.f32 %v10045_v50, %v19612_v32  ;;  %v10047_v61 = vpop.f32.mrb[37].mxu0 }
 0x3d2   : > { %v13073_v34 = vsel %vm13059_vm11, %v13052_v22, %v13054_v43  ;;  %v10086_v38 = vpop.f32.mrb[36].mxu1  ;;  %v19727_v42 = vadd.f32 %v10047_v61, %v19620_v7  ;;  %v10049_v55 = vpop.f32.mrb[38].mxu0 }
 0x3d3   : > { %v19724_v39 = vadd.f32 %v10086_v38, %v19617_v11  ;;  %v10088_v18 = vpop.f32.mrb[37].mxu1  ;;  %15153 = vmatmul.mubr.msk.bf16.vlgmr.msra.gmra.mrb[136].mxu1 %vm452_vm2, %v19655_v36  ;;  %15154 = vmatprep.subr.msk.bf16.mxu0 %vm456_vm1, %v13073_v34  ;;  %v13056_v32 = vpop.permute.xlu0 %13055 }
 0x3d4   : > { %v19733_v53 = vadd.f32 %v10088_v18, %v19625_v15  ;;  %13374 = vmatpush1.bf16.msra.mxu0 %v13116_v12  ;;  %v10090_v30 = vpop.f32.mrb[38].mxu1  ;;  %13446 = vmatprep.mubr.bf16.mxu1 %v15348_v26  ;;  %v13074_v11 = vsel %vm13059_vm11, %v13054_v43, %v13056_v32  ;;  %v10050_v7 = vpop.f32.mrb[39].mxu0 }
 0x3d5   : > { %v13058_v63 = vpop.permute.xlu1 %13057  ;;  %v13122_v16 = vsel %vm456_vm1, %v13074_v11, 0  ;;  %v10091_v31 = vpop.f32.mrb[39].mxu1 }
 0x3d6   : > { %v13075_v6 = vsel %vm13059_vm11, %v13056_v32, %v13058_v63 }
 0x3d7   : > { %15155 = vmatmul.mubr.msk.bf16.vlgmr.msra.gmra.mrb[140].mxu0 %vm452_vm2, %v19655_v36  ;;  %15156 = vmatprep.subr.msk.bf16.mxu1 %vm456_vm1, %v13075_v6  ;;  %v13559_v15 = vpop.permute.xlu0 %13558 }
 0x3d8   : > { %13415 = vmatpush1.bf16.msra.mxu1 %v13122_v16  ;;  %13692 = vmatprep.mubr.bf16.mxu0 %v15348_v26  ;;  %v10127_v8 = vpop.f32.mrb[40].mxu0 }
 0x3d9   : > { %v13561_v28 = vpop.permute.xlu1 %13560  ;;  %v19747_v49 = vadd.f32 %v10127_v8, %v19638_v47  ;;  %v10129_v41 = vpop.f32.mrb[41].mxu0 }
 0x3da   : > { %v10168_v58 = vpop.f32.mrb[40].mxu1  ;;  %v13593_v37 = vsel %vm13592_vm12, %v13559_v15, %v13561_v28  ;;  %v19754_v29 = vadd.f32 %v10129_v41, %v19644_v59  ;;  %v10131_v5 = vpop.f32.mrb[42].mxu0 }
 0x3db   : > { %v19751_v51 = vadd.f32 %v10168_v58, %v19641_v17  ;;  %v10170_v0 = vpop.f32.mrb[41].mxu1  ;;  %15157 = vmatmul.mubr.msk.bf16.vlgmr.msra.gmra.mrb[140].mxu1 %vm452_vm2, %v19655_v36  ;;  %v13563_v47 = vpop.permute.xlu0 %13562  ;;  %v13613_v24 = vsel %vm456_vm1, %v13593_v37, 0 }
 0x3dc   : > { %v19759_v60 = vadd.f32 %v10170_v0, %v19650_v44  ;;  %v10172_v20 = vpop.f32.mrb[42].mxu1  ;;  %13733 = vmatprep.mubr.bf16.mxu1 %v15348_v26  ;;  %v13594_v45 = vsel %vm13592_vm12, %v13561_v28, %v13563_v47  ;;  %v10132_v17 = vpop.f32.mrb[43].mxu0  ;;  %v19769_v44 = vld [vmem:[%s20049_s1 + $0x64] sm:$0xf] }
 0x3dd   : > { %v13565_v2 = vpop.permute.xlu1 %13564  ;;  %15160 = vmatprep.subr.msk.bf16.mxu0 %vm456_vm1, %v13594_v45  ;;  %v10173_v59 = vpop.f32.mrb[43].mxu1 }
 0x3de   : > { %v13595_v40 = vsel %vm13592_vm12, %v13563_v47, %v13565_v2  ;;  %13661 = vmatpush1.bf16.msra.mxu0 %v13613_v24 }
 0x3df   : > { %v13567_v36 = vpop.permute.xlu0 %13566  ;;  %v13619_v21 = vsel %vm456_vm1, %v13595_v40, 0 }
 0x3e0   : > { %v13596_v10 = vsel %vm13592_vm12, %v13565_v2, %v13567_v36  ;;  %v10209_v23 = vpop.f32.mrb[44].mxu0 }
 0x3e1   : > { %v13569_v56 = vpop.permute.xlu1 %13568  ;;  %v19774_v46 = vadd.f32 %v10209_v23, %v19669_v25  ;;  %v10211_v9 = vpop.f32.mrb[45].mxu0  ;;  %15161 = vmatmul.mubr.msk.bf16.vlgmr.msra.gmra.mrb[144].mxu0 %vm452_vm2, %v19769_v44  ;;  %15162 = vmatprep.subr.msk.bf16.mxu1 %vm456_vm1, %v13596_v10 }
 0x3e2   : > { %v10250_v57 = vpop.f32.mrb[44].mxu1  ;;  %v13597_v4 = vsel %vm13592_vm12, %v13567_v36, %v13569_v56  ;;  %v19784_v13 = vadd.f32 %v10211_v9, %v19675_v62  ;;  %13702 = vmatpush1.bf16.msra.mxu1 %v13619_v21  ;;  %v10213_v48 = vpop.f32.mrb[46].mxu0  ;;  %13774 = vmatprep.mubr.bf16.mxu0 %v15348_v26 }
 0x3e3   : > { %v19781_v3 = vadd.f32 %v10250_v57, %v19672_v27  ;;  %v10252_v22 = vpop.f32.mrb[45].mxu1  ;;  %v13571_v43 = vpop.permute.xlu0 %13570  ;;  %v13625_v27 = vsel %vm456_vm1, %v13597_v4, 0 }
 0x3e4   : > { %v19788_v25 = vadd.f32 %v10252_v22, %v19681_v33  ;;  %v10214_v50 = vpop.f32.mrb[47].mxu0  ;;  %v13598_v12 = vsel %vm13592_vm12, %v13569_v56, %v13571_v43  ;;  %v10254_v38 = vpop.f32.mrb[46].mxu1 }
 0x3e5   : > { %v13573_v34 = vpop.permute.xlu1 %13572  ;;  %15163 = vmatmul.mubr.msk.bf16.vlgmr.msra.gmra.mrb[144].mxu1 %vm452_vm2, %v19769_v44  ;;  %15164 = vmatprep.subr.msk.bf16.mxu0 %vm456_vm1, %v13598_v12  ;;  %v10255_v62 = vpop.f32.mrb[47].mxu1 }
 0x3e6   : > { %v13599_v61 = vsel %vm13592_vm12, %v13571_v43, %v13573_v34  ;;  %13743 = vmatpush1.bf16.msra.mxu0 %v13625_v27  ;;  %13815 = vmatprep.mubr.bf16.mxu1 %v15348_v26 }
 0x3e7   : > { %v13575_v33 = vpop.permute.xlu0 %13574  ;;  %v13631_v30 = vsel %vm456_vm1, %v13599_v61, 0 }
 0x3e8   : > { %v13600_v18 = vsel %vm13592_vm12, %v13573_v34, %v13575_v33  ;;  %v10496_v32 = vpop.f32.mrb[48].mxu0 }
 0x3e9   : > { %v13577_v55 = vpop.permute.xlu1 %13576  ;;  %v19800_v11 = vadd.f32 %v10496_v32, %v19695_v52  ;;  %v10498_v63 = vpop.f32.mrb[49].mxu0  ;;  %15165 = vmatmul.mubr.msk.bf16.vlgmr.msra.gmra.mrb[148].mxu0 %vm452_vm2, %v19769_v44  ;;  %15166 = vmatprep.subr.msk.bf16.mxu1 %vm456_vm1, %v13600_v18 }
 0x3ea   : > { %v13601_v7 = vsel %vm13592_vm12, %v13575_v33, %v13577_v55  ;;  %v19807_v16 = vadd.f32 %v10498_v63, %v19701_v35  ;;  %13784 = vmatpush1.bf16.msra.mxu1 %v13631_v30  ;;  %v10500_v6 = vpop.f32.mrb[50].mxu0  ;;  %13856 = vmatprep.mubr.bf16.mxu0 %v15348_v26 }
 0x3eb   : > { %v13579_v31 = vpop.permute.xlu0 %13578  ;;  %v10501_v15 = vpop.f32.mrb[51].mxu0  ;;  %v13637_v8 = vsel %vm456_vm1, %v13601_v7, 0 }
 0x3ec   : > { %v13602_v52 = vsel %vm13592_vm12, %v13577_v55, %v13579_v31 }
 0x3ed   : > { %v13581_v28 = vpop.permute.xlu1 %13580  ;;  %v10537_v54 = vpop.f32.mrb[48].mxu1  ;;  %15167 = vmatmul.mubr.msk.bf16.vlgmr.msra.gmra.mrb[148].mxu1 %vm452_vm2, %v19769_v44  ;;  %15168 = vmatprep.subr.msk.bf16.mxu0 %vm456_vm1, %v13602_v52 }
 0x3ee   : > { %v13603_v35 = vsel %vm13592_vm12, %v13579_v31, %v13581_v28  ;;  %v19817_v58 = vadd.f32 %v10537_v54, %v19698_v1  ;;  %v10539_v41 = vpop.f32.mrb[49].mxu1  ;;  %13825 = vmatpush1.bf16.msra.mxu0 %v13637_v8  ;;  %13897 = vmatprep.mubr.bf16.mxu1 %v15348_v26  ;;  %v19877_v31 = vld [vmem:[%s20049_s1 + $0x68] sm:$0xf] }
 0x3ef   : > { %v19821_v37 = vadd.f32 %v10539_v41, %v19707_v19  ;;  %v13583_v0 = vpop.permute.xlu0 %13582  ;;  %v10541_v5 = vpop.f32.mrb[50].mxu1  ;;  %v13643_v2 = vsel %vm456_vm1, %v13603_v35, 0 }
 0x3f0   : > { %v13604_v47 = vsel %vm13592_vm12, %v13581_v28, %v13583_v0  ;;  %v10542_v45 = vpop.f32.mrb[51].mxu1 }
 0x3f1   : > { %v13585_v20 = vpop.permute.xlu1 %13584  ;;  %v10578_v17 = vpop.f32.mrb[52].mxu0  ;;  %15169 = vmatmul.mubr.msk.bf16.vlgmr.msra.gmra.mrb[152].mxu0 %vm452_vm2, %v19769_v44  ;;  %15170 = vmatprep.subr.msk.bf16.mxu1 %vm456_vm1, %v13604_v47 }
 0x3f2   : > { %v13605_v1 = vsel %vm13592_vm12, %v13583_v0, %v13585_v20  ;;  %v19830_v24 = vadd.f32 %v10578_v17, %v19721_v14  ;;  %v10580_v19 = vpop.f32.mrb[53].mxu0  ;;  %13866 = vmatpush1.bf16.msra.mxu1 %v13643_v2  ;;  %13938 = vmatprep.mubr.bf16.mxu0 %v15348_v26 }
 0x3f3   : > { %v19834_v59 = vadd.f32 %v10580_v19, %v19727_v42  ;;  %v13587_v40 = vpop.permute.xlu0 %13586  ;;  %v10582_v36 = vpop.f32.mrb[54].mxu0  ;;  %v13649_v21 = vsel %vm456_vm1, %v13605_v1, 0 }
 0x3f4   : > { %v13606_v10 = vsel %vm13592_vm12, %v13585_v20, %v13587_v40  ;;  %v10583_v23 = vpop.f32.mrb[55].mxu0 }
 0x3f5   : > { %v13589_v56 = vpop.permute.xlu1 %13588  ;;  %v10619_v57 = vpop.f32.mrb[52].mxu1  ;;  %15171 = vmatmul.mubr.msk.bf16.vlgmr.msra.gmra.mrb[152].mxu1 %vm452_vm2, %v19769_v44  ;;  %15172 = vmatprep.subr.msk.bf16.mxu0 %vm456_vm1, %v13606_v10 }
 0x3f6   : > { %v13607_v14 = vsel %vm13592_vm12, %v13587_v40, %v13589_v56  ;;  %v19843_v9 = vadd.f32 %v10619_v57, %v19724_v39  ;;  %v10621_v42 = vpop.f32.mrb[53].mxu1  ;;  %13907 = vmatpush1.bf16.msra.mxu0 %v13649_v21  ;;  %13979 = vmatprep.mubr.bf16.mxu1 %v15348_v26 }
 0x3f7   : > { %v19847_v4 = vadd.f32 %v10621_v42, %v19733_v53  ;;  %v13591_v22 = vpop.permute.xlu0 %13590  ;;  %v10623_v48 = vpop.f32.mrb[54].mxu1  ;;  %v13655_v34 = vsel %vm456_vm1, %v13607_v14, 0 }
 0x3f8   : > { %v13608_v43 = vsel %vm13592_vm12, %v13589_v56, %v13591_v22  ;;  %v10624_v12 = vpop.f32.mrb[55].mxu1 }
 0x3f9   : > { %v14092_v50 = vpop.permute.xlu1 %14091  ;;  %v10660_v38 = vpop.f32.mrb[56].mxu0  ;;  %15173 = vmatmul.mubr.msk.bf16.vlgmr.msra.gmra.mrb[156].mxu0 %vm452_vm2, %v19769_v44  ;;  %15174 = vmatprep.subr.msk.bf16.mxu1 %vm456_vm1, %v13608_v43 }
 0x3fa   : > { %v19855_v39 = vadd.f32 %v10660_v38, %v19747_v49  ;;  %v10662_v53 = vpop.f32.mrb[57].mxu0  ;;  %13948 = vmatpush1.bf16.msra.mxu1 %v13655_v34  ;;  %14225 = vmatprep.mubr.bf16.mxu0 %v15348_v26 }
 0x3fb   : > { %v19859_v27 = vadd.f32 %v10662_v53, %v19754_v29  ;;  %v14094_v62 = vpop.permute.xlu0 %14093  ;;  %v10664_v61 = vpop.f32.mrb[58].mxu0 }
 0x3fc   : > { %v14126_v33 = vsel %vm14125_vm13, %v14092_v50, %v14094_v62  ;;  %v10665_v55 = vpop.f32.mrb[59].mxu0 }
 0x3fd   : > { %v14096_v18 = vpop.permute.xlu1 %14095  ;;  %v14146_v32 = vsel %vm456_vm1, %v14126_v33, 0  ;;  %v10701_v63 = vpop.f32.mrb[56].mxu1  ;;  %15175 = vmatmul.mubr.msk.bf16.vlgmr.msra.gmra.mrb[156].mxu1 %vm452_vm2, %v19769_v44 }
 0x3fe   : > { %v14127_v30 = vsel %vm14125_vm13, %v14094_v62, %v14096_v18  ;;  %v19867_v49 = vadd.f32 %v10701_v63, %v19751_v51  ;;  %v10703_v7 = vpop.f32.mrb[57].mxu1  ;;  %14266 = vmatprep.mubr.bf16.mxu1 %v15348_v26 }
 0x3ff   : > { %15178 = vmatprep.subr.msk.bf16.mxu0 %vm456_vm1, %v14127_v30  ;;  %v19872_v29 = vadd.f32 %v10703_v7, %v19759_v60  ;;  %v14098_v6 = vpop.permute.xlu0 %14097  ;;  %v10705_v15 = vpop.f32.mrb[58].mxu1 }
 0x400   : > { %14194 = vmatpush1.bf16.msra.mxu0 %v14146_v32  ;;  %v14128_v44 = vsel %vm14125_vm13, %v14096_v18, %v14098_v6  ;;  %v10706_v52 = vpop.f32.mrb[59].mxu1 }
 0x401   : > { %v14100_v51 = vpop.permute.xlu1 %14099  ;;  %v14152_v28 = vsel %vm456_vm1, %v14128_v44, 0  ;;  %v10742_v54 = vpop.f32.mrb[60].mxu0 }
 0x402   : > { %v14129_v8 = vsel %vm14125_vm13, %v14098_v6, %v14100_v51  ;;  %v19883_v60 = vadd.f32 %v10742_v54, %v19774_v46  ;;  %v10744_v35 = vpop.f32.mrb[61].mxu0 }
 0x403   : > { %15179 = vmatmul.mubr.msk.bf16.vlgmr.msra.gmra.mrb[160].mxu0 %vm452_vm2, %v19877_v31  ;;  %15180 = vmatprep.subr.msk.bf16.mxu1 %vm456_vm1, %v14129_v8  ;;  %v19889_v41 = vadd.f32 %v10744_v35, %v19784_v13  ;;  %v14102_v0 = vpop.permute.xlu0 %14101  ;;  %v10746_v5 = vpop.f32.mrb[62].mxu0 }
 0x404   : > { %14235 = vmatpush1.bf16.msra.mxu1 %v14152_v28  ;;  %14307 = vmatprep.mubr.bf16.mxu0 %v15348_v26  ;;  %v14130_v47 = vsel %vm14125_vm13, %v14100_v51, %v14102_v0  ;;  %v10747_v45 = vpop.f32.mrb[63].mxu0 }
 0x405   : > { %v14104_v20 = vpop.permute.xlu1 %14103  ;;  %v14158_v46 = vsel %vm456_vm1, %v14130_v47, 0  ;;  %v10783_v17 = vpop.f32.mrb[60].mxu1 }
 0x406   : > { %v14131_v2 = vsel %vm14125_vm13, %v14102_v0, %v14104_v20  ;;  %v19896_v1 = vadd.f32 %v10783_v17, %v19781_v3  ;;  %v10785_v19 = vpop.f32.mrb[61].mxu1 }
 0x407   : > { %15181 = vmatmul.mubr.msk.bf16.vlgmr.msra.gmra.mrb[160].mxu1 %vm452_vm2, %v19877_v31  ;;  %15182 = vmatprep.subr.msk.bf16.mxu0 %vm456_vm1, %v14131_v2  ;;  %v19902_v13 = vadd.f32 %v10785_v19, %v19788_v25  ;;  %v14106_v40 = vpop.permute.xlu0 %14105  ;;  %v10787_v36 = vpop.f32.mrb[62].mxu1 }
 0x408   : > { %14276 = vmatpush1.bf16.msra.mxu0 %v14158_v46  ;;  %14348 = vmatprep.mubr.bf16.mxu1 %v15348_v26  ;;  %v14132_v10 = vsel %vm14125_vm13, %v14104_v20, %v14106_v40  ;;  %v10788_v23 = vpop.f32.mrb[63].mxu1 }
 0x409   : > { %v14108_v56 = vpop.permute.xlu1 %14107  ;;  %v14164_v3 = vsel %vm456_vm1, %v14132_v10, 0 }
 0x40a   : > { %v14133_v21 = vsel %vm14125_vm13, %v14106_v40, %v14108_v56 }
 0x40b   : > { %v11029_v57 = vpop.f32.mrb[64].mxu0  ;;  %15183 = vmatmul.mubr.msk.bf16.vlgmr.msra.gmra.mrb[164].mxu0 %vm452_vm2, %v19877_v31  ;;  %15184 = vmatprep.subr.msk.bf16.mxu1 %vm456_vm1, %v14133_v21  ;;  %v14110_v42 = vpop.permute.xlu0 %14109 }
 0x40c   : > { %v19912_v25 = vadd.f32 %v11029_v57, %v19800_v11  ;;  %v11031_v14 = vpop.f32.mrb[65].mxu0  ;;  %14317 = vmatpush1.bf16.msra.mxu1 %v14164_v3  ;;  %14389 = vmatprep.mubr.bf16.mxu0 %v15348_v26  ;;  %v14134_v48 = vsel %vm14125_vm13, %v14108_v56, %v14110_v42 }
 0x40d   : > { %v19916_v22 = vadd.f32 %v11031_v14, %v19807_v16  ;;  %v14112_v43 = vpop.permute.xlu1 %14111  ;;  %v11033_v50 = vpop.f32.mrb[66].mxu0  ;;  %v14170_v12 = vsel %vm456_vm1, %v14134_v48, 0 }
 0x40e   : > { %v14135_v34 = vsel %vm14125_vm13, %v14110_v42, %v14112_v43  ;;  %v11070_v38 = vpop.f32.mrb[64].mxu1  ;;  %v11034_v53 = vpop.f32.mrb[67].mxu0 }
 0x40f   : > { %v19922_v11 = vadd.f32 %v11070_v38, %v19817_v58  ;;  %v11072_v62 = vpop.f32.mrb[65].mxu1  ;;  %15185 = vmatmul.mubr.msk.bf16.vlgmr.msra.gmra.mrb[164].mxu1 %vm452_vm2, %v19877_v31  ;;  %15186 = vmatprep.subr.msk.bf16.mxu0 %vm456_vm1, %v14135_v34  ;;  %v14114_v61 = vpop.permute.xlu0 %14113 }
 0x410   : > { %v19928_v16 = vadd.f32 %v11072_v62, %v19821_v37  ;;  %14358 = vmatpush1.bf16.msra.mxu0 %v14170_v12  ;;  %v11074_v33 = vpop.f32.mrb[66].mxu1  ;;  %14430 = vmatprep.mubr.bf16.mxu1 %v15348_v26  ;;  %v14136_v18 = vsel %vm14125_vm13, %v14112_v43, %v14114_v61 }
 0x411   : > { %v14116_v55 = vpop.permute.xlu1 %14115  ;;  %v11075_v32 = vpop.f32.mrb[67].mxu1  ;;  %v14176_v58 = vsel %vm456_vm1, %v14136_v18, 0 }
 0x412   : > { %v14137_v30 = vsel %vm14125_vm13, %v14114_v61, %v14116_v55 }
 0x413   : > { %v11111_v63 = vpop.f32.mrb[68].mxu0  ;;  %15187 = vmatmul.mubr.msk.bf16.vlgmr.msra.gmra.mrb[168].mxu0 %vm452_vm2, %v19877_v31  ;;  %15188 = vmatprep.subr.msk.bf16.mxu1 %vm456_vm1, %v14137_v30  ;;  %v14118_v6 = vpop.permute.xlu0 %14117 }
 0x414   : > { %v19938_v37 = vadd.f32 %v11111_v63, %v19830_v24  ;;  %v11113_v7 = vpop.f32.mrb[69].mxu0  ;;  %14399 = vmatpush1.bf16.msra.mxu1 %v14176_v58  ;;  %14471 = vmatprep.mubr.bf16.mxu0 %v15348_v26  ;;  %v14138_v44 = vsel %vm14125_vm13, %v14116_v55, %v14118_v6 }
 0x415   : > { %v19942_v15 = vadd.f32 %v11113_v7, %v19834_v59  ;;  %v14120_v51 = vpop.permute.xlu1 %14119  ;;  %v11115_v52 = vpop.f32.mrb[70].mxu0  ;;  %v14182_v28 = vsel %vm456_vm1, %v14138_v44, 0 }
 0x416   : > { %v14139_v8 = vsel %vm14125_vm13, %v14118_v6, %v14120_v51  ;;  %v11152_v54 = vpop.f32.mrb[68].mxu1  ;;  %v11116_v35 = vpop.f32.mrb[71].mxu0 }
 0x417   : > { %v11329_v24 = vadd.f32 %v11152_v54, %v19843_v9  ;;  %v11154_v0 = vpop.f32.mrb[69].mxu1  ;;  %15189 = vmatmul.mubr.msk.bf16.vlgmr.msra.gmra.mrb[168].mxu1 %vm452_vm2, %v19877_v31  ;;  %15190 = vmatprep.subr.msk.bf16.mxu0 %vm456_vm1, %v14139_v8  ;;  %v14122_v5 = vpop.permute.xlu0 %14121 }
 0x418   : > { %v11330_v59 = vadd.f32 %v11154_v0, %v19847_v4  ;;  %14440 = vmatpush1.bf16.msra.mxu0 %v14182_v28  ;;  %v11156_v47 = vpop.f32.mrb[70].mxu1  ;;  %14512 = vmatprep.mubr.bf16.mxu1 %v15348_v26  ;;  %v14140_v20 = vsel %vm14125_vm13, %v14120_v51, %v14122_v5 }
 0x419   : > { %v14124_v45 = vpop.permute.xlu1 %14123  ;;  %v11157_v46 = vpop.f32.mrb[71].mxu1  ;;  %v14188_v2 = vsel %vm456_vm1, %v14140_v20, 0 }
 0x41a   : > { %v14141_v9 = vsel %vm14125_vm13, %v14122_v5, %v14124_v45 }
 0x41b   : > { %v11193_v17 = vpop.f32.mrb[72].mxu0  ;;  %15191 = vmatmul.mubr.msk.bf16.vlgmr.msra.gmra.mrb[172].mxu0 %vm452_vm2, %v19877_v31  ;;  %15192 = vmatprep.subr.msk.bf16.mxu1 %vm456_vm1, %v14141_v9 }
 0x41c   : > { %v11331_v4 = vadd.f32 %v11193_v17, %v19855_v39  ;;  %v11195_v19 = vpop.f32.mrb[73].mxu0  ;;  %14481 = vmatpush1.bf16.msra.mxu1 %v14188_v2 }
 0x41d   : > { %v11332_v26 = vadd.f32 %v11195_v19, %v19859_v27  ;;  %v11197_v40 = vpop.f32.mrb[74].mxu0 }
 0x41e   : > { %v11234_v36 = vpop.f32.mrb[72].mxu1  ;;  %v11198_v10 = vpop.f32.mrb[75].mxu0 }
 0x41f   : > { %v11333_v56 = vadd.f32 %v11234_v36, %v19867_v49  ;;  %v11236_v23 = vpop.f32.mrb[73].mxu1  ;;  %15193 = vmatmul.mubr.msk.bf16.vlgmr.msra.gmra.mrb[172].mxu1 %vm452_vm2, %v19877_v31 }
 0x420   : > { %v11334_v3 = vadd.f32 %v11236_v23, %v19872_v29  ;;  %v11238_v21 = vpop.f32.mrb[74].mxu1 }
 0x421   : > { %v11239_v57 = vpop.f32.mrb[75].mxu1 }
 0x423   : > { %v11275_v14 = vpop.f32.mrb[76].mxu0 }
 0x424   : > { %v11335_v39 = vadd.f32 %v11275_v14, %v19883_v60  ;;  %v11277_v42 = vpop.f32.mrb[77].mxu0 }
 0x425   : > { %v11336_v48 = vadd.f32 %v11277_v42, %v19889_v41  ;;  %v11279_v27 = vpop.f32.mrb[78].mxu0 }
 0x426   : > { %v11316_v43 = vpop.f32.mrb[76].mxu1  ;;  %v11280_v50 = vpop.f32.mrb[79].mxu0 }
 0x427   : > { %v11337_v12 = vadd.f32 %v11316_v43, %v19896_v1  ;;  %v11318_v49 = vpop.f32.mrb[77].mxu1 }
 0x428   : > { %v11338_v34 = vadd.f32 %v11318_v49, %v19902_v13  ;;  %v11320_v38 = vpop.f32.mrb[78].mxu1 }
 0x429   : > { %v11321_v31 = vpop.f32.mrb[79].mxu1 }
 0x42c   : > { %v11562_v53 = vpop.f32.mrb[80].mxu0 }
 0x42d   : > { %v11856_v29 = vadd.f32 %v11562_v53, %v19912_v25  ;;  %v11564_v62 = vpop.f32.mrb[81].mxu0 }
 0x42e   : > { %v11857_v61 = vadd.f32 %v11564_v62, %v19916_v22  ;;  %v11566_v60 = vpop.f32.mrb[82].mxu0 }
 0x42f   : > { %v11567_v33 = vpop.f32.mrb[83].mxu0 }
 0x431   : > { %v11603_v18 = vpop.f32.mrb[80].mxu1 }
 0x432   : > { %v11858_v41 = vadd.f32 %v11603_v18, %v19922_v11  ;;  %v11605_v55 = vpop.f32.mrb[81].mxu1 }
 0x433   : > { %v11859_v32 = vadd.f32 %v11605_v55, %v19928_v16  ;;  %v11607_v1 = vpop.f32.mrb[82].mxu1 }
 0x434   : > { %v11608_v58 = vpop.f32.mrb[83].mxu1 }
 0x435   : > { %v11644_v30 = vpop.f32.mrb[84].mxu0 }
 0x436   : > { %v11860_v13 = vadd.f32 %v11644_v30, %v19938_v37  ;;  %v11646_v63 = vpop.f32.mrb[85].mxu0 }
 0x437   : > { %v11861_v7 = vadd.f32 %v11646_v63, %v19942_v15  ;;  %v11648_v25 = vpop.f32.mrb[86].mxu0 }
 0x438   : > { %v11649_v6 = vpop.f32.mrb[87].mxu0 }
 0x439   : > { %v11685_v44 = vpop.f32.mrb[84].mxu1 }
 0x43a   : > { %v11862_v22 = vadd.f32 %v11685_v44, %v11329_v24  ;;  %v11687_v51 = vpop.f32.mrb[85].mxu1 }
 0x43b   : > { %v11863_v52 = vadd.f32 %v11687_v51, %v11330_v59  ;;  %v11689_v28 = vpop.f32.mrb[86].mxu1 }
 0x43c   : > { %v11690_v8 = vpop.f32.mrb[87].mxu1 }
 0x43d   : > { %v11726_v11 = vpop.f32.mrb[88].mxu0 }
 0x43e   : > { %v11864_v54 = vadd.f32 %v11726_v11, %v11331_v4  ;;  %v11728_v35 = vpop.f32.mrb[89].mxu0 }
 0x43f   : > { %v11865_v16 = vadd.f32 %v11728_v35, %v11332_v26  ;;  %v11730_v0 = vpop.f32.mrb[90].mxu0 }
 0x440   : > { %v11731_v5 = vpop.f32.mrb[91].mxu0 }
 0x441   : > { %v11767_v47 = vpop.f32.mrb[88].mxu1 }
 0x442   : > { %v11866_v20 = vadd.f32 %v11767_v47, %v11333_v56  ;;  %v11769_v37 = vpop.f32.mrb[89].mxu1 }
 0x443   : > { %v11867_v45 = vadd.f32 %v11769_v37, %v11334_v3  ;;  %v11771_v46 = vpop.f32.mrb[90].mxu1 }
 0x444   : > { %v11772_v15 = vpop.f32.mrb[91].mxu1 }
 0x445   : > { %v11808_v2 = vpop.f32.mrb[92].mxu0 }
 0x446   : > { %v11868_v9 = vadd.f32 %v11808_v2, %v11335_v39  ;;  %v11810_v17 = vpop.f32.mrb[93].mxu0 }
 0x447   : > { %v11869_v24 = vadd.f32 %v11810_v17, %v11336_v48  ;;  %v11812_v19 = vpop.f32.mrb[94].mxu0 }
 0x448   : > { %v11813_v59 = vpop.f32.mrb[95].mxu0 }
 0x449   : > { %v11849_v40 = vpop.f32.mrb[92].mxu1 }
 0x44a   : > { %v11870_v36 = vadd.f32 %v11849_v40, %v11337_v12  ;;  %v11851_v10 = vpop.f32.mrb[93].mxu1 }
 0x44b   : > { %v11871_v4 = vadd.f32 %v11851_v10, %v11338_v34  ;;  %v11853_v23 = vpop.f32.mrb[94].mxu1 }
 0x44c   : > { %v11854_v26 = vpop.f32.mrb[95].mxu1 }
 0x44f   : > { %v12095_v21 = vpop.f32.mrb[96].mxu0 }
 0x450   : > { %v12389_v57 = vadd.f32 %v12095_v21, %v11856_v29  ;;  %v12097_v14 = vpop.f32.mrb[97].mxu0 }
 0x451   : > { %v12390_v56 = vadd.f32 %v12097_v14, %v11857_v61  ;;  %v12099_v42 = vpop.f32.mrb[98].mxu0 }
 0x452   : > { %v12136_v3 = vpop.f32.mrb[96].mxu1  ;;  %v12100_v27 = vpop.f32.mrb[99].mxu0 }
 0x453   : > { %v12391_v43 = vadd.f32 %v12136_v3, %v11858_v41  ;;  %v12138_v50 = vpop.f32.mrb[97].mxu1 }
 0x454   : > { %v12392_v39 = vadd.f32 %v12138_v50, %v11859_v32  ;;  %v12140_v49 = vpop.f32.mrb[98].mxu1 }
 0x455   : > { %v12141_v48 = vpop.f32.mrb[99].mxu1 }
 0x457   : > { %v12177_v38 = vpop.f32.mrb[100].mxu0 }
 0x458   : > { %v12393_v31 = vadd.f32 %v12177_v38, %v11860_v13  ;;  %v12179_v53 = vpop.f32.mrb[101].mxu0 }
 0x459   : > { %v12394_v12 = vadd.f32 %v12179_v53, %v11861_v7  ;;  %v12181_v62 = vpop.f32.mrb[102].mxu0 }
 0x45a   : > { %v12218_v34 = vpop.f32.mrb[100].mxu1  ;;  %v12182_v60 = vpop.f32.mrb[103].mxu0 }
 0x45b   : > { %v12395_v33 = vadd.f32 %v12218_v34, %v11862_v22  ;;  %v12220_v18 = vpop.f32.mrb[101].mxu1 }
 0x45c   : > { %v12396_v29 = vadd.f32 %v12220_v18, %v11863_v52  ;;  %v12222_v55 = vpop.f32.mrb[102].mxu1 }
 0x45d   : > { %v12223_v61 = vpop.f32.mrb[103].mxu1 }
 0x45f   : > { %v12259_v1 = vpop.f32.mrb[104].mxu0 }
 0x460   : > { %v12397_v58 = vadd.f32 %v12259_v1, %v11864_v54  ;;  %v12261_v30 = vpop.f32.mrb[105].mxu0 }
 0x461   : > { %v12398_v41 = vadd.f32 %v12261_v30, %v11865_v16  ;;  %v12263_v63 = vpop.f32.mrb[106].mxu0 }
 0x462   : > { %v12300_v32 = vpop.f32.mrb[104].mxu1  ;;  %v12264_v25 = vpop.f32.mrb[107].mxu0 }
 0x463   : > { %v12399_v6 = vadd.f32 %v12300_v32, %v11866_v20  ;;  %v12302_v44 = vpop.f32.mrb[105].mxu1 }
 0x464   : > { %v12400_v13 = vadd.f32 %v12302_v44, %v11867_v45  ;;  %v12304_v51 = vpop.f32.mrb[106].mxu1 }
 0x465   : > { %v12305_v7 = vpop.f32.mrb[107].mxu1 }
 0x467   : > { %v12341_v28 = vpop.f32.mrb[108].mxu0 }
 0x468   : > { %v12401_v8 = vadd.f32 %v12341_v28, %v11868_v9  ;;  %v12343_v11 = vpop.f32.mrb[109].mxu0 }
 0x469   : > { %v12402_v22 = vadd.f32 %v12343_v11, %v11869_v24  ;;  %v12345_v35 = vpop.f32.mrb[110].mxu0 }
 0x46a   : > { %v12382_v52 = vpop.f32.mrb[108].mxu1  ;;  %v12346_v0 = vpop.f32.mrb[111].mxu0 }
 0x46b   : > { %v12403_v5 = vadd.f32 %v12382_v52, %v11870_v36  ;;  %v12384_v47 = vpop.f32.mrb[109].mxu1 }
 0x46c   : > { %v12404_v54 = vadd.f32 %v12384_v47, %v11871_v4  ;;  %v12386_v37 = vpop.f32.mrb[110].mxu1 }
 0x46d   : > { %v12387_v16 = vpop.f32.mrb[111].mxu1 }
 0x470   : > { %v12628_v46 = vpop.f32.mrb[112].mxu0 }
 0x471   : > { %v12922_v15 = vadd.f32 %v12628_v46, %v12389_v57  ;;  %v12630_v2 = vpop.f32.mrb[113].mxu0 }
 0x472   : > { %v12923_v20 = vadd.f32 %v12630_v2, %v12390_v56  ;;  %v12632_v17 = vpop.f32.mrb[114].mxu0 }
 0x473   : > { %v12633_v45 = vpop.f32.mrb[115].mxu0 }
 0x475   : > { %v12669_v19 = vpop.f32.mrb[112].mxu1 }
 0x476   : > { %v12924_v59 = vadd.f32 %v12669_v19, %v12391_v43  ;;  %v12671_v40 = vpop.f32.mrb[113].mxu1 }
 0x477   : > { %v12925_v9 = vadd.f32 %v12671_v40, %v12392_v39  ;;  %v12673_v10 = vpop.f32.mrb[114].mxu1 }
 0x478   : > { %v12674_v24 = vpop.f32.mrb[115].mxu1 }
 0x479   : > { %v12710_v23 = vpop.f32.mrb[116].mxu0 }
 0x47a   : > { %v12926_v26 = vadd.f32 %v12710_v23, %v12393_v31  ;;  %v12712_v21 = vpop.f32.mrb[117].mxu0 }
 0x47b   : > { %v12927_v36 = vadd.f32 %v12712_v21, %v12394_v12  ;;  %v12714_v14 = vpop.f32.mrb[118].mxu0 }
 0x47c   : > { %v12715_v4 = vpop.f32.mrb[119].mxu0 }
 0x47d   : > { %v12751_v42 = vpop.f32.mrb[116].mxu1 }
 0x47e   : > { %v12928_v3 = vadd.f32 %v12751_v42, %v12395_v33  ;;  %v12753_v27 = vpop.f32.mrb[117].mxu1 }
 0x47f   : > { %v12929_v57 = vadd.f32 %v12753_v27, %v12396_v29  ;;  %v12755_v50 = vpop.f32.mrb[118].mxu1 }
 0x480   : > { %v12756_v56 = vpop.f32.mrb[119].mxu1 }
 0x481   : > { %v12792_v49 = vpop.f32.mrb[120].mxu0 }
 0x482   : > { %v12930_v48 = vadd.f32 %v12792_v49, %v12397_v58  ;;  %v12794_v38 = vpop.f32.mrb[121].mxu0 }
 0x483   : > { %v12931_v43 = vadd.f32 %v12794_v38, %v12398_v41  ;;  %v12796_v53 = vpop.f32.mrb[122].mxu0 }
 0x484   : > { %v12797_v39 = vpop.f32.mrb[123].mxu0 }
 0x485   : > { %v12833_v62 = vpop.f32.mrb[120].mxu1 }
 0x486   : > { %v12932_v34 = vadd.f32 %v12833_v62, %v12399_v6  ;;  %v12835_v60 = vpop.f32.mrb[121].mxu1 }
 0x487   : > { %v12933_v31 = vadd.f32 %v12835_v60, %v12400_v13  ;;  %v12837_v18 = vpop.f32.mrb[122].mxu1 }
 0x488   : > { %v12838_v12 = vpop.f32.mrb[123].mxu1 }
 0x489   : > { %v12874_v55 = vpop.f32.mrb[124].mxu0 }
 0x48a   : > { %v12934_v61 = vadd.f32 %v12874_v55, %v12401_v8  ;;  %v12876_v1 = vpop.f32.mrb[125].mxu0 }
 0x48b   : > { %v12935_v33 = vadd.f32 %v12876_v1, %v12402_v22  ;;  %v12878_v30 = vpop.f32.mrb[126].mxu0 }
 0x48c   : > { %v12879_v29 = vpop.f32.mrb[127].mxu0 }
 0x48d   : > { %v12915_v63 = vpop.f32.mrb[124].mxu1 }
 0x48e   : > { %v12936_v32 = vadd.f32 %v12915_v63, %v12403_v5  ;;  %v12917_v25 = vpop.f32.mrb[125].mxu1 }
 0x48f   : > { %v12937_v58 = vadd.f32 %v12917_v25, %v12404_v54  ;;  %v12919_v44 = vpop.f32.mrb[126].mxu1 }
 0x490   : > { %v12920_v41 = vpop.f32.mrb[127].mxu1 }
 0x492   : > { %v13161_v51 = vpop.f32.mrb[128].mxu0 }
 0x493   : > { %v13455_v7 = vadd.f32 %v13161_v51, %v12922_v15  ;;  %v13163_v28 = vpop.f32.mrb[129].mxu0 }
 0x494   : > { %v13456_v6 = vadd.f32 %v13163_v28, %v12923_v20  ;;  %v13165_v11 = vpop.f32.mrb[130].mxu0 }
 0x495   : > { %v13166_v13 = vpop.f32.mrb[131].mxu0 }
 0x496   : > { %v13202_v35 = vpop.f32.mrb[128].mxu1 }
 0x497   : > { %v13457_v52 = vadd.f32 %v13202_v35, %v12924_v59  ;;  %v13204_v0 = vpop.f32.mrb[129].mxu1 }
 0x498   : > { %v13458_v8 = vadd.f32 %v13204_v0, %v12925_v9  ;;  %v13206_v47 = vpop.f32.mrb[130].mxu1 }
 0x499   : > { %v13207_v22 = vpop.f32.mrb[131].mxu1 }
 0x49a   : > { %v13243_v37 = vpop.f32.mrb[132].mxu0 }
 0x49b   : > { %v13459_v16 = vadd.f32 %v13243_v37, %v12926_v26  ;;  %v13245_v46 = vpop.f32.mrb[133].mxu0 }
 0x49c   : > { %v13460_v5 = vadd.f32 %v13245_v46, %v12927_v36  ;;  %v13247_v2 = vpop.f32.mrb[134].mxu0 }
 0x49d   : > { %v13248_v54 = vpop.f32.mrb[135].mxu0 }
 0x49e   : > { %v13284_v17 = vpop.f32.mrb[132].mxu1 }
 0x49f   : > { %v13461_v45 = vadd.f32 %v13284_v17, %v12928_v3  ;;  %v13286_v19 = vpop.f32.mrb[133].mxu1 }
 0x4a0   : > { %v13462_v15 = vadd.f32 %v13286_v19, %v12929_v57  ;;  %v13288_v40 = vpop.f32.mrb[134].mxu1 }
 0x4a1   : > { %v13289_v20 = vpop.f32.mrb[135].mxu1 }
 0x4a2   : > { %v13325_v10 = vpop.f32.mrb[136].mxu0 }
 0x4a3   : > { %v13463_v24 = vadd.f32 %v13325_v10, %v12930_v48  ;;  %v13327_v23 = vpop.f32.mrb[137].mxu0 }
 0x4a4   : > { %v13464_v59 = vadd.f32 %v13327_v23, %v12931_v43  ;;  %v13329_v21 = vpop.f32.mrb[138].mxu0 }
 0x4a5   : > { %v13330_v9 = vpop.f32.mrb[139].mxu0 }
 0x4a6   : > { %v13366_v14 = vpop.f32.mrb[136].mxu1 }
 0x4a7   : > { %v13465_v4 = vadd.f32 %v13366_v14, %v12932_v34  ;;  %v13368_v42 = vpop.f32.mrb[137].mxu1 }
 0x4a8   : > { %v13466_v26 = vadd.f32 %v13368_v42, %v12933_v31  ;;  %v13370_v27 = vpop.f32.mrb[138].mxu1 }
 0x4a9   : > { %v13371_v36 = vpop.f32.mrb[139].mxu1 }
 0x4aa   : > { %v13407_v50 = vpop.f32.mrb[140].mxu0 }
 0x4ab   : > { %v13467_v56 = vadd.f32 %v13407_v50, %v12934_v61  ;;  %v13409_v49 = vpop.f32.mrb[141].mxu0 }
 0x4ac   : > { %v13468_v3 = vadd.f32 %v13409_v49, %v12935_v33  ;;  %v13411_v38 = vpop.f32.mrb[142].mxu0 }
 0x4ad   : > { %v13412_v57 = vpop.f32.mrb[143].mxu0 }
 0x4ae   : > { %v13448_v53 = vpop.f32.mrb[140].mxu1 }
 0x4af   : > { %v13469_v39 = vadd.f32 %v13448_v53, %v12936_v32  ;;  %v13450_v62 = vpop.f32.mrb[141].mxu1 }
 0x4b0   : > { %v13470_v48 = vadd.f32 %v13450_v62, %v12937_v58  ;;  %v13452_v60 = vpop.f32.mrb[142].mxu1 }
 0x4b1   : > { %v13453_v43 = vpop.f32.mrb[143].mxu1 }
 0x4b4   : > { %v13694_v18 = vpop.f32.mrb[144].mxu0 }
 0x4b5   : > { %v13988_v12 = vadd.f32 %v13694_v18, %v13455_v7  ;;  %v13696_v55 = vpop.f32.mrb[145].mxu0 }
 0x4b6   : > { %v13989_v34 = vadd.f32 %v13696_v55, %v13456_v6  ;;  %v13698_v1 = vpop.f32.mrb[146].mxu0 }
 0x4b7   : > { %v13699_v31 = vpop.f32.mrb[147].mxu0 }
 0x4b8   : > { %v13735_v30 = vpop.f32.mrb[144].mxu1 }
 0x4b9   : > { %v13990_v29 = vadd.f32 %v13735_v30, %v13457_v52  ;;  %v13737_v63 = vpop.f32.mrb[145].mxu1 }
 0x4ba   : > { %v13991_v61 = vadd.f32 %v13737_v63, %v13458_v8  ;;  %v13739_v25 = vpop.f32.mrb[146].mxu1 }
 0x4bb   : > { %v13740_v33 = vpop.f32.mrb[147].mxu1 }
 0x4bc   : > { %v13776_v44 = vpop.f32.mrb[148].mxu0 }
 0x4bd   : > { %v13992_v41 = vadd.f32 %v13776_v44, %v13459_v16  ;;  %v13778_v51 = vpop.f32.mrb[149].mxu0 }
 0x4be   : > { %v13993_v32 = vadd.f32 %v13778_v51, %v13460_v5  ;;  %v13780_v28 = vpop.f32.mrb[150].mxu0 }
 0x4bf   : > { %v13781_v58 = vpop.f32.mrb[151].mxu0 }
 0x4c0   : > { %v13817_v11 = vpop.f32.mrb[148].mxu1 }
 0x4c1   : > { %v13994_v13 = vadd.f32 %v13817_v11, %v13461_v45  ;;  %v13819_v35 = vpop.f32.mrb[149].mxu1 }
 0x4c2   : > { %v13995_v7 = vadd.f32 %v13819_v35, %v13462_v15  ;;  %v13821_v0 = vpop.f32.mrb[150].mxu1 }
 0x4c3   : > { %v13822_v6 = vpop.f32.mrb[151].mxu1 }
 0x4c4   : > { %v13858_v47 = vpop.f32.mrb[152].mxu0 }
 0x4c5   : > { %v19975_v22 = vadd.f32 %v13858_v47, %v13463_v24  ;;  %v13860_v52 = vpop.f32.mrb[153].mxu0 }
 0x4c6   : > { %v19977_v37 = vadd.f32 %v13860_v52, %v13464_v59  ;;  %v13862_v8 = vpop.f32.mrb[154].mxu0 }
 0x4c7   : > { %v13863_v46 = vpop.f32.mrb[155].mxu0 }
 0x4c8   : > { %v13899_v2 = vpop.f32.mrb[152].mxu1 }
 0x4c9   : > { %v19979_v16 = vadd.f32 %v13899_v2, %v13465_v4  ;;  %v13901_v5 = vpop.f32.mrb[153].mxu1 }
 0x4ca   : > { %v19981_v54 = vadd.f32 %v13901_v5, %v13466_v26  ;;  %v13903_v17 = vpop.f32.mrb[154].mxu1  ;;  %v19991_v26 = vpop.permute.xlu0 %14540 }
 0x4cb   : > { %v13904_v45 = vpop.f32.mrb[155].mxu1 }
 0x4cc   : > { %v13940_v19 = vpop.f32.mrb[156].mxu0 }
 0x4cd   : > { %v19983_v15 = vadd.f32 %v13940_v19, %v13467_v56  ;;  %v13942_v40 = vpop.f32.mrb[157].mxu0 }
 0x4ce   : > { %v19985_v20 = vadd.f32 %v13942_v40, %v13468_v3  ;;  %v13944_v10 = vpop.f32.mrb[158].mxu0 }
 0x4cf   : > { %v13945_v24 = vpop.f32.mrb[159].mxu0 }
 0x4d0   : > { %v13981_v23 = vpop.f32.mrb[156].mxu1 }
 0x4d1   : > { %v19987_v59 = vadd.f32 %v13981_v23, %v13469_v39  ;;  %v13983_v21 = vpop.f32.mrb[157].mxu1 }
 0x4d2   : > { %v19989_v9 = vadd.f32 %v13983_v21, %v13470_v48  ;;  %v13985_v14 = vpop.f32.mrb[158].mxu1 }
 0x4d3   : > { %v13986_v4 = vpop.f32.mrb[159].mxu1 }
 0x4d6   : > { %v14227_v42 = vpop.f32.mrb[160].mxu0 }
 0x4d7   : > { %v14521_v27 = vadd.f32 %v14227_v42, %v13988_v12  ;;  %v14229_v36 = vpop.f32.mrb[161].mxu0 }
 0x4d8   : > { %v14522_v50 = vadd.f32 %v14229_v36, %v13989_v34  ;;  %v14231_v56 = vpop.f32.mrb[162].mxu0 }
 0x4d9   : > { %v14543_v49 = vadd.f32 %v19991_v26, %v14521_v27  ;;  %v14232_v3 = vpop.f32.mrb[163].mxu0 }
 0x4da   : > { %v14544_v38 = vadd.f32 %v19991_v26, %v14522_v50  ;;  %v14268_v57 = vpop.f32.mrb[160].mxu1 }
 0x4db   : > { %14559 = vst [vmem:[%s15436_s26] sm:$0xff] %v14543_v49  ;;  %v14523_v53 = vadd.f32 %v14268_v57, %v13990_v29  ;;  %v14270_v39 = vpop.f32.mrb[161].mxu1 }
 0x4dc   : > { %14560 = vst [vmem:[%s15436_s26 + $0x8] sm:$0xff] %v14544_v38  ;;  %v14524_v62 = vadd.f32 %v14270_v39, %v13991_v61  ;;  %v14272_v48 = vpop.f32.mrb[162].mxu1 }
 0x4dd   : > { %v14545_v60 = vadd.f32 %v19991_v26, %v14523_v53  ;;  %v14273_v43 = vpop.f32.mrb[163].mxu1 }
 0x4de   : > { %v14546_v18 = vadd.f32 %v19991_v26, %v14524_v62  ;;  %v14309_v12 = vpop.f32.mrb[164].mxu0 }
 0x4df   : > { %14561 = vst [vmem:[%s15436_s26 + $0x10] sm:$0xff] %v14545_v60  ;;  %v14525_v55 = vadd.f32 %v14309_v12, %v13992_v41  ;;  %v14311_v34 = vpop.f32.mrb[165].mxu0 }
 0x4e0   : > { %14562 = vst [vmem:[%s15436_s26 + $0x18] sm:$0xff] %v14546_v18  ;;  %v14526_v1 = vadd.f32 %v14311_v34, %v13993_v32  ;;  %v14313_v31 = vpop.f32.mrb[166].mxu0 }
 0x4e1   : > { %v14547_v30 = vadd.f32 %v19991_v26, %v14525_v55  ;;  %v14314_v29 = vpop.f32.mrb[167].mxu0 }
 0x4e2   : > { %v14548_v63 = vadd.f32 %v19991_v26, %v14526_v1  ;;  %v14350_v61 = vpop.f32.mrb[164].mxu1 }
 0x4e3   : > { %14563 = vst [vmem:[%s15436_s26 + $0x20] sm:$0xff] %v14547_v30  ;;  %v14527_v25 = vadd.f32 %v14350_v61, %v13994_v13  ;;  %v14352_v33 = vpop.f32.mrb[165].mxu1 }
 0x4e4   : > { %14564 = vst [vmem:[%s15436_s26 + $0x28] sm:$0xff] %v14548_v63  ;;  %v14528_v44 = vadd.f32 %v14352_v33, %v13995_v7  ;;  %v14354_v51 = vpop.f32.mrb[166].mxu1 }
 0x4e5   : > { %v14549_v41 = vadd.f32 %v19991_v26, %v14527_v25  ;;  %v14355_v28 = vpop.f32.mrb[167].mxu1 }
 0x4e6   : > { %v14550_v32 = vadd.f32 %v19991_v26, %v14528_v44  ;;  %v14391_v58 = vpop.f32.mrb[168].mxu0 }
 0x4e7   : > { %14565 = vst [vmem:[%s15436_s26 + $0x30] sm:$0xff] %v14549_v41  ;;  %v14529_v11 = vadd.f32 %v14391_v58, %v19975_v22  ;;  %v14393_v35 = vpop.f32.mrb[169].mxu0 }
 0x4e8   : > { %14566 = vst [vmem:[%s15436_s26 + $0x38] sm:$0xff] %v14550_v32  ;;  %v14530_v0 = vadd.f32 %v14393_v35, %v19977_v37  ;;  %v14395_v13 = vpop.f32.mrb[170].mxu0 }
 0x4e9   : > { %v14551_v7 = vadd.f32 %v19991_v26, %v14529_v11  ;;  %v14396_v6 = vpop.f32.mrb[171].mxu0 }
 0x4ea   : > { %v14552_v47 = vadd.f32 %v19991_v26, %v14530_v0  ;;  %v14432_v52 = vpop.f32.mrb[168].mxu1 }
 0x4eb   : > { %14567 = vst [vmem:[%s15436_s26 + $0x40] sm:$0xff] %v14551_v7  ;;  %v14531_v8 = vadd.f32 %v14432_v52, %v19979_v16  ;;  %v14434_v46 = vpop.f32.mrb[169].mxu1 }
 0x4ec   : > { %14568 = vst [vmem:[%s15436_s26 + $0x48] sm:$0xff] %v14552_v47  ;;  %v14532_v22 = vadd.f32 %v14434_v46, %v19981_v54  ;;  %v14436_v2 = vpop.f32.mrb[170].mxu1 }
 0x4ed   : > { %v14553_v37 = vadd.f32 %v19991_v26, %v14531_v8  ;;  %v14437_v5 = vpop.f32.mrb[171].mxu1 }
 0x4ee   : > { %v14554_v17 = vadd.f32 %v19991_v26, %v14532_v22  ;;  %v14473_v45 = vpop.f32.mrb[172].mxu0 }
 0x4ef   : > { %14569 = vst [vmem:[%s15436_s26 + $0x50] sm:$0xff] %v14553_v37  ;;  %v14533_v19 = vadd.f32 %v14473_v45, %v19983_v15  ;;  %v14475_v40 = vpop.f32.mrb[173].mxu0 }
 0x4f0   : > { %14570 = vst [vmem:[%s15436_s26 + $0x58] sm:$0xff] %v14554_v17  ;;  %v14534_v16 = vadd.f32 %v14475_v40, %v19985_v20  ;;  %v14477_v10 = vpop.f32.mrb[174].mxu0 }
 0x4f1   : > { %v14555_v54 = vadd.f32 %v19991_v26, %v14533_v19  ;;  %v14478_v24 = vpop.f32.mrb[175].mxu0 }
 0x4f2   : > { %v14556_v23 = vadd.f32 %v19991_v26, %v14534_v16  ;;  %v14514_v21 = vpop.f32.mrb[172].mxu1 }
 0x4f3   : > { %14571 = vst [vmem:[%s15436_s26 + $0x60] sm:$0xff] %v14555_v54  ;;  %v14535_v14 = vadd.f32 %v14514_v21, %v19987_v59  ;;  %v14516_v4 = vpop.f32.mrb[173].mxu1 }
 0x4f4   : > { %14572 = vst [vmem:[%s15436_s26 + $0x68] sm:$0xff] %v14556_v23  ;;  %v14536_v15 = vadd.f32 %v14516_v4, %v19989_v9  ;;  %v14518_v42 = vpop.f32.mrb[174].mxu1 }
 0x4f5   : > { %v14557_v27 = vadd.f32 %v19991_v26, %v14535_v14  ;;  %v14519_v36 = vpop.f32.mrb[175].mxu1 }
 0x4f6   : > { %v14558_v20 = vadd.f32 %v19991_v26, %v14536_v15 }
 0x4f7   : > { %14573 = vst [vmem:[%s15436_s26 + $0x70] sm:$0xff] %v14557_v27 }
 0x4f8   : > { %14574 = vst [vmem:[%s15436_s26 + $0x78] sm:$0xff] %v14558_v20 }
 0x4f9 PF: > { %s13_s16 = sadd.s32 1, %s15344_s16   ;;  %s20052_s12 = smov %s15336_s14 }
 0x4fa   : > { %p10_p8 = scmp.ge.s32.totalorder %s13_s16, 8   ;;  %s20053_s13 = smov %s15340_s15 }
 0x4fb   : > { %s20054_s14 = smov %s20057_s17  ;;  %s20055_s15 = smov %s20061_s18 }
 0x4fc   :  { %12 = sbr.rel (!%p10_p8) target bundleno = 3 (0x3), region = 200 }
 0x503   :  { %14603 = vsyncmov [#allocation3] }
 0x506   :  { %s14604_s26 = vpop.sfrf %14603 }
 0x507   :  { %p15196_p9 = scmp.ne.s32.totalorder %s14604_s26, 0 }
 0x509   :  { %14608 = shalt.err (%p15196_p9)  }
 0x50a   :  { %14610 = vsyncmov [#allocation3 + $0x1] }
 0x50d   :  { %s14611_s21 = vpop.sfrf %14610 }
 0x50e   :  { %p15197_p10 = scmp.ne.s32.totalorder %s14611_s21, 0 }
 0x510   :  { %14615 = shalt.err (%p15197_p10)  }

</bundles_post_ra>
